<compile_context>
chip_gen: v6e
topology: v6e:2x2x1
jax: 0.10.0
libtpu: 0.0.40
codegen_flags: <defaults>
</compile_context>

<pallas_src>
import math

import jax
import jax.numpy as jnp
from jax import lax
from jax.experimental import pallas as pl
from jax.experimental.pallas import tpu as pltpu

# ---- per-sample model dimensions (match the module's config) ----
B = 2            # batch per problem
S = 8            # sequence length
H = 32           # HIDDEN_SIZE
NH = 4           # MULTI_HEAD
DH = H // NH     # HIDDEN_SIZE_HEAD
FF = 64          # FF_SIZE
EPS = 1e-6
NEG = -1e9

# ---- batching / tiling ----
NSAMP = 32               # independent (B=2) encoder problems per call
NSEQ = NSAMP * B         # 64 independent sequences
SPB = 16                 # sequences per grid step
R = SPB * S              # 128 rows per step -> lane-dense transposed output
NUM_STEPS = NSEQ // SPB  # grid extent
GS = SPB * NH * S        # 512 packed (head, sequence) score columns per step

# packed-weight lane offsets (every chunk starts at a 128-aligned lane)
W_QKV, W_MERGE, W_FFN1, W_FFN2, W_LANES = 0, 128, 256, 384, 512


def _layer_norm(x, gamma, beta):
    # openvqa LayerNorm: unbiased std (ddof=1), eps added to std.
    mean = jnp.mean(x, axis=-1, keepdims=True)
    d = x - mean
    var = jnp.sum(d * d, axis=-1, keepdims=True) / (x.shape[-1] - 1)
    return gamma * d / (jnp.sqrt(var) + EPS) + beta


def encoder_kernel(y_ref, km_ref, w_ref, vec_ref, cross_ref, hmask_ref,
                   bones_ref, eye_ref, out_ref):
    y = y_ref[...]               # (R, H): 16 sequences stacked along sublanes
    km = km_ref[0:1, :]          # (1, GS): additive key mask for this step
    cross = cross_ref[...]       # (R, GS): -1e9 on cross-sequence score blocks

    # row-packed, lane-0-aligned biases / LayerNorm params
    bqkv = vec_ref[0:1, 0:3 * H]
    bm   = vec_ref[1:2, 0:H]
    b1   = vec_ref[2:3, 0:FF]
    b2   = vec_ref[3:4, 0:H]
    g1   = vec_ref[4:5, 0:H]
    be1  = vec_ref[5:6, 0:H]
    g2   = vec_ref[6:7, 0:H]
    be2  = vec_ref[7:8, 0:H]

    # --- fused QKV projection: one MXU matmul (R,32)@(32,96) ---
    qkv = jnp.dot(y, w_ref[:, W_QKV:W_QKV + 3 * H],
                  preferred_element_type=jnp.float32) + bqkv
    q = qkv[:, 0:H] * (1.0 / math.sqrt(DH))   # fold 1/sqrt(d_k) into q
    k = qkv[:, H:2 * H]
    v = qkv[:, 2 * H:3 * H]

    # --- block-diagonal (head, sequence) packing of K and V: (GS, H) ---
    # packed row c = h*R + seq_local*S + j keeps only head h's DH channels.
    hmask = hmask_ref[...]
    k_bd = jnp.tile(k, (NH, 1)) * hmask
    v_bd = jnp.tile(v, (NH, 1)) * hmask

    # all heads x all sequences scores in ONE matmul: (R,32) x (GS,32)^T
    scores = lax.dot_general(q, k_bd, (((1,), (1,)), ((), ())),
                             preferred_element_type=jnp.float32)      # (R, GS)
    scores = scores + cross + km     # key mask + cross-sequence block mask

    # per-block softmax; common row-max shift keeps each block's softmax exact.
    m = jnp.max(scores, axis=-1, keepdims=True)
    ex = jnp.exp(scores - m)         # masked entries underflow to exactly 0
    # per-block denominator broadcast via one MXU matmul (keeps it off the XLU)
    denom = jnp.dot(ex, bones_ref[...], preferred_element_type=jnp.float32)
    denom = jnp.maximum(denom, 1e-30)    # cross/fully-masked blocks sum to 0
    p = ex / denom

    # attention * V: heads land already concatenated: (R,GS)@(GS,32) -> (R,32)
    atted = jnp.dot(p, v_bd, preferred_element_type=jnp.float32)

    # --- merge projection, residual, LayerNorm1 ---
    atted = jnp.dot(atted, w_ref[:, W_MERGE:W_MERGE + H],
                    preferred_element_type=jnp.float32) + bm
    x1 = _layer_norm(y + atted, g1, be1)

    # --- FFN: Linear -> ReLU -> Linear, residual, LayerNorm2 ---
    h1 = jnp.dot(x1, w_ref[:, W_FFN1:W_FFN1 + FF],
                 preferred_element_type=jnp.float32) + b1
    h1 = jnp.maximum(h1, 0.0)
    # second FFN weight stored transposed (H, FF); contract last dims.
    f = lax.dot_general(h1, w_ref[:, W_FFN2:W_FFN2 + FF],
                        (((1,), (1,)), ((), ())),
                        preferred_element_type=jnp.float32) + b2
    x2 = _layer_norm(x1 + f, g2, be2)                                  # (R, H)

    # lane-dense store: write x2^T (32,128) -> unmasked full-lane vst.
    # transpose on the idle MXU: (eye @ x2^T) via identity contraction.
    x2_t = lax.dot_general(eye_ref[...], x2, (((1,), (1,)), ((), ())),
                           preferred_element_type=jnp.float32)         # (H, R)
    out_ref[...] = x2_t


# ----------------------------- init-time packing -----------------------------

def pack_weights(params):
    (wq, bq, wk, bk, wv, bv, wm, bm, w1, b1, w2, b2, g1, be1, g2, be2) = params
    w_all = jnp.zeros((H, W_LANES), jnp.float32)
    w_all = w_all.at[:, W_QKV:W_QKV + 3 * H].set(
        jnp.concatenate([wq, wk, wv], axis=1))
    w_all = w_all.at[:, W_MERGE:W_MERGE + H].set(wm)
    w_all = w_all.at[:, W_FFN1:W_FFN1 + FF].set(w1)
    w_all = w_all.at[:, W_FFN2:W_FFN2 + FF].set(w2.T)

    vec = jnp.zeros((8, 128), jnp.float32)
    vec = vec.at[0, 0:3 * H].set(jnp.concatenate([bq, bk, bv], axis=1)[0])
    vec = vec.at[1, 0:H].set(bm[0])
    vec = vec.at[2, 0:FF].set(b1[0])
    vec = vec.at[3, 0:H].set(b2[0])
    vec = vec.at[4, 0:H].set(g1[0])
    vec = vec.at[5, 0:H].set(be1[0])
    vec = vec.at[6, 0:H].set(g2[0])
    vec = vec.at[7, 0:H].set(be2[0])
    return w_all, vec


def build_constants():
    # cross-sequence additive mask (R, GS): -1e9 where query row's sequence
    # differs from the packed column's sequence.
    row_seq = jnp.arange(R, dtype=jnp.int32) // S
    col_seq = (jnp.arange(GS, dtype=jnp.int32) % R) // S
    cross = jnp.where(row_seq[:, None] != col_seq[None, :],
                      jnp.float32(NEG), jnp.float32(0.0))
    # head packing selector (GS, H)
    row_head = jnp.arange(GS, dtype=jnp.int32) // R
    col_head = jnp.arange(H, dtype=jnp.int32) // DH
    hmask = (row_head[:, None] == col_head[None, :]).astype(jnp.float32)
    # per-block ones (GS, GS) for the softmax denominator matmul
    blk = jnp.arange(GS, dtype=jnp.int32) // S
    bones = (blk[:, None] == blk[None, :]).astype(jnp.float32)
    eye = jnp.eye(H, dtype=jnp.float32)
    return cross, hmask, bones, eye


def build_key_mask(mask_keys):
    """mask_keys: (NSEQ, S) bool, True = masked key -> (NUM_STEPS*8, GS) f32."""
    col_seq_local = (jnp.arange(GS, dtype=jnp.int32) % R) // S
    col_pos = jnp.arange(GS, dtype=jnp.int32) % S
    seq_idx = jnp.arange(NUM_STEPS, dtype=jnp.int32)[:, None] * SPB \
        + col_seq_local[None, :]
    km = jnp.where(mask_keys[seq_idx, col_pos[None, :]],
                   jnp.float32(NEG), jnp.float32(0.0))          # (T, GS)
    km_all = jnp.broadcast_to(km[:, None, :], (NUM_STEPS, 8, GS))
    return km_all.reshape(NUM_STEPS * 8, GS)


# --------------------------------- forward -----------------------------------

@jax.jit
def encoder_forward(y, km_all, w_all, vec, cross, hmask, bones, eye):
    """y: (NSEQ, S, H) f32 — NSAMP stacked (B=2) encoder problems."""
    y2 = y.reshape(NSEQ * S, H)
    out2 = pl.pallas_call(
        encoder_kernel,
        out_shape=jax.ShapeDtypeStruct((NUM_STEPS * H, R), jnp.float32),
        grid_spec=pltpu.PrefetchScalarGridSpec(
            num_scalar_prefetch=0,
            grid=(NUM_STEPS,),
            in_specs=[
                pl.BlockSpec((R, H), lambda i: (i, 0)),        # activations
                pl.BlockSpec((8, GS), lambda i: (i, 0)),       # key-mask row
                pl.BlockSpec((H, W_LANES), lambda i: (0, 0)),  # packed weights
                pl.BlockSpec((8, 128), lambda i: (0, 0)),      # biases / LN
                pl.BlockSpec((R, GS), lambda i: (0, 0)),       # cross-seq mask
                pl.BlockSpec((GS, H), lambda i: (0, 0)),       # head packing
                pl.BlockSpec((GS, GS), lambda i: (0, 0)),      # block-ones
                pl.BlockSpec((H, H), lambda i: (0, 0)),        # identity
            ],
            out_specs=pl.BlockSpec((H, R), lambda i: (i, 0)),
        ),
        compiler_params=pltpu.CompilerParams(
            dimension_semantics=("parallel",)),
    )(y2, km_all, w_all, vec, cross, hmask, bones, eye)
    # un-transpose the lane-dense (H, R) step blocks back to (NSEQ, S, H)
    return out2.reshape(NUM_STEPS, H, R).transpose(0, 2, 1).reshape(NSEQ, S, H)


# -------------------------------- reference ----------------------------------

def encoder_reference(y, mask_keys, params):
    """Pure-JAX reference mirroring the PyTorch module (eval mode)."""
    (wq, bq, wk, bk, wv, bv, wm, bm, w1, b1, w2, b2, g1, be1, g2, be2) = params

    def ln(x, g, b):
        mean = jnp.mean(x, axis=-1, keepdims=True)
        d = x - mean
        var = jnp.sum(d * d, axis=-1, keepdims=True) / (x.shape[-1] - 1)
        return g * d / (jnp.sqrt(var) + EPS) + b

    nb = y.shape[0]
    q = (y @ wq + bq).reshape(nb, S, NH, DH).transpose(0, 2, 1, 3)
    k = (y @ wk + bk).reshape(nb, S, NH, DH).transpose(0, 2, 1, 3)
    v = (y @ wv + bv).reshape(nb, S, NH, DH).transpose(0, 2, 1, 3)
    scores = jnp.einsum("bhqd,bhkd->bhqk", q, k) / math.sqrt(DH)
    scores = jnp.where(mask_keys[:, None, None, :], NEG, scores)
    att = jax.nn.softmax(scores, axis=-1)
    atted = jnp.einsum("bhqk,bhkd->bhqd", att, v).transpose(0, 2, 1, 3)
    atted = atted.reshape(nb, S, H) @ wm + bm
    x1 = ln(y + atted, g1, be1)
    f = jnp.maximum(x1 @ w1 + b1, 0.0) @ w2 + b2
    return ln(x1 + f, g2, be2)


def make_params(key):
    ks = jax.random.split(key, 16)
    def w(k, shape, fan_in):
        return jax.random.normal(k, shape, jnp.float32) / math.sqrt(fan_in)
    wq = w(ks[0], (H, H), H);   bq = 0.01 * jax.random.normal(ks[1], (1, H), jnp.float32)
    wk = w(ks[2], (H, H), H);   bk = 0.01 * jax.random.normal(ks[3], (1, H), jnp.float32)
    wv = w(ks[4], (H, H), H);   bv = 0.01 * jax.random.normal(ks[5], (1, H), jnp.float32)
    wm = w(ks[6], (H, H), H);   bm = 0.01 * jax.random.normal(ks[7], (1, H), jnp.float32)
    w1 = w(ks[8], (H, FF), H);  b1 = 0.01 * jax.random.normal(ks[9], (1, FF), jnp.float32)
    w2 = w(ks[10], (FF, H), FF); b2 = 0.01 * jax.random.normal(ks[11], (1, H), jnp.float32)
    g1 = jnp.ones((1, H), jnp.float32);  be1 = jnp.zeros((1, H), jnp.float32)
    g2 = jnp.ones((1, H), jnp.float32);  be2 = jnp.zeros((1, H), jnp.float32)
    return (wq, bq, wk, bk, wv, bv, wm, bm, w1, b1, w2, b2, g1, be1, g2, be2)


if __name__ == "__main__":
    key = jax.random.PRNGKey(0)
    k_y, k_p = jax.random.split(key, 2)

    # NSAMP independent (B=2, S=8, H=32) problems stacked along the batch axis.
    y = jax.random.normal(k_y, (NSEQ, S, H), jnp.float32)
    # mask the last 2 key positions of the second sequence of every problem
    # (batch item 1), nothing in batch item 0 — as in the original test.
    mask_keys = jnp.zeros((NSEQ, S), jnp.bool_).at[1::2, S - 2:].set(True)

    params = make_params(k_p)

    # init-time packing (hoisted out of the per-call hot path)
    w_all, vec = pack_weights(params)
    cross, hmask, bones, eye = build_constants()
    km_all = build_key_mask(mask_keys)

    out = encoder_forward(y, km_all, w_all, vec, cross, hmask, bones, eye)
    out = jax.block_until_ready(out)

    ref = encoder_reference(y, mask_keys, params)
    assert out.shape == (NSEQ, S, H)
    assert jnp.allclose(out, ref, rtol=1e-4, atol=1e-4), "mismatch vs reference"

    print("KERNEL_OK")
</pallas_src>

<mosaic_0001>
module attributes {stable_mosaic.version = 11 : i64} {
  func.func @encoder_kernel(%arg0: i32, %arg1: memref<128x32xf32, #tpu.memory_space<vmem>>, %arg2: memref<8x512xf32, #tpu.memory_space<vmem>>, %arg3: memref<32x512xf32, #tpu.memory_space<vmem>>, %arg4: memref<8x128xf32, #tpu.memory_space<vmem>>, %arg5: memref<128x512xf32, #tpu.memory_space<vmem>>, %arg6: memref<512x32xf32, #tpu.memory_space<vmem>>, %arg7: memref<512x512xf32, #tpu.memory_space<vmem>>, %arg8: memref<32x32xf32, #tpu.memory_space<vmem>>, %arg9: memref<32x128xf32, #tpu.memory_space<vmem>>) attributes {dimension_semantics = [#tpu.dimension_semantics<parallel>], iteration_bounds = array<i64: 4>, scalar_prefetch = 0 : i64, scratch_operands = 0 : i64, tpu.core_type = #tpu.core_type<tc>, window_params = [{transform_indices = @transform_0, window_bounds = array<i64: 128, 32>}, {transform_indices = @transform_1, window_bounds = array<i64: 8, 512>}, {pipeline_mode = #tpu.pipeline_mode<synchronous>, transform_indices = @transform_2, window_bounds = array<i64: 32, 512>}, {pipeline_mode = #tpu.pipeline_mode<synchronous>, transform_indices = @transform_3, window_bounds = array<i64: 8, 128>}, {pipeline_mode = #tpu.pipeline_mode<synchronous>, transform_indices = @transform_4, window_bounds = array<i64: 128, 512>}, {pipeline_mode = #tpu.pipeline_mode<synchronous>, transform_indices = @transform_5, window_bounds = array<i64: 512, 32>}, {pipeline_mode = #tpu.pipeline_mode<synchronous>, transform_indices = @transform_6, window_bounds = array<i64: 512, 512>}, {pipeline_mode = #tpu.pipeline_mode<synchronous>, transform_indices = @transform_7, window_bounds = array<i64: 32, 32>}, {transform_indices = @transform_8, window_bounds = array<i64: 32, 128>}]} {
    %c0 = arith.constant 0 : index
    %c0_0 = arith.constant 0 : index
    %0 = vector.load %arg1[%c0, %c0_0] : memref<128x32xf32, #tpu.memory_space<vmem>>, vector<128x32xf32>
    %c0_1 = arith.constant 0 : index
    %c0_2 = arith.constant 0 : index
    %1 = vector.load %arg2[%c0_1, %c0_2] : memref<8x512xf32, #tpu.memory_space<vmem>>, vector<1x512xf32>
    %c0_3 = arith.constant 0 : index
    %c0_4 = arith.constant 0 : index
    %2 = vector.load %arg5[%c0_3, %c0_4] : memref<128x512xf32, #tpu.memory_space<vmem>>, vector<128x512xf32>
    %c0_5 = arith.constant 0 : index
    %c0_6 = arith.constant 0 : index
    %3 = vector.load %arg4[%c0_5, %c0_6] : memref<8x128xf32, #tpu.memory_space<vmem>>, vector<1x96xf32>
    %c1 = arith.constant 1 : index
    %c0_7 = arith.constant 0 : index
    %4 = vector.load %arg4[%c1, %c0_7] : memref<8x128xf32, #tpu.memory_space<vmem>>, vector<1x32xf32>
    %c2 = arith.constant 2 : index
    %c0_8 = arith.constant 0 : index
    %5 = vector.load %arg4[%c2, %c0_8] : memref<8x128xf32, #tpu.memory_space<vmem>>, vector<1x64xf32>
    %c3 = arith.constant 3 : index
    %c0_9 = arith.constant 0 : index
    %6 = vector.load %arg4[%c3, %c0_9] : memref<8x128xf32, #tpu.memory_space<vmem>>, vector<1x32xf32>
    %c4 = arith.constant 4 : index
    %c0_10 = arith.constant 0 : index
    %7 = vector.load %arg4[%c4, %c0_10] : memref<8x128xf32, #tpu.memory_space<vmem>>, vector<1x32xf32>
    %c5 = arith.constant 5 : index
    %c0_11 = arith.constant 0 : index
    %8 = vector.load %arg4[%c5, %c0_11] : memref<8x128xf32, #tpu.memory_space<vmem>>, vector<1x32xf32>
    %c6 = arith.constant 6 : index
    %c0_12 = arith.constant 0 : index
    %9 = vector.load %arg4[%c6, %c0_12] : memref<8x128xf32, #tpu.memory_space<vmem>>, vector<1x32xf32>
    %c7 = arith.constant 7 : index
    %c0_13 = arith.constant 0 : index
    %10 = vector.load %arg4[%c7, %c0_13] : memref<8x128xf32, #tpu.memory_space<vmem>>, vector<1x32xf32>
    %c0_14 = arith.constant 0 : index
    %c0_15 = arith.constant 0 : index
    %11 = vector.load %arg3[%c0_14, %c0_15] : memref<32x512xf32, #tpu.memory_space<vmem>>, vector<32x96xf32>
    %cst = arith.constant dense<0.000000e+00> : vector<128x96xf32>
    %12 = tpu.matmul %0, %11, %cst {dimension_numbers = #tpu.dot_dimension_numbers<[1], [0], [0], [1], [0, 0, 1, 1], [], []>} : vector<128x32xf32>, vector<32x96xf32>, vector<128x96xf32> -> vector<128x96xf32>
    %13 = vector.broadcast %3 : vector<1x96xf32> to vector<128x96xf32>
    %14 = arith.addf %12, %13 : vector<128x96xf32>
    %15 = vector.extract_strided_slice %14 {offsets = [0, 0], sizes = [128, 32], strides = [1, 1]} : vector<128x96xf32> to vector<128x32xf32>
    %cst_16 = arith.constant 0.353553385 : f32
    %16 = vector.broadcast %cst_16 : f32 to vector<128x32xf32>
    %17 = arith.mulf %15, %16 : vector<128x32xf32>
    %18 = vector.extract_strided_slice %14 {offsets = [0, 32], sizes = [128, 32], strides = [1, 1]} : vector<128x96xf32> to vector<128x32xf32>
    %19 = vector.extract_strided_slice %14 {offsets = [0, 64], sizes = [128, 32], strides = [1, 1]} : vector<128x96xf32> to vector<128x32xf32>
    %c0_17 = arith.constant 0 : index
    %c0_18 = arith.constant 0 : index
    %20 = vector.load %arg6[%c0_17, %c0_18] : memref<512x32xf32, #tpu.memory_space<vmem>>, vector<512x32xf32>
    %21 = tpu.concatenate %18, %18, %18, %18 in 0 : vector<128x32xf32>, vector<128x32xf32>, vector<128x32xf32>, vector<128x32xf32> -> vector<512x32xf32>
    %22 = arith.mulf %21, %20 : vector<512x32xf32>
    %23 = tpu.concatenate %19, %19, %19, %19 in 0 : vector<128x32xf32>, vector<128x32xf32>, vector<128x32xf32>, vector<128x32xf32> -> vector<512x32xf32>
    %24 = arith.mulf %23, %20 : vector<512x32xf32>
    %cst_19 = arith.constant dense<0.000000e+00> : vector<128x512xf32>
    %25 = tpu.matmul %17, %22, %cst_19 {dimension_numbers = #tpu.dot_dimension_numbers<[1], [1], [0], [0], [0, 0, 1, 0], [], []>} : vector<128x32xf32>, vector<512x32xf32>, vector<128x512xf32> -> vector<128x512xf32>
    %26 = arith.addf %25, %2 : vector<128x512xf32>
    %27 = vector.broadcast %1 : vector<1x512xf32> to vector<128x512xf32>
    %28 = arith.addf %26, %27 : vector<128x512xf32>
    %cst_20 = arith.constant dense<0xFF800000> : vector<128xf32>
    %29 = vector.multi_reduction <maximumf>, %28, %cst_20 [1] : vector<128x512xf32> to vector<128xf32>
    %30 = vector.shape_cast %29 : vector<128xf32> to vector<128x1xf32>
    %31 = vector.broadcast %30 : vector<128x1xf32> to vector<128x512xf32>
    %32 = arith.subf %28, %31 : vector<128x512xf32>
    %33 = math.exp %32 : vector<128x512xf32>
    %c0_21 = arith.constant 0 : index
    %c0_22 = arith.constant 0 : index
    %34 = vector.load %arg7[%c0_21, %c0_22] : memref<512x512xf32, #tpu.memory_space<vmem>>, vector<512x512xf32>
    %cst_23 = arith.constant dense<0.000000e+00> : vector<128x512xf32>
    %35 = tpu.matmul %33, %34, %cst_23 {dimension_numbers = #tpu.dot_dimension_numbers<[1], [0], [0], [1], [0, 0, 1, 1], [], []>} : vector<128x512xf32>, vector<512x512xf32>, vector<128x512xf32> -> vector<128x512xf32>
    %cst_24 = arith.constant 1.000000e-30 : f32
    %36 = vector.broadcast %cst_24 : f32 to vector<128x512xf32>
    %37 = arith.maximumf %35, %36 : vector<128x512xf32>
    %38 = arith.divf %33, %37 : vector<128x512xf32>
    %cst_25 = arith.constant dense<0.000000e+00> : vector<128x32xf32>
    %39 = tpu.matmul %38, %24, %cst_25 {dimension_numbers = #tpu.dot_dimension_numbers<[1], [0], [0], [1], [0, 0, 1, 1], [], []>} : vector<128x512xf32>, vector<512x32xf32>, vector<128x32xf32> -> vector<128x32xf32>
    %c0_26 = arith.constant 0 : index
    %c128 = arith.constant 128 : index
    %40 = vector.load %arg3[%c0_26, %c128] : memref<32x512xf32, #tpu.memory_space<vmem>>, vector<32x32xf32>
    %cst_27 = arith.constant dense<0.000000e+00> : vector<128x32xf32>
    %41 = tpu.matmul %39, %40, %cst_27 {dimension_numbers = #tpu.dot_dimension_numbers<[1], [0], [0], [1], [0, 0, 1, 1], [], []>} : vector<128x32xf32>, vector<32x32xf32>, vector<128x32xf32> -> vector<128x32xf32>
    %42 = vector.broadcast %4 : vector<1x32xf32> to vector<128x32xf32>
    %43 = arith.addf %41, %42 : vector<128x32xf32>
    %44 = arith.addf %0, %43 : vector<128x32xf32>
    %cst_28 = arith.constant dense<0.000000e+00> : vector<128xf32>
    %45 = vector.multi_reduction <add>, %44, %cst_28 [1] : vector<128x32xf32> to vector<128xf32>
    %46 = vector.shape_cast %45 : vector<128xf32> to vector<128x1xf32>
    %cst_29 = arith.constant 3.200000e+01 : f32
    %47 = vector.broadcast %cst_29 : f32 to vector<128x1xf32>
    %48 = arith.divf %46, %47 : vector<128x1xf32>
    %49 = vector.broadcast %48 : vector<128x1xf32> to vector<128x32xf32>
    %50 = arith.subf %44, %49 : vector<128x32xf32>
    %51 = arith.mulf %50, %50 : vector<128x32xf32>
    %cst_30 = arith.constant dense<0.000000e+00> : vector<128xf32>
    %52 = vector.multi_reduction <add>, %51, %cst_30 [1] : vector<128x32xf32> to vector<128xf32>
    %53 = vector.shape_cast %52 : vector<128xf32> to vector<128x1xf32>
    %cst_31 = arith.constant 3.100000e+01 : f32
    %54 = vector.broadcast %cst_31 : f32 to vector<128x1xf32>
    %55 = arith.divf %53, %54 : vector<128x1xf32>
    %56 = vector.broadcast %7 : vector<1x32xf32> to vector<128x32xf32>
    %57 = arith.mulf %56, %50 : vector<128x32xf32>
    %58 = math.sqrt %55 : vector<128x1xf32>
    %cst_32 = arith.constant 9.99999997E-7 : f32
    %59 = vector.broadcast %cst_32 : f32 to vector<128x1xf32>
    %60 = arith.addf %58, %59 : vector<128x1xf32>
    %61 = vector.broadcast %60 : vector<128x1xf32> to vector<128x32xf32>
    %62 = arith.divf %57, %61 : vector<128x32xf32>
    %63 = vector.broadcast %8 : vector<1x32xf32> to vector<128x32xf32>
    %64 = arith.addf %62, %63 : vector<128x32xf32>
    %c0_33 = arith.constant 0 : index
    %c256 = arith.constant 256 : index
    %65 = vector.load %arg3[%c0_33, %c256] : memref<32x512xf32, #tpu.memory_space<vmem>>, vector<32x64xf32>
    %cst_34 = arith.constant dense<0.000000e+00> : vector<128x64xf32>
    %66 = tpu.matmul %64, %65, %cst_34 {dimension_numbers = #tpu.dot_dimension_numbers<[1], [0], [0], [1], [0, 0, 1, 1], [], []>} : vector<128x32xf32>, vector<32x64xf32>, vector<128x64xf32> -> vector<128x64xf32>
    %67 = vector.broadcast %5 : vector<1x64xf32> to vector<128x64xf32>
    %68 = arith.addf %66, %67 : vector<128x64xf32>
    %cst_35 = arith.constant 0.000000e+00 : f32
    %69 = vector.broadcast %cst_35 : f32 to vector<128x64xf32>
    %70 = arith.maximumf %68, %69 : vector<128x64xf32>
    %c0_36 = arith.constant 0 : index
    %c384 = arith.constant 384 : index
    %71 = vector.load %arg3[%c0_36, %c384] : memref<32x512xf32, #tpu.memory_space<vmem>>, vector<32x64xf32>
    %cst_37 = arith.constant dense<0.000000e+00> : vector<128x32xf32>
    %72 = tpu.matmul %70, %71, %cst_37 {dimension_numbers = #tpu.dot_dimension_numbers<[1], [1], [0], [0], [0, 0, 1, 0], [], []>} : vector<128x64xf32>, vector<32x64xf32>, vector<128x32xf32> -> vector<128x32xf32>
    %73 = vector.broadcast %6 : vector<1x32xf32> to vector<128x32xf32>
    %74 = arith.addf %72, %73 : vector<128x32xf32>
    %75 = arith.addf %64, %74 : vector<128x32xf32>
    %cst_38 = arith.constant dense<0.000000e+00> : vector<128xf32>
    %76 = vector.multi_reduction <add>, %75, %cst_38 [1] : vector<128x32xf32> to vector<128xf32>
    %77 = vector.shape_cast %76 : vector<128xf32> to vector<128x1xf32>
    %cst_39 = arith.constant 3.200000e+01 : f32
    %78 = vector.broadcast %cst_39 : f32 to vector<128x1xf32>
    %79 = arith.divf %77, %78 : vector<128x1xf32>
    %80 = vector.broadcast %79 : vector<128x1xf32> to vector<128x32xf32>
    %81 = arith.subf %75, %80 : vector<128x32xf32>
    %82 = arith.mulf %81, %81 : vector<128x32xf32>
    %cst_40 = arith.constant dense<0.000000e+00> : vector<128xf32>
    %83 = vector.multi_reduction <add>, %82, %cst_40 [1] : vector<128x32xf32> to vector<128xf32>
    %84 = vector.shape_cast %83 : vector<128xf32> to vector<128x1xf32>
    %cst_41 = arith.constant 3.100000e+01 : f32
    %85 = vector.broadcast %cst_41 : f32 to vector<128x1xf32>
    %86 = arith.divf %84, %85 : vector<128x1xf32>
    %87 = vector.broadcast %9 : vector<1x32xf32> to vector<128x32xf32>
    %88 = arith.mulf %87, %81 : vector<128x32xf32>
    %89 = math.sqrt %86 : vector<128x1xf32>
    %cst_42 = arith.constant 9.99999997E-7 : f32
    %90 = vector.broadcast %cst_42 : f32 to vector<128x1xf32>
    %91 = arith.addf %89, %90 : vector<128x1xf32>
    %92 = vector.broadcast %91 : vector<128x1xf32> to vector<128x32xf32>
    %93 = arith.divf %88, %92 : vector<128x32xf32>
    %94 = vector.broadcast %10 : vector<1x32xf32> to vector<128x32xf32>
    %95 = arith.addf %93, %94 : vector<128x32xf32>
    %c0_43 = arith.constant 0 : index
    %c0_44 = arith.constant 0 : index
    %96 = vector.load %arg8[%c0_43, %c0_44] : memref<32x32xf32, #tpu.memory_space<vmem>>, vector<32x32xf32>
    %cst_45 = arith.constant dense<0.000000e+00> : vector<32x128xf32>
    %97 = tpu.matmul %96, %95, %cst_45 {dimension_numbers = #tpu.dot_dimension_numbers<[1], [1], [0], [0], [0, 0, 1, 0], [], []>} : vector<32x32xf32>, vector<128x32xf32>, vector<32x128xf32> -> vector<32x128xf32>
    %c0_46 = arith.constant 0 : index
    %c0_47 = arith.constant 0 : index
    %98 = vector.load %arg9[%c0_46, %c0_47] : memref<32x128xf32, #tpu.memory_space<vmem>>, vector<32x128xf32>
    tpu.vector_store %arg9[%c0_46, %c0_47], %97 {strides = array<i32>} : memref<32x128xf32, #tpu.memory_space<vmem>>, vector<32x128xf32>,
    return
  }
  func.func @transform_0(%arg0: i32) -> (i32, i32) {
    %c0_i32 = arith.constant 0 : i32
    %c0_i32_0 = arith.constant 0 : i32
    return %arg0, %c0_i32 : i32, i32
  }
  func.func @transform_1(%arg0: i32) -> (i32, i32) {
    %c0_i32 = arith.constant 0 : i32
    %c0_i32_0 = arith.constant 0 : i32
    return %arg0, %c0_i32 : i32, i32
  }
  func.func @transform_2(%arg0: i32) -> (i32, i32) {
    %c0_i32 = arith.constant 0 : i32
    %c0_i32_0 = arith.constant 0 : i32
    %c0_i32_1 = arith.constant 0 : i32
    return %c0_i32, %c0_i32_0 : i32, i32
  }
  func.func @transform_3(%arg0: i32) -> (i32, i32) {
    %c0_i32 = arith.constant 0 : i32
    %c0_i32_0 = arith.constant 0 : i32
    %c0_i32_1 = arith.constant 0 : i32
    return %c0_i32, %c0_i32_0 : i32, i32
  }
  func.func @transform_4(%arg0: i32) -> (i32, i32) {
    %c0_i32 = arith.constant 0 : i32
    %c0_i32_0 = arith.constant 0 : i32
    %c0_i32_1 = arith.constant 0 : i32
    return %c0_i32, %c0_i32_0 : i32, i32
  }
  func.func @transform_5(%arg0: i32) -> (i32, i32) {
    %c0_i32 = arith.constant 0 : i32
    %c0_i32_0 = arith.constant 0 : i32
    %c0_i32_1 = arith.constant 0 : i32
    return %c0_i32, %c0_i32_0 : i32, i32
  }
  func.func @transform_6(%arg0: i32) -> (i32, i32) {
    %c0_i32 = arith.constant 0 : i32
    %c0_i32_0 = arith.constant 0 : i32
    %c0_i32_1 = arith.constant 0 : i32
    return %c0_i32, %c0_i32_0 : i32, i32
  }
  func.func @transform_7(%arg0: i32) -> (i32, i32) {
    %c0_i32 = arith.constant 0 : i32
    %c0_i32_0 = arith.constant 0 : i32
    %c0_i32_1 = arith.constant 0 : i32
    return %c0_i32, %c0_i32_0 : i32, i32
  }
  func.func @transform_8(%arg0: i32) -> (i32, i32) {
    %c0_i32 = arith.constant 0 : i32
    %c0_i32_0 = arith.constant 0 : i32
    return %arg0, %c0_i32 : i32, i32
  }
}

</mosaic_0001>

<bundles_post_ra>
// kernel: encoder_forward.1
= control target key start
LH: loop header
LB: loop body
LE: loop exit
PB: predicated region body
PF: predicated region fallthrough
CT: control target
= control target key end

     0   :  { %13 = vsyncpa [#allocation3], 0  ;;  %s6920_s27 = smov 0   ;;  %s10116_s0 = inlined_call_operand.vmem [shape: f32[512,32], index: 0, kind: input, shape index: {}]   ;;  %s10117_s1 = inlined_call_operand.vmem [shape: f32[32,512], index: 1, kind: input, shape index: {}]   ;;  %s10118_s2 = inlined_call_operand.vmem [shape: f32[32,512], index: 2, kind: input, shape index: {}]   ;;  %s10119_s3 = inlined_call_operand.vmem [shape: f32[8,128], index: 3, kind: input, shape index: {}]   ;;  %s10120_s4 = inlined_call_operand.vmem [shape: f32[128,512], index: 4, kind: input, shape index: {}]   ;;  %s10121_s5 = inlined_call_operand.vmem [shape: f32[512,32], index: 5, kind: input, shape index: {}]   ;;  %s10122_s6 = inlined_call_operand.hbm [shape: f32[512,512], index: 6, kind: input, shape index: {}]   ;;  %s10123_s7 = inlined_call_operand.vmem [shape: f32[32,32], index: 7, kind: input, shape index: {}]   ;;  %s10124_s8 = inlined_call_operand.vmem [shape: f32[128,128], index: 8, kind: output, shape index: {}]  }
   0x1 LB: > { %s6926_s28 = sadd.s32 4294967295, %s6867_s27   ;;  %p5597_p0 = scmp.ge.s32.totalorder %s6867_s27, 1  ;;  %s6867_s27 = sphi %s6920_s27, %s19_s27  }
   0x2   : > { %p228_p1 = scmp.lt.s32.totalorder %s6867_s27, 5  ;;  %s6869_s29 = smov [#allocation2]  }
   0x3   : > { %s252_s30 = sshll.u32 %s6869_s29, 4  ;;  %p6365_p3 = scmp.eq.s32.totalorder %s6926_s28, 0  ;;  %s253_s30 = int_to_ptr.vmem [resolvable:$true] %s252_s30 }
   0x4   : > { %p6930_p2 = pnand %p5597_p0, %p228_p1  ;;  %s6842_s10 = scalar_lea.vmem %s253_s30, 32768 }
   0x5   : > { %p6843_p7 = scmp.ne.s32.totalorder %s253_s30, %s6842_s10  ;;  %p6850_p10 = scmp.lt.s32.totalorder %s253_s30, %s253_s30 }
   0x6   : > { %p6361_p4 = pneg %p6930_p2  ;;  %p6851_p11 = scmp.lt.s32.totalorder %s6842_s10, %s6842_s10 }
   0x8   : > { %p6362_p5 = pnand %p6365_p3, %p6361_p4  ;;  %p6852_p12 = por %p6851_p11, %p6850_p10 }
   0xa   : > { %p6833_p6 = pneg %p6362_p5 }
   0xc   : > { %p6845_p8 = pnand %p6843_p7, %p6833_p6 }
   0xe   : > { %p6846_p9 = pneg %p6845_p8 }
  0x10   : > { %p6853_p13 = pnand %p6852_p12, %p6846_p9 }
  0x12   : > { %6856 = shalt.err (!%p6853_p13)
}
  0x13   : > { %s6870_s11 = smov 512   ;;  %s6871_s12 = smov 32  }
  0x14   : > { %6364 = dma.hbm_to_vmem [thread:$0]  (!%p6362_p5), %s10122_s6, 32768, %s253_s30, [#allocation3], %s6870_s11, %s6870_s11, %s6871_s12  }
  0x15   : > { %288 = sbr.rel (%p6930_p2) target bundleno = 2960 (0xb90), region = 52 }
  0x1a   : > { %6862 = dma.done.wait (%p6365_p3), [#allocation3], 32768  }
  0x1b   : > { %6864 = vsyncadd (%p6365_p3), [#allocation3], 4294934528  ;;  %s5602_s15 = sshll.u32 %s6926_s28, 4  ;;  %v6952_v0 = vld [vmem:[%s10121_s5 + $0xf8] sm:$0xff]  ;;  %v6957_v1 = vld [vmem:[%s10121_s5 + $0xf0] sm:$0xff]  ;;  %s6872_s26 = smov 32  }
  0x1c   : > { %p328_p0 = scmp.lt.s32.totalorder %s5602_s15, 63  ;;  %v436_v2 = vld [vmem:[%s10118_s2 + $0x60] sm:$0xff]  ;;  %841 = vrot.lane.b32.xlu0 %v6952_v0, %s6872_s26  ;;  %839 = vrot.lane.b32.xlu1 %v6957_v1, %s6872_s26  ;;  %vm441_vm0 = vcmask 261120   ;;  %v6977_v4 = vld [vmem:[%s10121_s5 + $0x1f8] sm:$0xff]  ;;  %s6873_s12 = smov 96   ;;  %vm4780_vm1 = vcmask 523264  }
  0x1d   : > { %v435_v3 = vld [vmem:[%s10118_s2 + $0x40] sm:$0xff]  ;;  %6191 = vmatprep.subr.mxu1 %v436_v2  ;;  %v6982_v5 = vld [vmem:[%s10121_s5 + $0x78] sm:$0xff]  ;;  %v7004_v10 = vld [vmem:[%s10121_s5 + $0x70] sm:$0xff]  ;;  %s6874_s13 = smov 64   ;;  %p333_p1 = scmp.lt.s32.totalorder %s6926_s28, 3 }
  0x1e   : > { %s10480_s15 = smov (!%p328_p0, %s5602_s15), 63  ;;  %6192 = vmatpush3.msra.mxu1 %v436_v2  ;;  %v434_v6 = vld [vmem:[%s10118_s2 + $0x20] sm:$0xff]  ;;  %v6999_v9 = vld [vmem:[%s10121_s5 + $0x178] sm:$0xff]  ;;  %v7016_v13 = vld [vmem:[%s10121_s5 + $0x1f0] sm:$0xff] }
  0x1f   : > { %s5603_s16 = sshll.u32 %s10480_s15, 3  ;;  %6193 = vmatprep.subr.mxu1 %v435_v3  ;;  %v433_v8 = vld [vmem:[%s10118_s2] sm:$0xff]  ;;  %v7022_v14 = vld [vmem:[%s10121_s5 + $0xe8] sm:$0xff]  ;;  %v7034_v17 = vld [vmem:[%s10121_s5 + $0x170] sm:$0xff] }
  0x20   : > { %s6965_s25 = scalar_lea.vmem %s10116_s0, %s5603_s16  ;;  %6194 = vmatpush3.msra.mxu1 %v435_v3  ;;  %905 = vrot.lane.b32.xlu1 %v6977_v4, %s6872_s26  ;;  %v7040_v18 = vld [vmem:[%s10121_s5 + $0x68] sm:$0xff]  ;;  %v7058_v22 = vld [vmem:[%s10121_s5 + $0xe0] sm:$0xff]  ;;  %v678_v30 = vld [vmem:[%s10121_s5 + $0xd8] sm:$0xff] }
  0x21   : > { %v344_v7 = vld [vmem:[%s6965_s25] sm:$0xff]  ;;  %809 = vrot.lane.b32.xlu0 %v6982_v5, %s6872_s26  ;;  %6195 = vmatprep.subr.mxu1 %v434_v6  ;;  %v345_v11 = vld [vmem:[%s6965_s25 + $0x8] sm:$0xff]  ;;  %v346_v12 = vld [vmem:[%s6965_s25 + $0x10] sm:$0xff]  ;;  %s7765_s14 = scalar_select %p333_p1, %s6926_s28, 3 }
  0x22   : > { %6199 = vmatprep.mubr.msk.f32.mxu1 %vm441_vm0, %v344_v7  ;;  %6196 = vmatpush3.msra.mxu1 %v434_v6  ;;  %v347_v15 = vld [vmem:[%s6965_s25 + $0x18] sm:$0xff]  ;;  %v348_v16 = vld [vmem:[%s6965_s25 + $0x20] sm:$0xff]  ;;  %v349_v19 = vld [vmem:[%s6965_s25 + $0x28] sm:$0xff] }
  0x23   : > { %6197 = vmatprep.subr.mxu1 %v433_v8  ;;  %v350_v20 = vld [vmem:[%s6965_s25 + $0x30] sm:$0xff]  ;;  %v7052_v21 = vld [vmem:[%s10121_s5 + $0x1e8] sm:$0xff]  ;;  %v351_v23 = vld [vmem:[%s6965_s25 + $0x38] sm:$0xff]  ;;  %s5802_s15 = sshll.u32 %s7765_s14, 5 }
  0x24   : > { %6198 = vmatpush3.msra.mxu1 %v433_v8  ;;  %873 = vrot.lane.b32.xlu1 %v6999_v9, %s6872_s26  ;;  %v352_v24 = vld [vmem:[%s6965_s25 + $0x40] sm:$0xff]  ;;  %v7070_v25 = vld [vmem:[%s10121_s5 + $0x168] sm:$0xff]  ;;  %v354_v28 = vld [vmem:[%s6965_s25 + $0x50] sm:$0xff]  ;;  %s337_s18 = scalar_lea.vmem %s10117_s1, %s5802_s15 }
  0x25   : > { %807 = vrot.lane.b32.xlu0 %v7004_v10, %s6872_s26  ;;  %6200 = vmatmul.mubr.msk.f32.vlgmr.msra.gmra.mxu1 %vm441_vm0, %v345_v11  ;;  %v663_v26 = vld [vmem:[%s10121_s5 + $0x60] sm:$0xff]  ;;  %v353_v27 = vld [vmem:[%s6965_s25 + $0x48] sm:$0xff]  ;;  %v355_v31 = vld [vmem:[%s6965_s25 + $0x58] sm:$0xff] }
  0x26   : > { %6202 = vmatprep.mubr.msk.f32.mxu1 %vm441_vm0, %v346_v12  ;;  %v7085_v29 = vld [vmem:[%s10121_s5 + $0x1e0] sm:$0xff]  ;;  %v662_v34 = vld [vmem:[%s10121_s5 + $0x58] sm:$0xff]  ;;  %v357_v35 = vld [vmem:[%s6965_s25 + $0x68] sm:$0xff] }
  0x27   : > { %v356_v32 = vld [vmem:[%s6965_s25 + $0x60] sm:$0xff]  ;;  %v358_v36 = vld [vmem:[%s6965_s25 + $0x70] sm:$0xff]  ;;  %v710_v37 = vld [vmem:[%s10121_s5 + $0x1d8] sm:$0xff] }
  0x28   : > { %903 = vrot.lane.b32.xlu1 %v7016_v13, %s6872_s26  ;;  %v695_v33 = vld [vmem:[%s10121_s5 + $0x160] sm:$0xff]  ;;  %v677_v38 = vld [vmem:[%s10121_s5 + $0xd0] sm:$0xff]  ;;  %v359_v39 = vld [vmem:[%s6965_s25 + $0x78] sm:$0xff] }
  0x29   : > { %837 = vrot.lane.b32.xlu0 %v7022_v14, %s6872_s26  ;;  %6203 = vmatmul.mubr.msk.f32.gmra.mxu1 %vm441_vm0, %v347_v15  ;;  %v694_v40 = vld [vmem:[%s10121_s5 + $0x158] sm:$0xff]  ;;  %v661_v41 = vld [vmem:[%s10121_s5 + $0x50] sm:$0xff]  ;;  %v676_v43 = vld [vmem:[%s10121_s5 + $0xc8] sm:$0xff] }
  0x2a   : > { %6205 = vmatprep.mubr.msk.f32.mxu1 %vm441_vm0, %v348_v16  ;;  %v709_v42 = vld [vmem:[%s10121_s5 + $0x1d0] sm:$0xff]  ;;  %v660_v45 = vld [vmem:[%s10121_s5 + $0x48] sm:$0xff]  ;;  %v675_v47 = vld [vmem:[%s10121_s5 + $0xc0] sm:$0xff] }
  0x2b   : > { %v693_v44 = vld [vmem:[%s10121_s5 + $0x150] sm:$0xff]  ;;  %v708_v46 = vld [vmem:[%s10121_s5 + $0x1c8] sm:$0xff]  ;;  %v659_v49 = vld [vmem:[%s10121_s5 + $0x40] sm:$0xff] }
  0x2c   : > { %871 = vrot.lane.b32.xlu1 %v7034_v17, %s6872_s26  ;;  %v692_v48 = vld [vmem:[%s10121_s5 + $0x148] sm:$0xff]  ;;  %v707_v50 = vld [vmem:[%s10121_s5 + $0x1c0] sm:$0xff]  ;;  %v674_v51 = vld [vmem:[%s10121_s5 + $0xb8] sm:$0xff] }
  0x2d   : > { %805 = vrot.lane.b32.xlu0 %v7040_v18, %s6872_s26  ;;  %6206 = vmatmul.mubr.msk.f32.gmra.mxu1 %vm441_vm0, %v349_v19  ;;  %v691_v52 = vld [vmem:[%s10121_s5 + $0x140] sm:$0xff]  ;;  %v658_v53 = vld [vmem:[%s10121_s5 + $0x38] sm:$0xff]  ;;  %v673_v55 = vld [vmem:[%s10121_s5 + $0xb0] sm:$0xff] }
  0x2e   : > { %6208 = vmatprep.mubr.msk.f32.mxu1 %vm441_vm0, %v350_v20  ;;  %v706_v54 = vld [vmem:[%s10121_s5 + $0x1b8] sm:$0xff]  ;;  %v657_v57 = vld [vmem:[%s10121_s5 + $0x30] sm:$0xff]  ;;  %v672_v59 = vld [vmem:[%s10121_s5 + $0xa8] sm:$0xff] }
  0x2f   : > { %v690_v56 = vld [vmem:[%s10121_s5 + $0x138] sm:$0xff]  ;;  %v705_v58 = vld [vmem:[%s10121_s5 + $0x1b0] sm:$0xff]  ;;  %v656_v61 = vld [vmem:[%s10121_s5 + $0x28] sm:$0xff] }
  0x30   : > { %901 = vrot.lane.b32.xlu1 %v7052_v21, %s6872_s26  ;;  %v689_v60 = vld [vmem:[%s10121_s5 + $0x130] sm:$0xff]  ;;  %v704_v62 = vld [vmem:[%s10121_s5 + $0x1a8] sm:$0xff]  ;;  %v671_v63 = vld [vmem:[%s10121_s5 + $0xa0] sm:$0xff] }
  0x31   : > { %835 = vrot.lane.b32.xlu0 %v7058_v22, %s6872_s26  ;;  %6209 = vmatmul.mubr.msk.f32.gmra.mxu1 %vm441_vm0, %v351_v23  ;;  %v688_v2 = vld [vmem:[%s10121_s5 + $0x128] sm:$0xff]  ;;  %v655_v3 = vld [vmem:[%s10121_s5 + $0x20] sm:$0xff]  ;;  %v670_v7 = vld [vmem:[%s10121_s5 + $0x98] sm:$0xff] }
  0x32   : > { %6211 = vmatprep.mubr.msk.f32.mxu1 %vm441_vm0, %v352_v24  ;;  %v703_v6 = vld [vmem:[%s10121_s5 + $0x1a0] sm:$0xff]  ;;  %v654_v11 = vld [vmem:[%s10121_s5 + $0x18] sm:$0xff]  ;;  %v669_v15 = vld [vmem:[%s10121_s5 + $0x90] sm:$0xff] }
  0x33   : > { %v687_v8 = vld [vmem:[%s10121_s5 + $0x120] sm:$0xff]  ;;  %v702_v12 = vld [vmem:[%s10121_s5 + $0x198] sm:$0xff]  ;;  %v653_v19 = vld [vmem:[%s10121_s5 + $0x10] sm:$0xff] }
  0x34   : > { %869 = vrot.lane.b32.xlu1 %v7070_v25, %s6872_s26  ;;  %v686_v16 = vld [vmem:[%s10121_s5 + $0x118] sm:$0xff]  ;;  %v701_v20 = vld [vmem:[%s10121_s5 + $0x190] sm:$0xff]  ;;  %v668_v23 = vld [vmem:[%s10121_s5 + $0x88] sm:$0xff] }
  0x35   : > { %803 = vrot.lane.b32.xlu0 %v663_v26, %s6872_s26  ;;  %6212 = vmatmul.mubr.msk.f32.gmra.mxu1 %vm441_vm0, %v353_v27  ;;  %v685_v24 = vld [vmem:[%s10121_s5 + $0x110] sm:$0xff]  ;;  %v652_v26 = vld [vmem:[%s10121_s5 + $0x8] sm:$0xff] }
  0x36   : > { %6214 = vmatprep.mubr.msk.f32.mxu1 %vm441_vm0, %v354_v28  ;;  %v700_v27 = vld [vmem:[%s10121_s5 + $0x188] sm:$0xff]  ;;  %v667_v28 = vld [vmem:[%s10121_s5 + $0x80] sm:$0xff] }
  0x38   : > { %899 = vrot.lane.b32.xlu1 %v7085_v29, %s6872_s26 }
  0x39   : > { %833 = vrot.lane.b32.xlu0 %v678_v30, %s6872_s26  ;;  %6215 = vmatmul.mubr.msk.f32.gmra.mxu1 %vm441_vm0, %v355_v31  ;;  %v651_v30 = vld [vmem:[%s10121_s5] sm:$0xff]  ;;  %v684_v31 = vld [vmem:[%s10121_s5 + $0x108] sm:$0xff] }
  0x3a   : > { %6217 = vmatprep.mubr.msk.f32.mxu1 %vm441_vm0, %v356_v32  ;;  %v683_v32 = vld [vmem:[%s10121_s5 + $0x100] sm:$0xff] }
  0x3c   : > { %867 = vrot.lane.b32.xlu1 %v695_v33, %s6872_s26  ;;  %v699_v33 = vld [vmem:[%s10121_s5 + $0x180] sm:$0xff] }
  0x3d   : > { %801 = vrot.lane.b32.xlu0 %v662_v34, %s6872_s26  ;;  %6218 = vmatmul.mubr.msk.f32.gmra.mxu1 %vm441_vm0, %v357_v35 }
  0x3e   : > { %6220 = vmatprep.mubr.msk.f32.mxu1 %vm441_vm0, %v358_v36 }
  0x40   : > { %897 = vrot.lane.b32.xlu1 %v710_v37, %s6872_s26 }
  0x41   : > { %831 = vrot.lane.b32.xlu0 %v677_v38, %s6872_s26  ;;  %6221 = vmatmul.mubr.msk.f32.gmra.mxu1 %vm441_vm0, %v359_v39 }
  0x44   : > { %865 = vrot.lane.b32.xlu1 %v694_v40, %s6872_s26 }
  0x45   : > { %799 = vrot.lane.b32.xlu0 %v661_v41, %s6872_s26 }
  0x48   : > { %895 = vrot.lane.b32.xlu1 %v709_v42, %s6872_s26 }
  0x49   : > { %829 = vrot.lane.b32.xlu0 %v676_v43, %s6872_s26 }
  0x4c   : > { %863 = vrot.lane.b32.xlu1 %v693_v44, %s6872_s26 }
  0x4d   : > { %797 = vrot.lane.b32.xlu0 %v660_v45, %s6872_s26 }
  0x50   : > { %893 = vrot.lane.b32.xlu1 %v708_v46, %s6872_s26 }
  0x51   : > { %827 = vrot.lane.b32.xlu0 %v675_v47, %s6872_s26 }
  0x54   : > { %861 = vrot.lane.b32.xlu1 %v692_v48, %s6872_s26 }
  0x55   : > { %795 = vrot.lane.b32.xlu0 %v659_v49, %s6872_s26 }
  0x58   : > { %891 = vrot.lane.b32.xlu1 %v707_v50, %s6872_s26 }
  0x59   : > { %825 = vrot.lane.b32.xlu0 %v674_v51, %s6872_s26 }
  0x5c   : > { %859 = vrot.lane.b32.xlu1 %v691_v52, %s6872_s26 }
  0x5d   : > { %793 = vrot.lane.b32.xlu0 %v658_v53, %s6872_s26 }
  0x60   : > { %889 = vrot.lane.b32.xlu1 %v706_v54, %s6872_s26 }
  0x61   : > { %823 = vrot.lane.b32.xlu0 %v673_v55, %s6872_s26 }
  0x64   : > { %857 = vrot.lane.b32.xlu1 %v690_v56, %s6872_s26 }
  0x65   : > { %791 = vrot.lane.b32.xlu0 %v657_v57, %s6872_s26 }
  0x68   : > { %887 = vrot.lane.b32.xlu1 %v705_v58, %s6872_s26  ;;  %v7339_v58 = vld [vmem:[%s10119_s3] ss:$0 sm:$0xff] }
  0x69   : > { %821 = vrot.lane.b32.xlu0 %v672_v59, %s6872_s26 }
  0x6c   : > { %855 = vrot.lane.b32.xlu1 %v689_v60, %s6872_s26 }
  0x6d   : > { %789 = vrot.lane.b32.xlu0 %v656_v61, %s6872_s26 }
  0x70   : > { %885 = vrot.lane.b32.xlu1 %v704_v62, %s6872_s26 }
  0x71   : > { %819 = vrot.lane.b32.xlu0 %v671_v63, %s6872_s26 }
  0x74   : > { %853 = vrot.lane.b32.xlu1 %v688_v2, %s6872_s26 }
  0x75   : > { %787 = vrot.lane.b32.xlu0 %v655_v3, %s6872_s26 }
  0x78   : > { %883 = vrot.lane.b32.xlu1 %v703_v6, %s6872_s26 }
  0x79   : > { %817 = vrot.lane.b32.xlu0 %v670_v7, %s6872_s26 }
  0x7c   : > { %851 = vrot.lane.b32.xlu1 %v687_v8, %s6872_s26 }
  0x7d   : > { %785 = vrot.lane.b32.xlu0 %v654_v11, %s6872_s26 }
  0x80   : > { %881 = vrot.lane.b32.xlu1 %v702_v12, %s6872_s26 }
  0x81   : > { %815 = vrot.lane.b32.xlu0 %v669_v15, %s6872_s26 }
  0x84   : > { %849 = vrot.lane.b32.xlu1 %v686_v16, %s6872_s26 }
  0x85   : > { %783 = vrot.lane.b32.xlu0 %v653_v19, %s6872_s26 }
  0x88   : > { %879 = vrot.lane.b32.xlu1 %v701_v20, %s6872_s26 }
  0x89   : > { %813 = vrot.lane.b32.xlu0 %v668_v23, %s6872_s26 }
  0x8c   : > { %847 = vrot.lane.b32.xlu1 %v685_v24, %s6872_s26 }
  0x8d   : > { %781 = vrot.lane.b32.xlu0 %v652_v26, %s6872_s26 }
  0x8e   : > { %v7294_v34 = vpop.permute.xlu0 %841  ;;  %v7300_v36 = vpop.permute.xlu1 %839 }
  0x90   : > { %877 = vrot.lane.b32.xlu1 %v700_v27, %s6872_s26 }
  0x91   : > { %811 = vrot.lane.b32.xlu0 %v667_v28, %s6872_s26 }
  0x92   : > { %v7304_v38 = vpop.permute.xlu1 %905 }
  0x93   : > { %v7298_v35 = vpop.permute.xlu0 %809 }
  0x94   : > { %779 = vrot.lane.b32.xlu1 %v651_v30, %s6872_s26 }
  0x95   : > { %845 = vrot.lane.b32.xlu0 %v684_v31, %s6872_s26 }
  0x96   : > { %v7308_v40 = vpop.permute.xlu1 %873 }
  0x97   : > { %v7302_v37 = vpop.permute.xlu0 %807 }
  0x98   : > { %843 = vrot.lane.b32.xlu1 %v683_v32, %s6872_s26 }
  0x99   : > { %875 = vrot.lane.b32.xlu0 %v699_v33, %s6872_s26 }
  0x9a   : > { %v7312_v42 = vpop.permute.xlu1 %903 }
  0x9b   : > { %v7306_v39 = vpop.permute.xlu0 %837 }
  0x9e   : > { %v7316_v44 = vpop.permute.xlu1 %871 }
  0x9f   : > { %v7310_v41 = vpop.permute.xlu0 %805 }
  0xa2   : > { %v7320_v46 = vpop.permute.xlu1 %901 }
  0xa3   : > { %v7314_v43 = vpop.permute.xlu0 %835 }
  0xa6   : > { %v7324_v48 = vpop.permute.xlu1 %869 }
  0xa7   : > { %v7318_v45 = vpop.permute.xlu0 %803 }
  0xaa   : > { %v7328_v50 = vpop.permute.xlu1 %899 }
  0xab   : > { %v7322_v47 = vpop.permute.xlu0 %833 }
  0xae   : > { %v7332_v52 = vpop.permute.xlu1 %867 }
  0xaf   : > { %v7326_v49 = vpop.permute.xlu0 %801 }
  0xb2   : > { %v898_v54 = vpop.permute.xlu1 %897 }
  0xb3   : > { %v7330_v51 = vpop.permute.xlu0 %831 }
  0xb6   : > { %v866_v56 = vpop.permute.xlu1 %865 }
  0xb7   : > { %v7334_v53 = vpop.permute.xlu0 %799 }
  0xba   : > { %v896_v59 = vpop.permute.xlu1 %895 }
  0xbb   : > { %v830_v55 = vpop.permute.xlu0 %829 }
  0xbe   : > { %v864_v6 = vpop.permute.xlu1 %863 }
  0xbf   : > { %v798_v57 = vpop.permute.xlu0 %797 }
  0xc2   : > { %v894_v20 = vpop.permute.xlu1 %893 }
  0xc3   : > { %v828_v60 = vpop.permute.xlu0 %827 }
  0xc6   : > { %v862_v32 = vpop.permute.xlu1 %861 }
  0xc7   : > { %v796_v11 = vpop.permute.xlu0 %795 }
  0xcb   : > { %v826_v23 = vpop.permute.xlu0 %825 }
  0xcf   : > { %v794_v33 = vpop.permute.xlu0 %793 }
  0xe5   : > { %v6201_v61 = vpop.f32.mrf.mxu1 }
  0xe6   : > { %v7342_v62 = vadd.f32 %v6201_v61, %v7339_v58 }
  0xe7   : > { %v556_v63 = vpop.f32.mrf.mxu1 }
  0xe8   : > { %10257 = vst [vmem:[#allocation5_spill] sm:$0xff] %v7342_v62  ;;  %v7345_v2 = vadd.f32 %v7339_v58, %v556_v63 }
  0xe9   : > { %v6204_v3 = vpop.f32.mrf.mxu1 }
  0xea   : > { %10258 = vst [vmem:[#allocation6_spill] sm:$0xff] %v7345_v2  ;;  %v7348_v7 = vadd.f32 %v6204_v3, %v7339_v58  ;;  %v7351_v8 = vmul.f32 0.35355338, %v7345_v2 }
  0xeb   : > { %v7353_v12 = vpop.f32.mrf.mxu1 }
  0xec   : > { %10259 = vst [vmem:[#allocation7_spill] sm:$0xff] %v7348_v7  ;;  %5855 = vmatprep.mubr.msk.f32.mxu1 %vm441_vm0, %v7351_v8  ;;  %5919 = vmatprep.mubr.msk.f32.mxu0 %vm441_vm0, %v7351_v8 }
  0xed   : > { %v6207_v15 = vpop.f32.mrf.mxu1 }
  0xee   : > { %v7360_v16 = vadd.f32 %v6207_v15, %v7339_v58 }
  0xef   : > { %v7362_v19 = vpop.f32.mrf.mxu1 }
  0xf0   : > { %10260 = vst [vmem:[#allocation8_spill] sm:$0xff] %v7360_v16 }
  0xf1   : > { %v6210_v24 = vpop.f32.mrf.mxu1 }
  0xf2   : > { %v7365_v26 = vadd.f32 %v6210_v24, %v7339_v58 }
  0xf3   : > { %v7367_v27 = vpop.f32.mrf.mxu1 }
  0xf4   : > { %10261 = vst [vmem:[#allocation9_spill] sm:$0xff] %v7365_v26  ;;  %v994_v28 = vmul.f32 %v826_v23, %v7365_v26  ;;  %v978_v61 = vmul.f32 %v794_v33, %v7365_v26 }
  0xf5   : > { %v6213_v30 = vpop.f32.mrf.mxu1 }
  0xf6   : > { %v7371_v31 = vadd.f32 %v6213_v30, %v7339_v58  ;;  %1401 = vrot.lane.b32.xlu0 %v994_v28, %s6873_s12  ;;  %v892_v30 = vpop.permute.xlu1 %891 }
  0xf7   : > { %v596_v3 = vpop.f32.mrf.mxu1 }
  0xf8   : > { %10262 = vst [vmem:[#allocation10_spill] sm:$0xff] %v7371_v31  ;;  %v1028_v63 = vmul.f32 %v894_v20, %v7371_v31  ;;  %v7379_v15 = vadd.f32 %v7339_v58, %v596_v3  ;;  %v1012_v23 = vmul.f32 %v862_v32, %v7371_v31  ;;  %v996_v24 = vmul.f32 %v830_v55, %v7371_v31 }
  0xf9   : > { %v980_v28 = vmul.f32 %v798_v57, %v7371_v31  ;;  %v6216_v33 = vpop.f32.mrf.mxu1 }
  0xfa   : > { %1369 = vrot.lane.b32.xlu0 %v978_v61, %s6873_s12  ;;  %1469 = vrot.lane.b32.xlu1 %v1028_v63, %s6873_s12  ;;  %10263 = vst [vmem:[#allocation11_spill] sm:$0xff] %v7379_v15  ;;  %v1027_v20 = vmul.f32 %v892_v30, %v7379_v15  ;;  %v860_v61 = vpop.permute.xlu1 %859  ;;  %v7390_v63 = vadd.f32 %v6216_v33, %v7339_v58 }
  0xfb   : > { %v1011_v55 = vmul.f32 %v860_v61, %v7379_v15  ;;  %v995_v32 = vmul.f32 %v828_v60, %v7379_v15  ;;  %v979_v3 = vmul.f32 %v796_v11, %v7379_v15 }
  0xfc   : > { %10264 = vst [vmem:[#allocation12_spill] sm:$0xff] %v7390_v63  ;;  %v1030_v57 = vmul.f32 %v898_v54, %v7390_v63  ;;  %v1014_v30 = vmul.f32 %v866_v56, %v7390_v63  ;;  %v998_v60 = vmul.f32 %v7322_v47, %v7390_v63  ;;  %v7408_v54 = vpop.permute.xlu0 %823 }
  0xfe   : > { %1437 = vrot.lane.b32.xlu1 %v1012_v23, %s6873_s12  ;;  %1405 = vrot.lane.b32.xlu0 %v996_v24, %s6873_s12  ;;  %v606_v23 = vpop.f32.mrf.mxu1  ;;  %v890_v56 = vpop.permute.xlu1 %889 }
  0xff   : > { %v7401_v24 = vadd.f32 %v7339_v58, %v606_v23 }
 0x101   : > { %10265 = vst [vmem:[#allocation13_spill] sm:$0xff] %v7401_v24  ;;  %v1029_v11 = vmul.f32 %v896_v59, %v7401_v24  ;;  %v1013_v47 = vmul.f32 %v864_v6, %v7401_v24  ;;  %v997_v61 = vmul.f32 %v7330_v51, %v7401_v24  ;;  %v981_v59 = vmul.f32 %v7334_v53, %v7401_v24 }
 0x102   : > { %1373 = vrot.lane.b32.xlu0 %v980_v28, %s6873_s12  ;;  %1467 = vrot.lane.b32.xlu1 %v1027_v20, %s6873_s12  ;;  %v982_v28 = vmul.f32 %v7326_v49, %v7390_v63  ;;  %v6219_v20 = vpop.f32.mrf.mxu1 }
 0x103   : > { %v7416_v33 = vadd.f32 %v6219_v20, %v7339_v58 }
 0x105   : > { %10266 = vst [vmem:[#allocation14_spill] sm:$0xff] %v7416_v33  ;;  %v1032_v49 = vmul.f32 %v7320_v46, %v7416_v33  ;;  %v1000_v23 = vmul.f32 %v7306_v39, %v7416_v33 }
 0x106   : > { %1435 = vrot.lane.b32.xlu1 %v1011_v55, %s6873_s12  ;;  %1403 = vrot.lane.b32.xlu0 %v995_v32, %s6873_s12  ;;  %v792_v55 = vpop.permute.xlu0 %791  ;;  %v616_v32 = vpop.f32.mrf.mxu1 }
 0x107   : > { %v7430_v51 = vadd.f32 %v7339_v58, %v616_v32 }
 0x109   : > { %10267 = vst [vmem:[#allocation15_spill] sm:$0xff] %v7430_v51  ;;  %v1031_v53 = vmul.f32 %v7328_v50, %v7430_v51  ;;  %v1015_v39 = vmul.f32 %v7332_v52, %v7430_v51 }
 0x10a   : > { %1473 = vrot.lane.b32.xlu1 %v1030_v57, %s6873_s12  ;;  %1371 = vrot.lane.b32.xlu0 %v979_v3, %s6873_s12  ;;  %v858_v57 = vpop.permute.xlu1 %857  ;;  %v822_v6 = vpop.permute.xlu0 %821  ;;  %v1016_v3 = vmul.f32 %v7324_v48, %v7416_v33 }
 0x10e   : > { %1441 = vrot.lane.b32.xlu1 %v1014_v30, %s6873_s12  ;;  %1409 = vrot.lane.b32.xlu0 %v998_v60, %s6873_s12  ;;  %v888_v46 = vpop.permute.xlu1 %887  ;;  %v984_v30 = vmul.f32 %v7310_v41, %v7416_v33  ;;  %v6222_v60 = vpop.f32.mrf.mxu1 }
 0x10f   : > { %v7445_v48 = vadd.f32 %v6222_v60, %v7339_v58 }
 0x111   : > { %10268 = vst [vmem:[#allocation16_spill] sm:$0xff] %v7445_v48  ;;  %v986_v50 = vmul.f32 %v7298_v35, %v7445_v48 }
 0x112   : > { %1471 = vrot.lane.b32.xlu1 %v1029_v11, %s6873_s12  ;;  %1377 = vrot.lane.b32.xlu0 %v982_v28, %s6873_s12  ;;  %v790_v11 = vpop.permute.xlu0 %789  ;;  %v999_v28 = vmul.f32 %v7314_v43, %v7430_v51  ;;  %v856_v20 = vpop.permute.xlu1 %855 }
 0x116   : > { %1439 = vrot.lane.b32.xlu1 %v1013_v47, %s6873_s12  ;;  %1407 = vrot.lane.b32.xlu0 %v997_v61, %s6873_s12  ;;  %v820_v41 = vpop.permute.xlu0 %819  ;;  %v983_v47 = vmul.f32 %v7318_v45, %v7430_v51  ;;  %v626_v61 = vpop.f32.mrf.mxu1  ;;  %v1034_v45 = vmul.f32 %v7304_v38, %v7445_v48 }
 0x117   : > { %v886_v52 = vpop.permute.xlu1 %885  ;;  %v7460_v43 = vadd.f32 %v7339_v58, %v626_v61 }
 0x119   : > { %10269 = vst [vmem:[#allocation17_spill] sm:$0xff] %v7460_v43  ;;  %v1001_v35 = vmul.f32 %v7300_v36, %v7460_v43  ;;  %v1033_v38 = vmul.f32 %v7312_v42, %v7460_v43  ;;  %v1010_v42 = vmul.f32 %v858_v57, %v7365_v26 }
 0x11a   : > { %1477 = vrot.lane.b32.xlu1 %v1032_v49, %s6873_s12  ;;  %1375 = vrot.lane.b32.xlu0 %v981_v59, %s6873_s12  ;;  %v1018_v49 = vmul.f32 %v7308_v40, %v7445_v48  ;;  %v1002_v59 = vmul.f32 %v7294_v34, %v7445_v48  ;;  %v788_v32 = vpop.permute.xlu0 %787  ;;  %v7476_v34 = vadd.f32 %v7339_v58, %v7367_v27 }
 0x11b   : > { %v1017_v27 = vmul.f32 %v7316_v44, %v7460_v43 }
 0x11c   : > { %10270 = vst [vmem:[#allocation18_spill] sm:$0xff] %v7476_v34  ;;  %v1009_v57 = vmul.f32 %v856_v20, %v7476_v34 }
 0x11e   : > { %1445 = vrot.lane.b32.xlu1 %v1016_v3, %s6873_s12  ;;  %1413 = vrot.lane.b32.xlu0 %v1000_v23, %s6873_s12  ;;  %v854_v3 = vpop.permute.xlu1 %853  ;;  %v818_v40 = vpop.permute.xlu0 %817  ;;  %v1026_v23 = vmul.f32 %v890_v56, %v7365_v26 }
 0x11f   : > { %v1008_v20 = vmul.f32 %v854_v3, %v7360_v16 }
 0x122   : > { %1475 = vrot.lane.b32.xlu1 %v1031_v53, %s6873_s12  ;;  %1381 = vrot.lane.b32.xlu0 %v984_v30, %s6873_s12  ;;  %v985_v53 = vmul.f32 %v7302_v37, %v7460_v43  ;;  %v884_v36 = vpop.permute.xlu1 %883  ;;  %v993_v30 = vmul.f32 %v7408_v54, %v7476_v34  ;;  %v786_v60 = vpop.permute.xlu0 %785  ;;  %v977_v37 = vmul.f32 %v792_v55, %v7476_v34 }
 0x123   : > { %v992_v54 = vmul.f32 %v822_v6, %v7360_v16  ;;  %v1025_v55 = vmul.f32 %v888_v46, %v7476_v34 }
 0x126   : > { %1443 = vrot.lane.b32.xlu1 %v1015_v39, %s6873_s12  ;;  %1411 = vrot.lane.b32.xlu0 %v999_v28, %s6873_s12  ;;  %v852_v56 = vpop.permute.xlu1 %851  ;;  %v816_v39 = vpop.permute.xlu0 %815  ;;  %v7500_v28 = vadd.f32 %v7339_v58, %v7362_v19 }
 0x128   : > { %10271 = vst [vmem:[#allocation19_spill] sm:$0xff] %v7500_v28  ;;  %v991_v6 = vmul.f32 %v820_v41, %v7500_v28  ;;  %v975_v46 = vmul.f32 %v788_v32, %v7500_v28  ;;  %v7522_v32 = vadd.f32 %v7339_v58, %v7353_v12 }
 0x12a   : > { %1385 = vrot.lane.b32.xlu1 %v986_v50, %s6873_s12  ;;  %1379 = vrot.lane.b32.xlu0 %v983_v47, %s6873_s12  ;;  %v882_v44 = vpop.permute.xlu1 %881  ;;  %v976_v50 = vmul.f32 %v790_v11, %v7360_v16  ;;  %v784_v47 = vpop.permute.xlu0 %783  ;;  %v990_v11 = vmul.f32 %v818_v40, %v7348_v7  ;;  %10272 = vst [vmem:[#allocation20_spill] sm:$0xff] %v7522_v32 }
 0x12b   : > { %v989_v3 = vmul.f32 %v816_v39, %v7522_v32 }
 0x12e   : > { %1449 = vrot.lane.b32.xlu1 %v1018_v49, %s6873_s12  ;;  %1417 = vrot.lane.b32.xlu0 %v1002_v59, %s6873_s12  ;;  %v850_v61 = vpop.permute.xlu1 %849  ;;  %v814_v19 = vpop.permute.xlu0 %813  ;;  %v1024_v49 = vmul.f32 %v886_v52, %v7360_v16  ;;  %v1023_v52 = vmul.f32 %v884_v36, %v7500_v28  ;;  %v973_v36 = vmul.f32 %v784_v47, %v7522_v32 }
 0x132   : > { %1415 = vrot.lane.b32.xlu1 %v1001_v35, %s6873_s12  ;;  %1481 = vrot.lane.b32.xlu0 %v1034_v45, %s6873_s12  ;;  %v880_v59 = vpop.permute.xlu1 %879  ;;  %v782_v41 = vpop.permute.xlu0 %781  ;;  %v974_v35 = vmul.f32 %v786_v60, %v7348_v7 }
 0x136   : > { %1465 = vrot.lane.b32.xlu1 %v1026_v23, %s6873_s12  ;;  %1383 = vrot.lane.b32.xlu0 %v985_v53, %s6873_s12  ;;  %v848_v45 = vpop.permute.xlu1 %847  ;;  %v812_v40 = vpop.permute.xlu0 %811  ;;  %v1007_v23 = vmul.f32 %v852_v56, %v7500_v28  ;;  %v1022_v53 = vmul.f32 %v882_v44, %v7348_v7 }
 0x137   : > { %v1005_v39 = vmul.f32 %v848_v45, %v7522_v32 }
 0x13a   : > { %1479 = vrot.lane.b32.xlu1 %v1033_v38, %s6873_s12  ;;  %1399 = vrot.lane.b32.xlu0 %v993_v30, %s6873_s12  ;;  %v878_v58 = vpop.permute.xlu1 %877  ;;  %v846_v12 = vpop.permute.xlu0 %845  ;;  %v1006_v38 = vmul.f32 %v850_v61, %v7348_v7  ;;  %v988_v30 = vmul.f32 %v814_v19, %v7342_v62 }
 0x13e   : > { %1447 = vrot.lane.b32.xlu1 %v1017_v27, %s6873_s12  ;;  %1367 = vrot.lane.b32.xlu0 %v977_v37, %s6873_s12  ;;  %v780_v60 = vpop.permute.xlu1 %779  ;;  %v1021_v27 = vmul.f32 %v880_v59, %v7522_v32  ;;  %v972_v37 = vmul.f32 %v782_v41, %v7342_v62  ;;  %v876_v56 = vpop.permute.xlu0 %875 }
 0x13f   : > { %v1019_v61 = vmul.f32 %v876_v56, %v7345_v2 }
 0x142   : > { %1433 = vrot.lane.b32.xlu1 %v1010_v42, %s6873_s12  ;;  %1397 = vrot.lane.b32.xlu0 %v992_v54, %s6873_s12  ;;  %v987_v42 = vmul.f32 %v812_v40, %v7345_v2  ;;  %v844_v54 = vpop.permute.xlu1 %843 }
 0x146   : > { %1463 = vrot.lane.b32.xlu1 %v1025_v55, %s6873_s12  ;;  %1365 = vrot.lane.b32.xlu0 %v976_v50, %s6873_s12  ;;  %v1020_v55 = vmul.f32 %v878_v58, %v7342_v62  ;;  %v971_v50 = vmul.f32 %v780_v60, %v7345_v2 }
 0x14a   : > { %1431 = vrot.lane.b32.xlu1 %v1009_v57, %s6873_s12  ;;  %1395 = vrot.lane.b32.xlu0 %v991_v6, %s6873_s12  ;;  %v1004_v6 = vmul.f32 %v846_v12, %v7342_v62 }
 0x14e   : > { %1461 = vrot.lane.b32.xlu1 %v1024_v49, %s6873_s12  ;;  %1363 = vrot.lane.b32.xlu0 %v975_v46, %s6873_s12  ;;  %v1003_v46 = vmul.f32 %v844_v54, %v7345_v2 }
 0x152   : > { %1429 = vrot.lane.b32.xlu1 %v1008_v20, %s6873_s12  ;;  %1393 = vrot.lane.b32.xlu0 %v990_v11, %s6873_s12 }
 0x156   : > { %1459 = vrot.lane.b32.xlu1 %v1023_v52, %s6873_s12  ;;  %1361 = vrot.lane.b32.xlu0 %v974_v35, %s6873_s12 }
 0x15a   : > { %1427 = vrot.lane.b32.xlu1 %v1007_v23, %s6873_s12  ;;  %1391 = vrot.lane.b32.xlu0 %v989_v3, %s6873_s12 }
 0x15e   : > { %1457 = vrot.lane.b32.xlu1 %v1022_v53, %s6873_s12  ;;  %1359 = vrot.lane.b32.xlu0 %v973_v36, %s6873_s12 }
 0x162   : > { %1425 = vrot.lane.b32.xlu1 %v1006_v38, %s6873_s12  ;;  %1389 = vrot.lane.b32.xlu0 %v988_v30, %s6873_s12 }
 0x166   : > { %1455 = vrot.lane.b32.xlu1 %v1021_v27, %s6873_s12  ;;  %1357 = vrot.lane.b32.xlu0 %v972_v37, %s6873_s12 }
 0x168   : > { %v7544_v44 = vpop.permute.xlu0 %1401 }
 0x16a   : > { %1423 = vrot.lane.b32.xlu1 %v1005_v39, %s6873_s12  ;;  %1387 = vrot.lane.b32.xlu0 %v987_v42, %s6873_s12 }
 0x16c   : > { %v7550_v47 = vpop.permute.xlu0 %1369  ;;  %v7552_v57 = vpop.permute.xlu1 %1469 }
 0x16e   : > { %1453 = vrot.lane.b32.xlu1 %v1020_v55, %s6873_s12  ;;  %1355 = vrot.lane.b32.xlu0 %v971_v50, %s6873_s12 }
 0x170   : > { %v7558_v19 = vpop.permute.xlu1 %1437  ;;  %v7560_v49 = vpop.permute.xlu0 %1405 }
 0x172   : > { %1421 = vrot.lane.b32.xlu1 %v1004_v6, %s6873_s12  ;;  %1451 = vrot.lane.b32.xlu0 %v1019_v61, %s6873_s12 }
 0x174   : > { %v7565_v11 = vpop.permute.xlu0 %1373  ;;  %v7567_v59 = vpop.permute.xlu1 %1467 }
 0x176   : > { %1419 = vrot.lane.b32.xlu1 %v1003_v46, %s6873_s12  ;;  %1161 = vrot.lane.b32.xlu0 %v6977_v4, %s6874_s13 }
 0x178   : > { %v7572_v20 = vpop.permute.xlu1 %1435  ;;  %v7574_v41 = vpop.permute.xlu0 %1403 }
 0x17a   : > { %1097 = vrot.lane.b32.xlu1 %v6952_v0, %s6874_s13  ;;  %1095 = vrot.lane.b32.xlu0 %v6957_v1, %s6874_s13 }
 0x17c   : > { %v7580_v35 = vpop.permute.xlu1 %1473  ;;  %v7582_v52 = vpop.permute.xlu0 %1371 }
 0x17e   : > { %1065 = vrot.lane.b32.xlu1 %v6982_v5, %s6874_s13  ;;  %1063 = vrot.lane.b32.xlu0 %v7004_v10, %s6874_s13 }
 0x180   : > { %v7588_v4 = vpop.permute.xlu1 %1441  ;;  %v1410_v45 = vpop.permute.xlu0 %1409 }
 0x182   : > { %1129 = vrot.lane.b32.xlu1 %v6999_v9, %s6874_s13  ;;  %1093 = vrot.lane.b32.xlu0 %v7022_v14, %s6874_s13 }
 0x184   : > { %v1472_v0 = vpop.permute.xlu1 %1471  ;;  %v1378_v1 = vpop.permute.xlu0 %1377 }
 0x186   : > { %1159 = vrot.lane.b32.xlu1 %v7016_v13, %s6874_s13  ;;  %1061 = vrot.lane.b32.xlu0 %v7040_v18, %s6874_s13 }
 0x188   : > { %v1440_v5 = vpop.permute.xlu1 %1439  ;;  %v1408_v3 = vpop.permute.xlu0 %1407 }
 0x18a   : > { %1127 = vrot.lane.b32.xlu1 %v7034_v17, %s6874_s13  ;;  %1091 = vrot.lane.b32.xlu0 %v7058_v22, %s6874_s13 }
 0x18c   : > { %v1478_v9 = vpop.permute.xlu1 %1477  ;;  %v1376_v10 = vpop.permute.xlu0 %1375 }
 0x18e   : > { %1157 = vrot.lane.b32.xlu1 %v7052_v21, %s6874_s13 }
 0x190   : > { %v1446_v14 = vpop.permute.xlu1 %1445  ;;  %v1414_v40 = vpop.permute.xlu0 %1413 }
 0x192   : > { %1125 = vrot.lane.b32.xlu1 %v7070_v25, %s6874_s13 }
 0x194   : > { %v1476_v13 = vpop.permute.xlu1 %1475  ;;  %v1382_v18 = vpop.permute.xlu0 %1381 }
 0x196   : > { %1155 = vrot.lane.b32.xlu1 %v7085_v29, %s6874_s13 }
 0x198   : > { %v1444_v23 = vpop.permute.xlu1 %1443  ;;  %v1412_v17 = vpop.permute.xlu0 %1411 }
 0x19c   : > { %v1386_v53 = vpop.permute.xlu1 %1385  ;;  %v1380_v36 = vpop.permute.xlu0 %1379 }
 0x1a0   : > { %v1450_v22 = vpop.permute.xlu1 %1449  ;;  %v1418_v58 = vpop.permute.xlu0 %1417 }
 0x1a1   : > { %5823 = vmatprep.subr.msk.mxu1 %vm441_vm0, %v1418_v58  ;;  %v648_v58 = vmul.f32 0.35355338, %v7416_v33 }
 0x1a2   : > { %5824 = vmatpush3.xpose.msk.msra.mxu1 %vm441_vm0, %v1386_v53  ;;  %v645_v53 = vmul.f32 0.35355338, %v7401_v24 }
 0x1a4   : > { %v1416_v21 = vpop.permute.xlu1 %1415  ;;  %v1482_v12 = vpop.permute.xlu0 %1481 }
 0x1a5   : > { %5825 = vmatprep.subr.msk.mxu1 %vm441_vm0, %v1416_v21  ;;  %5887 = vmatprep.subr.msk.mxu0 %vm441_vm0, %v1482_v12  ;;  %v649_v21 = vmul.f32 0.35355338, %v7460_v43  ;;  %v650_v12 = vmul.f32 0.35355338, %v7445_v48  ;;  %v2426_v48 = vld [vmem:[#allocation2 + $0x2c0] sm:$0xff] }
 0x1a6   : > { %5888 = vmatpush3.xpose.msk.msra.mxu0 %vm441_vm0, %v1450_v22  ;;  %v647_v22 = vmul.f32 0.35355338, %v7430_v51 }
 0x1a8   : > { %v1466_v25 = vpop.permute.xlu1 %1465  ;;  %v1384_v29 = vpop.permute.xlu0 %1383 }
 0x1a9   : > { %5826 = vmatpush3.xpose.msk.msra.mxu1 %vm441_vm0, %v1384_v29  ;;  %v2527_v29 = vld [vmem:[#allocation2 + $0x5e8] sm:$0xff] }
 0x1aa   : > { %5827 = vmatprep.subr.msk.mxu1 %vm441_vm0, %v1414_v40  ;;  %v639_v40 = vmul.f32 0.35355338, %v7500_v28 }
 0x1ac   : > { %v1480_v38 = vpop.permute.xlu1 %1479  ;;  %v1400_v30 = vpop.permute.xlu0 %1399 }
 0x1ad   : > { %5828 = vmatpush3.xpose.msk.msra.mxu1 %vm441_vm0, %v1382_v18  ;;  %5889 = vmatprep.subr.msk.mxu0 %vm441_vm0, %v1480_v38  ;;  %v642_v18 = vmul.f32 0.35355338, %v7365_v26  ;;  %v2398_v38 = vld [vmem:[#allocation2 + $0x1e0] sm:$0xff]  ;;  %v2435_v26 = vld [vmem:[#allocation2 + $0x308] sm:$0xff] }
 0x1ae   : > { %5829 = vmatprep.subr.msk.mxu1 %vm441_vm0, %v1412_v17  ;;  %v644_v17 = vmul.f32 0.35355338, %v7371_v31 }
 0x1b0   : > { %v1448_v60 = vpop.permute.xlu1 %1447  ;;  %v1368_v27 = vpop.permute.xlu0 %1367 }
 0x1b1   : > { %5830 = vmatpush3.xpose.msk.msra.mxu1 %vm441_vm0, %v1380_v36  ;;  %5890 = vmatpush3.xpose.msk.msra.mxu0 %vm441_vm0, %v1448_v60  ;;  %v646_v36 = vmul.f32 0.35355338, %v7390_v63  ;;  %v2395_v60 = vld [vmem:[#allocation2 + $0x1c8] sm:$0xff] }
 0x1b2   : > { %5831 = vmatprep.subr.msk.mxu1 %vm441_vm0, %v1410_v45  ;;  %5891 = vmatprep.subr.msk.mxu0 %vm441_vm0, %v1478_v9  ;;  %v637_v9 = vmul.f32 0.35355338, %v7522_v32  ;;  %v2559_v63 = vld [vmem:[#allocation2 + $0x6e8] sm:$0xff] }
 0x1b4   : > { %v1434_v37 = vpop.permute.xlu1 %1433  ;;  %v1398_v56 = vpop.permute.xlu0 %1397 }
 0x1b5   : > { %5832 = vmatpush3.xpose.msk.msra.mxu1 %vm441_vm0, %v1378_v1  ;;  %5892 = vmatpush3.xpose.msk.msra.mxu0 %vm441_vm0, %v1446_v14  ;;  %v636_v1 = vmul.f32 0.35355338, %v7342_v62  ;;  %v638_v14 = vmul.f32 0.35355338, %v7348_v7  ;;  %v2570_v7 = vld [vmem:[#allocation2 + $0x740] sm:$0xff] }
 0x1b6   : > { %5833 = vmatprep.subr.msk.mxu1 %vm441_vm0, %v1408_v3  ;;  %5893 = vmatprep.subr.msk.mxu0 %vm441_vm0, %v1476_v13  ;;  %v640_v13 = vmul.f32 0.35355338, %v7360_v16 }
 0x1b8   : > { %v1464_v39 = vpop.permute.xlu1 %1463  ;;  %v1366_v42 = vpop.permute.xlu0 %1365 }
 0x1b9   : > { %5834 = vmatpush3.xpose.msk.msra.mxu1 %vm441_vm0, %v1376_v10  ;;  %5894 = vmatpush3.xpose.msk.msra.mxu0 %vm441_vm0, %v1444_v23  ;;  %v643_v23 = vmul.f32 0.35355338, %v7379_v15 }
 0x1ba   : > { %5835 = vmatprep.subr.msk.mxu1 %vm441_vm0, %v7560_v49  ;;  %5895 = vmatprep.subr.msk.mxu0 %vm441_vm0, %v7580_v35 }
 0x1bc   : > { %v1432_v54 = vpop.permute.xlu1 %1431  ;;  %v1396_v55 = vpop.permute.xlu0 %1395 }
 0x1bd   : > { %5836 = vmatpush3.xpose.msk.msra.mxu1 %vm441_vm0, %v7565_v11  ;;  %5896 = vmatpush3.xpose.msk.msra.mxu0 %vm441_vm0, %v7588_v4 }
 0x1be   : > { %5837 = vmatprep.subr.msk.mxu1 %vm441_vm0, %v7574_v41  ;;  %5897 = vmatprep.subr.msk.mxu0 %vm441_vm0, %v1472_v0 }
 0x1c0   : > { %v1462_v50 = vpop.permute.xlu1 %1461  ;;  %v1364_v6 = vpop.permute.xlu0 %1363 }
 0x1c1   : > { %5838 = vmatpush3.xpose.msk.msra.mxu1 %vm441_vm0, %v7582_v52  ;;  %5898 = vmatpush3.xpose.msk.msra.mxu0 %vm441_vm0, %v1440_v5 }
 0x1c2   : > { %5839 = vmatprep.subr.msk.mxu1 %vm441_vm0, %v7544_v44  ;;  %5899 = vmatprep.subr.msk.mxu0 %vm441_vm0, %v7552_v57 }
 0x1c4   : > { %v1430_v61 = vpop.permute.xlu1 %1429  ;;  %v1394_v49 = vpop.permute.xlu0 %1393 }
 0x1c5   : > { %5840 = vmatpush3.xpose.msk.msra.mxu1 %vm441_vm0, %v7550_v47  ;;  %5900 = vmatpush3.xpose.msk.msra.mxu0 %vm441_vm0, %v7558_v19 }
 0x1c6   : > { %5841 = vmatprep.subr.msk.mxu1 %vm441_vm0, %v1400_v30  ;;  %5901 = vmatprep.subr.msk.mxu0 %vm441_vm0, %v7567_v59  ;;  %v2526_v30 = vld [vmem:[#allocation2 + $0x5e0] sm:$0xff] }
 0x1c8   : > { %v1460_v46 = vpop.permute.xlu1 %1459  ;;  %v1362_v11 = vpop.permute.xlu0 %1361 }
 0x1c9   : > { %5842 = vmatpush3.xpose.msk.msra.mxu1 %vm441_vm0, %v1368_v27  ;;  %5902 = vmatpush3.xpose.msk.msra.mxu0 %vm441_vm0, %v7572_v20  ;;  %v2523_v27 = vld [vmem:[#allocation2 + $0x5c8] sm:$0xff] }
 0x1ca   : > { %5843 = vmatprep.subr.msk.mxu1 %vm441_vm0, %v1398_v56  ;;  %5903 = vmatprep.subr.msk.mxu0 %vm441_vm0, %v1466_v25  ;;  %v2399_v25 = vld [vmem:[#allocation2 + $0x1e8] sm:$0xff]  ;;  %v2522_v56 = vld [vmem:[#allocation2 + $0x5c0] sm:$0xff] }
 0x1cc   : > { %v1428_v44 = vpop.permute.xlu1 %1427  ;;  %v1392_v47 = vpop.permute.xlu0 %1391 }
 0x1cd   : > { %5844 = vmatpush3.xpose.msk.msra.mxu1 %vm441_vm0, %v1366_v42  ;;  %5904 = vmatpush3.xpose.msk.msra.mxu0 %vm441_vm0, %v1434_v37  ;;  %v2394_v37 = vld [vmem:[#allocation2 + $0x1c0] sm:$0xff]  ;;  %v2519_v42 = vld [vmem:[#allocation2 + $0x5a8] sm:$0xff] }
 0x1ce   : > { %5845 = vmatprep.subr.msk.mxu1 %vm441_vm0, %v1396_v55  ;;  %5905 = vmatprep.subr.msk.mxu0 %vm441_vm0, %v1464_v39  ;;  %v2391_v39 = vld [vmem:[#allocation2 + $0x1a8] sm:$0xff]  ;;  %v2518_v55 = vld [vmem:[#allocation2 + $0x5a0] sm:$0xff] }
 0x1d0   : > { %v1458_v57 = vpop.permute.xlu1 %1457  ;;  %v1360_v19 = vpop.permute.xlu0 %1359 }
 0x1d1   : > { %5846 = vmatpush3.xpose.msk.msra.mxu1 %vm441_vm0, %v1364_v6  ;;  %5906 = vmatpush3.xpose.msk.msra.mxu0 %vm441_vm0, %v1432_v54  ;;  %v2390_v54 = vld [vmem:[#allocation2 + $0x1a0] sm:$0xff]  ;;  %v2515_v6 = vld [vmem:[#allocation2 + $0x588] sm:$0xff] }
 0x1d2   : > { %5847 = vmatprep.subr.msk.mxu1 %vm441_vm0, %v1394_v49  ;;  %5907 = vmatprep.subr.msk.mxu0 %vm441_vm0, %v1462_v50  ;;  %v2387_v50 = vld [vmem:[#allocation2 + $0x188] sm:$0xff]  ;;  %v2514_v49 = vld [vmem:[#allocation2 + $0x580] sm:$0xff] }
 0x1d4   : > { %v1426_v59 = vpop.permute.xlu1 %1425  ;;  %v1390_v20 = vpop.permute.xlu0 %1389 }
 0x1d5   : > { %5848 = vmatpush3.xpose.msk.msra.mxu1 %vm441_vm0, %v1362_v11  ;;  %5908 = vmatpush3.xpose.msk.msra.mxu0 %vm441_vm0, %v1430_v61  ;;  %v2386_v61 = vld [vmem:[#allocation2 + $0x180] sm:$0xff]  ;;  %v2511_v11 = vld [vmem:[#allocation2 + $0x568] sm:$0xff] }
 0x1d6   : > { %5849 = vmatprep.subr.msk.mxu1 %vm441_vm0, %v1392_v47  ;;  %5909 = vmatprep.subr.msk.mxu0 %vm441_vm0, %v1460_v46  ;;  %v2383_v46 = vld [vmem:[#allocation2 + $0x168] sm:$0xff]  ;;  %v2510_v47 = vld [vmem:[#allocation2 + $0x560] sm:$0xff] }
 0x1d8   : > { %v1456_v41 = vpop.permute.xlu1 %1455  ;;  %v1358_v35 = vpop.permute.xlu0 %1357 }
 0x1d9   : > { %5850 = vmatpush3.xpose.msk.msra.mxu1 %vm441_vm0, %v1360_v19  ;;  %5910 = vmatpush3.xpose.msk.msra.mxu0 %vm441_vm0, %v1428_v44  ;;  %v2382_v44 = vld [vmem:[#allocation2 + $0x160] sm:$0xff]  ;;  %v2507_v19 = vld [vmem:[#allocation2 + $0x548] sm:$0xff] }
 0x1da   : > { %5851 = vmatprep.subr.msk.mxu1 %vm441_vm0, %v1390_v20  ;;  %5911 = vmatprep.subr.msk.mxu0 %vm441_vm0, %v1458_v57  ;;  %v2379_v57 = vld [vmem:[#allocation2 + $0x148] sm:$0xff]  ;;  %v2506_v20 = vld [vmem:[#allocation2 + $0x540] sm:$0xff] }
 0x1dc   : > { %v1424_v52 = vpop.permute.xlu1 %1423  ;;  %v1388_v4 = vpop.permute.xlu0 %1387 }
 0x1dd   : > { %5852 = vmatpush3.xpose.msk.msra.mxu1 %vm441_vm0, %v1358_v35  ;;  %5912 = vmatpush3.xpose.msk.msra.mxu0 %vm441_vm0, %v1426_v59  ;;  %v2378_v59 = vld [vmem:[#allocation2 + $0x140] sm:$0xff]  ;;  %v2375_v35 = vld [vmem:[#allocation2 + $0x128] sm:$0xff] }
 0x1de   : > { %5853 = vmatprep.subr.msk.mxu1 %vm441_vm0, %v1388_v4  ;;  %5913 = vmatprep.subr.msk.mxu0 %vm441_vm0, %v1456_v41  ;;  %v1982_v41 = vlaneseq  ;;  %v2374_v4 = vld [vmem:[#allocation2 + $0x120] sm:$0xff] }
 0x1e0   : > { %v1454_v45 = vpop.permute.xlu1 %1453  ;;  %v1356_v0 = vpop.permute.xlu0 %1355 }
 0x1e1   : > { %5854 = vmatpush3.xpose.msk.msra.mxu1 %vm441_vm0, %v1356_v0  ;;  %5914 = vmatpush3.xpose.msk.msra.mxu0 %vm441_vm0, %v1424_v52  ;;  %v2503_v52 = vld [vmem:[#allocation2 + $0x528] sm:$0xff] }
 0x1e2   : > { %5915 = vmatprep.subr.msk.mxu0 %vm441_vm0, %v1454_v45  ;;  %2594 = vmatprep.subr.mxu1 %v2399_v25  ;;  %v2502_v45 = vld [vmem:[#allocation2 + $0x520] sm:$0xff]  ;;  %v2371_v0 = vld [vmem:[#allocation2 + $0x108] sm:$0xff] }
 0x1e4   : > { %v1422_v5 = vpop.permute.xlu1 %1421  ;;  %v1452_v3 = vpop.permute.xlu0 %1451  ;;  %5856 = vmatmul.mubr.msk.f32.vlgmr.msra.gmra.mxu1 %vm441_vm0, %v7351_v8 }
 0x1e5   : > { %5857 = vmatprep.mubr.msk.f32.mxu1 %vm441_vm0, %v636_v1  ;;  %5916 = vmatpush3.xpose.msk.msra.mxu0 %vm441_vm0, %v1422_v5  ;;  %v2370_v5 = vld [vmem:[#allocation2 + $0x100] sm:$0xff] }
 0x1e6   : > { %5917 = vmatprep.subr.msk.mxu0 %vm441_vm0, %v1452_v3  ;;  %2595 = vmatpush1.msra.mxu1 %v2398_v38  ;;  %v2498_v3 = vld [vmem:[#allocation2 + $0x500] sm:$0xff] }
 0x1e7   : > { %2596 = vmatprep.subr.mxu1 %v2395_v60  ;;  %v2486_v38 = vld [vmem:[#allocation2 + $0x4a0] sm:$0xff] }
 0x1e8   : > { %v1420_v10 = vpop.permute.xlu1 %1419  ;;  %5858 = vmatmul.mubr.msk.f32.gmra.mxu1 %vm441_vm0, %v636_v1 }
 0x1e9   : > { %5859 = vmatprep.mubr.msk.f32.mxu1 %vm441_vm0, %v637_v9  ;;  %5918 = vmatpush3.xpose.msk.msra.mxu0 %vm441_vm0, %v1420_v10  ;;  %v2367_v10 = vld [vmem:[#allocation2 + $0xe8] sm:$0xff] }
 0x1ea   : > { %2755 = vmatprep.subr.mxu0 %v2527_v29  ;;  %2597 = vmatpush1.msra.mxu1 %v2394_v37  ;;  %v2358_v29 = vld [vmem:[#allocation2 + $0xa0] sm:$0xff]  ;;  %v2483_v37 = vld [vmem:[#allocation2 + $0x488] sm:$0xff] }
 0x1eb   : > { %2598 = vmatprep.subr.mxu1 %v2391_v39 }
 0x1ec   : > { %5860 = vmatmul.mubr.msk.f32.gmra.mxu1 %vm441_vm0, %v637_v9  ;;  %5920 = vmatmul.mubr.msk.f32.vlgmr.msra.gmra.mxu0 %vm441_vm0, %v7351_v8  ;;  %v641_v8 = vmul.f32 0.35355338, %v7476_v34 }
 0x1ed   : > { %5861 = vmatprep.mubr.msk.f32.mxu1 %vm441_vm0, %v638_v14  ;;  %5921 = vmatprep.mubr.msk.f32.mxu0 %vm441_vm0, %v636_v1 }
 0x1ee   : > { %2756 = vmatpush1.msra.mxu0 %v2526_v30  ;;  %2599 = vmatpush1.msra.mxu1 %v2390_v54  ;;  %v360_v30 = vld [vmem:[%s337_s18] ss:$8 sm:$0xf]  ;;  %s5606_s18 = sshll.u32 %s6926_s28, 2 }
 0x1ef   : > { %2757 = vmatprep.subr.mxu0 %v2523_v27  ;;  %2600 = vmatprep.subr.mxu1 %v2387_v50  ;;  %v2355_v27 = vld [vmem:[#allocation2 + $0x88] sm:$0xff]  ;;  %v2354_v54 = vld [vmem:[#allocation2 + $0x80] sm:$0xff]  ;;  %p339_p2 = scmp.lt.s32.totalorder %s5606_s18, 15 }
 0x1f0   : > { %5862 = vmatmul.mubr.msk.f32.gmra.mxu1 %vm441_vm0, %v638_v14  ;;  %5922 = vmatmul.mubr.msk.f32.gmra.mxu0 %vm441_vm0, %v636_v1  ;;  %v2499_v1 = vld [vmem:[#allocation2 + $0x508] sm:$0xff] }
 0x1f1   : > { %5863 = vmatprep.mubr.msk.f32.mxu1 %vm441_vm0, %v639_v40  ;;  %5923 = vmatprep.mubr.msk.f32.mxu0 %vm441_vm0, %v637_v9  ;;  %s10482_s18 = smov (!%p339_p2, %s5606_s18), 15 }
 0x1f2   : > { %2758 = vmatpush1.msra.mxu0 %v2522_v56  ;;  %2601 = vmatpush1.msra.mxu1 %v2386_v61  ;;  %v2351_v61 = vld [vmem:[#allocation2 + $0x68] sm:$0xff]  ;;  %s5607_s19 = sshll.u32 %s10482_s18, 3 }
 0x1f3   : > { %2759 = vmatprep.subr.mxu0 %v2519_v42  ;;  %2602 = vmatprep.subr.mxu1 %v2383_v46 }
 0x1f4   : > { %5864 = vmatmul.mubr.msk.f32.gmra.mxu1 %vm441_vm0, %v639_v40  ;;  %5924 = vmatmul.mubr.msk.f32.gmra.mxu0 %vm441_vm0, %v637_v9  ;;  %v7768_v9 = vshrl.u32 %v1982_v41, 7 }
 0x1f5   : > { %5865 = vmatprep.mubr.msk.f32.mxu1 %vm441_vm0, %v640_v13  ;;  %5925 = vmatprep.mubr.msk.f32.mxu0 %vm441_vm0, %v638_v14 }
 0x1f6   : > { %2760 = vmatpush1.msra.mxu0 %v2518_v55  ;;  %2603 = vmatpush1.msra.mxu1 %v2382_v44  ;;  %v1984_v25 = vsub.s32 0, %v7768_v9  ;;  %v1992_v42 = vsub.s32 2, %v7768_v9  ;;  %v2482_v55 = vld [vmem:[#allocation2 + $0x480] sm:$0xff] }
 0x1f7   : > { %2761 = vmatprep.subr.mxu0 %v2515_v6  ;;  %2604 = vmatprep.subr.mxu1 %v2379_v57  ;;  %v366_v6 = vld [vmem:[%s10120_s4 + $0x28] sm:$0xff]  ;;  %v2350_v44 = vld [vmem:[#allocation2 + $0x60] sm:$0xff] }
 0x1f8   : > { %5866 = vmatmul.mubr.msk.f32.gmra.mxu1 %vm441_vm0, %v640_v13  ;;  %5926 = vmatmul.mubr.msk.f32.gmra.mxu0 %vm441_vm0, %v638_v14  ;;  %v2495_v14 = vld [vmem:[#allocation2 + $0x4e8] sm:$0xff]  ;;  %v365_v57 = vld [vmem:[%s10120_s4 + $0x20] sm:$0xff] }
 0x1f9   : > { %5867 = vmatprep.mubr.msk.f32.mxu1 %vm441_vm0, %v641_v8  ;;  %5927 = vmatprep.mubr.msk.f32.mxu0 %vm441_vm0, %v639_v40 }
 0x1fa   : > { %2762 = vmatpush1.msra.mxu0 %v2514_v49  ;;  %2605 = vmatpush1.msra.mxu1 %v2378_v59  ;;  %v2479_v49 = vld [vmem:[#allocation2 + $0x468] sm:$0xff]  ;;  %v363_v59 = vld [vmem:[%s10120_s4 + $0x10] sm:$0xff] }
 0x1fb   : > { %2763 = vmatprep.subr.mxu0 %v2511_v11  ;;  %2606 = vmatprep.subr.mxu1 %v2375_v35  ;;  %v7787_v11 = vrot.slane %v360_v30, %v1984_v25 }
 0x1fc   : > { %5868 = vmatmul.mubr.msk.f32.gmra.mxu1 %vm441_vm0, %v641_v8  ;;  %5928 = vmatmul.mubr.msk.f32.gmra.mxu0 %vm441_vm0, %v639_v40  ;;  %v2366_v40 = vld [vmem:[#allocation2 + $0xe0] sm:$0xff] }
 0x1fd   : > { %5869 = vmatprep.mubr.msk.f32.mxu1 %vm441_vm0, %v642_v18  ;;  %5929 = vmatprep.mubr.msk.f32.mxu0 %vm441_vm0, %v640_v13 }
 0x1fe   : > { %2764 = vmatpush1.msra.mxu0 %v2510_v47  ;;  %2607 = vmatpush1.msra.mxu1 %v2374_v4  ;;  %v2478_v47 = vld [vmem:[#allocation2 + $0x460] sm:$0xff]  ;;  %v370_v4 = vld [vmem:[%s10120_s4 + $0x48] sm:$0xff] }
 0x1ff   : > { %2765 = vmatprep.subr.mxu0 %v2507_v19  ;;  %2608 = vmatprep.subr.mxu1 %v2371_v0  ;;  %v369_v0 = vld [vmem:[%s10120_s4 + $0x40] sm:$0xff] }
 0x200   : > { %5870 = vmatmul.mubr.msk.f32.gmra.mxu1 %vm441_vm0, %v642_v18  ;;  %5930 = vmatmul.mubr.msk.f32.gmra.mxu0 %vm441_vm0, %v640_v13  ;;  %v2494_v13 = vld [vmem:[#allocation2 + $0x4e0] sm:$0xff] }
 0x201   : > { %5871 = vmatprep.mubr.msk.f32.mxu1 %vm441_vm0, %v643_v23  ;;  %5931 = vmatprep.mubr.msk.f32.mxu0 %vm441_vm0, %v641_v8 }
 0x202   : > { %2766 = vmatpush1.msra.mxu0 %v2506_v20  ;;  %2609 = vmatpush1.msra.mxu1 %v2370_v5  ;;  %v1996_v20 = vsub.s32 3, %v7768_v9 }
 0x203   : > { %2767 = vmatprep.subr.mxu0 %v2503_v52  ;;  %2610 = vmatprep.subr.mxu1 %v2367_v10  ;;  %v7799_v52 = vrot.slane %v360_v30, %v1992_v42  ;;  %v2346_v10 = vld [vmem:[#allocation2 + $0x40] sm:$0xff]  ;;  %v2467_v42 = vld [vmem:[#allocation2 + $0x408] sm:$0xff] }
 0x204   : > { %5872 = vmatmul.mubr.msk.f32.gmra.mxu1 %vm441_vm0, %v643_v23  ;;  %5932 = vmatmul.mubr.msk.f32.gmra.mxu0 %vm441_vm0, %v641_v8  ;;  %v2363_v8 = vld [vmem:[#allocation2 + $0xc8] sm:$0xff] }
 0x205   : > { %5873 = vmatprep.mubr.msk.f32.mxu1 %vm441_vm0, %v644_v17  ;;  %5933 = vmatprep.mubr.msk.f32.mxu0 %vm441_vm0, %v642_v18 }
 0x206   : > { %2768 = vmatpush1.msra.mxu0 %v2502_v45  ;;  %2611 = vmatpush1.msra.mxu1 %v2366_v40  ;;  %v364_v45 = vld [vmem:[%s10120_s4 + $0x18] sm:$0xff] }
 0x207   : > { %2769 = vmatprep.subr.mxu0 %v2499_v1  ;;  %2612 = vmatprep.subr.mxu1 %v2363_v8  ;;  %v2474_v8 = vld [vmem:[#allocation2 + $0x440] sm:$0xff] }
 0x208   : > { %5874 = vmatmul.mubr.msk.f32.gmra.mxu1 %vm441_vm0, %v644_v17  ;;  %5934 = vmatmul.mubr.msk.f32.gmra.mxu0 %vm441_vm0, %v642_v18  ;;  %v2491_v18 = vld [vmem:[#allocation2 + $0x4c8] sm:$0xff] }
 0x209   : > { %5875 = vmatprep.mubr.msk.f32.mxu1 %vm441_vm0, %v645_v53  ;;  %5935 = vmatprep.mubr.msk.f32.mxu0 %vm441_vm0, %v643_v23 }
 0x20a   : > { %2770 = vmatpush1.msra.mxu0 %v2498_v3  ;;  %v2347_v3 = vld [vmem:[#allocation2 + $0x48] sm:$0xff] }
 0x20b   : > { %2771 = vmatprep.subr.mxu0 %v2495_v14 }
 0x20c   : > { %5876 = vmatmul.mubr.msk.f32.gmra.mxu1 %vm441_vm0, %v645_v53  ;;  %5936 = vmatmul.mubr.msk.f32.gmra.mxu0 %vm441_vm0, %v643_v23  ;;  %v1988_v23 = vsub.s32 1, %v7768_v9  ;;  %v2475_v9 = vld [vmem:[#allocation2 + $0x448] sm:$0xff] }
 0x20d   : > { %5877 = vmatprep.mubr.msk.f32.mxu1 %vm441_vm0, %v646_v36  ;;  %5937 = vmatprep.mubr.msk.f32.mxu0 %vm441_vm0, %v644_v17 }
 0x20e   : > { %2772 = vmatpush1.msra.mxu0 %v2494_v13  ;;  %v7781_v39 = vrot.slane %v360_v30, %v1988_v23  ;;  %v2471_v23 = vld [vmem:[#allocation2 + $0x428] sm:$0xff] }
 0x20f   : > { %2773 = vmatprep.subr.mxu0 %v2491_v18  ;;  %v2343_v18 = vld [vmem:[#allocation2 + $0x28] sm:$0xff] }
 0x210   : > { %5878 = vmatmul.mubr.msk.f32.gmra.mxu1 %vm441_vm0, %v646_v36  ;;  %5938 = vmatmul.mubr.msk.f32.gmra.mxu0 %vm441_vm0, %v644_v17  ;;  %v2362_v17 = vld [vmem:[#allocation2 + $0xc0] sm:$0xff] }
 0x211   : > { %5879 = vmatprep.mubr.msk.f32.mxu1 %vm441_vm0, %v647_v22  ;;  %5939 = vmatprep.mubr.msk.f32.mxu0 %vm441_vm0, %v645_v53 }
 0x212   : > { %2613 = vmatpush1.msra.mxu1 %v2362_v17 }
 0x214   : > { %5880 = vmatmul.mubr.msk.f32.gmra.mxu1 %vm441_vm0, %v647_v22  ;;  %5940 = vmatmul.mubr.msk.f32.gmra.mxu0 %vm441_vm0, %v645_v53  ;;  %v2490_v53 = vld [vmem:[#allocation2 + $0x4c0] sm:$0xff] }
 0x215   : > { %5881 = vmatprep.mubr.msk.f32.mxu1 %vm441_vm0, %v648_v58  ;;  %5941 = vmatprep.mubr.msk.f32.mxu0 %vm441_vm0, %v646_v36 }
 0x216   : > { %2774 = vmatpush1.msra.mxu0 %v2490_v53 }
 0x218   : > { %5882 = vmatmul.mubr.msk.f32.gmra.mxu1 %vm441_vm0, %v648_v58  ;;  %5942 = vmatmul.mubr.msk.f32.gmra.mxu0 %vm441_vm0, %v646_v36 }
 0x219   : > { %5883 = vmatprep.mubr.msk.f32.mxu1 %vm441_vm0, %v649_v21  ;;  %5943 = vmatprep.mubr.msk.f32.mxu0 %vm441_vm0, %v647_v22 }
 0x21c   : > { %5884 = vmatmul.mubr.msk.f32.gmra.mxu1 %vm441_vm0, %v649_v21  ;;  %5944 = vmatmul.mubr.msk.f32.gmra.mxu0 %vm441_vm0, %v647_v22  ;;  %v362_v22 = vld [vmem:[%s10120_s4 + $0x8] sm:$0xff] }
 0x21d   : > { %5885 = vmatprep.mubr.msk.f32.mxu1 %vm441_vm0, %v650_v12  ;;  %5945 = vmatprep.mubr.msk.f32.mxu0 %vm441_vm0, %v648_v58 }
 0x220   : > { %5886 = vmatmul.mubr.msk.f32.gmra.mxu1 %vm441_vm0, %v650_v12  ;;  %5946 = vmatmul.mubr.msk.f32.gmra.mxu0 %vm441_vm0, %v648_v58  ;;  %v2359_v58 = vld [vmem:[#allocation2 + $0xa8] sm:$0xff] }
 0x221   : > { %5947 = vmatprep.mubr.msk.f32.mxu0 %vm441_vm0, %v649_v21  ;;  %2614 = vmatprep.subr.mxu1 %v2359_v58  ;;  %v2342_v58 = vld [vmem:[#allocation2 + $0x20] sm:$0xff] }
 0x222   : > { %2615 = vmatpush1.msra.mxu1 %v2358_v29 }
 0x223   : > { %2616 = vmatprep.subr.mxu1 %v2355_v27 }
 0x224   : > { %5948 = vmatmul.mubr.msk.f32.gmra.mxu0 %vm441_vm0, %v649_v21  ;;  %v2487_v21 = vld [vmem:[#allocation2 + $0x4a8] sm:$0xff]  ;;  %2617 = vmatpush1.msra.mxu1 %v2354_v54  ;;  %v2338_v54 = vld [vmem:[#allocation2] sm:$0xff] }
 0x225   : > { %5949 = vmatprep.mubr.msk.f32.mxu0 %vm441_vm0, %v650_v12  ;;  %2775 = vmatprep.subr.mxu0 %v2487_v21  ;;  %v2470_v21 = vld [vmem:[#allocation2 + $0x420] sm:$0xff] }
 0x226   : > { %2776 = vmatpush1.msra.mxu0 %v2486_v38  ;;  %2618 = vmatprep.subr.mxu1 %v2351_v61 }
 0x227   : > { %2777 = vmatprep.subr.mxu0 %v2483_v37  ;;  %2619 = vmatpush1.msra.mxu1 %v2350_v44  ;;  %v2463_v44 = vld [vmem:[#allocation2 + $0x3e8] sm:$0xff] }
 0x228   : > { %5950 = vmatmul.mubr.msk.f32.gmra.mxu0 %vm441_vm0, %v650_v12  ;;  %v361_v12 = vld [vmem:[%s10120_s4] sm:$0xff]  ;;  %2620 = vmatprep.subr.mxu1 %v2347_v3 }
 0x229   : > { %2778 = vmatpush1.msra.mxu0 %v2482_v55  ;;  %2621 = vmatpush1.msra.mxu1 %v2346_v10 }
 0x22a   : > { %2779 = vmatprep.subr.mxu0 %v2479_v49  ;;  %2622 = vmatprep.subr.mxu1 %v2343_v18  ;;  %v368_v49 = vld [vmem:[%s10120_s4 + $0x38] sm:$0xff] }
 0x22b   : > { %2780 = vmatpush1.msra.mxu0 %v2478_v47  ;;  %2623 = vmatpush1.msra.mxu1 %v2342_v58  ;;  %v2459_v58 = vld [vmem:[#allocation2 + $0x3c8] sm:$0xff] }
 0x22c   : > { %2781 = vmatprep.subr.mxu0 %v2475_v9 }
 0x22d   : > { %2782 = vmatpush1.msra.mxu0 %v2474_v8  ;;  %v2590_v8 = vld [vmem:[#allocation2 + $0x7e0] sm:$0xff] }
 0x22e   : > { %2783 = vmatprep.subr.mxu0 %v2471_v23 }
 0x22f   : > { %2784 = vmatpush1.msra.mxu0 %v2470_v21  ;;  %v2587_v21 = vld [vmem:[#allocation2 + $0x7c8] sm:$0xff] }
 0x230   : > { %2785 = vmatprep.subr.mxu0 %v2467_v42 }
 0x2a4   : > { %v1725_v36 = vpop.f32.mrf.mxu1 }
 0x2a5   : > { %v1726_v46 = vadd.f32 %v1725_v36, %v361_v12  ;;  %v7813_v36 = vrot.slane %v360_v30, %v1996_v20  ;;  %v374_v30 = vld [vmem:[%s10120_s4 + $0x68] sm:$0xff]  ;;  %v371_v20 = vld [vmem:[%s10120_s4 + $0x50] sm:$0xff] }
 0x2a6   : > { %v1727_v60 = vpop.f32.mrf.mxu1 }
 0x2a7   : > { %v1728_v56 = vadd.f32 %v1727_v60, %v362_v22  ;;  %v7811_v14 = vadd.f32 %v7787_v11, %v1726_v46  ;;  %v367_v22 = vld [vmem:[%s10120_s4 + $0x30] sm:$0xff]  ;;  %v2466_v46 = vld [vmem:[#allocation2 + $0x400] sm:$0xff] }
 0x2a8   : > { %v1731_v50 = vpop.f32.mrf.mxu1  ;;  %2786 = vmatpush1.msra.mxu0 %v2466_v46 }
 0x2a9   : > { %v7797_v41 = vadd.f32 %v7781_v39, %v1728_v56  ;;  %v1732_v40 = vadd.f32 %v1731_v50, %v365_v57  ;;  %v2339_v56 = vld [vmem:[#allocation2 + $0x8] sm:$0xff]  ;;  %v373_v57 = vld [vmem:[%s10120_s4 + $0x60] sm:$0xff] }
 0x2aa   : > { %v1733_v19 = vpop.f32.mrf.mxu1  ;;  %2624 = vmatprep.subr.mxu1 %v2339_v56 }
 0x2ab   : > { %v1734_v35 = vadd.f32 %v1733_v19, %v366_v6  ;;  %v2066_v12 = vmax.f32 %v7811_v14, %v7797_v41  ;;  %v7830_v55 = vadd.f32 %v7787_v11, %v1732_v40  ;;  %2625 = vmatpush1.msra.mxu1 %v2338_v54 }
 0x2ac   : > { %v1737_v1 = vpop.f32.mrf.mxu1  ;;  %v1886_v5 = vpop.f32.mrf.mxu0  ;;  %2626 = vmatprep.subr.mxu1 %v2463_v44 }
 0x2ad   : > { %v1887_v13 = vadd.f32 %v1886_v5, %v363_v59  ;;  %v7821_v25 = vadd.f32 %v7781_v39, %v1734_v35  ;;  %v1738_v50 = vadd.f32 %v1737_v1, %v369_v0  ;;  %v2591_v35 = vld [vmem:[#allocation2 + $0x7e8] sm:$0xff]  ;;  %v2462_v5 = vld [vmem:[#allocation2 + $0x3e0] sm:$0xff] }
 0x2ae   : > { %v1739_v17 = vpop.f32.mrf.mxu1  ;;  %v1888_v53 = vpop.f32.mrf.mxu0  ;;  %2787 = vmatprep.subr.mxu0 %v2591_v35  ;;  %2627 = vmatpush2.msra.mxu1 %v2462_v5  ;;  %v2583_v5 = vld [vmem:[#allocation2 + $0x7a8] sm:$0xff] }
 0x2af   : > { %v7824_v29 = vadd.f32 %v7799_v52, %v1887_v13  ;;  %v1740_v38 = vadd.f32 %v1739_v17, %v370_v4  ;;  %v1889_v60 = vadd.f32 %v1888_v53, %v364_v45  ;;  %v2071_v4 = vmax.f32 %v7830_v55, %v7821_v25  ;;  %v378_v13 = vld [vmem:[%s10120_s4 + $0x88] sm:$0xff]  ;;  %2788 = vmatpush2.msra.mxu0 %v2590_v8  ;;  %v379_v8 = vld [vmem:[%s10120_s4 + $0x90] sm:$0xff] }
 0x2b0   : > { %v1743_v27 = vpop.f32.mrf.mxu1  ;;  %v1892_v37 = vpop.f32.mrf.mxu0  ;;  %v7858_v18 = vadd.f32 %v7787_v11, %v1738_v50  ;;  %2628 = vmatprep.subr.mxu1 %v2459_v58  ;;  %2789 = vmatprep.subr.mxu0 %v2587_v21  ;;  %v2451_v21 = vld [vmem:[#allocation2 + $0x388] sm:$0xff] }
 0x2b1   : > { %v2067_v6 = vmax.f32 %v2066_v12, %v7824_v29  ;;  %v1893_v61 = vadd.f32 %v1892_v37, %v367_v22  ;;  %v7837_v47 = vadd.f32 %v7813_v36, %v1889_v60  ;;  %v7848_v45 = vadd.f32 %v7781_v39, %v1740_v38  ;;  %v372_v22 = vld [vmem:[%s10120_s4 + $0x58] sm:$0xff]  ;;  %v377_v38 = vld [vmem:[%s10120_s4 + $0x80] sm:$0xff] }
 0x2b2   : > { %v1745_v19 = vpop.f32.mrf.mxu1  ;;  %v1894_v59 = vpop.f32.mrf.mxu0  ;;  %v1744_v23 = vadd.f32 %v1743_v27, %v373_v57  ;;  %v375_v27 = vld [vmem:[%s10120_s4 + $0x70] sm:$0xff]  ;;  %v2458_v37 = vld [vmem:[#allocation2 + $0x3c0] sm:$0xff]  ;;  %v382_v57 = vld [vmem:[%s10120_s4 + $0xa8] sm:$0xff] }
 0x2b3   : > { %v7851_v0 = vadd.f32 %v7799_v52, %v1893_v61  ;;  %v1746_v1 = vadd.f32 %v1745_v19, %v374_v30  ;;  %v1895_v3 = vadd.f32 %v1894_v59, %v368_v49  ;;  %v2068_v40 = vmax.f32 %v2067_v6, %v7837_v47  ;;  %v2586_v6 = vld [vmem:[#allocation2 + $0x7c0] sm:$0xff]  ;;  %v2455_v19 = vld [vmem:[#allocation2 + $0x3a8] sm:$0xff]  ;;  %2629 = vmatpush2.msra.mxu1 %v2458_v37 }
 0x2b4   : > { %v1749_v9 = vpop.f32.mrf.mxu1  ;;  %v1898_v10 = vpop.f32.mrf.mxu0  ;;  %v2076_v56 = vmax.f32 %v7858_v18, %v7848_v45  ;;  %v7886_v59 = vadd.f32 %v7787_v11, %v1744_v23  ;;  %2790 = vmatpush2.msra.mxu0 %v2586_v6  ;;  %v2582_v23 = vld [vmem:[#allocation2 + $0x7a0] sm:$0xff]  ;;  %2630 = vmatprep.subr.mxu1 %v2455_v19  ;;  %v386_v37 = vld [vmem:[%s10120_s4 + $0xc8] sm:$0xff] }
 0x2b5   : > { %v2072_v17 = vmax.f32 %v2071_v4, %v7851_v0  ;;  %v1899_v53 = vadd.f32 %v1898_v10, %v371_v20  ;;  %v7865_v12 = vadd.f32 %v7813_v36, %v1895_v3  ;;  %2069 = vmax.xlane.f32.xlu0 %v2068_v40  ;;  %v7876_v42 = vadd.f32 %v7781_v39, %v1746_v1  ;;  %v376_v1 = vld [vmem:[%s10120_s4 + $0x78] sm:$0xff]  ;;  %v2454_v3 = vld [vmem:[#allocation2 + $0x3a0] sm:$0xff] }
 0x2b6   : > { %v1751_v30 = vpop.f32.mrf.mxu1  ;;  %v1900_v60 = vpop.f32.mrf.mxu0  ;;  %v1750_v20 = vadd.f32 %v1749_v9, %v377_v38  ;;  %v381_v40 = vld [vmem:[%s10120_s4 + $0xa0] sm:$0xff]  ;;  %2791 = vmatprep.subr.mxu0 %v2583_v5  ;;  %2631 = vmatpush2.msra.mxu1 %v2454_v3  ;;  %v2447_v5 = vld [vmem:[#allocation2 + $0x368] sm:$0xff] }
 0x2b7   : > { %v7879_v54 = vadd.f32 %v7799_v52, %v1899_v53  ;;  %v1752_v50 = vadd.f32 %v1751_v30, %v378_v13  ;;  %v1901_v61 = vadd.f32 %v1900_v60, %v372_v22  ;;  %v2073_v44 = vmax.f32 %v2072_v17, %v7865_v12  ;;  %2792 = vmatpush2.msra.mxu0 %v2582_v23  ;;  %v2578_v19 = vld [vmem:[#allocation2 + $0x780] sm:$0xff] }
 0x2b8   : > { %v1755_v49 = vpop.f32.mrf.mxu1  ;;  %v1904_v46 = vpop.f32.mrf.mxu0  ;;  %v2081_v17 = vmax.f32 %v7886_v59, %v7876_v42  ;;  %2632 = vmatprep.subr.mxu1 %v2451_v21  ;;  %v390_v21 = vld [vmem:[%s10120_s4 + $0xe8] sm:$0xff] }
 0x2b9   : > { %v2077_v35 = vmax.f32 %v2076_v56, %v7879_v54  ;;  %v1905_v4 = vadd.f32 %v1904_v46, %v375_v27  ;;  %v7893_v10 = vadd.f32 %v7813_v36, %v1901_v61  ;;  %2074 = vmax.xlane.f32.xlu1 %v2073_v44  ;;  %v7904_v53 = vadd.f32 %v7781_v39, %v1752_v50  ;;  %v2579_v56 = vld [vmem:[#allocation2 + $0x788] sm:$0xff]  ;;  %v380_v44 = vld [vmem:[%s10120_s4 + $0x98] sm:$0xff] }
 0x2ba   : > { %v1757_v13 = vpop.f32.mrf.mxu1  ;;  %v1906_v9 = vpop.f32.mrf.mxu0  ;;  %v7914_v50 = vadd.f32 %v7787_v11, %v1750_v20  ;;  %v1756_v6 = vadd.f32 %v1755_v49, %v381_v40  ;;  %2793 = vmatprep.subr.mxu0 %v2579_v56 }
 0x2bb   : > { %v7907_v22 = vadd.f32 %v7799_v52, %v1905_v4  ;;  %v1758_v58 = vadd.f32 %v1757_v13, %v382_v57  ;;  %v1907_v38 = vadd.f32 %v1906_v9, %v376_v1  ;;  %v2078_v27 = vmax.f32 %v2077_v35, %v7893_v10  ;;  %v2450_v57 = vld [vmem:[#allocation2 + $0x380] sm:$0xff]  ;;  %v383_v1 = vld [vmem:[%s10120_s4 + $0xb0] sm:$0xff]  ;;  %2794 = vmatpush2.msra.mxu0 %v2578_v19 }
 0x2bc   : > { %v1761_v30 = vpop.f32.mrf.mxu1  ;;  %v1910_v60 = vpop.f32.mrf.mxu0  ;;  %v385_v4 = vld [vmem:[%s10120_s4 + $0xc0] sm:$0xff]  ;;  %v2086_v3 = vmax.f32 %v7914_v50, %v7904_v53  ;;  %2633 = vmatpush2.msra.mxu1 %v2450_v57  ;;  %v387_v19 = vld [vmem:[%s10120_s4 + $0xd0] sm:$0xff] }
 0x2bd   : > { %v2082_v61 = vmax.f32 %v2081_v17, %v7907_v22  ;;  %v1911_v46 = vadd.f32 %v1910_v60, %v379_v8  ;;  %v7921_v35 = vadd.f32 %v7813_v36, %v1907_v38  ;;  %2079 = vmax.xlane.f32.xlu0 %v2078_v27  ;;  %v7932_v40 = vadd.f32 %v7781_v39, %v1758_v58  ;;  %v2575_v8 = vld [vmem:[#allocation2 + $0x768] sm:$0xff]  ;;  %v2446_v27 = vld [vmem:[#allocation2 + $0x360] sm:$0xff] }
 0x2be   : > { %v1763_v20 = vpop.f32.mrf.mxu1  ;;  %v1912_v49 = vpop.f32.mrf.mxu0  ;;  %v7942_v58 = vadd.f32 %v7787_v11, %v1756_v6  ;;  %2634 = vmatprep.subr.mxu1 %v2447_v5  ;;  %v389_v57 = vld [vmem:[%s10120_s4 + $0xe0] sm:$0xff]  ;;  %2795 = vmatprep.subr.mxu0 %v2575_v8  ;;  %v394_v8 = vld [vmem:[%s10120_s4 + $0x108] sm:$0xff] }
 0x2bf   : > { %v7935_v13 = vadd.f32 %v7799_v52, %v1911_v46  ;;  %v1764_v9 = vadd.f32 %v1763_v20, %v386_v37  ;;  %v1913_v23 = vadd.f32 %v1912_v49, %v380_v44  ;;  %v2083_v60 = vmax.f32 %v2082_v61, %v7921_v35  ;;  %v384_v44 = vld [vmem:[%s10120_s4 + $0xb8] sm:$0xff]  ;;  %v2574_v61 = vld [vmem:[#allocation2 + $0x760] sm:$0xff]  ;;  %v2443_v20 = vld [vmem:[#allocation2 + $0x348] sm:$0xff]  ;;  %2635 = vmatpush2.msra.mxu1 %v2446_v27 }
 0x2c0   : > { %v1767_v17 = vpop.f32.mrf.mxu1  ;;  %v1916_v38 = vpop.f32.mrf.mxu0  ;;  %v1762_v46 = vadd.f32 %v1761_v30, %v385_v4  ;;  %v2571_v4 = vld [vmem:[#allocation2 + $0x748] sm:$0xff]  ;;  %2796 = vmatpush2.msra.mxu0 %v2574_v61  ;;  %2636 = vmatprep.subr.mxu1 %v2443_v20  ;;  %v393_v61 = vld [vmem:[%s10120_s4 + $0x100] sm:$0xff] }
 0x2c1   : > { %v2087_v37 = vmax.f32 %v2086_v3, %v7935_v13  ;;  %v1917_v56 = vadd.f32 %v1916_v38, %v383_v1  ;;  %v7949_v49 = vadd.f32 %v7813_v36, %v1913_v23  ;;  %2084 = vmax.xlane.f32.xlu0 %v2083_v60  ;;  %v2091_v1 = vmax.f32 %v7942_v58, %v7932_v40  ;;  %v2442_v38 = vld [vmem:[#allocation2 + $0x340] sm:$0xff] }
 0x2c2   : > { %v1769_v6 = vpop.f32.mrf.mxu1  ;;  %v1918_v30 = vpop.f32.mrf.mxu0  ;;  %v7960_v5 = vadd.f32 %v7781_v39, %v1764_v9  ;;  %v7970_v9 = vadd.f32 %v7787_v11, %v1762_v46  ;;  %2797 = vmatprep.subr.mxu0 %v2571_v4  ;;  %2637 = vmatpush2.msra.mxu1 %v2442_v38  ;;  %v2438_v20 = vld [vmem:[#allocation2 + $0x320] sm:$0xff]  ;;  %v398_v38 = vld [vmem:[%s10120_s4 + $0x128] sm:$0xff] }
 0x2c3   : > { %v7963_v3 = vadd.f32 %v7799_v52, %v1917_v56  ;;  %v1770_v23 = vadd.f32 %v1769_v6, %v390_v21  ;;  %v1919_v60 = vadd.f32 %v1918_v30, %v384_v44  ;;  %v2088_v32 = vmax.f32 %v2087_v37, %v7949_v49  ;;  %v388_v44 = vld [vmem:[%s10120_s4 + $0xd8] sm:$0xff]  ;;  %v2439_v37 = vld [vmem:[#allocation2 + $0x328] sm:$0xff]  ;;  %2798 = vmatpush2.msra.mxu0 %v2570_v7 }
 0x2c4   : > { %v1773_v2 = vpop.f32.mrf.mxu1  ;;  %v1922_v62 = vpop.f32.mrf.mxu0  ;;  %v1768_v56 = vadd.f32 %v1767_v17, %v389_v57  ;;  %v2567_v6 = vld [vmem:[#allocation2 + $0x728] sm:$0xff]  ;;  %v2096_v57 = vmax.f32 %v7970_v9, %v7960_v5  ;;  %2638 = vmatprep.subr.mxu1 %v2439_v37  ;;  %v397_v37 = vld [vmem:[%s10120_s4 + $0x120] sm:$0xff] }
 0x2c5   : > { %v2092_v21 = vmax.f32 %v2091_v1, %v7963_v3  ;;  %v1923_v27 = vadd.f32 %v1922_v62, %v387_v19  ;;  %v7977_v30 = vadd.f32 %v7813_v36, %v1919_v60  ;;  %2089 = vmax.xlane.f32.xlu1 %v2088_v32  ;;  %v391_v62 = vld [vmem:[%s10120_s4 + $0xf0] sm:$0xff]  ;;  %v7988_v19 = vadd.f32 %v7781_v39, %v1770_v23  ;;  %v2566_v32 = vld [vmem:[#allocation2 + $0x720] sm:$0xff] }
 0x2c6   : > { %v1775_v46 = vpop.f32.mrf.mxu1  ;;  %v1924_v17 = vpop.f32.mrf.mxu0  ;;  %2799 = vmatprep.subr.mxu0 %v2567_v6  ;;  %v7998_v23 = vadd.f32 %v7787_v11, %v1768_v56  ;;  %2639 = vmatpush2.msra.mxu1 %v2438_v20  ;;  %v2562_v6 = vld [vmem:[#allocation2 + $0x700] sm:$0xff] }
 0x2c7   : > { %v7991_v4 = vadd.f32 %v7799_v52, %v1923_v27  ;;  %v1776_v1 = vadd.f32 %v1775_v46, %v394_v8  ;;  %v1925_v60 = vadd.f32 %v1924_v17, %v388_v44  ;;  %v2093_v34 = vmax.f32 %v2092_v21, %v7977_v30  ;;  %v392_v44 = vld [vmem:[%s10120_s4 + $0xf8] sm:$0xff]  ;;  %v2563_v21 = vld [vmem:[#allocation2 + $0x708] sm:$0xff]  ;;  %v2434_v46 = vld [vmem:[#allocation2 + $0x300] sm:$0xff]  ;;  %2800 = vmatpush2.msra.mxu0 %v2566_v32 }
 0x2c8   : > { %v1779_v28 = vpop.f32.mrf.mxu1  ;;  %v1928_v16 = vpop.f32.mrf.mxu0  ;;  %v1774_v27 = vadd.f32 %v1773_v2, %v393_v61  ;;  %v2101_v61 = vmax.f32 %v7998_v23, %v7988_v19  ;;  %2640 = vmatprep.subr.mxu1 %v2435_v26  ;;  %v402_v32 = vld [vmem:[%s10120_s4 + $0x148] sm:$0xff]  ;;  %2801 = vmatprep.subr.mxu0 %v2563_v21  ;;  %v401_v21 = vld [vmem:[%s10120_s4 + $0x140] sm:$0xff] }
 0x2c9   : > { %v2097_v8 = vmax.f32 %v2096_v57, %v7991_v4  ;;  %v1929_v7 = vadd.f32 %v1928_v16, %v391_v62  ;;  %v8005_v17 = vadd.f32 %v7813_v36, %v1925_v60  ;;  %2094 = vmax.xlane.f32.xlu0 %v2093_v34  ;;  %v395_v16 = vld [vmem:[%s10120_s4 + $0x110] sm:$0xff]  ;;  %v8016_v62 = vadd.f32 %v7781_v39, %v1776_v1  ;;  %v2431_v34 = vld [vmem:[#allocation2 + $0x2e8] sm:$0xff] }
 0x2ca   : > { %v1781_v56 = vpop.f32.mrf.mxu1  ;;  %v1930_v2 = vpop.f32.mrf.mxu0  ;;  %2641 = vmatpush2.msra.mxu1 %v2434_v46  ;;  %v8026_v1 = vadd.f32 %v7787_v11, %v1774_v27  ;;  %2802 = vmatpush2.msra.mxu0 %v2562_v6  ;;  %v2427_v46 = vld [vmem:[#allocation2 + $0x2c8] sm:$0xff] }
 0x2cb   : > { %10273 = vst [vmem:[#allocation21_spill] sm:$0xff] %v8016_v62  ;;  %v8019_v20 = vadd.f32 %v7799_v52, %v1929_v7  ;;  %v1782_v57 = vadd.f32 %v1781_v56, %v398_v38  ;;  %v1931_v60 = vadd.f32 %v1930_v2, %v392_v44  ;;  %v2098_v24 = vmax.f32 %v2097_v8, %v8005_v17  ;;  %v396_v44 = vld [vmem:[%s10120_s4 + $0x118] sm:$0xff]  ;;  %v2430_v8 = vld [vmem:[#allocation2 + $0x2e0] sm:$0xff] }
 0x2cc   : > { %v1785_v15 = vpop.f32.mrf.mxu1  ;;  %v1934_v31 = vpop.f32.mrf.mxu0  ;;  %10274 = vst [vmem:[#allocation22_spill] sm:$0xff] %v8026_v1  ;;  %v1780_v7 = vadd.f32 %v1779_v28, %v397_v37  ;;  %v2558_v56 = vld [vmem:[#allocation2 + $0x6e0] sm:$0xff]  ;;  %2642 = vmatprep.subr.mxu1 %v2431_v34  ;;  %v2106_v37 = vmax.f32 %v8026_v1, %v8016_v62  ;;  %2803 = vmatprep.subr.mxu0 %v2559_v63  ;;  %v406_v34 = vld [vmem:[%s10120_s4 + $0x168] sm:$0xff] }
 0x2cd   : > { %v2102_v38 = vmax.f32 %v2101_v61, %v8019_v20  ;;  %v1935_v26 = vadd.f32 %v1934_v31, %v395_v16  ;;  %v8033_v2 = vadd.f32 %v7813_v36, %v1931_v60  ;;  %2099 = vmax.xlane.f32.xlu1 %v2098_v24  ;;  %v399_v31 = vld [vmem:[%s10120_s4 + $0x130] sm:$0xff]  ;;  %v8044_v16 = vadd.f32 %v7781_v39, %v1782_v57  ;;  %v2555_v24 = vld [vmem:[#allocation2 + $0x6c8] sm:$0xff] }
 0x2ce   : > { %v1787_v27 = vpop.f32.mrf.mxu1  ;;  %v1936_v28 = vpop.f32.mrf.mxu0  ;;  %2643 = vmatpush2.msra.mxu1 %v2430_v8  ;;  %2804 = vmatpush2.msra.mxu0 %v2558_v56  ;;  %v8054_v57 = vadd.f32 %v7787_v11, %v1780_v7  ;;  %v405_v8 = vld [vmem:[%s10120_s4 + $0x160] sm:$0xff]  ;;  %v2551_v56 = vld [vmem:[#allocation2 + $0x6a8] sm:$0xff] }
 0x2cf   : > { %10275 = vst [vmem:[#allocation23_spill] sm:$0xff] %v8044_v16  ;;  %v8047_v6 = vadd.f32 %v7799_v52, %v1935_v26  ;;  %v1788_v61 = vadd.f32 %v1787_v27, %v402_v32  ;;  %v1937_v60 = vadd.f32 %v1936_v28, %v396_v44  ;;  %v2103_v43 = vmax.f32 %v2102_v38, %v8033_v2  ;;  %v400_v44 = vld [vmem:[%s10120_s4 + $0x138] sm:$0xff]  ;;  %v2554_v38 = vld [vmem:[#allocation2 + $0x6c0] sm:$0xff]  ;;  %v2423_v27 = vld [vmem:[#allocation2 + $0x2a8] sm:$0xff] }
 0x2d0   : > { %v1791_v51 = vpop.f32.mrf.mxu1  ;;  %v1940_v33 = vpop.f32.mrf.mxu0  ;;  %10277 = vst [vmem:[#allocation25_spill] sm:$0xff] %v8054_v57  ;;  %v1786_v26 = vadd.f32 %v1785_v15, %v401_v21  ;;  %2644 = vmatprep.subr.mxu1 %v2427_v46  ;;  %2805 = vmatprep.subr.mxu0 %v2555_v24  ;;  %v2111_v21 = vmax.f32 %v8054_v57, %v8044_v16  ;;  %v410_v24 = vld [vmem:[%s10120_s4 + $0x188] sm:$0xff]  ;;  %v2550_v16 = vld [vmem:[#allocation2 + $0x6a0] sm:$0xff] }
 0x2d1   : > { %10276 = vst [vmem:[#allocation24_spill] sm:$0xff] %v8047_v6  ;;  %v2107_v32 = vmax.f32 %v2106_v37, %v8047_v6  ;;  %v1941_v63 = vadd.f32 %v1940_v33, %v399_v31  ;;  %v8061_v28 = vadd.f32 %v7813_v36, %v1937_v60  ;;  %2104 = vmax.xlane.f32.xlu0 %v2103_v43  ;;  %v403_v33 = vld [vmem:[%s10120_s4 + $0x150] sm:$0xff]  ;;  %v2422_v43 = vld [vmem:[#allocation2 + $0x2a0] sm:$0xff] }
 0x2d2   : > { %v1793_v7 = vpop.f32.mrf.mxu1  ;;  %v1942_v15 = vpop.f32.mrf.mxu0  ;;  %v8072_v31 = vadd.f32 %v7781_v39, %v1788_v61  ;;  %2645 = vmatpush2.msra.mxu1 %v2426_v48  ;;  %2806 = vmatpush2.msra.mxu0 %v2554_v38  ;;  %v8082_v61 = vadd.f32 %v7787_v11, %v1786_v26  ;;  %v409_v38 = vld [vmem:[%s10120_s4 + $0x180] sm:$0xff] }
 0x2d3   : > { %10278 = vst [vmem:[#allocation26_spill] sm:$0xff] %v8061_v28  ;;  %v8075_v46 = vadd.f32 %v7799_v52, %v1941_v63  ;;  %v1794_v37 = vadd.f32 %v1793_v7, %v406_v34  ;;  %v1943_v60 = vadd.f32 %v1942_v15, %v400_v44  ;;  %v2108_v1 = vmax.f32 %v2107_v32, %v8061_v28  ;;  %v404_v44 = vld [vmem:[%s10120_s4 + $0x158] sm:$0xff]  ;;  %v2419_v32 = vld [vmem:[#allocation2 + $0x288] sm:$0xff] }
 0x2d4   : > { %10279 = vst [vmem:[#allocation27_spill] sm:$0xff] %v8072_v31  ;;  %v1797_v6 = vpop.f32.mrf.mxu1  ;;  %v1946_v62 = vpop.f32.mrf.mxu0  ;;  %2646 = vmatprep.subr.mxu1 %v2423_v27  ;;  %10281 = vst [vmem:[#allocation29_spill] sm:$0xff] %v8082_v61  ;;  %v1792_v63 = vadd.f32 %v1791_v51, %v405_v8  ;;  %2807 = vmatprep.subr.mxu0 %v2551_v56  ;;  %v2547_v7 = vld [vmem:[#allocation2 + $0x688] sm:$0xff]  ;;  %v2418_v27 = vld [vmem:[#allocation2 + $0x280] sm:$0xff]  ;;  %v2116_v8 = vmax.f32 %v8082_v61, %v8072_v31 }
 0x2d5   : > { %10280 = vst [vmem:[#allocation28_spill] sm:$0xff] %v8075_v46  ;;  %v2112_v34 = vmax.f32 %v2111_v21, %v8075_v46  ;;  %v1947_v48 = vadd.f32 %v1946_v62, %v403_v33  ;;  %v8089_v15 = vadd.f32 %v7813_v36, %v1943_v60  ;;  %2109 = vmax.xlane.f32.xlu1 %v2108_v1  ;;  %v407_v62 = vld [vmem:[%s10120_s4 + $0x170] sm:$0xff]  ;;  %v2546_v1 = vld [vmem:[#allocation2 + $0x680] sm:$0xff]  ;;  %v2415_v31 = vld [vmem:[#allocation2 + $0x268] sm:$0xff] }
 0x2d6   : > { %v1799_v26 = vpop.f32.mrf.mxu1  ;;  %v1948_v51 = vpop.f32.mrf.mxu0  ;;  %2647 = vmatpush2.msra.mxu1 %v2422_v43  ;;  %v8100_v33 = vadd.f32 %v7781_v39, %v1794_v37  ;;  %2808 = vmatpush2.msra.mxu0 %v2550_v16  ;;  %v414_v43 = vld [vmem:[%s10120_s4 + $0x1a8] sm:$0xff]  ;;  %v8110_v37 = vadd.f32 %v7787_v11, %v1792_v63 }
 0x2d7   : > { %10282 = vst [vmem:[#allocation30_spill] sm:$0xff] %v8089_v15  ;;  %v8103_v56 = vadd.f32 %v7799_v52, %v1947_v48  ;;  %v1800_v21 = vadd.f32 %v1799_v26, %v410_v24  ;;  %v1949_v60 = vadd.f32 %v1948_v51, %v404_v44  ;;  %v2113_v28 = vmax.f32 %v2112_v34, %v8089_v15  ;;  %v408_v44 = vld [vmem:[%s10120_s4 + $0x178] sm:$0xff]  ;;  %v2543_v34 = vld [vmem:[#allocation2 + $0x668] sm:$0xff]  ;;  %v2414_v26 = vld [vmem:[#allocation2 + $0x260] sm:$0xff] }
 0x2d8   : > { %10283 = vst [vmem:[#allocation31_spill] sm:$0xff] %v8100_v33  ;;  %v1803_v46 = vpop.f32.mrf.mxu1  ;;  %v1952_v57 = vpop.f32.mrf.mxu0  ;;  %2648 = vmatprep.subr.mxu1 %v2419_v32  ;;  %2809 = vmatprep.subr.mxu0 %v2547_v7  ;;  %10285 = vst [vmem:[#allocation33_spill] sm:$0xff] %v8110_v37  ;;  %v1798_v48 = vadd.f32 %v1797_v6, %v409_v38  ;;  %v413_v32 = vld [vmem:[%s10120_s4 + $0x1a0] sm:$0xff]  ;;  %v2121_v38 = vmax.f32 %v8110_v37, %v8100_v33 }
 0x2d9   : > { %10284 = vst [vmem:[#allocation32_spill] sm:$0xff] %v8103_v56  ;;  %v2117_v24 = vmax.f32 %v2116_v8, %v8103_v56  ;;  %v1953_v16 = vadd.f32 %v1952_v57, %v407_v62  ;;  %2649 = vmatpush2.msra.mxu1 %v2418_v27  ;;  %v8117_v51 = vadd.f32 %v7813_v36, %v1949_v60  ;;  %v411_v57 = vld [vmem:[%s10120_s4 + $0x190] sm:$0xff]  ;;  %v2542_v7 = vld [vmem:[#allocation2 + $0x660] sm:$0xff] }
 0x2da   : > { %2114 = vmax.xlane.f32.xlu0 %v2113_v28  ;;  %v1805_v63 = vpop.f32.mrf.mxu1  ;;  %v1954_v6 = vpop.f32.mrf.mxu0  ;;  %2810 = vmatpush2.msra.mxu0 %v2546_v1  ;;  %v8128_v62 = vadd.f32 %v7781_v39, %v1800_v21  ;;  %v2411_v28 = vld [vmem:[#allocation2 + $0x248] sm:$0xff]  ;;  %v8135_v15 = vadd.f32 %v7787_v11, %v1798_v48  ;;  %v1804_v33 = vadd.f32 %v1803_v46, %v413_v32  ;;  %v415_v48 = vld [vmem:[%s10120_s4 + $0x1b0] sm:$0xff] }
 0x2db   : > { %v8131_v27 = vadd.f32 %v7799_v52, %v1953_v16  ;;  %v1806_v8 = vadd.f32 %v1805_v63, %v414_v43  ;;  %2650 = vmatprep.subr.mxu1 %v2415_v31  ;;  %v1955_v60 = vadd.f32 %v1954_v6, %v408_v44  ;;  %v2118_v61 = vmax.f32 %v2117_v24, %v8117_v51  ;;  %v2539_v1 = vld [vmem:[#allocation2 + $0x648] sm:$0xff]  ;;  %v412_v43 = vld [vmem:[%s10120_s4 + $0x198] sm:$0xff]  ;;  %v2410_v31 = vld [vmem:[#allocation2 + $0x240] sm:$0xff] }
 0x2dc   : > { %v1958_v56 = vpop.f32.mrf.mxu0  ;;  %2811 = vmatprep.subr.mxu0 %v2543_v34  ;;  %2651 = vmatpush2.msra.mxu1 %v2414_v26  ;;  %v2538_v16 = vld [vmem:[#allocation2 + $0x640] sm:$0xff]  ;;  %v2407_v46 = vld [vmem:[#allocation2 + $0x228] sm:$0xff] }
 0x2dd   : > { %v2122_v21 = vmax.f32 %v2121_v38, %v8131_v27  ;;  %v1959_v37 = vadd.f32 %v1958_v56, %v411_v57  ;;  %2812 = vmatpush2.msra.mxu0 %v2542_v7  ;;  %v8142_v44 = vadd.f32 %v7813_v36, %v1955_v60  ;;  %2119 = vmax.xlane.f32.xlu1 %v2118_v61  ;;  %v2535_v32 = vld [vmem:[#allocation2 + $0x628] sm:$0xff]  ;;  %v2406_v57 = vld [vmem:[#allocation2 + $0x220] sm:$0xff] }
 0x2de   : > { %v1960_v24 = vpop.f32.mrf.mxu0  ;;  %2652 = vmatprep.subr.mxu1 %v2411_v28  ;;  %v2126_v56 = vmax.f32 %v8135_v15, %v8128_v62  ;;  %v8150_v34 = vadd.f32 %v7781_v39, %v1806_v8  ;;  %2813 = vmatprep.subr.mxu0 %v2539_v1  ;;  %v8157_v7 = vadd.f32 %v7787_v11, %v1804_v33  ;;  %v2534_v8 = vld [vmem:[#allocation2 + $0x620] sm:$0xff]  ;;  %v2403_v60 = vld [vmem:[#allocation2 + $0x208] sm:$0xff] }
 0x2df   : > { %v8153_v26 = vadd.f32 %v7799_v52, %v1959_v37  ;;  %v1961_v63 = vadd.f32 %v1960_v24, %v412_v43  ;;  %v2123_v6 = vmax.f32 %v2122_v21, %v8142_v44  ;;  %2653 = vmatpush2.msra.mxu1 %v2410_v31  ;;  %2814 = vmatpush2.msra.mxu0 %v2538_v16  ;;  %v416_v37 = vld [vmem:[%s10120_s4 + $0x1b8] sm:$0xff]  ;;  %v2531_v43 = vld [vmem:[#allocation2 + $0x608] sm:$0xff]  ;;  %v2402_v31 = vld [vmem:[#allocation2 + $0x200] sm:$0xff] }
 0x2e0   : > { %10286 = vst [vmem:[#allocation34_spill] sm:$0xff] %v8150_v34  ;;  %v1964_v61 = vpop.f32.mrf.mxu0  ;;  %10287 = vst [vmem:[#allocation35_spill] sm:$0xff] %v8157_v7  ;;  %2654 = vmatprep.subr.mxu1 %v2407_v46  ;;  %2815 = vmatprep.subr.mxu0 %v2535_v32  ;;  %v2131_v33 = vmax.f32 %v8157_v7, %v8150_v34  ;;  %v2530_v24 = vld [vmem:[#allocation2 + $0x600] sm:$0xff] }
 0x2e1   : > { %v2127_v38 = vmax.f32 %v2126_v56, %v8153_v26  ;;  %v1965_v28 = vadd.f32 %v1964_v61, %v415_v48  ;;  %v8164_v1 = vadd.f32 %v7813_v36, %v1961_v63  ;;  %2124 = vmax.xlane.f32.xlu0 %v2123_v6  ;;  %2655 = vmatpush2.msra.mxu1 %v2406_v57  ;;  %v6765_v61 = vld [vmem:[%s10121_s5 + $0x160] sm:$0xff]  ;;  %v1809_v6 = vpop.f32.mrf.mxu1 }
 0x2e2   : > { %v1966_v21 = vpop.f32.mrf.mxu0  ;;  %2816 = vmatpush2.msra.mxu0 %v2534_v8  ;;  %2656 = vmatprep.subr.mxu1 %v2403_v60  ;;  %v6766_v57 = vld [vmem:[%s10121_s5 + $0x60] sm:$0xff]  ;;  %v418_v60 = vld [vmem:[%s10120_s4 + $0x1c8] sm:$0xff] }
 0x2e3   : > { %v8169_v16 = vadd.f32 %v7799_v52, %v1965_v28  ;;  %v1967_v48 = vadd.f32 %v1966_v21, %v416_v37  ;;  %v2128_v46 = vmax.f32 %v2127_v38, %v8164_v1  ;;  %2817 = vmatprep.subr.mxu0 %v2531_v43  ;;  %2657 = vmatpush2.msra.mxu1 %v2402_v31  ;;  %v2401_v38 = vld [vmem:[#allocation2 + $0x1f8] sm:$0xff]  ;;  %v1811_v37 = vpop.f32.mrf.mxu1  ;;  %v417_v43 = vld [vmem:[%s10120_s4 + $0x1c0] sm:$0xff]  ;;  %v419_v31 = vld [vmem:[%s10120_s4 + $0x1d0] sm:$0xff] }
 0x2e4   : > { %2818 = vmatpush2.msra.mxu0 %v2530_v24  ;;  %v2529_v28 = vld [vmem:[#allocation2 + $0x5f8] sm:$0xff]  ;;  %2916 = vmatprep.subr.mxu1 %v2401_v38  ;;  %v1970_v8 = vpop.f32.mrf.mxu0  ;;  %v1812_v24 = vadd.f32 %v1811_v37, %v418_v60  ;;  %v423_v38 = vld [vmem:[%s10120_s4 + $0x1f0] sm:$0xff] }
 0x2e5   : > { %10288 = vst [vmem:[#allocation36_spill] sm:$0xff] %v8169_v16  ;;  %v2132_v56 = vmax.f32 %v2131_v33, %v8169_v16  ;;  %v8174_v32 = vadd.f32 %v7813_v36, %v1967_v48  ;;  %2129 = vmax.xlane.f32.xlu1 %v2128_v46  ;;  %3077 = vmatprep.subr.mxu0 %v2529_v28  ;;  %v1815_v21 = vpop.f32.mrf.mxu1  ;;  %v422_v48 = vld [vmem:[%s10120_s4 + $0x1e8] sm:$0xff]  ;;  %v424_v16 = vld [vmem:[%s10120_s4 + $0x1f8] sm:$0xff] }
 0x2e6   : > { %v1972_v33 = vpop.f32.mrf.mxu0  ;;  %v8207_v37 = vadd.f32 %v7781_v39, %v1812_v24 }
 0x2e7   : > { %10289 = vst [vmem:[#allocation37_spill] sm:$0xff] %v8174_v32  ;;  %v2133_v63 = vmax.f32 %v2132_v56, %v8174_v32  ;;  %v1817_v46 = vpop.f32.mrf.mxu1  ;;  %v1810_v56 = vadd.f32 %v1809_v6, %v417_v43 }
 0x2e8   : > { %v1976_v28 = vpop.f32.mrf.mxu0  ;;  %v1818_v60 = vadd.f32 %v1817_v46, %v422_v48  ;;  %v8226_v48 = vpop.permute.xlu1 %1097 }
 0x2e9   : > { %2134 = vmax.xlane.f32.xlu0 %v2133_v63  ;;  %v421_v63 = vld [vmem:[%s10120_s4 + $0x1e0] sm:$0xff]  ;;  %v8210_v6 = vadd.f32 %v7787_v11, %v1810_v56 }
 0x2ea   : > { %v1816_v32 = vadd.f32 %v1815_v21, %v421_v63  ;;  %v1978_v34 = vpop.f32.mrf.mxu0  ;;  %v8221_v24 = vadd.f32 %v7781_v39, %v1818_v60 }
 0x2eb   : > { %v2136_v7 = vmax.f32 %v8210_v6, %v8207_v37  ;;  %v1979_v63 = vadd.f32 %v1978_v34, %v424_v16 }
 0x2ec   : > { %10291 = vst [vmem:[#allocation39_spill] sm:$0xff] %v8221_v24  ;;  %v8224_v21 = vadd.f32 %v7787_v11, %v1816_v32  ;;  %v8242_v32 = vpop.permute.xlu1 %1065 }
 0x2ee   : > { %10292 = vst [vmem:[#allocation40_spill] sm:$0xff] %v8224_v21 }
 0x2f6   : > { %1123 = vrot.lane.b32.xlu1 %v6765_v61, %s6874_s13  ;;  %v1971_v61 = vadd.f32 %v1970_v8, %v419_v31  ;;  %v1977_v31 = vadd.f32 %v1976_v28, %v423_v38 }
 0x2f8   : > { %v8213_v43 = vadd.f32 %v7799_v52, %v1971_v61  ;;  %v8233_v56 = vadd.f32 %v7799_v52, %v1977_v31  ;;  %v2141_v61 = vmax.f32 %v8224_v21, %v8221_v24  ;;  %v8247_v52 = vpop.permute.xlu1 %1129  ;;  %v6768_v31 = vld [vmem:[%s10121_s5 + $0x158] sm:$0xff] }
 0x2fa   : > { %10290 = vst [vmem:[#allocation38_spill] sm:$0xff] %v8213_v43  ;;  %v2137_v46 = vmax.f32 %v2136_v7, %v8213_v43  ;;  %10293 = vst [vmem:[#allocation41_spill] sm:$0xff] %v8233_v56  ;;  %v2142_v39 = vmax.f32 %v2141_v61, %v8233_v56  ;;  %v8244_v7 = vpop.permute.xlu0 %1161 }
 0x2fc   : > { %v8251_v16 = vpop.permute.xlu1 %1159 }
 0x2fe   : > { %v8249_v34 = vpop.permute.xlu0 %1095 }
 0x2ff   : > { %1059 = vrot.lane.b32.xlu0 %v6766_v57, %s6874_s13  ;;  %v420_v57 = vld [vmem:[%s10120_s4 + $0x1d8] sm:$0xff] }
 0x300   : > { %v1973_v8 = vadd.f32 %v1972_v33, %v420_v57  ;;  %v8239_v57 = vadd.f32 %v7813_v36, %v1979_v63  ;;  %v8259_v60 = vpop.permute.xlu1 %1127  ;;  %v6769_v63 = vld [vmem:[%s10121_s5 + $0x1d0] sm:$0xff] }
 0x302   : > { %v8230_v33 = vadd.f32 %v7813_v36, %v1973_v8  ;;  %10294 = vst [vmem:[#allocation42_spill] sm:$0xff] %v8239_v57  ;;  %v2143_v38 = vmax.f32 %v2142_v39, %v8239_v57  ;;  %v8253_v28 = vpop.permute.xlu0 %1063  ;;  %v6767_v36 = vld [vmem:[%s10121_s5 + $0x1d8] sm:$0xff] }
 0x303   : > { %v6770_v39 = vld [vmem:[%s10121_s5 + $0xd8] sm:$0xff] }
 0x304   : > { %v2138_v11 = vmax.f32 %v2137_v46, %v8230_v33  ;;  %v8267_v46 = vpop.permute.xlu1 %1157 }
 0x306   : > { %v8261_v8 = vpop.permute.xlu0 %1093 }
 0x30a   : > { %v8273_v61 = vpop.permute.xlu0 %1061 }
 0x30b   : > { %10295 = vst [vmem:[#allocation43_spill] sm:$0xff] %v8273_v61 }
 0x31a   : > { %2139 = vmax.xlane.f32.xlu1 %v2138_v11  ;;  %v6771_v11 = vld [vmem:[%s10121_s5 + $0x150] sm:$0xff] }
 0x31e   : > { %2144 = vmax.xlane.f32.xlu0 %v2143_v38  ;;  %v8283_v38 = vpop.permute.xlu1 %1125 }
 0x32b   : > { %1153 = vrot.lane.b32.xlu1 %v6767_v36, %s6874_s13  ;;  %v6772_v36 = vld [vmem:[%s10121_s5 + $0x58] sm:$0xff] }
 0x32f   : > { %1121 = vrot.lane.b32.xlu1 %v6768_v31, %s6874_s13  ;;  %v8289_v31 = vpop.permute.xlu0 %1091 }
 0x330   : > { %10296 = vst [vmem:[#allocation44_spill] sm:$0xff] %v8289_v31 }
 0x333   : > { %1151 = vrot.lane.b32.xlu1 %v6769_v63, %s6874_s13  ;;  %v6773_v63 = vld [vmem:[%s10121_s5 + $0x1c8] sm:$0xff] }
 0x334   : > { %1089 = vrot.lane.b32.xlu0 %v6770_v39, %s6874_s13  ;;  %v6774_v39 = vld [vmem:[%s10121_s5 + $0xd0] sm:$0xff] }
 0x337   : > { %1119 = vrot.lane.b32.xlu1 %v6771_v11, %s6874_s13  ;;  %v8299_v11 = vpop.permute.xlu1 %1155 }
 0x338   : > { %1057 = vrot.lane.b32.xlu0 %v6772_v36, %s6874_s13 }
 0x33b   : > { %1149 = vrot.lane.b32.xlu1 %v6773_v63, %s6874_s13  ;;  %v6775_v63 = vld [vmem:[%s10121_s5 + $0x148] sm:$0xff] }
 0x33c   : > { %1087 = vrot.lane.b32.xlu0 %v6774_v39, %s6874_s13  ;;  %v6776_v39 = vld [vmem:[%s10121_s5 + $0x50] sm:$0xff] }
 0x33e   : > { %v2070_v56 = vpop.xlane.xlu0 %2069 }
 0x33f   : > { %v2146_v21 = vsub.f32 %v7811_v14, %v2070_v56  ;;  %v2147_v36 = vsub.f32 %v7797_v41, %v2070_v56  ;;  %v2148_v31 = vsub.f32 %v7824_v29, %v2070_v56  ;;  %v2149_v57 = vsub.f32 %v7837_v47, %v2070_v56  ;;  %1117 = vrot.lane.b32.xlu1 %v6775_v63, %s6874_s13  ;;  %v6777_v63 = vld [vmem:[%s10121_s5 + $0x1c0] sm:$0xff] }
 0x340   : > { %1055 = vrot.lane.b32.xlu0 %v6776_v39, %s6874_s13 }
 0x341   : > { %v2210_v24 = vmul.f32 1.442695, %v2146_v21  ;;  %v2212_v14 = vmul.f32 1.442695, %v2147_v36  ;;  %v2214_v61 = vmul.f32 1.442695, %v2148_v31 }
 0x342   : > { %v2216_v41 = vmul.f32 1.442695, %v2149_v57  ;;  %v2075_v43 = vpop.xlane.xlu1 %2074  ;;  %v6778_v57 = vld [vmem:[%s10121_s5 + $0xc8] sm:$0xff] }
 0x343   : > { %6381 = vpow2.f32 %v2210_v24  ;;  %v2150_v29 = vsub.f32 %v7830_v55, %v2075_v43  ;;  %v2151_v47 = vsub.f32 %v7821_v25, %v2075_v43  ;;  %v2152_v56 = vsub.f32 %v7851_v0, %v2075_v43  ;;  %1147 = vrot.lane.b32.xlu1 %v6777_v63, %s6874_s13  ;;  %v6781_v63 = vld [vmem:[%s10121_s5 + $0x1b8] sm:$0xff] }
 0x344   : > { %6383 = vpow2.f32 %v2212_v14  ;;  %v2153_v21 = vsub.f32 %v7865_v12, %v2075_v43  ;;  %1085 = vrot.lane.b32.xlu0 %v6778_v57, %s6874_s13  ;;  %v6779_v43 = vld [vmem:[%s10121_s5 + $0x140] sm:$0xff]  ;;  %v6780_v14 = vld [vmem:[%s10121_s5 + $0x48] sm:$0xff] }
 0x345   : > { %6385 = vpow2.f32 %v2214_v61  ;;  %v2218_v55 = vmul.f32 1.442695, %v2150_v29  ;;  %v2220_v25 = vmul.f32 1.442695, %v2151_v47  ;;  %v2222_v24 = vmul.f32 1.442695, %v2152_v56 }
 0x346   : > { %6387 = vpow2.f32 %v2216_v41  ;;  %v2224_v0 = vmul.f32 1.442695, %v2153_v21  ;;  %v2080_v31 = vpop.xlane.xlu0 %2079  ;;  %v6782_v57 = vld [vmem:[%s10121_s5 + $0xc0] sm:$0xff] }
 0x347   : > { %6389 = vpow2.f32 %v2218_v55  ;;  %v2154_v36 = vsub.f32 %v7858_v18, %v2080_v31  ;;  %v2155_v39 = vsub.f32 %v7848_v45, %v2080_v31  ;;  %v2156_v12 = vsub.f32 %v7879_v54, %v2080_v31  ;;  %1115 = vrot.lane.b32.xlu1 %v6779_v43, %s6874_s13 }
 0x348   : > { %6391 = vpow2.f32 %v2220_v25  ;;  %v2157_v61 = vsub.f32 %v7893_v10, %v2080_v31  ;;  %1053 = vrot.lane.b32.xlu0 %v6780_v14, %s6874_s13  ;;  %v6783_v31 = vld [vmem:[%s10121_s5 + $0x138] sm:$0xff] }
 0x349   : > { %6393 = vpow2.f32 %v2222_v24  ;;  %v2226_v18 = vmul.f32 1.442695, %v2154_v36  ;;  %v2228_v45 = vmul.f32 1.442695, %v2155_v39  ;;  %v2230_v41 = vmul.f32 1.442695, %v2156_v12 }
 0x34a   : > { %6395 = vpow2.f32 %v2224_v0  ;;  %v2232_v54 = vmul.f32 1.442695, %v2157_v61  ;;  %v2085_v29 = vpop.xlane.xlu0 %2084  ;;  %v6784_v12 = vld [vmem:[%s10121_s5 + $0x40] sm:$0xff] }
 0x34b   : > { %6397 = vpow2.f32 %v2226_v18  ;;  %v2158_v47 = vsub.f32 %v7886_v59, %v2085_v29  ;;  %v2159_v56 = vsub.f32 %v7876_v42, %v2085_v29  ;;  %v2160_v10 = vsub.f32 %v7907_v22, %v2085_v29  ;;  %1145 = vrot.lane.b32.xlu1 %v6781_v63, %s6874_s13 }
 0x34c   : > { %6399 = vpow2.f32 %v2228_v45  ;;  %v2161_v21 = vsub.f32 %v7921_v35, %v2085_v29  ;;  %1083 = vrot.lane.b32.xlu0 %v6782_v57, %s6874_s13 }
 0x34d   : > { %6401 = vpow2.f32 %v2230_v41  ;;  %v2234_v59 = vmul.f32 1.442695, %v2158_v47  ;;  %v2236_v42 = vmul.f32 1.442695, %v2159_v56  ;;  %v2238_v55 = vmul.f32 1.442695, %v2160_v10 }
 0x34e   : > { %6403 = vpow2.f32 %v2232_v54  ;;  %v2240_v22 = vmul.f32 1.442695, %v2161_v21  ;;  %v2090_v25 = vpop.xlane.xlu1 %2089  ;;  %v6785_v47 = vld [vmem:[%s10121_s5 + $0x1b0] sm:$0xff] }
 0x34f   : > { %6405 = vpow2.f32 %v2234_v59  ;;  %v2162_v24 = vsub.f32 %v7914_v50, %v2090_v25  ;;  %v2163_v0 = vsub.f32 %v7904_v53, %v2090_v25  ;;  %v2164_v35 = vsub.f32 %v7935_v13, %v2090_v25  ;;  %1113 = vrot.lane.b32.xlu1 %v6783_v31, %s6874_s13  ;;  %v2528_v56 = vld [vmem:[#allocation2 + $0x5f0] sm:$0xff]  ;;  %v2525_v31 = vld [vmem:[#allocation2 + $0x5d8] sm:$0xff] }
 0x350   : > { %v8356_v36 = vpop.eup %6381  ;;  %6407 = vpow2.f32 %v2236_v42  ;;  %v2165_v39 = vsub.f32 %v7949_v49, %v2090_v25  ;;  %1051 = vrot.lane.b32.xlu0 %v6784_v12, %s6874_s13  ;;  %v2400_v49 = vld [vmem:[#allocation2 + $0x1f0] sm:$0xff] }
 0x351   : > { %v8363_v53 = vpop.eup %6383  ;;  %6409 = vpow2.f32 %v2238_v55  ;;  %v2242_v50 = vmul.f32 1.442695, %v2162_v24  ;;  %v2244_v13 = vmul.f32 1.442695, %v2163_v0  ;;  %v2246_v43 = vmul.f32 1.442695, %v2164_v35 }
 0x352   : > { %v8365_v61 = vpop.eup %6385  ;;  %6411 = vpow2.f32 %v2240_v22  ;;  %v2248_v14 = vmul.f32 1.442695, %v2165_v39  ;;  %2658 = vmatprep.mubr.f32.mxu1 %v8363_v53  ;;  %v2095_v18 = vpop.xlane.xlu0 %2094  ;;  %v2397_v55 = vld [vmem:[#allocation2 + $0x1d8] sm:$0xff]  ;;  %v6787_v35 = vld [vmem:[%s10121_s5 + $0x130] sm:$0xff] }
 0x353   : > { %10297 = vst [vmem:[#allocation45_spill] sm:$0xff] %v8365_v61  ;;  %v8368_v45 = vpop.eup %6387  ;;  %6413 = vpow2.f32 %v2242_v50  ;;  %2659 = vmatmul.mubr.f32.vlgmr.msra.gmra.mxu1 %v8356_v36  ;;  %v2166_v41 = vsub.f32 %v7942_v58, %v2095_v18  ;;  %v2167_v54 = vsub.f32 %v7932_v40, %v2095_v18  ;;  %v2168_v29 = vsub.f32 %v7963_v3, %v2095_v18  ;;  %v6786_v40 = vld [vmem:[%s10121_s5 + $0xb8] sm:$0xff] }
 0x354   : > { %10298 = vst [vmem:[#allocation46_spill] sm:$0xff] %v8368_v45  ;;  %1143 = vrot.lane.b32.xlu1 %v6785_v47, %s6874_s13  ;;  %v8378_v10 = vpop.eup %6389  ;;  %6415 = vpow2.f32 %v2244_v13  ;;  %2819 = vmatprep.mubr.f32.mxu0 %v8368_v45  ;;  %v2169_v63 = vsub.f32 %v7977_v30, %v2095_v18  ;;  %v2396_v18 = vld [vmem:[#allocation2 + $0x1d0] sm:$0xff]  ;;  %v6789_v47 = vld [vmem:[%s10121_s5 + $0x1a8] sm:$0xff] }
 0x355   : > { %1081 = vrot.lane.b32.xlu0 %v6786_v40, %s6874_s13  ;;  %v8386_v58 = vpop.eup %6391  ;;  %6417 = vpow2.f32 %v2246_v43  ;;  %2820 = vmatmul.mubr.f32.vlgmr.msra.gmra.mxu0 %v8365_v61  ;;  %v2250_v3 = vmul.f32 1.442695, %v2166_v41  ;;  %v2252_v21 = vmul.f32 1.442695, %v2167_v54  ;;  %v2254_v57 = vmul.f32 1.442695, %v2168_v29 }
 0x356   : > { %2917 = vmatpush1.msra.mxu1 %v2400_v49  ;;  %v8389_v59 = vpop.eup %6393  ;;  %6419 = vpow2.f32 %v2248_v14  ;;  %v2256_v42 = vmul.f32 1.442695, %v2169_v63  ;;  %2664 = vmatprep.mubr.f32.mxu1 %v8386_v58  ;;  %v2100_v30 = vpop.xlane.xlu1 %2099 }
 0x357   : > { %10299 = vst [vmem:[#allocation47_spill] sm:$0xff] %v8389_v59  ;;  %3078 = vmatpush1.msra.mxu0 %v2528_v56  ;;  %v8392_v22 = vpop.eup %6395  ;;  %6421 = vpow2.f32 %v2250_v3  ;;  %v2170_v25 = vsub.f32 %v7970_v9, %v2100_v30  ;;  %v2171_v24 = vsub.f32 %v7960_v5, %v2100_v30  ;;  %v2172_v0 = vsub.f32 %v7991_v4, %v2100_v30  ;;  %v6788_v5 = vld [vmem:[%s10121_s5 + $0x38] sm:$0xff]  ;;  %v2524_v56 = vld [vmem:[#allocation2 + $0x5d0] sm:$0xff] }
 0x358   : > { %10300 = vst [vmem:[#allocation48_spill] sm:$0xff] %v8392_v22  ;;  %2665 = vmatmul.mubr.f32.gmra.mxu1 %v8378_v10  ;;  %1111 = vrot.lane.b32.xlu1 %v6787_v35, %s6874_s13  ;;  %v8402_v39 = vpop.eup %6397  ;;  %6423 = vpow2.f32 %v2252_v21  ;;  %v2173_v9 = vsub.f32 %v8005_v17, %v2100_v30  ;;  %v2393_v30 = vld [vmem:[#allocation2 + $0x1b8] sm:$0xff] }
 0x359   : > { %2825 = vmatprep.mubr.f32.mxu0 %v8392_v22  ;;  %1049 = vrot.lane.b32.xlu0 %v6788_v5, %s6874_s13  ;;  %v8410_v4 = vpop.eup %6399  ;;  %6425 = vpow2.f32 %v2254_v57  ;;  %v2258_v12 = vmul.f32 1.442695, %v2170_v25  ;;  %v2260_v50 = vmul.f32 1.442695, %v2171_v24  ;;  %v2262_v13 = vmul.f32 1.442695, %v2172_v0 }
 0x35a   : > { %2826 = vmatmul.mubr.f32.gmra.mxu0 %v8389_v59  ;;  %2918 = vmatprep.subr.mxu1 %v2397_v55  ;;  %v8413_v43 = vpop.eup %6401  ;;  %6427 = vpow2.f32 %v2256_v42  ;;  %v2264_v14 = vmul.f32 1.442695, %v2173_v9  ;;  %v2105_v17 = vpop.xlane.xlu0 %2104  ;;  %v10305_v25 = vld [vmem:[#allocation22_spill] sm:$0xff]  ;;  %v10306_v0 = vld [vmem:[#allocation21_spill] sm:$0xff] }
 0x35b   : > { %10301 = vst [vmem:[#allocation49_spill] sm:$0xff] %v8413_v43  ;;  %2670 = vmatprep.mubr.f32.mxu1 %v8410_v4  ;;  %3079 = vmatprep.subr.mxu0 %v2525_v31  ;;  %v8416_v49 = vpop.eup %6403  ;;  %6429 = vpow2.f32 %v2258_v12  ;;  %v2174_v41 = vsub.f32 %v7998_v23, %v2105_v17  ;;  %v2175_v54 = vsub.f32 %v7988_v19, %v2105_v17  ;;  %v6790_v19 = vld [vmem:[%s10121_s5 + $0xb0] sm:$0xff]  ;;  %v10307_v31 = vld [vmem:[#allocation24_spill] sm:$0xff]  ;;  %v6791_v5 = vld [vmem:[%s10121_s5 + $0x128] sm:$0xff] }
 0x35c   : > { %10302 = vst [vmem:[#allocation50_spill] sm:$0xff] %v8416_v49  ;;  %2671 = vmatmul.mubr.f32.gmra.mxu1 %v8402_v39  ;;  %v2176_v29 = vsub.f32 %v8019_v20, %v2105_v17  ;;  %1141 = vrot.lane.b32.xlu1 %v6789_v47, %s6874_s13  ;;  %v8426_v63 = vpop.eup %6405  ;;  %6431 = vpow2.f32 %v2260_v50  ;;  %v2177_v40 = vsub.f32 %v8033_v2, %v2105_v17  ;;  %v2521_v12 = vld [vmem:[#allocation2 + $0x5b8] sm:$0xff]  ;;  %v6792_v17 = vld [vmem:[%s10121_s5 + $0x30] sm:$0xff] }
 0x35d   : > { %2831 = vmatprep.mubr.f32.mxu0 %v8416_v49  ;;  %1079 = vrot.lane.b32.xlu0 %v6790_v19, %s6874_s13  ;;  %v8434_v23 = vpop.eup %6407  ;;  %6433 = vpow2.f32 %v2262_v13  ;;  %v2266_v20 = vmul.f32 1.442695, %v2174_v41  ;;  %v2268_v3 = vmul.f32 1.442695, %v2175_v54  ;;  %v10309_v13 = vld [vmem:[#allocation26_spill] sm:$0xff]  ;;  %v2392_v19 = vld [vmem:[#allocation2 + $0x1b0] sm:$0xff] }
 0x35e   : > { %2832 = vmatmul.mubr.f32.gmra.mxu0 %v8413_v43  ;;  %v2270_v21 = vmul.f32 1.442695, %v2176_v29  ;;  %2919 = vmatpush1.msra.mxu1 %v2396_v18  ;;  %v8437_v57 = vpop.eup %6409  ;;  %6435 = vpow2.f32 %v2264_v14  ;;  %v2272_v42 = vmul.f32 1.442695, %v2177_v40  ;;  %v2110_v2 = vpop.xlane.xlu1 %2109 }
 0x35f   : > { %10303 = vst [vmem:[#allocation51_spill] sm:$0xff] %v8437_v57  ;;  %2676 = vmatprep.mubr.f32.mxu1 %v8434_v23  ;;  %3080 = vmatpush1.msra.mxu0 %v2524_v56  ;;  %v8440_v55 = vpop.eup %6411  ;;  %6437 = vpow2.f32 %v2266_v20  ;;  %v2178_v24 = vsub.f32 %v10305_v25, %v2110_v2  ;;  %v2179_v35 = vsub.f32 %v10306_v0, %v2110_v2  ;;  %v2520_v0 = vld [vmem:[#allocation2 + $0x5b0] sm:$0xff] }
 0x360   : > { %10304 = vst [vmem:[#allocation52_spill] sm:$0xff] %v8440_v55  ;;  %v2180_v9 = vsub.f32 %v10307_v31, %v2110_v2  ;;  %2677 = vmatmul.mubr.f32.gmra.mxu1 %v8426_v63  ;;  %1109 = vrot.lane.b32.xlu1 %v6791_v5, %s6874_s13  ;;  %v8450_v50 = vpop.eup %6413  ;;  %6439 = vpow2.f32 %v2268_v3  ;;  %v2181_v14 = vsub.f32 %v10309_v13, %v2110_v2  ;;  %v10312_v3 = vld [vmem:[#allocation25_spill] sm:$0xff]  ;;  %v10313_v2 = vld [vmem:[#allocation23_spill] sm:$0xff]  ;;  %v10316_v31 = vld [vmem:[#allocation30_spill] sm:$0xff] }
 0x361   : > { %10308 = vst [vmem:[#allocation22_spill] sm:$0xff] %v8450_v50  ;;  %2837 = vmatprep.mubr.f32.mxu0 %v8440_v55  ;;  %1047 = vrot.lane.b32.xlu0 %v6792_v17, %s6874_s13  ;;  %v8458_v18 = vpop.eup %6415  ;;  %6441 = vpow2.f32 %v2270_v21  ;;  %v2274_v41 = vmul.f32 1.442695, %v2178_v24  ;;  %v2276_v54 = vmul.f32 1.442695, %v2179_v35  ;;  %v10314_v24 = vld [vmem:[#allocation28_spill] sm:$0xff] }
 0x362   : > { %v2278_v29 = vmul.f32 1.442695, %v2180_v9  ;;  %2838 = vmatmul.mubr.f32.gmra.mxu0 %v8437_v57  ;;  %2920 = vmatprep.subr.mxu1 %v2393_v30  ;;  %v8461_v47 = vpop.eup %6417  ;;  %6443 = vpow2.f32 %v2272_v42  ;;  %v2280_v56 = vmul.f32 1.442695, %v2181_v14  ;;  %v6793_v42 = vld [vmem:[%s10121_s5 + $0x1a0] sm:$0xff]  ;;  %v6794_v5 = vld [vmem:[%s10121_s5 + $0xa8] sm:$0xff] }
 0x363   : > { %10310 = vst [vmem:[#allocation21_spill] sm:$0xff] %v8461_v47  ;;  %2682 = vmatprep.mubr.f32.mxu1 %v8458_v18  ;;  %v2115_v40 = vpop.xlane.xlu0 %2114  ;;  %3081 = vmatprep.subr.mxu0 %v2521_v12  ;;  %v8464_v20 = vpop.eup %6419  ;;  %6445 = vpow2.f32 %v2274_v41 }
 0x364   : > { %10311 = vst [vmem:[#allocation24_spill] sm:$0xff] %v8464_v20  ;;  %2683 = vmatmul.mubr.f32.gmra.mxu1 %v8450_v50  ;;  %v2182_v21 = vsub.f32 %v10312_v3, %v2115_v40  ;;  %v2183_v25 = vsub.f32 %v10313_v2, %v2115_v40  ;;  %v2184_v30 = vsub.f32 %v10314_v24, %v2115_v40  ;;  %v8474_v35 = vpop.eup %6421  ;;  %6447 = vpow2.f32 %v2276_v54  ;;  %v2389_v3 = vld [vmem:[#allocation2 + $0x198] sm:$0xff]  ;;  %v10320_v24 = vld [vmem:[#allocation29_spill] sm:$0xff] }
 0x365   : > { %1139 = vrot.lane.b32.xlu1 %v6793_v42, %s6874_s13  ;;  %10315 = vst [vmem:[#allocation26_spill] sm:$0xff] %v8474_v35  ;;  %2843 = vmatprep.mubr.f32.mxu0 %v8464_v20  ;;  %v2185_v9 = vsub.f32 %v10316_v31, %v2115_v40  ;;  %v8482_v12 = vpop.eup %6423  ;;  %6449 = vpow2.f32 %v2278_v29  ;;  %v10321_v42 = vld [vmem:[#allocation27_spill] sm:$0xff] }
 0x366   : > { %1077 = vrot.lane.b32.xlu0 %v6794_v5, %s6874_s13  ;;  %10317 = vst [vmem:[#allocation25_spill] sm:$0xff] %v8482_v12  ;;  %2844 = vmatmul.mubr.f32.gmra.mxu0 %v8461_v47  ;;  %v2282_v13 = vmul.f32 1.442695, %v2182_v21  ;;  %v2284_v14 = vmul.f32 1.442695, %v2183_v25  ;;  %v8485_v41 = vpop.eup %6425  ;;  %6451 = vpow2.f32 %v2280_v56  ;;  %v2120_v40 = vpop.xlane.xlu1 %2119  ;;  %v10322_v21 = vld [vmem:[#allocation32_spill] sm:$0xff] }
 0x367   : > { %v2286_v17 = vmul.f32 1.442695, %v2184_v30  ;;  %2921 = vmatpush1.msra.mxu1 %v2392_v19  ;;  %10318 = vst [vmem:[#allocation23_spill] sm:$0xff] %v8485_v41  ;;  %v2288_v54 = vmul.f32 1.442695, %v2185_v9  ;;  %2688 = vmatprep.mubr.f32.mxu1 %v8482_v12  ;;  %v8488_v2 = vpop.eup %6427  ;;  %v2186_v29 = vsub.f32 %v10320_v24, %v2120_v40  ;;  %v2187_v31 = vsub.f32 %v10321_v42, %v2120_v40  ;;  %v6795_v56 = vld [vmem:[%s10121_s5 + $0x120] sm:$0xff] }
 0x368   : > { %3082 = vmatpush1.msra.mxu0 %v2520_v0  ;;  %10319 = vst [vmem:[#allocation28_spill] sm:$0xff] %v8488_v2  ;;  %6453 = vpow2.f32 %v2282_v13  ;;  %v2188_v25 = vsub.f32 %v10322_v21, %v2120_v40  ;;  %2689 = vmatmul.mubr.f32.gmra.mxu1 %v8474_v35  ;;  %v2517_v19 = vld [vmem:[#allocation2 + $0x598] sm:$0xff]  ;;  %v8498_v30 = vpop.eup %6429  ;;  %v2189_v0 = vsub.f32 %v8117_v51, %v2120_v40  ;;  %v6796_v9 = vld [vmem:[%s10121_s5 + $0x28] sm:$0xff]  ;;  %v2388_v40 = vld [vmem:[#allocation2 + $0x190] sm:$0xff] }
 0x369   : > { %1107 = vrot.lane.b32.xlu1 %v6795_v56, %s6874_s13  ;;  %10323 = vst [vmem:[#allocation30_spill] sm:$0xff] %v8498_v30  ;;  %6455 = vpow2.f32 %v2284_v14  ;;  %2849 = vmatprep.mubr.f32.mxu0 %v8488_v2  ;;  %v8506_v5 = vpop.eup %6431  ;;  %v2290_v13 = vmul.f32 1.442695, %v2186_v29  ;;  %v2292_v24 = vmul.f32 1.442695, %v2187_v31  ;;  %v10328_v31 = vld [vmem:[#allocation31_spill] sm:$0xff] }
 0x36a   : > { %1045 = vrot.lane.b32.xlu0 %v6796_v9, %s6874_s13  ;;  %10324 = vst [vmem:[#allocation29_spill] sm:$0xff] %v8506_v5  ;;  %6457 = vpow2.f32 %v2286_v17  ;;  %v2294_v42 = vmul.f32 1.442695, %v2188_v25  ;;  %2850 = vmatmul.mubr.f32.gmra.mxu0 %v8485_v41  ;;  %v8509_v14 = vpop.eup %6433  ;;  %v2296_v21 = vmul.f32 1.442695, %v2189_v0  ;;  %v2125_v51 = vpop.xlane.xlu0 %2124  ;;  %v10327_v17 = vld [vmem:[#allocation33_spill] sm:$0xff] }
 0x36b   : > { %2922 = vmatprep.subr.mxu1 %v2389_v3  ;;  %10325 = vst [vmem:[#allocation27_spill] sm:$0xff] %v8509_v14  ;;  %6459 = vpow2.f32 %v2288_v54  ;;  %2694 = vmatprep.mubr.f32.mxu1 %v8506_v5  ;;  %v8512_v56 = vpop.eup %6435  ;;  %v2190_v29 = vsub.f32 %v10327_v17, %v2125_v51  ;;  %v2191_v25 = vsub.f32 %v10328_v31, %v2125_v51  ;;  %v6797_v54 = vld [vmem:[%s10121_s5 + $0x198] sm:$0xff]  ;;  %v2516_v0 = vld [vmem:[#allocation2 + $0x590] sm:$0xff] }
 0x36c   : > { %3083 = vmatprep.subr.mxu0 %v2517_v19  ;;  %10326 = vst [vmem:[#allocation32_spill] sm:$0xff] %v8512_v56  ;;  %6461 = vpow2.f32 %v2290_v13  ;;  %2695 = vmatmul.mubr.f32.gmra.mxu1 %v8498_v30  ;;  %v2192_v3 = vsub.f32 %v8131_v27, %v2125_v51  ;;  %v8522_v19 = vpop.eup %6437  ;;  %v2193_v9 = vsub.f32 %v8142_v44, %v2125_v51  ;;  %v6798_v13 = vld [vmem:[%s10121_s5 + $0xa0] sm:$0xff]  ;;  %v2385_v51 = vld [vmem:[#allocation2 + $0x178] sm:$0xff] }
 0x36d   : > { %1137 = vrot.lane.b32.xlu1 %v6797_v54, %s6874_s13  ;;  %10329 = vst [vmem:[#allocation33_spill] sm:$0xff] %v8522_v19  ;;  %6463 = vpow2.f32 %v2292_v24  ;;  %2855 = vmatprep.mubr.f32.mxu0 %v8512_v56  ;;  %v8530_v27 = vpop.eup %6439  ;;  %v2298_v17 = vmul.f32 1.442695, %v2190_v29  ;;  %v2300_v31 = vmul.f32 1.442695, %v2191_v25 }
 0x36e   : > { %1075 = vrot.lane.b32.xlu0 %v6798_v13, %s6874_s13  ;;  %10330 = vst [vmem:[#allocation31_spill] sm:$0xff] %v8530_v27  ;;  %6465 = vpow2.f32 %v2294_v42  ;;  %2856 = vmatmul.mubr.f32.gmra.mxu0 %v8509_v14  ;;  %v2302_v54 = vmul.f32 1.442695, %v2192_v3  ;;  %v8533_v24 = vpop.eup %6441  ;;  %v2304_v30 = vmul.f32 1.442695, %v2193_v9  ;;  %v2130_v44 = vpop.xlane.xlu1 %2129 }
 0x36f   : > { %2923 = vmatpush1.msra.mxu1 %v2388_v40  ;;  %10331 = vst [vmem:[#allocation53_spill] sm:$0xff] %v8533_v24  ;;  %6467 = vpow2.f32 %v2296_v21  ;;  %2700 = vmatprep.mubr.f32.mxu1 %v8530_v27  ;;  %v8536_v56 = vpop.eup %6443  ;;  %v2194_v42 = vsub.f32 %v8135_v15, %v2130_v44  ;;  %v2195_v13 = vsub.f32 %v8128_v62, %v2130_v44  ;;  %v6799_v21 = vld [vmem:[%s10121_s5 + $0x118] sm:$0xff]  ;;  %v6800_v62 = vld [vmem:[%s10121_s5 + $0x20] sm:$0xff] }
 0x370   : > { %3084 = vmatpush1.msra.mxu0 %v2516_v0  ;;  %10332 = vst [vmem:[#allocation54_spill] sm:$0xff] %v8536_v56  ;;  %6469 = vpow2.f32 %v2298_v17  ;;  %v2196_v29 = vsub.f32 %v8153_v26, %v2130_v44  ;;  %2701 = vmatmul.mubr.f32.gmra.mxu1 %v8522_v19  ;;  %v2513_v40 = vld [vmem:[#allocation2 + $0x578] sm:$0xff]  ;;  %v8546_v25 = vpop.eup %6445  ;;  %v2197_v15 = vsub.f32 %v8164_v1, %v2130_v44  ;;  %v2384_v44 = vld [vmem:[#allocation2 + $0x170] sm:$0xff] }
 0x371   : > { %1105 = vrot.lane.b32.xlu1 %v6799_v21, %s6874_s13  ;;  %10333 = vst [vmem:[#allocation55_spill] sm:$0xff] %v8546_v25  ;;  %6471 = vpow2.f32 %v2300_v31  ;;  %2861 = vmatprep.mubr.f32.mxu0 %v8536_v56  ;;  %v8554_v26 = vpop.eup %6447  ;;  %v2306_v3 = vmul.f32 1.442695, %v2194_v42  ;;  %v2308_v0 = vmul.f32 1.442695, %v2195_v13  ;;  %v10338_v13 = vld [vmem:[#allocation34_spill] sm:$0xff] }
 0x372   : > { %1043 = vrot.lane.b32.xlu0 %v6800_v62, %s6874_s13  ;;  %10334 = vst [vmem:[#allocation56_spill] sm:$0xff] %v8554_v26  ;;  %6473 = vpow2.f32 %v2302_v54  ;;  %v2310_v9 = vmul.f32 1.442695, %v2196_v29  ;;  %2862 = vmatmul.mubr.f32.gmra.mxu0 %v8533_v24  ;;  %v8557_v17 = vpop.eup %6449  ;;  %v2312_v31 = vmul.f32 1.442695, %v2197_v15  ;;  %v2135_v1 = vpop.xlane.xlu0 %2134  ;;  %v10337_v54 = vld [vmem:[#allocation35_spill] sm:$0xff] }
 0x373   : > { %2924 = vmatprep.subr.mxu1 %v2385_v51  ;;  %10335 = vst [vmem:[#allocation57_spill] sm:$0xff] %v8557_v17  ;;  %6475 = vpow2.f32 %v2304_v30  ;;  %2706 = vmatprep.mubr.f32.mxu1 %v8554_v26  ;;  %v8560_v21 = vpop.eup %6451  ;;  %v2198_v42 = vsub.f32 %v10337_v54, %v2135_v1  ;;  %v2199_v29 = vsub.f32 %v10338_v13, %v2135_v1  ;;  %v6801_v51 = vld [vmem:[%s10121_s5 + $0x190] sm:$0xff]  ;;  %v6802_v54 = vld [vmem:[%s10121_s5 + $0x98] sm:$0xff] }
 0x374   : > { %3085 = vmatprep.subr.mxu0 %v2513_v40  ;;  %10336 = vst [vmem:[#allocation58_spill] sm:$0xff] %v8560_v21  ;;  %6477 = vpow2.f32 %v2306_v3  ;;  %2707 = vmatmul.mubr.f32.gmra.mxu1 %v8546_v25  ;;  %v2512_v30 = vld [vmem:[#allocation2 + $0x570] sm:$0xff]  ;;  %v10340_v40 = vld [vmem:[#allocation36_spill] sm:$0xff]  ;;  %v10341_v3 = vld [vmem:[#allocation37_spill] sm:$0xff] }
 0x375   : > { %1135 = vrot.lane.b32.xlu1 %v6801_v51, %s6874_s13  ;;  %v8569_v15 = vpop.eup %6453  ;;  %6479 = vpow2.f32 %v2308_v0  ;;  %2867 = vmatprep.mubr.f32.mxu0 %v8560_v21  ;;  %v2200_v62 = vsub.f32 %v10340_v40, %v2135_v1  ;;  %v2201_v25 = vsub.f32 %v10341_v3, %v2135_v1  ;;  %v2314_v51 = vmul.f32 1.442695, %v2198_v42  ;;  %v2381_v1 = vld [vmem:[#allocation2 + $0x158] sm:$0xff] }
 0x376   : > { %10339 = vst [vmem:[#allocation35_spill] sm:$0xff] %v8569_v15  ;;  %1073 = vrot.lane.b32.xlu0 %v6802_v54, %s6874_s13  ;;  %v8578_v13 = vpop.eup %6455  ;;  %6481 = vpow2.f32 %v2310_v9  ;;  %2868 = vmatmul.mubr.f32.gmra.mxu0 %v8557_v17  ;;  %v2316_v26 = vmul.f32 1.442695, %v2199_v29  ;;  %v6803_v9 = vld [vmem:[%s10121_s5 + $0x110] sm:$0xff] }
 0x377   : > { %10342 = vst [vmem:[#allocation34_spill] sm:$0xff] %v8578_v13  ;;  %2925 = vmatpush1.msra.mxu1 %v2384_v44  ;;  %v8581_v0 = vpop.eup %6457  ;;  %6483 = vpow2.f32 %v2312_v31  ;;  %v2318_v40 = vmul.f32 1.442695, %v2200_v62  ;;  %v2320_v21 = vmul.f32 1.442695, %v2201_v25  ;;  %2712 = vmatprep.mubr.f32.mxu1 %v8578_v13  ;;  %v2509_v44 = vld [vmem:[#allocation2 + $0x558] sm:$0xff] }
 0x378   : > { %10343 = vst [vmem:[#allocation36_spill] sm:$0xff] %v8581_v0  ;;  %3086 = vmatpush1.msra.mxu0 %v2512_v30  ;;  %v8584_v3 = vpop.eup %6459  ;;  %6485 = vpow2.f32 %v2314_v51  ;;  %2713 = vmatmul.mubr.f32.gmra.mxu1 %v8569_v15  ;;  %v6804_v25 = vld [vmem:[%s10121_s5 + $0x18] sm:$0xff]  ;;  %v6805_v62 = vld [vmem:[%s10121_s5 + $0x188] sm:$0xff]  ;;  %v2508_v54 = vld [vmem:[#allocation2 + $0x550] sm:$0xff] }
 0x379   : > { %10344 = vst [vmem:[#allocation37_spill] sm:$0xff] %v8584_v3  ;;  %1103 = vrot.lane.b32.xlu1 %v6803_v9, %s6874_s13  ;;  %v8591_v42 = vpop.eup %6461  ;;  %6487 = vpow2.f32 %v2316_v26  ;;  %2873 = vmatprep.mubr.f32.mxu0 %v8584_v3  ;;  %v2380_v26 = vld [vmem:[#allocation2 + $0x150] sm:$0xff]  ;;  %v2377_v9 = vld [vmem:[#allocation2 + $0x138] sm:$0xff] }
 0x37a   : > { %10345 = vst [vmem:[#allocation59_spill] sm:$0xff] %v8591_v42  ;;  %1041 = vrot.lane.b32.xlu0 %v6804_v25, %s6874_s13  ;;  %v8598_v31 = vpop.eup %6463  ;;  %6489 = vpow2.f32 %v2318_v40  ;;  %2874 = vmatmul.mubr.f32.gmra.mxu0 %v8581_v0  ;;  %v6807_v25 = vld [vmem:[%s10121_s5 + $0x108] sm:$0xff] }
 0x37b   : > { %10346 = vst [vmem:[#allocation60_spill] sm:$0xff] %v8598_v31  ;;  %2926 = vmatprep.subr.mxu1 %v2381_v1  ;;  %v8601_v29 = vpop.eup %6465  ;;  %6491 = vpow2.f32 %v2320_v21  ;;  %2718 = vmatprep.mubr.f32.mxu1 %v8598_v31  ;;  %v6806_v21 = vld [vmem:[%s10121_s5 + $0x90] sm:$0xff] }
 0x37c   : > { %10347 = vst [vmem:[#allocation61_spill] sm:$0xff] %v8601_v29  ;;  %3087 = vmatprep.subr.mxu0 %v2509_v44  ;;  %v8604_v30 = vpop.eup %6467  ;;  %2719 = vmatmul.mubr.f32.gmra.mxu1 %v8591_v42  ;;  %v2368_v42 = vld [vmem:[#allocation2 + $0xf0] sm:$0xff] }
 0x37d   : > { %10348 = vst [vmem:[#allocation62_spill] sm:$0xff] %v8604_v30  ;;  %1133 = vrot.lane.b32.xlu1 %v6805_v62, %s6874_s13  ;;  %v8611_v51 = vpop.eup %6469  ;;  %2879 = vmatprep.mubr.f32.mxu0 %v8604_v30  ;;  %v2505_v62 = vld [vmem:[#allocation2 + $0x538] sm:$0xff] }
 0x37e   : > { %10349 = vst [vmem:[#allocation63_spill] sm:$0xff] %v8611_v51  ;;  %1071 = vrot.lane.b32.xlu0 %v6806_v21, %s6874_s13  ;;  %v8618_v40 = vpop.eup %6471  ;;  %2880 = vmatmul.mubr.f32.gmra.mxu0 %v8601_v29  ;;  %v2365_v30 = vld [vmem:[#allocation2 + $0xd8] sm:$0xff] }
 0x37f   : > { %10350 = vst [vmem:[#allocation64_spill] sm:$0xff] %v8618_v40  ;;  %2927 = vmatpush1.msra.mxu1 %v2380_v26  ;;  %v8621_v1 = vpop.eup %6473  ;;  %2724 = vmatprep.mubr.f32.mxu1 %v8618_v40  ;;  %v6808_v26 = vld [vmem:[%s10121_s5 + $0x10] sm:$0xff] }
 0x380   : > { %10351 = vst [vmem:[#allocation65_spill] sm:$0xff] %v8621_v1  ;;  %3088 = vmatpush1.msra.mxu0 %v2508_v54  ;;  %v8624_v44 = vpop.eup %6475  ;;  %2725 = vmatmul.mubr.f32.gmra.mxu1 %v8611_v51 }
 0x381   : > { %10352 = vst [vmem:[#allocation66_spill] sm:$0xff] %v8624_v44  ;;  %1101 = vrot.lane.b32.xlu1 %v6807_v25, %s6874_s13  ;;  %v8631_v21 = vpop.eup %6477  ;;  %2885 = vmatprep.mubr.f32.mxu0 %v8624_v44  ;;  %v2376_v25 = vld [vmem:[#allocation2 + $0x130] sm:$0xff]  ;;  %v6809_v44 = vld [vmem:[%s10121_s5 + $0x180] sm:$0xff] }
 0x382   : > { %10353 = vst [vmem:[#allocation67_spill] sm:$0xff] %v8631_v21  ;;  %1039 = vrot.lane.b32.xlu0 %v6808_v26, %s6874_s13  ;;  %v8638_v54 = vpop.eup %6479  ;;  %2886 = vmatmul.mubr.f32.gmra.mxu0 %v8621_v1  ;;  %v2504_v26 = vld [vmem:[#allocation2 + $0x530] sm:$0xff] }
 0x383   : > { %10354 = vst [vmem:[#allocation68_spill] sm:$0xff] %v8638_v54  ;;  %2928 = vmatprep.subr.mxu1 %v2377_v9  ;;  %v8641_v51 = vpop.eup %6481  ;;  %2730 = vmatprep.mubr.f32.mxu1 %v8638_v54  ;;  %v6810_v9 = vld [vmem:[%s10121_s5 + $0x88] sm:$0xff]  ;;  %v2372_v1 = vld [vmem:[#allocation2 + $0x110] sm:$0xff] }
 0x384   : > { %10355 = vst [vmem:[#allocation69_spill] sm:$0xff] %v8641_v51  ;;  %3089 = vmatprep.subr.mxu0 %v2505_v62  ;;  %v8644_v40 = vpop.eup %6483  ;;  %2731 = vmatmul.mubr.f32.gmra.mxu1 %v8631_v21 }
 0x385   : > { %10356 = vst [vmem:[#allocation70_spill] sm:$0xff] %v8644_v40  ;;  %1131 = vrot.lane.b32.xlu1 %v6809_v44, %s6874_s13  ;;  %v8651_v29 = vpop.eup %6485  ;;  %2891 = vmatprep.mubr.f32.mxu0 %v8644_v40  ;;  %v2373_v44 = vld [vmem:[#allocation2 + $0x118] sm:$0xff]  ;;  %v6811_v40 = vld [vmem:[%s10121_s5 + $0x100] sm:$0xff] }
 0x386   : > { %10357 = vst [vmem:[#allocation71_spill] sm:$0xff] %v8651_v29  ;;  %1069 = vrot.lane.b32.xlu0 %v6810_v9, %s6874_s13  ;;  %v8658_v62 = vpop.eup %6487  ;;  %2892 = vmatmul.mubr.f32.gmra.mxu0 %v8641_v51  ;;  %v2501_v9 = vld [vmem:[#allocation2 + $0x518] sm:$0xff] }
 0x387   : > { %10358 = vst [vmem:[#allocation72_spill] sm:$0xff] %v8658_v62  ;;  %2929 = vmatpush1.msra.mxu1 %v2376_v25  ;;  %v8661_v21 = vpop.eup %6489  ;;  %2736 = vmatprep.mubr.f32.mxu1 %v8658_v62  ;;  %v6812_v25 = vld [vmem:[%s10121_s5 + $0x8] sm:$0xff]  ;;  %v10361_v62 = vld [vmem:[#allocation16_spill] sm:$0xff] }
 0x388   : > { %10359 = vst [vmem:[#allocation73_spill] sm:$0xff] %v8661_v21  ;;  %3090 = vmatpush1.msra.mxu0 %v2504_v26  ;;  %v8664_v54 = vpop.eup %6491  ;;  %2737 = vmatmul.mubr.f32.gmra.mxu1 %v8651_v29  ;;  %v2500_v26 = vld [vmem:[#allocation2 + $0x510] sm:$0xff]  ;;  %v1290_v29 = vmul.f32 %v8244_v7, %v10361_v62  ;;  %v2369_v51 = vld [vmem:[#allocation2 + $0xf8] sm:$0xff] }
 0x389   : > { %10360 = vst [vmem:[#allocation74_spill] sm:$0xff] %v8664_v54  ;;  %1099 = vrot.lane.b32.xlu1 %v6811_v40, %s6874_s13  ;;  %2897 = vmatprep.mubr.f32.mxu0 %v8664_v54  ;;  %v2497_v40 = vld [vmem:[#allocation2 + $0x4f8] sm:$0xff]  ;;  %v2496_v54 = vld [vmem:[#allocation2 + $0x4f0] sm:$0xff] }
 0x38a   : > { %1037 = vrot.lane.b32.xlu0 %v6812_v25, %s6874_s13  ;;  %2898 = vmatmul.mubr.f32.gmra.mxu0 %v8661_v21  ;;  %v6813_v25 = vld [vmem:[%s10121_s5 + $0x80] sm:$0xff]  ;;  %v2493_v7 = vld [vmem:[#allocation2 + $0x4d8] sm:$0xff]  ;;  %v2360_v21 = vld [vmem:[#allocation2 + $0xb0] sm:$0xff] }
 0x38b   : > { %2930 = vmatprep.subr.mxu1 %v2373_v44  ;;  %3091 = vmatprep.subr.mxu0 %v2501_v9  ;;  %v1274_v44 = vmul.f32 %v8247_v52, %v10361_v62  ;;  %v2361_v9 = vld [vmem:[#allocation2 + $0xb8] sm:$0xff]  ;;  %v2488_v52 = vld [vmem:[#allocation2 + $0x4b0] sm:$0xff] }
 0x38c   : > { %2931 = vmatpush1.msra.mxu1 %v2372_v1  ;;  %3092 = vmatpush1.msra.mxu0 %v2500_v26  ;;  %v2364_v1 = vld [vmem:[#allocation2 + $0xd0] sm:$0xff]  ;;  %v2489_v26 = vld [vmem:[#allocation2 + $0x4b8] sm:$0xff] }
 0x38d   : > { %3620 = vrot.lane.b32.xlu1 %v1290_v29, %s6874_s13  ;;  %2932 = vmatprep.subr.mxu1 %v2369_v51  ;;  %v2492_v29 = vld [vmem:[#allocation2 + $0x4d0] sm:$0xff]  ;;  %v6814_v51 = vld [vmem:[%s10121_s5] sm:$0xff] }
 0x38e   : > { %1067 = vrot.lane.b32.xlu0 %v6813_v25, %s6874_s13  ;;  %3093 = vmatprep.subr.mxu0 %v2497_v40  ;;  %v10362_v40 = vld [vmem:[#allocation17_spill] sm:$0xff]  ;;  %v2485_v25 = vld [vmem:[#allocation2 + $0x498] sm:$0xff] }
 0x38f   : > { %2933 = vmatpush1.msra.mxu1 %v2368_v42  ;;  %3094 = vmatpush1.msra.mxu0 %v2496_v54  ;;  %v1289_v42 = vmul.f32 %v8251_v16, %v10362_v40  ;;  %v1258_v54 = vmul.f32 %v8226_v48, %v10361_v62  ;;  %v1273_v16 = vmul.f32 %v8259_v60, %v10362_v40  ;;  %v2480_v48 = vld [vmem:[#allocation2 + $0x470] sm:$0xff]  ;;  %v2473_v60 = vld [vmem:[#allocation2 + $0x438] sm:$0xff] }
 0x390   : > { %2934 = vmatprep.subr.mxu1 %v2365_v30  ;;  %3095 = vmatprep.subr.mxu0 %v2493_v7  ;;  %v2357_v30 = vld [vmem:[#allocation2 + $0x98] sm:$0xff]  ;;  %v2356_v7 = vld [vmem:[#allocation2 + $0x90] sm:$0xff] }
 0x391   : > { %3588 = vrot.lane.b32.xlu1 %v1274_v44, %s6874_s13  ;;  %2935 = vmatpush1.msra.mxu1 %v2364_v1  ;;  %v2484_v44 = vld [vmem:[#allocation2 + $0x490] sm:$0xff]  ;;  %v2481_v1 = vld [vmem:[#allocation2 + $0x478] sm:$0xff] }
 0x392   : > { %1035 = vrot.lane.b32.xlu0 %v6814_v51, %s6874_s13  ;;  %3096 = vmatpush1.msra.mxu0 %v2492_v29  ;;  %v2353_v51 = vld [vmem:[#allocation2 + $0x78] sm:$0xff]  ;;  %v2352_v29 = vld [vmem:[#allocation2 + $0x70] sm:$0xff] }
 0x393   : > { %2936 = vmatprep.subr.mxu1 %v2361_v9  ;;  %3097 = vmatprep.subr.mxu0 %v2489_v26  ;;  %v1242_v9 = vmul.f32 %v8242_v32, %v10361_v62  ;;  %v2477_v26 = vld [vmem:[#allocation2 + $0x458] sm:$0xff]  ;;  %v2472_v32 = vld [vmem:[#allocation2 + $0x430] sm:$0xff] }
 0x394   : > { %2937 = vmatpush1.msra.mxu1 %v2360_v21  ;;  %3098 = vmatpush1.msra.mxu0 %v2488_v52  ;;  %v2349_v21 = vld [vmem:[#allocation2 + $0x58] sm:$0xff]  ;;  %v2348_v52 = vld [vmem:[#allocation2 + $0x50] sm:$0xff] }
 0x395   : > { %3618 = vrot.lane.b32.xlu1 %v1289_v42, %s6874_s13  ;;  %2938 = vmatprep.subr.mxu1 %v2357_v30  ;;  %v2476_v42 = vld [vmem:[#allocation2 + $0x450] sm:$0xff]  ;;  %v2345_v30 = vld [vmem:[#allocation2 + $0x38] sm:$0xff] }
 0x396   : > { %3556 = vrot.lane.b32.xlu0 %v1258_v54, %s6874_s13  ;;  %3099 = vmatprep.subr.mxu0 %v2485_v25  ;;  %v10363_v54 = vld [vmem:[#allocation14_spill] sm:$0xff]  ;;  %v2341_v62 = vld [vmem:[#allocation2 + $0x18] sm:$0xff] }
 0x397   : > { %2939 = vmatpush1.msra.mxu1 %v2356_v7  ;;  %3100 = vmatpush1.msra.mxu0 %v2484_v44  ;;  %v1288_v25 = vmul.f32 %v8267_v46, %v10363_v54  ;;  %v2344_v7 = vld [vmem:[#allocation2 + $0x30] sm:$0xff]  ;;  %v1257_v44 = vmul.f32 %v8249_v34, %v10362_v40  ;;  %v2593_v46 = vld [vmem:[#allocation2 + $0x7f8] sm:$0xff] }
 0x398   : > { %2940 = vmatprep.subr.mxu1 %v2353_v51  ;;  %3101 = vmatprep.subr.mxu0 %v2481_v1  ;;  %v2469_v51 = vld [vmem:[#allocation2 + $0x418] sm:$0xff]  ;;  %v2340_v1 = vld [vmem:[#allocation2 + $0x10] sm:$0xff] }
 0x399   : > { %3586 = vrot.lane.b32.xlu1 %v1273_v16, %s6874_s13  ;;  %2941 = vmatpush1.msra.mxu1 %v2352_v29  ;;  %v2468_v16 = vld [vmem:[#allocation2 + $0x410] sm:$0xff]  ;;  %v2465_v29 = vld [vmem:[#allocation2 + $0x3f8] sm:$0xff] }
 0x39a   : > { %3102 = vmatpush1.msra.mxu0 %v2480_v48  ;;  %3524 = vrot.lane.b32.xlu0 %v1242_v9, %s6874_s13  ;;  %v1272_v48 = vmul.f32 %v8283_v38, %v10363_v54  ;;  %v2464_v34 = vld [vmem:[#allocation2 + $0x3f0] sm:$0xff]  ;;  %v2457_v38 = vld [vmem:[#allocation2 + $0x3b8] sm:$0xff] }
 0x39b   : > { %2942 = vmatprep.subr.mxu1 %v2349_v21  ;;  %3103 = vmatprep.subr.mxu0 %v2477_v26  ;;  %v1124_v21 = vpop.permute.xlu1 %1123  ;;  %v2592_v9 = vld [vmem:[#allocation2 + $0x7f0] sm:$0xff]  ;;  %v2461_v26 = vld [vmem:[#allocation2 + $0x3d8] sm:$0xff] }
 0x39c   : > { %2943 = vmatpush1.msra.mxu1 %v2348_v52  ;;  %3104 = vmatpush1.msra.mxu0 %v2476_v42  ;;  %v1241_v52 = vmul.f32 %v8253_v28, %v10362_v40  ;;  %v2589_v42 = vld [vmem:[#allocation2 + $0x7d8] sm:$0xff]  ;;  %v2456_v28 = vld [vmem:[#allocation2 + $0x3b0] sm:$0xff] }
 0x39d   : > { %2944 = vmatprep.subr.mxu1 %v2345_v30  ;;  %3105 = vmatprep.subr.mxu0 %v2473_v60  ;;  %v2460_v30 = vld [vmem:[#allocation2 + $0x3d0] sm:$0xff] }
 0x39e   : > { %3616 = vrot.lane.b32.xlu1 %v1288_v25, %s6874_s13  ;;  %2945 = vmatpush1.msra.mxu1 %v2344_v7  ;;  %v2588_v60 = vld [vmem:[#allocation2 + $0x7d0] sm:$0xff]  ;;  %v8714_v25 = vpop.permute.xlu0 %1059  ;;  %v2585_v7 = vld [vmem:[#allocation2 + $0x7b8] sm:$0xff] }
 0x39f   : > { %3106 = vmatpush1.msra.mxu0 %v2472_v32  ;;  %3554 = vrot.lane.b32.xlu0 %v1257_v44, %s6874_s13  ;;  %v2584_v40 = vld [vmem:[#allocation2 + $0x7b0] sm:$0xff] }
 0x3a0   : > { %2946 = vmatprep.subr.mxu1 %v2341_v62  ;;  %3107 = vmatprep.subr.mxu0 %v2469_v51  ;;  %v10364_v62 = vld [vmem:[#allocation15_spill] sm:$0xff]  ;;  %v2453_v51 = vld [vmem:[#allocation2 + $0x398] sm:$0xff] }
 0x3a1   : > { %2947 = vmatpush1.msra.mxu1 %v2340_v1  ;;  %3108 = vmatpush1.msra.mxu0 %v2468_v16  ;;  %v1287_v44 = vmul.f32 %v8299_v11, %v10364_v62  ;;  %v1256_v1 = vmul.f32 %v8261_v8, %v10363_v54  ;;  %v2580_v11 = vld [vmem:[#allocation2 + $0x790] sm:$0xff]  ;;  %v2577_v8 = vld [vmem:[#allocation2 + $0x778] sm:$0xff] }
 0x3a2   : > { %2948 = vmatprep.subr.mxu1 %v2465_v29  ;;  %3109 = vmatprep.subr.mxu0 %v2593_v46  ;;  %v2581_v29 = vld [vmem:[#allocation2 + $0x798] sm:$0xff]  ;;  %v2452_v46 = vld [vmem:[#allocation2 + $0x390] sm:$0xff] }
 0x3a3   : > { %3584 = vrot.lane.b32.xlu1 %v1272_v48, %s6874_s13  ;;  %2949 = vmatpush2.msra.mxu1 %v2464_v34  ;;  %v2140_v32 = vpop.xlane.xlu1 %2139  ;;  %v2449_v34 = vld [vmem:[#allocation2 + $0x378] sm:$0xff] }
 0x3a4   : > { %3110 = vmatpush2.msra.mxu0 %v2592_v9  ;;  %3522 = vrot.lane.b32.xlu0 %v1241_v52, %s6874_s13  ;;  %v2203_v16 = vsub.f32 %v8207_v37, %v2140_v32  ;;  %v2205_v48 = vsub.f32 %v8230_v33, %v2140_v32  ;;  %v2202_v52 = vsub.f32 %v8210_v6, %v2140_v32  ;;  %v10365_v37 = vld [vmem:[#allocation38_spill] sm:$0xff]  ;;  %v2448_v33 = vld [vmem:[#allocation2 + $0x370] sm:$0xff] }
 0x3a5   : > { %2950 = vmatprep.subr.mxu1 %v2461_v26  ;;  %3111 = vmatprep.subr.mxu0 %v2589_v42  ;;  %v1271_v42 = vmul.f32 %v1124_v21, %v10364_v62 }
 0x3a6   : > { %2951 = vmatpush2.msra.mxu1 %v2460_v30  ;;  %3112 = vmatpush2.msra.mxu0 %v2588_v60  ;;  %v2204_v30 = vsub.f32 %v10365_v37, %v2140_v32  ;;  %v2576_v60 = vld [vmem:[#allocation2 + $0x770] sm:$0xff]  ;;  %v2328_v6 = vmul.f32 1.442695, %v2205_v48  ;;  %v2322_v32 = vmul.f32 1.442695, %v2202_v52  ;;  %v2569_v48 = vld [vmem:[#allocation2 + $0x738] sm:$0xff] }
 0x3a7   : > { %2952 = vmatprep.subr.mxu1 %v2457_v38  ;;  %3113 = vmatprep.subr.mxu0 %v2585_v7  ;;  %v1154_v9 = vpop.permute.xlu1 %1153  ;;  %v8724_v26 = vpop.xlane.xlu0 %2144  ;;  %v2324_v38 = vmul.f32 1.442695, %v2203_v16  ;;  %v2445_v7 = vld [vmem:[#allocation2 + $0x358] sm:$0xff]  ;;  %v2572_v16 = vld [vmem:[#allocation2 + $0x750] sm:$0xff] }
 0x3a8   : > { %3614 = vrot.lane.b32.xlu1 %v1287_v44, %s6874_s13  ;;  %2953 = vmatpush2.msra.mxu1 %v2456_v28  ;;  %v10366_v44 = vld [vmem:[#allocation43_spill] sm:$0xff] }
 0x3a9   : > { %3114 = vmatpush2.msra.mxu0 %v2584_v40  ;;  %3552 = vrot.lane.b32.xlu0 %v1256_v1, %s6874_s13  ;;  %v1240_v28 = vmul.f32 %v10366_v44, %v10363_v54  ;;  %v2573_v40 = vld [vmem:[#allocation2 + $0x758] sm:$0xff]  ;;  %v10368_v37 = vld [vmem:[#allocation39_spill] sm:$0xff]  ;;  %6493 = vpow2.f32 %v2324_v38 }
 0x3aa   : > { %2954 = vmatprep.subr.mxu1 %v2453_v51  ;;  %3115 = vmatprep.subr.mxu0 %v2581_v29  ;;  %v2444_v51 = vld [vmem:[#allocation2 + $0x350] sm:$0xff]  ;;  %v10367_v29 = vld [vmem:[#allocation12_spill] sm:$0xff]  ;;  %v2207_v54 = vsub.f32 %v10368_v37, %v8724_v26  ;;  %6495 = vpow2.f32 %v2328_v6 }
 0x3ab   : > { %2955 = vmatpush2.msra.mxu1 %v2452_v46  ;;  %3116 = vmatpush2.msra.mxu0 %v2580_v11  ;;  %v1122_v21 = vpop.permute.xlu1 %1121  ;;  %v8733_v1 = vpop.permute.xlu0 %1089  ;;  %v1286_v46 = vmul.f32 %v1154_v9, %v10367_v29  ;;  %v2441_v11 = vld [vmem:[#allocation2 + $0x338] sm:$0xff]  ;;  %v2440_v52 = vld [vmem:[#allocation2 + $0x330] sm:$0xff]  ;;  %6497 = vpow2.f32 %v2322_v32 }
 0x3ac   : > { %2956 = vmatprep.subr.mxu1 %v2449_v34  ;;  %3117 = vmatprep.subr.mxu0 %v2577_v8  ;;  %v2326_v34 = vmul.f32 1.442695, %v2204_v30  ;;  %v10369_v8 = vld [vmem:[#allocation42_spill] sm:$0xff]  ;;  %v2568_v9 = vld [vmem:[#allocation2 + $0x730] sm:$0xff]  ;;  %v2437_v30 = vld [vmem:[#allocation2 + $0x318] sm:$0xff] }
 0x3ad   : > { %3582 = vrot.lane.b32.xlu1 %v1271_v42, %s6874_s13  ;;  %2957 = vmatpush2.msra.mxu1 %v2448_v33  ;;  %v2209_v42 = vsub.f32 %v10369_v8, %v8724_v26  ;;  %v10370_v33 = vld [vmem:[#allocation40_spill] sm:$0xff]  ;;  %v2332_v8 = vmul.f32 1.442695, %v2207_v54 }
 0x3ae   : > { %3118 = vmatpush2.msra.mxu0 %v2576_v60  ;;  %3520 = vrot.lane.b32.xlu0 %v1240_v28, %s6874_s13  ;;  %v2206_v60 = vsub.f32 %v10370_v33, %v8724_v26  ;;  %v10372_v28 = vld [vmem:[#allocation41_spill] sm:$0xff]  ;;  %v2565_v6 = vld [vmem:[#allocation2 + $0x718] sm:$0xff]  ;;  %6499 = vpow2.f32 %v2326_v34 }
 0x3af   : > { %2958 = vmatprep.subr.mxu1 %v2445_v7  ;;  %3119 = vmatprep.subr.mxu0 %v2573_v40  ;;  %v1152_v44 = vpop.permute.xlu1 %1151  ;;  %v8743_v37 = vpop.permute.xlu0 %1057  ;;  %v10371_v7 = vld [vmem:[#allocation44_spill] sm:$0xff]  ;;  %v2208_v40 = vsub.f32 %v10372_v28, %v8724_v26  ;;  %v2336_v31 = vmul.f32 1.442695, %v2209_v42  ;;  %v2432_v26 = vld [vmem:[#allocation2 + $0x2f0] sm:$0xff]  ;;  %6501 = vpow2.f32 %v2332_v8 }
 0x3b0   : > { %2959 = vmatpush2.msra.mxu1 %v2444_v51  ;;  %3120 = vmatpush2.msra.mxu0 %v2572_v16  ;;  %v1255_v38 = vmul.f32 %v10371_v7, %v10364_v62  ;;  %v2436_v51 = vld [vmem:[#allocation2 + $0x310] sm:$0xff]  ;;  %v1270_v16 = vmul.f32 %v1122_v21, %v10367_v29  ;;  %v2433_v33 = vld [vmem:[#allocation2 + $0x2f8] sm:$0xff]  ;;  %v2330_v7 = vmul.f32 1.442695, %v2206_v60 }
 0x3b1   : > { %2960 = vmatprep.subr.mxu1 %v2441_v11  ;;  %3121 = vmatprep.subr.mxu0 %v2569_v48  ;;  %v2564_v11 = vld [vmem:[#allocation2 + $0x710] sm:$0xff]  ;;  %v2561_v32 = vld [vmem:[#allocation2 + $0x6f8] sm:$0xff]  ;;  %v2334_v34 = vmul.f32 1.442695, %v2208_v40  ;;  %6503 = vpow2.f32 %v2336_v31 }
 0x3b2   : > { %3612 = vrot.lane.b32.xlu1 %v1286_v46, %s6874_s13  ;;  %2961 = vmatpush2.msra.mxu1 %v2440_v52  ;;  %v2560_v46 = vld [vmem:[#allocation2 + $0x6f0] sm:$0xff]  ;;  %v2429_v21 = vld [vmem:[#allocation2 + $0x2d8] sm:$0xff]  ;;  %v1239_v52 = vmul.f32 %v8714_v25, %v10364_v62  ;;  %6505 = vpow2.f32 %v2330_v7 }
 0x3b3   : > { %3122 = vmatpush2.msra.mxu0 %v2568_v9  ;;  %3550 = vrot.lane.b32.xlu0 %v1255_v38, %s6874_s13  ;;  %v1120_v48 = vpop.permute.xlu1 %1119  ;;  %v8752_v28 = vpop.permute.xlu0 %1087  ;;  %v2557_v54 = vld [vmem:[#allocation2 + $0x6d8] sm:$0xff]  ;;  %v2428_v42 = vld [vmem:[#allocation2 + $0x2d0] sm:$0xff]  ;;  %v10373_v9 = vld [vmem:[#allocation13_spill] sm:$0xff]  ;;  %6507 = vpow2.f32 %v2334_v34 }
 0x3b4   : > { %2962 = vmatprep.subr.mxu1 %v2437_v30  ;;  %3123 = vmatprep.subr.mxu0 %v2565_v6  ;;  %v1285_v60 = vmul.f32 %v1152_v44, %v10373_v9  ;;  %v2556_v30 = vld [vmem:[#allocation2 + $0x6d0] sm:$0xff]  ;;  %v2425_v38 = vld [vmem:[#allocation2 + $0x2b8] sm:$0xff] }
 0x3b5   : > { %2963 = vmatpush2.msra.mxu1 %v2436_v51  ;;  %3124 = vmatpush2.msra.mxu0 %v2564_v11  ;;  %v2553_v40 = vld [vmem:[#allocation2 + $0x6b8] sm:$0xff]  ;;  %v2424_v8 = vld [vmem:[#allocation2 + $0x2b0] sm:$0xff]  ;;  %v1254_v11 = vmul.f32 %v8733_v1, %v10367_v29 }
 0x3b6   : > { %2964 = vmatprep.subr.mxu1 %v2433_v33  ;;  %3125 = vmatprep.subr.mxu0 %v2561_v32  ;;  %v2552_v25 = vld [vmem:[#allocation2 + $0x6b0] sm:$0xff]  ;;  %v2421_v31 = vld [vmem:[#allocation2 + $0x298] sm:$0xff] }
 0x3b7   : > { %3580 = vrot.lane.b32.xlu1 %v1270_v16, %s6874_s13  ;;  %2965 = vmatpush2.msra.mxu1 %v2432_v26  ;;  %v1150_v6 = vpop.permute.xlu1 %1149  ;;  %v8758_v51 = vpop.permute.xlu0 %1055  ;;  %v2549_v62 = vld [vmem:[#allocation2 + $0x698] sm:$0xff]  ;;  %v2420_v44 = vld [vmem:[#allocation2 + $0x290] sm:$0xff] }
 0x3b8   : > { %3126 = vmatpush2.msra.mxu0 %v2560_v46  ;;  %2966 = vmatprep.subr.mxu1 %v2429_v21  ;;  %v8762_v16 = vpop.eup %6493  ;;  %v2548_v33 = vld [vmem:[#allocation2 + $0x690] sm:$0xff]  ;;  %v1269_v46 = vmul.f32 %v1120_v48, %v10373_v9  ;;  %v2417_v34 = vld [vmem:[#allocation2 + $0x278] sm:$0xff] }
 0x3b9   : > { %3127 = vmatprep.subr.mxu0 %v2557_v54  ;;  %3518 = vrot.lane.b32.xlu0 %v1239_v52, %s6874_s13  ;;  %10374 = vst [vmem:[#allocation16_spill] sm:$0xff] %v8762_v16  ;;  %v8768_v26 = vpop.eup %6495  ;;  %v2545_v54 = vld [vmem:[#allocation2 + $0x678] sm:$0xff]  ;;  %v2544_v52 = vld [vmem:[#allocation2 + $0x670] sm:$0xff] }
 0x3ba   : > { %2967 = vmatpush2.msra.mxu1 %v2428_v42  ;;  %3128 = vmatpush2.msra.mxu0 %v2556_v30  ;;  %10375 = vst [vmem:[#allocation17_spill] sm:$0xff] %v8768_v26  ;;  %v8771_v21 = vpop.eup %6497  ;;  %v2416_v42 = vld [vmem:[#allocation2 + $0x270] sm:$0xff]  ;;  %v2413_v30 = vld [vmem:[#allocation2 + $0x258] sm:$0xff] }
 0x3bb   : > { %2968 = vmatprep.subr.mxu1 %v2425_v38  ;;  %3129 = vmatprep.subr.mxu0 %v2553_v40  ;;  %v1118_v32 = vpop.permute.xlu1 %1117  ;;  %v8766_v7 = vpop.permute.xlu0 %1085  ;;  %10376 = vst [vmem:[#allocation14_spill] sm:$0xff] %v8771_v21  ;;  %v2541_v38 = vld [vmem:[#allocation2 + $0x658] sm:$0xff]  ;;  %v2412_v40 = vld [vmem:[#allocation2 + $0x250] sm:$0xff] }
 0x3bc   : > { %3610 = vrot.lane.b32.xlu1 %v1285_v60, %s6874_s13  ;;  %2969 = vmatpush2.msra.mxu1 %v2424_v8  ;;  %v8774_v1 = vpop.eup %6499 }
 0x3bd   : > { %3130 = vmatpush2.msra.mxu0 %v2552_v25  ;;  %2970 = vmatprep.subr.mxu1 %v2421_v31  ;;  %10377 = vst [vmem:[#allocation15_spill] sm:$0xff] %v8774_v1  ;;  %v8783_v8 = vpop.eup %6501  ;;  %v1238_v25 = vmul.f32 %v8743_v37, %v10367_v29  ;;  %v2540_v31 = vld [vmem:[#allocation2 + $0x650] sm:$0xff] }
 0x3be   : > { %3131 = vmatprep.subr.mxu0 %v2549_v62  ;;  %3548 = vrot.lane.b32.xlu0 %v1254_v11, %s6874_s13  ;;  %10378 = vst [vmem:[#allocation38_spill] sm:$0xff] %v8783_v8  ;;  %v8787_v62 = vpop.eup %6503  ;;  %v2408_v37 = vld [vmem:[#allocation2 + $0x230] sm:$0xff] }
 0x3bf   : > { %2971 = vmatpush2.msra.mxu1 %v2420_v44  ;;  %3132 = vmatpush2.msra.mxu0 %v2548_v33  ;;  %v1148_v48 = vpop.permute.xlu1 %1147  ;;  %v8778_v60 = vpop.permute.xlu0 %1053  ;;  %10379 = vst [vmem:[#allocation43_spill] sm:$0xff] %v8787_v62  ;;  %v10380_v44 = vld [vmem:[#allocation10_spill] sm:$0xff]  ;;  %v2409_v33 = vld [vmem:[#allocation2 + $0x238] sm:$0xff] }
 0x3c0   : > { %2742 = vmatprep.mubr.f32.mxu1 %v8762_v16  ;;  %2903 = vmatprep.mubr.f32.mxu0 %v8768_v26  ;;  %v1284_v11 = vmul.f32 %v1150_v6, %v10380_v44  ;;  %v2536_v6 = vld [vmem:[#allocation2 + $0x630] sm:$0xff] }
 0x3c1   : > { %2972 = vmatprep.subr.mxu1 %v2417_v34  ;;  %3133 = vmatprep.subr.mxu0 %v2545_v54  ;;  %v8792_v54 = vpop.eup %6505 }
 0x3c2   : > { %3578 = vrot.lane.b32.xlu1 %v1269_v46, %s6874_s13  ;;  %2743 = vmatmul.mubr.f32.gmra.mxu1 %v8771_v21  ;;  %10381 = vst [vmem:[#allocation12_spill] sm:$0xff] %v8792_v54  ;;  %v8795_v29 = vpop.eup %6507 }
 0x3c3   : > { %2904 = vmatmul.mubr.f32.gmra.mxu0 %v8774_v1  ;;  %2973 = vmatpush2.msra.mxu1 %v2416_v42  ;;  %v1116_v46 = vpop.permute.xlu1 %1115  ;;  %v8790_v34 = vpop.permute.xlu0 %1083  ;;  %v2537_v1 = vld [vmem:[#allocation2 + $0x638] sm:$0xff]  ;;  %10382 = vst [vmem:[#allocation39_spill] sm:$0xff] %v8795_v29 }
 0x3c4   : > { %3134 = vmatpush2.msra.mxu0 %v2544_v52  ;;  %2974 = vmatprep.subr.mxu1 %v2413_v30  ;;  %v2405_v42 = vld [vmem:[#allocation2 + $0x218] sm:$0xff] }
 0x3c5   : > { %3135 = vmatprep.subr.mxu0 %v2541_v38  ;;  %3516 = vrot.lane.b32.xlu0 %v1238_v25, %s6874_s13  ;;  %v2533_v38 = vld [vmem:[#allocation2 + $0x618] sm:$0xff]  ;;  %v2404_v25 = vld [vmem:[#allocation2 + $0x210] sm:$0xff] }
 0x3c6   : > { %2975 = vmatpush2.msra.mxu1 %v2412_v40  ;;  %3136 = vmatpush2.msra.mxu0 %v2540_v31  ;;  %v1268_v40 = vmul.f32 %v1118_v32, %v10380_v44  ;;  %v1253_v31 = vmul.f32 %v8752_v28, %v10373_v9  ;;  %v10383_v32 = vld [vmem:[#allocation11_spill] sm:$0xff]  ;;  %v1237_v28 = vmul.f32 %v8758_v51, %v10373_v9 }
 0x3c7   : > { %2748 = vmatprep.mubr.f32.mxu1 %v8783_v8  ;;  %2909 = vmatprep.mubr.f32.mxu0 %v8787_v62  ;;  %v1146_v52 = vpop.permute.xlu1 %1145  ;;  %v1052_v30 = vpop.permute.xlu0 %1051 }
 0x3c8   : > { %2976 = vmatprep.subr.mxu1 %v2409_v33  ;;  %3137 = vmatprep.subr.mxu0 %v2537_v1  ;;  %v2532_v1 = vld [vmem:[#allocation2 + $0x610] sm:$0xff] }
 0x3c9   : > { %3608 = vrot.lane.b32.xlu1 %v1284_v11, %s6874_s13  ;;  %2749 = vmatmul.mubr.f32.gmra.mxu1 %v8792_v54 }
 0x3ca   : > { %2910 = vmatmul.mubr.f32.gmra.mxu0 %v8795_v29  ;;  %2977 = vmatpush2.msra.mxu1 %v2408_v37  ;;  %v1283_v37 = vmul.f32 %v1148_v48, %v10383_v32  ;;  %v1252_v48 = vmul.f32 %v8766_v7, %v10380_v44 }
 0x3cb   : > { %3138 = vmatpush2.msra.mxu0 %v2536_v6  ;;  %2978 = vmatprep.subr.mxu1 %v2405_v42  ;;  %v1114_v11 = vpop.permute.xlu1 %1113  ;;  %v1082_v33 = vpop.permute.xlu0 %1081 }
 0x3cc   : > { %2980 = vmatprep.mubr.f32.mxu1 %v8363_v53  ;;  %3139 = vmatprep.subr.mxu0 %v2533_v38  ;;  %v1267_v38 = vmul.f32 %v1116_v46, %v10383_v32  ;;  %v1236_v46 = vmul.f32 %v8778_v60, %v10380_v44 }
 0x3cd   : > { %3141 = vmatprep.mubr.f32.mxu0 %v8368_v45  ;;  %3546 = vrot.lane.b32.xlu0 %v1253_v31, %s6874_s13 }
 0x3ce   : > { %2979 = vmatpush2.msra.mxu1 %v2404_v25  ;;  %3140 = vmatpush2.msra.mxu0 %v2532_v1 }
 0x3cf   : > { %3576 = vrot.lane.b32.xlu1 %v1268_v40, %s6874_s13  ;;  %2981 = vmatmul.mubr.f32.vlgmr.msra.gmra.mxu1 %v8356_v36  ;;  %v1144_v6 = vpop.permute.xlu1 %1143  ;;  %v1050_v42 = vpop.permute.xlu0 %1049  ;;  %v10384_v40 = vld [vmem:[#allocation9_spill] sm:$0xff] }
 0x3d0   : > { %3142 = vmatmul.mubr.f32.vlgmr.msra.gmra.mxu0 %v8365_v61  ;;  %2986 = vmatprep.mubr.f32.mxu1 %v8386_v58  ;;  %v1282_v25 = vmul.f32 %v1146_v52, %v10384_v40  ;;  %v1266_v1 = vmul.f32 %v1114_v11, %v10384_v40  ;;  %v1251_v52 = vmul.f32 %v8790_v34, %v10383_v32 }
 0x3d1   : > { %3147 = vmatprep.mubr.f32.mxu0 %v8392_v22  ;;  %3514 = vrot.lane.b32.xlu0 %v1237_v28, %s6874_s13  ;;  %v1235_v11 = vmul.f32 %v1052_v30, %v10383_v32  ;;  %v10386_v30 = vld [vmem:[#allocation32_spill] sm:$0xff] }
 0x3d3   : > { %3606 = vrot.lane.b32.xlu1 %v1283_v37, %s6874_s13  ;;  %2987 = vmatmul.mubr.f32.gmra.mxu1 %v8378_v10  ;;  %v1112_v9 = vpop.permute.xlu1 %1111  ;;  %v1080_v51 = vpop.permute.xlu0 %1079  ;;  %v10385_v37 = vld [vmem:[#allocation18_spill] sm:$0xff] }
 0x3d4   : > { %3148 = vmatmul.mubr.f32.gmra.mxu0 %v8389_v59  ;;  %2992 = vmatprep.mubr.f32.mxu1 %v8410_v4  ;;  %v1281_v28 = vmul.f32 %v1144_v6, %v10385_v37  ;;  %v1250_v6 = vmul.f32 %v1082_v33, %v10384_v40 }
 0x3d5   : > { %3153 = vmatprep.mubr.f32.mxu0 %v8416_v49  ;;  %3544 = vrot.lane.b32.xlu0 %v1252_v48, %s6874_s13  ;;  %v1265_v48 = vmul.f32 %v1112_v9, %v10385_v37  ;;  %v1234_v9 = vmul.f32 %v1050_v42, %v10384_v40  ;;  %v10389_v42 = vld [vmem:[#allocation56_spill] sm:$0xff]  ;;  %v10390_v40 = vld [vmem:[#allocation58_spill] sm:$0xff] }
 0x3d7   : > { %3574 = vrot.lane.b32.xlu1 %v1267_v38, %s6874_s13  ;;  %2993 = vmatmul.mubr.f32.gmra.mxu1 %v8402_v39  ;;  %v1142_v7 = vpop.permute.xlu1 %1141  ;;  %v1048_v31 = vpop.permute.xlu0 %1047 }
 0x3d8   : > { %3154 = vmatmul.mubr.f32.gmra.mxu0 %v8413_v43  ;;  %2998 = vmatprep.mubr.f32.mxu1 %v8434_v23 }
 0x3d9   : > { %3159 = vmatprep.mubr.f32.mxu0 %v8440_v55  ;;  %3512 = vrot.lane.b32.xlu0 %v1236_v46, %s6874_s13  ;;  %v10387_v46 = vld [vmem:[#allocation8_spill] sm:$0xff] }
 0x3db   : > { %3604 = vrot.lane.b32.xlu1 %v1282_v25, %s6874_s13  ;;  %2999 = vmatmul.mubr.f32.gmra.mxu1 %v8426_v63  ;;  %v1110_v60 = vpop.permute.xlu1 %1109  ;;  %v1078_v44 = vpop.permute.xlu0 %1077 }
 0x3dc   : > { %3160 = vmatmul.mubr.f32.gmra.mxu0 %v8437_v57  ;;  %3004 = vmatprep.mubr.f32.mxu1 %v8458_v18 }
 0x3dd   : > { %3165 = vmatprep.mubr.f32.mxu0 %v8464_v20  ;;  %3542 = vrot.lane.b32.xlu0 %v1251_v52, %s6874_s13  ;;  %v10388_v52 = vld [vmem:[#allocation30_spill] sm:$0xff] }
 0x3df   : > { %3572 = vrot.lane.b32.xlu1 %v1266_v1, %s6874_s13  ;;  %3005 = vmatmul.mubr.f32.gmra.mxu1 %v8450_v50  ;;  %v1140_v34 = vpop.permute.xlu1 %1139  ;;  %v1046_v38 = vpop.permute.xlu0 %1045  ;;  %v1280_v1 = vmul.f32 %v1142_v7, %v10387_v46  ;;  %v1249_v7 = vmul.f32 %v1080_v51, %v10385_v37 }
 0x3e0   : > { %3166 = vmatmul.mubr.f32.gmra.mxu0 %v8461_v47  ;;  %3010 = vmatprep.mubr.f32.mxu1 %v8482_v12 }
 0x3e1   : > { %3171 = vmatprep.mubr.f32.mxu0 %v8488_v2  ;;  %3510 = vrot.lane.b32.xlu0 %v1235_v11, %s6874_s13  ;;  %v1264_v11 = vmul.f32 %v1110_v60, %v10387_v46  ;;  %v1233_v60 = vmul.f32 %v1048_v31, %v10385_v37  ;;  %v10393_v31 = vld [vmem:[#allocation60_spill] sm:$0xff]  ;;  %v10394_v37 = vld [vmem:[#allocation62_spill] sm:$0xff] }
 0x3e3   : > { %3602 = vrot.lane.b32.xlu1 %v1281_v28, %s6874_s13  ;;  %3011 = vmatmul.mubr.f32.gmra.mxu1 %v8474_v35  ;;  %v1108_v32 = vpop.permute.xlu1 %1107  ;;  %v1076_v25 = vpop.permute.xlu0 %1075 }
 0x3e4   : > { %3172 = vmatmul.mubr.f32.gmra.mxu0 %v8485_v41  ;;  %3016 = vmatprep.mubr.f32.mxu1 %v8506_v5 }
 0x3e5   : > { %3177 = vmatprep.mubr.f32.mxu0 %v10386_v30  ;;  %3540 = vrot.lane.b32.xlu0 %v1250_v6, %s6874_s13  ;;  %v10405_v30 = vld [vmem:[#allocation67_spill] sm:$0xff] }
 0x3e7   : > { %3570 = vrot.lane.b32.xlu1 %v1265_v48, %s6874_s13  ;;  %3017 = vmatmul.mubr.f32.gmra.mxu1 %v10388_v52  ;;  %v1138_v33 = vpop.permute.xlu1 %1137  ;;  %v1044_v28 = vpop.permute.xlu0 %1043 }
 0x3e8   : > { %3178 = vmatmul.mubr.f32.gmra.mxu0 %v8509_v14  ;;  %3022 = vmatprep.mubr.f32.mxu1 %v8530_v27 }
 0x3e9   : > { %3183 = vmatprep.mubr.f32.mxu0 %v8536_v56  ;;  %3508 = vrot.lane.b32.xlu0 %v1234_v9, %s6874_s13  ;;  %v10391_v9 = vld [vmem:[#allocation19_spill] sm:$0xff] }
 0x3ea   : > { %v10392_v56 = vld [vmem:[#allocation55_spill] sm:$0xff] }
 0x3eb   : > { %3600 = vrot.lane.b32.xlu1 %v1280_v1, %s6874_s13  ;;  %3023 = vmatmul.mubr.f32.gmra.mxu1 %v8522_v19  ;;  %v1106_v48 = vpop.permute.xlu1 %1105  ;;  %v1074_v6 = vpop.permute.xlu0 %1073  ;;  %v1279_v1 = vmul.f32 %v1140_v34, %v10391_v9  ;;  %v1248_v34 = vmul.f32 %v1078_v44, %v10387_v46  ;;  %v10397_v44 = vld [vmem:[#allocation61_spill] sm:$0xff] }
 0x3ec   : > { %3184 = vmatmul.mubr.f32.gmra.mxu0 %v8533_v24  ;;  %3028 = vmatprep.mubr.f32.mxu1 %v10389_v42  ;;  %v10398_v24 = vld [vmem:[#allocation64_spill] sm:$0xff] }
 0x3ed   : > { %3189 = vmatprep.mubr.f32.mxu0 %v10390_v40  ;;  %3538 = vrot.lane.b32.xlu0 %v1249_v7, %s6874_s13 }
 0x3ef   : > { %3568 = vrot.lane.b32.xlu1 %v1264_v11, %s6874_s13  ;;  %3029 = vmatmul.mubr.f32.gmra.mxu1 %v10392_v56  ;;  %v1136_v51 = vpop.permute.xlu1 %1135  ;;  %v1042_v40 = vpop.permute.xlu0 %1041  ;;  %v1263_v11 = vmul.f32 %v1108_v32, %v10391_v9  ;;  %v1232_v32 = vmul.f32 %v1046_v38, %v10387_v46  ;;  %v10401_v38 = vld [vmem:[#allocation65_spill] sm:$0xff]  ;;  %v10402_v46 = vld [vmem:[#allocation68_spill] sm:$0xff] }
 0x3f0   : > { %3190 = vmatmul.mubr.f32.gmra.mxu0 %v8557_v17  ;;  %3034 = vmatprep.mubr.f32.mxu1 %v8578_v13  ;;  %v10396_v17 = vld [vmem:[#allocation59_spill] sm:$0xff] }
 0x3f1   : > { %3195 = vmatprep.mubr.f32.mxu0 %v8584_v3  ;;  %3506 = vrot.lane.b32.xlu0 %v1233_v60, %s6874_s13  ;;  %v10395_v60 = vld [vmem:[#allocation7_spill] sm:$0xff] }
 0x3f3   : > { %3598 = vrot.lane.b32.xlu1 %v1279_v1, %s6874_s13  ;;  %3035 = vmatmul.mubr.f32.gmra.mxu1 %v8569_v15  ;;  %v1104_v7 = vpop.permute.xlu1 %1103  ;;  %v1072_v3 = vpop.permute.xlu0 %1071  ;;  %v1278_v1 = vmul.f32 %v1138_v33, %v10395_v60  ;;  %v1247_v33 = vmul.f32 %v1076_v25, %v10391_v9  ;;  %v10406_v25 = vld [vmem:[#allocation69_spill] sm:$0xff] }
 0x3f4   : > { %3196 = vmatmul.mubr.f32.gmra.mxu0 %v8581_v0  ;;  %3040 = vmatprep.mubr.f32.mxu1 %v10393_v31  ;;  %v10399_v0 = vld [vmem:[#allocation66_spill] sm:$0xff] }
 0x3f5   : > { %3201 = vmatprep.mubr.f32.mxu0 %v10394_v37  ;;  %3536 = vrot.lane.b32.xlu0 %v1248_v34, %s6874_s13  ;;  %v10400_v34 = vld [vmem:[#allocation63_spill] sm:$0xff] }
 0x3f7   : > { %3566 = vrot.lane.b32.xlu1 %v1263_v11, %s6874_s13  ;;  %3041 = vmatmul.mubr.f32.gmra.mxu1 %v10396_v17  ;;  %v1134_v14 = vpop.permute.xlu1 %1133  ;;  %v1040_v37 = vpop.permute.xlu0 %1039  ;;  %v1262_v11 = vmul.f32 %v1106_v48, %v10395_v60  ;;  %v1231_v48 = vmul.f32 %v1044_v28, %v10391_v9  ;;  %v10410_v28 = vld [vmem:[#allocation73_spill] sm:$0xff] }
 0x3f8   : > { %3202 = vmatmul.mubr.f32.gmra.mxu0 %v10397_v44  ;;  %3046 = vmatprep.mubr.f32.mxu1 %v10398_v24  ;;  %v10403_v44 = vld [vmem:[#allocation70_spill] sm:$0xff] }
 0x3f9   : > { %3207 = vmatprep.mubr.f32.mxu0 %v10399_v0  ;;  %3504 = vrot.lane.b32.xlu0 %v1232_v32, %s6874_s13  ;;  %v10404_v32 = vld [vmem:[#allocation20_spill] sm:$0xff] }
 0x3fb   : > { %3596 = vrot.lane.b32.xlu1 %v1278_v1, %s6874_s13  ;;  %3047 = vmatmul.mubr.f32.gmra.mxu1 %v10400_v34  ;;  %v1102_v24 = vpop.permute.xlu1 %1101  ;;  %v1070_v0 = vpop.permute.xlu0 %1069  ;;  %v1277_v1 = vmul.f32 %v1136_v51, %v10404_v32  ;;  %v10407_v34 = vld [vmem:[#allocation72_spill] sm:$0xff]  ;;  %v1246_v51 = vmul.f32 %v1074_v6, %v10395_v60  ;;  %v10412_v6 = vld [vmem:[#allocation15_spill] sm:$0xff] }
 0x3fc   : > { %3208 = vmatmul.mubr.f32.gmra.mxu0 %v10401_v38  ;;  %3052 = vmatprep.mubr.f32.mxu1 %v10402_v46  ;;  %v10408_v38 = vld [vmem:[#allocation74_spill] sm:$0xff] }
 0x3fd   : > { %3213 = vmatprep.mubr.f32.mxu0 %v10403_v44  ;;  %3534 = vrot.lane.b32.xlu0 %v1247_v33, %s6874_s13  ;;  %v10409_v33 = vld [vmem:[#allocation71_spill] sm:$0xff] }
 0x3ff   : > { %3564 = vrot.lane.b32.xlu1 %v1262_v11, %s6874_s13  ;;  %3053 = vmatmul.mubr.f32.gmra.mxu1 %v10405_v30  ;;  %v1132_v46 = vpop.permute.xlu1 %1131  ;;  %v1038_v44 = vpop.permute.xlu0 %1037  ;;  %v1261_v11 = vmul.f32 %v1104_v7, %v10404_v32  ;;  %v1230_v7 = vmul.f32 %v1042_v40, %v10395_v60 }
 0x400   : > { %3214 = vmatmul.mubr.f32.gmra.mxu0 %v10406_v25  ;;  %3058 = vmatprep.mubr.f32.mxu1 %v10407_v34 }
 0x401   : > { %3219 = vmatprep.mubr.f32.mxu0 %v10408_v38  ;;  %3502 = vrot.lane.b32.xlu0 %v1231_v48, %s6874_s13  ;;  %v10411_v48 = vld [vmem:[#allocation5_spill] sm:$0xff] }
 0x403   : > { %3594 = vrot.lane.b32.xlu1 %v1277_v1, %s6874_s13  ;;  %3059 = vmatmul.mubr.f32.gmra.mxu1 %v10409_v33  ;;  %v1100_v9 = vpop.permute.xlu1 %1099  ;;  %v1068_v38 = vpop.permute.xlu0 %1067  ;;  %v1276_v1 = vmul.f32 %v1134_v14, %v10411_v48  ;;  %v1245_v14 = vmul.f32 %v1072_v3, %v10404_v32 }
 0x404   : > { %3220 = vmatmul.mubr.f32.gmra.mxu0 %v10410_v28  ;;  %3064 = vmatprep.mubr.f32.mxu1 %v8762_v16 }
 0x405   : > { %3225 = vmatprep.mubr.f32.mxu0 %v8768_v26  ;;  %3532 = vrot.lane.b32.xlu0 %v1246_v51, %s6874_s13  ;;  %v10413_v51 = vld [vmem:[#allocation6_spill] sm:$0xff] }
 0x406   : > { %v1259_v3 = vmul.f32 %v1100_v9, %v10413_v51 }
 0x407   : > { %3562 = vrot.lane.b32.xlu1 %v1261_v11, %s6874_s13  ;;  %3065 = vmatmul.mubr.f32.gmra.mxu1 %v8771_v21  ;;  %v3621_v28 = vpop.permute.xlu1 %3620  ;;  %v1036_v26 = vpop.permute.xlu0 %1035  ;;  %v1260_v11 = vmul.f32 %v1102_v24, %v10411_v48 }
 0x408   : > { %3226 = vmatmul.mubr.f32.gmra.mxu0 %v10412_v6  ;;  %3070 = vmatprep.mubr.f32.mxu1 %v8783_v8 }
 0x409   : > { %3231 = vmatprep.mubr.f32.mxu0 %v8787_v62  ;;  %3500 = vrot.lane.b32.xlu0 %v1230_v7, %s6874_s13  ;;  %v1275_v7 = vmul.f32 %v1132_v46, %v10413_v51 }
 0x40a   : > { %6031 = vmatprep.subr.mxu0 %v3621_v28  ;;  %v1229_v28 = vmul.f32 %v1040_v37, %v10404_v32 }
 0x40b   : > { %3592 = vrot.lane.b32.xlu1 %v1276_v1, %s6874_s13  ;;  %3071 = vmatmul.mubr.f32.gmra.mxu1 %v8792_v54  ;;  %v3589_v40 = vpop.permute.xlu1 %3588  ;;  %v3557_v60 = vpop.permute.xlu0 %3556 }
 0x40c   : > { %3232 = vmatmul.mubr.f32.gmra.mxu0 %v8795_v29  ;;  %5951 = vmatprep.subr.mxu1 %v3557_v60 }
 0x40d   : > { %3530 = vrot.lane.b32.xlu0 %v1245_v14, %s6874_s13  ;;  %6032 = vmatpush3.msra.mxu0 %v3589_v40  ;;  %v1244_v14 = vmul.f32 %v1070_v0, %v10411_v48 }
 0x40f   : > { %3560 = vrot.lane.b32.xlu1 %v1260_v11, %s6874_s13  ;;  %v3619_v1 = vpop.permute.xlu1 %3618  ;;  %v3525_v24 = vpop.permute.xlu0 %3524  ;;  %v1228_v11 = vmul.f32 %v1038_v44, %v10411_v48 }
 0x410   : > { %6033 = vmatprep.subr.mxu0 %v3619_v1  ;;  %5952 = vmatpush3.msra.mxu1 %v3525_v24  ;;  %v1243_v1 = vmul.f32 %v1068_v38, %v10413_v51 }
 0x411   : > { %3498 = vrot.lane.b32.xlu0 %v1229_v28, %s6874_s13 }
 0x413   : > { %3590 = vrot.lane.b32.xlu1 %v1275_v7, %s6874_s13  ;;  %v2660_v40 = vpop.f32.mrf.mxu1  ;;  %v3587_v29 = vpop.permute.xlu1 %3586 }
 0x414   : > { %v3555_v46 = vpop.permute.xlu0 %3554  ;;  %6034 = vmatpush3.msra.mxu0 %v3587_v29 }
 0x415   : > { %3528 = vrot.lane.b32.xlu0 %v1244_v14, %s6874_s13  ;;  %v2821_v37 = vpop.f32.mrf.mxu0  ;;  %v2662_v32 = vpop.f32.mrf.mxu1  ;;  %5953 = vmatprep.subr.mxu1 %v3555_v46  ;;  %v1227_v14 = vmul.f32 %v1036_v26, %v10413_v51 }
 0x416   : > { %v8948_v60 = vadd.f32 %v2821_v37, %v2660_v40 }
 0x417   : > { %3558 = vrot.lane.b32.xlu1 %v1259_v3, %s6874_s13  ;;  %v2823_v7 = vpop.f32.mrf.mxu0  ;;  %v3617_v0 = vpop.permute.xlu1 %3616 }
 0x418   : > { %v2824_v9 = vadd.f32 %v2823_v7, %v2662_v32  ;;  %v3523_v28 = vpop.permute.xlu0 %3522  ;;  %6035 = vmatprep.subr.mxu0 %v3617_v0  ;;  %v8952_v24 = vpop.f32.mrf.mxu1 }
 0x419   : > { %3496 = vrot.lane.b32.xlu0 %v1228_v11, %s6874_s13  ;;  %5954 = vmatpush3.msra.mxu1 %v3523_v28 }
 0x41a   : > { %v3239_v29 = vmax.f32 %v2824_v9, 1e-30  ;;  %v8954_v3 = vpop.f32.mrf.mxu0  ;;  %v8958_v40 = vpop.f32.mrf.mxu1 }
 0x41b   : > { %v3585_v44 = vpop.permute.xlu1 %3584 }
 0x41c   : > { %6509 = vrcp.f32 %v3239_v29  ;;  %v3553_v48 = vpop.permute.xlu0 %3552  ;;  %6036 = vmatpush3.msra.mxu0 %v3585_v44  ;;  %v8960_v46 = vpop.f32.mrf.mxu0 }
 0x41d   : > { %3526 = vrot.lane.b32.xlu0 %v1243_v1, %s6874_s13  ;;  %5955 = vmatprep.subr.mxu1 %v3553_v48  ;;  %v8963_v32 = vpop.f32.mrf.mxu1 }
 0x41e   : > { %v8965_v11 = vpop.f32.mrf.mxu0 }
 0x41f   : > { %v3615_v38 = vpop.permute.xlu1 %3614  ;;  %v8967_v0 = vpop.f32.mrf.mxu1 }
 0x420   : > { %v3521_v37 = vpop.permute.xlu0 %3520  ;;  %6037 = vmatprep.subr.mxu0 %v3615_v38  ;;  %v8969_v26 = vpop.f32.mrf.mxu0 }
 0x421   : > { %3494 = vrot.lane.b32.xlu0 %v1227_v14, %s6874_s13  ;;  %5956 = vmatpush3.msra.mxu1 %v3521_v37  ;;  %v8971_v1 = vpop.f32.mrf.mxu1 }
 0x422   : > { %v8974_v48 = vpop.f32.mrf.mxu0 }
 0x423   : > { %v3583_v7 = vpop.permute.xlu1 %3582  ;;  %v8976_v38 = vpop.f32.mrf.mxu1 }
 0x424   : > { %6038 = vmatpush3.msra.mxu0 %v3583_v7  ;;  %v8978_v37 = vpop.f32.mrf.mxu0 }
 0x425   : > { %v3551_v9 = vpop.permute.xlu0 %3550 }
 0x426   : > { %5957 = vmatprep.subr.mxu1 %v3551_v9  ;;  %v8982_v62 = vpop.f32.mrf.mxu0 }
 0x427   : > { %v3613_v51 = vpop.permute.xlu1 %3612 }
 0x428   : > { %6039 = vmatprep.subr.mxu0 %v3613_v51  ;;  %v8980_v51 = vpop.f32.mrf.mxu1 }
 0x429   : > { %v6510_v28 = vpop.eup %6509 }
 0x42a   : > { %v3305_v44 = vmul.f32 %v6510_v28, %v8363_v53  ;;  %v8984_v53 = vpop.f32.mrf.mxu1 }
 0x42b   : > { %v3519_v29 = vpop.permute.xlu0 %3518  ;;  %v3581_v14 = vpop.permute.xlu1 %3580 }
 0x42c   : > { %5958 = vmatpush3.msra.mxu1 %v3519_v29  ;;  %3750 = vmatprep.mubr.f32.mxu1 %v3305_v44  ;;  %v8986_v29 = vpop.f32.mrf.mxu0 }
 0x42d   : > { %6040 = vmatpush3.msra.mxu0 %v3581_v14  ;;  %v8988_v14 = vpop.f32.mrf.mxu1 }
 0x42e   : > { %v8990_v25 = vpop.f32.mrf.mxu0 }
 0x42f   : > { %v3611_v9 = vpop.permute.xlu1 %3610 }
 0x430   : > { %v3549_v7 = vpop.permute.xlu0 %3548  ;;  %6041 = vmatprep.subr.mxu0 %v3611_v9  ;;  %v8994_v54 = vpop.f32.mrf.mxu0 }
 0x431   : > { %5959 = vmatprep.subr.mxu1 %v3549_v7  ;;  %v8992_v7 = vpop.f32.mrf.mxu1 }
 0x432   : > { %v8998_v16 = vpop.f32.mrf.mxu0 }
 0x434   : > { %v3579_v6 = vpop.permute.xlu1 %3578  ;;  %v9002_v34 = vpop.f32.mrf.mxu0 }
 0x435   : > { %6042 = vmatpush3.msra.mxu0 %v3579_v6  ;;  %v8996_v6 = vpop.f32.mrf.mxu1 }
 0x437   : > { %v3517_v28 = vpop.permute.xlu0 %3516  ;;  %v9000_v33 = vpop.f32.mrf.mxu1 }
 0x438   : > { %5960 = vmatpush3.msra.mxu1 %v3517_v28 }
 0x439   : > { %v9004_v17 = vpop.f32.mrf.mxu1 }
 0x43b   : > { %v3609_v44 = vpop.permute.xlu1 %3608  ;;  %v9008_v41 = vpop.f32.mrf.mxu1 }
 0x43c   : > { %6043 = vmatprep.subr.mxu0 %v3609_v44 }
 0x43d   : > { %v9012_v15 = vpop.f32.mrf.mxu1 }
 0x43f   : > { %v3547_v9 = vpop.permute.xlu0 %3546  ;;  %v9016_v47 = vpop.f32.mrf.mxu1 }
 0x440   : > { %5961 = vmatprep.subr.mxu1 %v3547_v9 }
 0x441   : > { %v3577_v8 = vpop.permute.xlu1 %3576  ;;  %v9020_v56 = vpop.f32.mrf.mxu1 }
 0x442   : > { %6044 = vmatpush3.msra.mxu0 %v3577_v8  ;;  %v9006_v8 = vpop.f32.mrf.mxu0 }
 0x443   : > { %v3515_v21 = vpop.permute.xlu0 %3514  ;;  %v9024_v57 = vpop.f32.mrf.mxu1 }
 0x444   : > { %5962 = vmatpush3.msra.mxu1 %v3515_v21 }
 0x445   : > { %v3607_v28 = vpop.permute.xlu1 %3606  ;;  %v9028_v19 = vpop.f32.mrf.mxu1 }
 0x446   : > { %6045 = vmatprep.subr.mxu0 %v3607_v28  ;;  %v9010_v28 = vpop.f32.mrf.mxu0 }
 0x447   : > { %v3545_v44 = vpop.permute.xlu0 %3544  ;;  %v9032_v43 = vpop.f32.mrf.mxu1 }
 0x448   : > { %5963 = vmatprep.subr.mxu1 %v3545_v44 }
 0x449   : > { %v3575_v30 = vpop.permute.xlu1 %3574  ;;  %v9036_v52 = vpop.f32.mrf.mxu1 }
 0x44a   : > { %6046 = vmatpush3.msra.mxu0 %v3575_v30  ;;  %v9014_v30 = vpop.f32.mrf.mxu0 }
 0x44b   : > { %v3513_v9 = vpop.permute.xlu0 %3512  ;;  %v9040_v59 = vpop.f32.mrf.mxu1 }
 0x44c   : > { %5964 = vmatpush3.msra.mxu1 %v3513_v9 }
 0x44d   : > { %v3605_v31 = vpop.permute.xlu1 %3604  ;;  %v9044_v35 = vpop.f32.mrf.mxu1 }
 0x44e   : > { %6047 = vmatprep.subr.mxu0 %v3605_v31  ;;  %v9018_v31 = vpop.f32.mrf.mxu0  ;;  %10414 = vst [vmem:[#allocation42_spill] sm:$0xff] %v9044_v35 }
 0x44f   : > { %v3543_v21 = vpop.permute.xlu0 %3542  ;;  %v9048_v61 = vpop.f32.mrf.mxu1 }
 0x450   : > { %5965 = vmatprep.subr.mxu1 %v3543_v21  ;;  %10416 = vst [vmem:[#allocation44_spill] sm:$0xff] %v9048_v61  ;;  %v2828_v61 = vadd.f32 %v8954_v3, %v8952_v24  ;;  %v2840_v3 = vadd.f32 %v8974_v48, %v8971_v1  ;;  %v2852_v48 = vadd.f32 %v8990_v25, %v8988_v14 }
 0x451   : > { %v3573_v2 = vpop.permute.xlu1 %3572  ;;  %v9052_v50 = vpop.f32.mrf.mxu1  ;;  %v2860_v25 = vadd.f32 %v9002_v34, %v9000_v33 }
 0x452   : > { %6048 = vmatpush3.msra.mxu0 %v3573_v2  ;;  %v9022_v2 = vpop.f32.mrf.mxu0  ;;  %10418 = vst [vmem:[#allocation13_spill] sm:$0xff] %v9052_v50  ;;  %v3242_v24 = vmax.f32 %v2828_v61, 1e-30  ;;  %v2848_v61 = vadd.f32 %v8986_v29, %v8984_v53  ;;  %v3250_v1 = vmax.f32 %v2840_v3, 1e-30 }
 0x453   : > { %v3511_v44 = vpop.permute.xlu0 %3510  ;;  %v3263_v34 = vmax.f32 %v2860_v25, 1e-30 }
 0x454   : > { %5966 = vmatpush3.msra.mxu1 %v3511_v44  ;;  %v3255_v29 = vmax.f32 %v2848_v61, 1e-30 }
 0x455   : > { %v3603_v13 = vpop.permute.xlu1 %3602 }
 0x456   : > { %6049 = vmatprep.subr.mxu0 %v3603_v13  ;;  %v9026_v13 = vpop.f32.mrf.mxu0 }
 0x457   : > { %v3541_v9 = vpop.permute.xlu0 %3540 }
 0x458   : > { %5967 = vmatprep.subr.mxu1 %v3541_v9 }
 0x459   : > { %v3571_v20 = vpop.permute.xlu1 %3570 }
 0x45a   : > { %6050 = vmatpush3.msra.mxu0 %v3571_v20  ;;  %v9030_v20 = vpop.f32.mrf.mxu0 }
 0x45b   : > { %v3509_v21 = vpop.permute.xlu0 %3508 }
 0x45c   : > { %5968 = vmatpush3.msra.mxu1 %v3509_v21 }
 0x45d   : > { %v3601_v42 = vpop.permute.xlu1 %3600 }
 0x45e   : > { %6051 = vmatprep.subr.mxu0 %v3601_v42  ;;  %v9034_v42 = vpop.f32.mrf.mxu0 }
 0x45f   : > { %v3539_v44 = vpop.permute.xlu0 %3538 }
 0x460   : > { %5969 = vmatprep.subr.mxu1 %v3539_v44 }
 0x461   : > { %v3569_v55 = vpop.permute.xlu1 %3568 }
 0x462   : > { %6052 = vmatpush3.msra.mxu0 %v3569_v55  ;;  %v9038_v55 = vpop.f32.mrf.mxu0 }
 0x463   : > { %v3507_v9 = vpop.permute.xlu0 %3506 }
 0x464   : > { %5970 = vmatpush3.msra.mxu1 %v3507_v9 }
 0x465   : > { %v3599_v27 = vpop.permute.xlu1 %3598 }
 0x466   : > { %6053 = vmatprep.subr.mxu0 %v3599_v27  ;;  %v9042_v27 = vpop.f32.mrf.mxu0 }
 0x467   : > { %v3537_v21 = vpop.permute.xlu0 %3536 }
 0x468   : > { %5971 = vmatprep.subr.mxu1 %v3537_v21 }
 0x469   : > { %v3567_v49 = vpop.permute.xlu1 %3566 }
 0x46a   : > { %6054 = vmatpush3.msra.mxu0 %v3567_v49  ;;  %v9046_v49 = vpop.f32.mrf.mxu0 }
 0x46b   : > { %v3505_v44 = vpop.permute.xlu0 %3504  ;;  %10415 = vst [vmem:[#allocation40_spill] sm:$0xff] %v9046_v49 }
 0x46c   : > { %5972 = vmatpush3.msra.mxu1 %v3505_v44 }
 0x46d   : > { %v3597_v5 = vpop.permute.xlu1 %3596 }
 0x46e   : > { %6055 = vmatprep.subr.mxu0 %v3597_v5  ;;  %v9050_v5 = vpop.f32.mrf.mxu0 }
 0x46f   : > { %v3535_v9 = vpop.permute.xlu0 %3534  ;;  %10417 = vst [vmem:[#allocation41_spill] sm:$0xff] %v9050_v5  ;;  %v9061_v5 = vpop.f32.mrf.mxu1 }
 0x470   : > { %5973 = vmatprep.subr.mxu1 %v3535_v9 }
 0x471   : > { %v3565_v22 = vpop.permute.xlu1 %3564 }
 0x472   : > { %6056 = vmatpush3.msra.mxu0 %v3565_v22  ;;  %v9054_v22 = vpop.f32.mrf.mxu0 }
 0x473   : > { %v3503_v21 = vpop.permute.xlu0 %3502 }
 0x474   : > { %5974 = vmatpush3.msra.mxu1 %v3503_v21  ;;  %v2830_v21 = vadd.f32 %v8960_v46, %v8958_v40 }
 0x475   : > { %v3595_v12 = vpop.permute.xlu1 %3594 }
 0x476   : > { %6057 = vmatprep.subr.mxu0 %v3595_v12  ;;  %v3238_v12 = vmax.f32 %v8948_v60, 1e-30  ;;  %v3243_v49 = vmax.f32 %v2830_v21, 1e-30  ;;  %v2842_v21 = vadd.f32 %v8978_v37, %v8976_v38 }
 0x477   : > { %v3533_v44 = vpop.permute.xlu0 %3532 }
 0x478   : > { %5975 = vmatprep.subr.mxu1 %v3533_v44  ;;  %6511 = vrcp.f32 %v3238_v12  ;;  %v3251_v37 = vmax.f32 %v2842_v21, 1e-30 }
 0x479   : > { %v3563_v45 = vpop.permute.xlu1 %3562  ;;  %6513 = vrcp.f32 %v3243_v49  ;;  %v2854_v49 = vadd.f32 %v8994_v54, %v8992_v7  ;;  %v2864_v54 = vadd.f32 %v9006_v8, %v9004_v17  ;;  %v2870_v17 = vadd.f32 %v9014_v30, %v9012_v15 }
 0x47a   : > { %6058 = vmatpush3.msra.mxu0 %v3563_v45  ;;  %v9063_v45 = vpop.f32.mrf.mxu0  ;;  %6515 = vrcp.f32 %v3242_v24 }
 0x47b   : > { %v3501_v9 = vpop.permute.xlu0 %3500  ;;  %v3266_v33 = vmax.f32 %v2864_v54, 1e-30  ;;  %v3270_v30 = vmax.f32 %v2870_v17, 1e-30 }
 0x47c   : > { %5976 = vmatpush3.msra.mxu1 %v3501_v9  ;;  %v2836_v9 = vadd.f32 %v8969_v26, %v8967_v0 }
 0x47d   : > { %v3593_v35 = vpop.permute.xlu1 %3592 }
 0x47e   : > { %6059 = vmatprep.subr.mxu0 %v3593_v35  ;;  %v2834_v35 = vadd.f32 %v8965_v11, %v8963_v32  ;;  %v2846_v32 = vadd.f32 %v8982_v62, %v8980_v51  ;;  %v2858_v51 = vadd.f32 %v8998_v16, %v8996_v6  ;;  %v3259_v16 = vmax.f32 %v2854_v49, 1e-30 }
 0x47f   : > { %v3531_v44 = vpop.permute.xlu0 %3530  ;;  %v2866_v6 = vadd.f32 %v9010_v28, %v9008_v41 }
 0x480   : > { %5977 = vmatprep.subr.mxu1 %v3531_v44  ;;  %v3246_v26 = vmax.f32 %v2834_v35, 1e-30  ;;  %v3254_v62 = vmax.f32 %v2846_v32, 1e-30  ;;  %v3262_v3 = vmax.f32 %v2858_v51, 1e-30  ;;  %v2872_v32 = vadd.f32 %v9018_v31, %v9016_v47 }
 0x481   : > { %v3561_v50 = vpop.permute.xlu1 %3560  ;;  %v3979_v47 = vld [vmem:[%s10118_s2 + $0x68] sm:$0xff] }
 0x482   : > { %6060 = vmatpush3.msra.mxu0 %v3561_v50  ;;  %v9069_v40 = vpop.f32.mrf.mxu1  ;;  %v3247_v50 = vmax.f32 %v2836_v9, 1e-30  ;;  %v3258_v9 = vmax.f32 %v2852_v48, 1e-30 }
 0x483   : > { %v9071_v60 = vpop.f32.mrf.mxu0  ;;  %v3499_v46 = vpop.permute.xlu0 %3498 }
 0x484   : > { %5978 = vmatpush3.msra.mxu1 %v3499_v46  ;;  %v9077_v44 = vpop.f32.mrf.mxu1  ;;  %6517 = vrcp.f32 %v3247_v50  ;;  %v3267_v50 = vmax.f32 %v2866_v6, 1e-30 }
 0x485   : > { %v9081_v11 = vpop.f32.mrf.mxu0  ;;  %v3591_v0 = vpop.permute.xlu1 %3590  ;;  %6519 = vrcp.f32 %v3246_v26 }
 0x486   : > { %6061 = vmatprep.subr.mxu0 %v3591_v0  ;;  %6521 = vrcp.f32 %v3250_v1  ;;  %v6512_v21 = vpop.eup %6511 }
 0x487   : > { %v3529_v38 = vpop.permute.xlu0 %3528  ;;  %6523 = vrcp.f32 %v3251_v37  ;;  %v6514_v61 = vpop.eup %6513  ;;  %v3303_v15 = vmul.f32 %v6512_v21, %v8356_v36 }
 0x488   : > { %5979 = vmatprep.subr.mxu1 %v3529_v38  ;;  %6525 = vrcp.f32 %v3254_v62  ;;  %v2876_v38 = vadd.f32 %v9022_v2, %v9020_v56  ;;  %v6516_v31 = vpop.eup %6515  ;;  %v3271_v62 = vmax.f32 %v2872_v32, 1e-30 }
 0x489   : > { %v9091_v12 = vpop.f32.mrf.mxu1  ;;  %v3559_v14 = vpop.permute.xlu1 %3558  ;;  %6527 = vrcp.f32 %v3255_v29 }
 0x48a   : > { %v9093_v53 = vpop.f32.mrf.mxu0  ;;  %6062 = vmatpush3.msra.mxu0 %v3559_v14  ;;  %6529 = vrcp.f32 %v3258_v9  ;;  %v3313_v9 = vmul.f32 %v6514_v61, %v8386_v58  ;;  %v3274_v6 = vmax.f32 %v2876_v38, 1e-30  ;;  %v2882_v58 = vadd.f32 %v9030_v20, %v9028_v19 }
 0x48b   : > { %v9099_v7 = vpop.f32.mrf.mxu1  ;;  %v3497_v24 = vpop.permute.xlu0 %3496  ;;  %6531 = vrcp.f32 %v3259_v16 }
 0x48c   : > { %v9101_v35 = vpop.f32.mrf.mxu0  ;;  %5980 = vmatpush3.msra.mxu1 %v3497_v24  ;;  %6533 = vrcp.f32 %v3262_v3  ;;  %v2878_v24 = vadd.f32 %v9026_v13, %v9024_v57 }
 0x48d   : > { %6535 = vrcp.f32 %v3263_v34 }
 0x48e   : > { %6537 = vrcp.f32 %v3266_v33  ;;  %v3311_v33 = vmul.f32 %v6516_v31, %v8378_v10 }
 0x48f   : > { %v2982_v8 = vpop.f32.mrf.mxu1  ;;  %v3527_v28 = vpop.permute.xlu0 %3526  ;;  %6539 = vrcp.f32 %v3267_v50 }
 0x490   : > { %v3143_v46 = vpop.f32.mrf.mxu0  ;;  %5981 = vmatprep.subr.mxu1 %v3527_v28 }
 0x491   : > { %v3144_v41 = vadd.f32 %v3143_v46, %v2982_v8  ;;  %v2984_v0 = vpop.f32.mrf.mxu1  ;;  %v6518_v54 = vpop.eup %6517 }
 0x492   : > { %v3145_v26 = vpop.f32.mrf.mxu0  ;;  %v6520_v16 = vpop.eup %6519 }
 0x493   : > { %v3240_v1 = vmax.f32 %v3144_v41, 1e-30  ;;  %v3146_v48 = vadd.f32 %v3145_v26, %v2984_v0  ;;  %v2988_v37 = vpop.f32.mrf.mxu1  ;;  %v3495_v25 = vpop.permute.xlu0 %3494  ;;  %v3321_v41 = vmul.f32 %v6518_v54, %v8410_v4  ;;  %v3275_v0 = vmax.f32 %v2878_v24, 1e-30  ;;  %v10419_v24 = vld [vmem:[#allocation42_spill] sm:$0xff] }
 0x494   : > { %v3149_v49 = vpop.f32.mrf.mxu0  ;;  %5982 = vmatpush3.msra.mxu1 %v3495_v25  ;;  %v6522_v17 = vpop.eup %6521  ;;  %v2884_v26 = vadd.f32 %v9034_v42, %v9032_v43  ;;  %v3319_v61 = vmul.f32 %v6520_v16, %v8402_v39  ;;  %v2888_v4 = vadd.f32 %v9038_v55, %v9036_v52  ;;  %v2890_v52 = vadd.f32 %v9042_v27, %v9040_v59 }
 0x495   : > { %v3241_v51 = vmax.f32 %v3146_v48, 1e-30  ;;  %v3150_v29 = vadd.f32 %v3149_v49, %v2988_v37  ;;  %6541 = vrcp.f32 %v3240_v1  ;;  %v2990_v14 = vpop.f32.mrf.mxu1  ;;  %3751 = vmatmul.mubr.f32.vlgmr.msra.gmra.mxu1 %v3303_v15  ;;  %6223 = vmatprep.subr.mxu1 %v3979_v47  ;;  %v6524_v21 = vpop.eup %6523  ;;  %v3278_v48 = vmax.f32 %v2882_v58, 1e-30  ;;  %v10421_v58 = vld [vmem:[#allocation22_spill] sm:$0xff] }
 0x496   : > { %v3151_v36 = vpop.f32.mrf.mxu0  ;;  %3755 = vmatprep.mubr.f32.mxu1 %v3313_v9  ;;  %6224 = vmatpush3.msra.mxu1 %v3979_v47  ;;  %v6526_v57 = vpop.eup %6525  ;;  %v3329_v47 = vmul.f32 %v6524_v21, %v8434_v23  ;;  %v3282_v23 = vmax.f32 %v2888_v4, 1e-30 }
 0x497   : > { %6543 = vrcp.f32 %v3241_v51  ;;  %v3244_v56 = vmax.f32 %v3150_v29, 1e-30  ;;  %v3152_v2 = vadd.f32 %v3151_v36, %v2990_v14  ;;  %v2994_v3 = vpop.f32.mrf.mxu1  ;;  %v6528_v10 = vpop.eup %6527  ;;  %v3327_v29 = vmul.f32 %v6522_v17, %v8426_v63 }
 0x498   : > { %6545 = vrcp.f32 %v3270_v30  ;;  %v3155_v34 = vpop.f32.mrf.mxu0  ;;  %v9125_v1 = vpop.eup %6529  ;;  %v3283_v63 = vmax.f32 %v2890_v52, 1e-30 }
 0x499   : > { %6547 = vrcp.f32 %v3271_v62  ;;  %v3245_v8 = vmax.f32 %v3152_v2, 1e-30  ;;  %v3156_v46 = vadd.f32 %v3155_v34, %v2994_v3  ;;  %v2996_v50 = vpop.f32.mrf.mxu1  ;;  %3756 = vmatmul.mubr.f32.gmra.mxu1 %v3311_v33  ;;  %v6532_v38 = vpop.eup %6531  ;;  %v3279_v62 = vmax.f32 %v2884_v26, 1e-30  ;;  %v10420_v3 = vld [vmem:[#allocation40_spill] sm:$0xff]  ;;  %v10424_v26 = vld [vmem:[#allocation25_spill] sm:$0xff] }
 0x49a   : > { %6549 = vrcp.f32 %v3244_v56  ;;  %v3157_v32 = vpop.f32.mrf.mxu0  ;;  %3760 = vmatprep.mubr.f32.mxu1 %v3321_v41  ;;  %v9130_v43 = vpop.eup %6533  ;;  %v3337_v2 = vmul.f32 %v6528_v10, %v8458_v18  ;;  %v2894_v34 = vadd.f32 %v10420_v3, %v10419_v24  ;;  %v10423_v10 = vld [vmem:[#allocation45_spill] sm:$0xff] }
 0x49b   : > { %6551 = vrcp.f32 %v3245_v8  ;;  %v3248_v13 = vmax.f32 %v3156_v46, 1e-30  ;;  %v3158_v28 = vadd.f32 %v3157_v32, %v2996_v50  ;;  %v3000_v19 = vpop.f32.mrf.mxu1  ;;  %v9132_v39 = vpop.eup %6535  ;;  %v3335_v8 = vmul.f32 %v6526_v57, %v10421_v58  ;;  %v10422_v50 = vld [vmem:[#allocation46_spill] sm:$0xff] }
 0x49c   : > { %6553 = vrcp.f32 %v3274_v6  ;;  %v3161_v20 = vpop.f32.mrf.mxu0  ;;  %v9137_v25 = vpop.eup %6537  ;;  %v3286_v4 = vmax.f32 %v2894_v34, 1e-30  ;;  %v10432_v34 = vld [vmem:[#allocation30_spill] sm:$0xff] }
 0x49d   : > { %v3249_v15 = vmax.f32 %v3158_v28, 1e-30  ;;  %v3162_v30 = vadd.f32 %v3161_v20, %v3000_v19  ;;  %6555 = vrcp.f32 %v3248_v13  ;;  %v3002_v37 = vpop.f32.mrf.mxu1  ;;  %3761 = vmatmul.mubr.f32.gmra.mxu1 %v3319_v61  ;;  %v9139_v9 = vpop.eup %6539  ;;  %v3345_v19 = vmul.f32 %v6532_v38, %v10424_v26 }
 0x49e   : > { %v3163_v49 = vpop.f32.mrf.mxu0  ;;  %3765 = vmatprep.mubr.f32.mxu1 %v3329_v47 }
 0x49f   : > { %6557 = vrcp.f32 %v3249_v15  ;;  %v3252_v42 = vmax.f32 %v3162_v30, 1e-30  ;;  %v3164_v31 = vadd.f32 %v3163_v49, %v3002_v37  ;;  %v3006_v55 = vpop.f32.mrf.mxu1  ;;  %v10425_v15 = vld [vmem:[#allocation44_spill] sm:$0xff]  ;;  %v10426_v30 = vld [vmem:[#allocation41_spill] sm:$0xff] }
 0x4a0   : > { %6559 = vrcp.f32 %v3275_v0  ;;  %v3167_v51 = vpop.f32.mrf.mxu0  ;;  %v2896_v37 = vadd.f32 %v10426_v30, %v10425_v15 }
 0x4a1   : > { %6561 = vrcp.f32 %v3278_v48  ;;  %v3253_v14 = vmax.f32 %v3164_v31, 1e-30  ;;  %v3168_v36 = vadd.f32 %v3167_v51, %v3006_v55  ;;  %v3008_v54 = vpop.f32.mrf.mxu1  ;;  %3766 = vmatmul.mubr.f32.gmra.mxu1 %v3327_v29  ;;  %v10429_v29 = vld [vmem:[#allocation48_spill] sm:$0xff] }
 0x4a2   : > { %6563 = vrcp.f32 %v3252_v42  ;;  %v3169_v56 = vpop.f32.mrf.mxu0  ;;  %v6542_v16 = vpop.eup %6541  ;;  %3770 = vmatprep.mubr.f32.mxu1 %v3337_v2  ;;  %v10427_v42 = vld [vmem:[#allocation26_spill] sm:$0xff]  ;;  %v10431_v2 = vld [vmem:[#allocation29_spill] sm:$0xff] }
 0x4a3   : > { %6565 = vrcp.f32 %v3253_v14  ;;  %v3256_v59 = vmax.f32 %v3168_v36, 1e-30  ;;  %v3170_v27 = vadd.f32 %v3169_v56, %v3008_v54  ;;  %v3012_v33 = vpop.f32.mrf.mxu1  ;;  %v3307_v0 = vmul.f32 %v6542_v16, %v10423_v10  ;;  %v10430_v54 = vld [vmem:[#allocation47_spill] sm:$0xff] }
 0x4a4   : > { %v6544_v6 = vpop.eup %6543  ;;  %6567 = vrcp.f32 %v3279_v62  ;;  %v3173_v17 = vpop.f32.mrf.mxu0  ;;  %v3343_v31 = vmul.f32 %v9125_v1, %v10427_v42  ;;  %v10428_v62 = vld [vmem:[#allocation13_spill] sm:$0xff]  ;;  %v3353_v16 = vmul.f32 %v9132_v39, %v10431_v2  ;;  %v10440_v2 = vld [vmem:[#allocation55_spill] sm:$0xff] }
 0x4a5   : > { %v9145_v46 = vpop.eup %6545  ;;  %6569 = vrcp.f32 %v3282_v23  ;;  %v3257_v18 = vmax.f32 %v3170_v27, 1e-30  ;;  %v3174_v21 = vadd.f32 %v3173_v17, %v3012_v33  ;;  %v3309_v32 = vmul.f32 %v6544_v6, %v10422_v50  ;;  %v3014_v13 = vpop.f32.mrf.mxu1  ;;  %3771 = vmatmul.mubr.f32.gmra.mxu1 %v3335_v8 }
 0x4a6   : > { %v9148_v41 = vpop.eup %6547  ;;  %6571 = vrcp.f32 %v3256_v59  ;;  %v3175_v28 = vpop.f32.mrf.mxu0  ;;  %3775 = vmatprep.mubr.f32.mxu1 %v3345_v19  ;;  %v2900_v52 = vadd.f32 %v9054_v22, %v10428_v62  ;;  %v3287_v22 = vmax.f32 %v2896_v37, 1e-30  ;;  %v3351_v33 = vmul.f32 %v9130_v43, %v10432_v34 }
 0x4a7   : > { %v6550_v20 = vpop.eup %6549  ;;  %6573 = vrcp.f32 %v3257_v18  ;;  %v3260_v61 = vmax.f32 %v3174_v21, 1e-30  ;;  %v3176_v57 = vadd.f32 %v3175_v28, %v3014_v13  ;;  %3895 = vmatprep.mubr.f32.mxu0 %v3309_v32  ;;  %v3018_v49 = vpop.f32.mrf.mxu1  ;;  %v10433_v18 = vld [vmem:[#allocation50_spill] sm:$0xff]  ;;  %v10434_v28 = vld [vmem:[#allocation49_spill] sm:$0xff] }
 0x4a8   : > { %v6552_v48 = vpop.eup %6551  ;;  %6575 = vrcp.f32 %v3283_v63  ;;  %v3179_v47 = vpop.f32.mrf.mxu0  ;;  %3896 = vmatmul.mubr.f32.vlgmr.msra.gmra.mxu0 %v3307_v0  ;;  %v3315_v56 = vmul.f32 %v6550_v20, %v10430_v54  ;;  %v2902_v63 = vadd.f32 %v9063_v45, %v9061_v5  ;;  %v3290_v17 = vmax.f32 %v2900_v52, 1e-30  ;;  %v10435_v45 = vld [vmem:[#allocation31_spill] sm:$0xff] }
 0x4a9   : > { %v9156_v38 = vpop.eup %6553  ;;  %v3261_v55 = vmax.f32 %v3176_v57, 1e-30  ;;  %v3180_v51 = vadd.f32 %v3179_v47, %v3018_v49  ;;  %v3317_v23 = vmul.f32 %v6552_v48, %v10429_v29  ;;  %6577 = vrcp.f32 %v3260_v61  ;;  %v3020_v14 = vpop.f32.mrf.mxu1  ;;  %3776 = vmatmul.mubr.f32.gmra.mxu1 %v3343_v31  ;;  %v10437_v49 = vld [vmem:[#allocation52_spill] sm:$0xff]  ;;  %v10438_v52 = vld [vmem:[#allocation51_spill] sm:$0xff] }
 0x4aa   : > { %v3181_v36 = vpop.f32.mrf.mxu0  ;;  %v6556_v59 = vpop.eup %6555  ;;  %3780 = vmatprep.mubr.f32.mxu1 %v3353_v16  ;;  %v3361_v10 = vmul.f32 %v9139_v9, %v10435_v45  ;;  %v3291_v20 = vmax.f32 %v2902_v63, 1e-30  ;;  %v2908_v61 = vadd.f32 %v9081_v11, %v9077_v44  ;;  %v10439_v11 = vld [vmem:[#allocation56_spill] sm:$0xff]  ;;  %v3367_v16 = vmul.f32 %v9145_v46, %v10440_v2  ;;  %v10452_v2 = vld [vmem:[#allocation63_spill] sm:$0xff] }
 0x4ab   : > { %6579 = vrcp.f32 %v3261_v55  ;;  %v3264_v1 = vmax.f32 %v3180_v51, 1e-30  ;;  %v3182_v27 = vadd.f32 %v3181_v36, %v3020_v14  ;;  %3900 = vmatprep.mubr.f32.mxu0 %v3317_v23  ;;  %v3024_v24 = vpop.f32.mrf.mxu1  ;;  %v3323_v5 = vmul.f32 %v6556_v59, %v10434_v28  ;;  %v10445_v45 = vld [vmem:[#allocation28_spill] sm:$0xff] }
 0x4ac   : > { %v6558_v6 = vpop.eup %6557  ;;  %6581 = vrcp.f32 %v3286_v4  ;;  %v3185_v3 = vpop.f32.mrf.mxu0  ;;  %3901 = vmatmul.mubr.f32.gmra.mxu0 %v3315_v56  ;;  %v10436_v4 = vld [vmem:[#allocation33_spill] sm:$0xff]  ;;  %v3369_v55 = vmul.f32 %v9148_v41, %v10439_v11  ;;  %v2906_v14 = vadd.f32 %v9071_v60, %v9069_v40  ;;  %v3295_v36 = vmax.f32 %v2908_v61, 1e-30 }
 0x4ad   : > { %v6560_v39 = vpop.eup %6559  ;;  %v3265_v58 = vmax.f32 %v3182_v27, 1e-30  ;;  %v3186_v8 = vadd.f32 %v3185_v3, %v3024_v24  ;;  %v3325_v21 = vmul.f32 %v6558_v6, %v10433_v18  ;;  %6583 = vrcp.f32 %v3264_v1  ;;  %v3026_v32 = vpop.f32.mrf.mxu1  ;;  %3781 = vmatmul.mubr.f32.gmra.mxu1 %v3351_v33  ;;  %v10441_v6 = vld [vmem:[#allocation24_spill] sm:$0xff]  ;;  %v10442_v40 = vld [vmem:[#allocation21_spill] sm:$0xff]  ;;  %v10443_v3 = vld [vmem:[#allocation34_spill] sm:$0xff] }
 0x4ae   : > { %v9169_v50 = vpop.eup %6561  ;;  %v3187_v13 = vpop.f32.mrf.mxu0  ;;  %3785 = vmatprep.mubr.f32.mxu1 %v3361_v10  ;;  %v3359_v15 = vmul.f32 %v9137_v25, %v10436_v4  ;;  %v2914_v59 = vadd.f32 %v9101_v35, %v9099_v7  ;;  %v3377_v34 = vmul.f32 %v6560_v39, %v10443_v3  ;;  %v2912_v7 = vadd.f32 %v9093_v53, %v9091_v12  ;;  %v10447_v12 = vld [vmem:[#allocation60_spill] sm:$0xff] }
 0x4af   : > { %v6564_v0 = vpop.eup %6563  ;;  %6585 = vrcp.f32 %v3265_v58  ;;  %v3268_v26 = vmax.f32 %v3186_v8, 1e-30  ;;  %v3188_v43 = vadd.f32 %v3187_v13, %v3026_v32  ;;  %3905 = vmatprep.mubr.f32.mxu0 %v3325_v21  ;;  %v3030_v57 = vpop.f32.mrf.mxu1  ;;  %v3294_v8 = vmax.f32 %v2906_v14, 1e-30  ;;  %v10444_v21 = vld [vmem:[#allocation35_spill] sm:$0xff] }
 0x4b0   : > { %v6566_v19 = vpop.eup %6565  ;;  %6587 = vrcp.f32 %v3287_v22  ;;  %v3191_v48 = vpop.f32.mrf.mxu0  ;;  %3906 = vmatmul.mubr.f32.gmra.mxu0 %v3323_v5  ;;  %v3331_v44 = vmul.f32 %v6564_v0, %v10438_v52  ;;  %v3375_v32 = vmul.f32 %v9156_v38, %v10444_v21  ;;  %v3299_v13 = vmax.f32 %v2914_v59, 1e-30 }
 0x4b1   : > { %v6568_v9 = vpop.eup %6567  ;;  %6589 = vrcp.f32 %v3290_v17  ;;  %v3269_v30 = vmax.f32 %v3188_v43, 1e-30  ;;  %v3192_v37 = vadd.f32 %v3191_v48, %v3030_v57  ;;  %v3333_v47 = vmul.f32 %v6566_v19, %v10437_v49  ;;  %v3032_v31 = vpop.f32.mrf.mxu1  ;;  %3786 = vmatmul.mubr.f32.gmra.mxu1 %v3359_v15  ;;  %v10446_v43 = vld [vmem:[#allocation23_spill] sm:$0xff] }
 0x4b2   : > { %v9179_v42 = vpop.eup %6569  ;;  %6591 = vrcp.f32 %v3268_v26  ;;  %v3193_v62 = vpop.f32.mrf.mxu0  ;;  %3790 = vmatprep.mubr.f32.mxu1 %v3369_v55  ;;  %v3385_v53 = vmul.f32 %v6568_v9, %v10447_v12  ;;  %v3298_v48 = vmax.f32 %v2912_v7, 1e-30  ;;  %v10450_v55 = vld [vmem:[#allocation27_spill] sm:$0xff] }
 0x4b3   : > { %v6572_v51 = vpop.eup %6571  ;;  %6593 = vrcp.f32 %v3269_v30  ;;  %v3272_v29 = vmax.f32 %v3192_v37, 1e-30  ;;  %v3194_v25 = vadd.f32 %v3193_v62, %v3032_v31  ;;  %3910 = vmatprep.mubr.f32.mxu0 %v3333_v47  ;;  %v3036_v54 = vpop.f32.mrf.mxu1  ;;  %v10448_v30 = vld [vmem:[#allocation59_spill] sm:$0xff]  ;;  %v10449_v31 = vld [vmem:[#allocation32_spill] sm:$0xff] }
 0x4b4   : > { %v6574_v23 = vpop.eup %6573  ;;  %6595 = vrcp.f32 %v3291_v20  ;;  %v3197_v56 = vpop.f32.mrf.mxu0  ;;  %3911 = vmatmul.mubr.f32.gmra.mxu0 %v3331_v44  ;;  %v3339_v60 = vmul.f32 %v6572_v51, %v10442_v40  ;;  %v3383_v37 = vmul.f32 %v9169_v50, %v10448_v30 }
 0x4b5   : > { %v6576_v41 = vpop.eup %6575  ;;  %v3273_v1 = vmax.f32 %v3194_v25, 1e-30  ;;  %v3198_v27 = vadd.f32 %v3197_v56, %v3036_v54  ;;  %v3341_v22 = vmul.f32 %v6574_v23, %v10441_v6  ;;  %6597 = vrcp.f32 %v3272_v29  ;;  %v3038_v63 = vpop.f32.mrf.mxu1  ;;  %3791 = vmatmul.mubr.f32.gmra.mxu1 %v3367_v16  ;;  %v10451_v29 = vld [vmem:[#allocation64_spill] sm:$0xff]  ;;  %v10453_v6 = vld [vmem:[#allocation54_spill] sm:$0xff] }
 0x4b6   : > { %v3199_v24 = vpop.f32.mrf.mxu0  ;;  %v6578_v33 = vpop.eup %6577  ;;  %3795 = vmatprep.mubr.f32.mxu1 %v3377_v34  ;;  %v3393_v25 = vmul.f32 %v6576_v41, %v10451_v29  ;;  %v3391_v16 = vmul.f32 %v9179_v42, %v10452_v2 }
 0x4b7   : > { %6599 = vrcp.f32 %v3273_v1  ;;  %v3276_v17 = vmax.f32 %v3198_v27, 1e-30  ;;  %v3200_v58 = vadd.f32 %v3199_v24, %v3038_v63  ;;  %3915 = vmatprep.mubr.f32.mxu0 %v3341_v22  ;;  %v3042_v35 = vpop.f32.mrf.mxu1  ;;  %v3347_v19 = vmul.f32 %v6578_v33, %v10446_v43  ;;  %v10454_v24 = vld [vmem:[#allocation53_spill] sm:$0xff] }
 0x4b8   : > { %v6580_v46 = vpop.eup %6579  ;;  %6601 = vrcp.f32 %v3295_v36  ;;  %v3203_v18 = vpop.f32.mrf.mxu0  ;;  %3916 = vmatmul.mubr.f32.gmra.mxu0 %v3339_v60  ;;  %v10455_v60 = vld [vmem:[#allocation68_spill] sm:$0xff] }
 0x4b9   : > { %v9197_v39 = vpop.eup %6581  ;;  %v3277_v28 = vmax.f32 %v3200_v58, 1e-30  ;;  %v3204_v5 = vadd.f32 %v3203_v18, %v3042_v35  ;;  %v3349_v10 = vmul.f32 %v6580_v46, %v10445_v45  ;;  %6603 = vrcp.f32 %v3276_v17  ;;  %v3044_v0 = vpop.f32.mrf.mxu1  ;;  %3796 = vmatmul.mubr.f32.gmra.mxu1 %v3375_v32  ;;  %v10456_v18 = vld [vmem:[#allocation58_spill] sm:$0xff]  ;;  %v10457_v32 = vld [vmem:[#allocation67_spill] sm:$0xff]  ;;  %v10458_v45 = vld [vmem:[#allocation57_spill] sm:$0xff] }
 0x4ba   : > { %v3205_v26 = vpop.f32.mrf.mxu0  ;;  %v6584_v20 = vpop.eup %6583  ;;  %3800 = vmatprep.mubr.f32.mxu1 %v3385_v53 }
 0x4bb   : > { %6605 = vrcp.f32 %v3277_v28  ;;  %v3280_v61 = vmax.f32 %v3204_v5, 1e-30  ;;  %v3206_v57 = vadd.f32 %v3205_v26, %v3044_v0  ;;  %3920 = vmatprep.mubr.f32.mxu0 %v3349_v10  ;;  %v3048_v4 = vpop.f32.mrf.mxu1  ;;  %v3355_v51 = vmul.f32 %v6584_v20, %v10450_v55  ;;  %v10459_v0 = vld [vmem:[#allocation72_spill] sm:$0xff] }
 0x4bc   : > { %v6586_v38 = vpop.eup %6585  ;;  %6607 = vrcp.f32 %v3294_v8  ;;  %v3209_v15 = vpop.f32.mrf.mxu0  ;;  %3921 = vmatmul.mubr.f32.gmra.mxu0 %v3347_v19 }
 0x4bd   : > { %v6588_v49 = vpop.eup %6587  ;;  %6609 = vrcp.f32 %v3299_v13  ;;  %v3281_v47 = vmax.f32 %v3206_v57, 1e-30  ;;  %v3210_v9 = vadd.f32 %v3209_v15, %v3048_v4  ;;  %v3357_v62 = vmul.f32 %v6586_v38, %v10449_v31  ;;  %v3050_v44 = vpop.f32.mrf.mxu1  ;;  %3801 = vmatmul.mubr.f32.gmra.mxu1 %v3383_v37  ;;  %v10461_v15 = vld [vmem:[#allocation71_spill] sm:$0xff] }
 0x4be   : > { %v9205_v52 = vpop.eup %6589  ;;  %6611 = vrcp.f32 %v3280_v61  ;;  %v3211_v11 = vpop.f32.mrf.mxu0  ;;  %3805 = vmatprep.mubr.f32.mxu1 %v3393_v25  ;;  %v3401_v3 = vmul.f32 %v6588_v49, %v10455_v60  ;;  %v3399_v13 = vmul.f32 %v9197_v39, %v10457_v32 }
 0x4bf   : > { %v6592_v23 = vpop.eup %6591  ;;  %6613 = vrcp.f32 %v3281_v47  ;;  %v3284_v14 = vmax.f32 %v3210_v9, 1e-30  ;;  %v3212_v36 = vadd.f32 %v3211_v11, %v3050_v44  ;;  %3925 = vmatprep.mubr.f32.mxu0 %v3357_v62  ;;  %v3054_v54 = vpop.f32.mrf.mxu1  ;;  %v3407_v30 = vmul.f32 %v9205_v52, %v10461_v15  ;;  %v10462_v9 = vld [vmem:[#allocation36_spill] sm:$0xff]  ;;  %v3977_v15 = vld [vmem:[%s10118_s2 + $0x28] sm:$0xff] }
 0x4c0   : > { %v6594_v50 = vpop.eup %6593  ;;  %v3215_v56 = vpop.f32.mrf.mxu0  ;;  %3926 = vmatmul.mubr.f32.gmra.mxu0 %v3355_v51  ;;  %6615 = vrcp.f32 %v3298_v48  ;;  %v3363_v40 = vmul.f32 %v6592_v23, %v10454_v24  ;;  %v10460_v48 = vld [vmem:[#allocation37_spill] sm:$0xff]  ;;  %v10463_v62 = vld [vmem:[#allocation16_spill] sm:$0xff] }
 0x4c1   : > { %v6596_v59 = vpop.eup %6595  ;;  %v3285_v1 = vmax.f32 %v3212_v36, 1e-30  ;;  %v3216_v27 = vadd.f32 %v3215_v56, %v3054_v54  ;;  %v3365_v41 = vmul.f32 %v6594_v50, %v10453_v6  ;;  %6617 = vrcp.f32 %v3284_v14  ;;  %v3056_v22 = vpop.f32.mrf.mxu1  ;;  %3806 = vmatmul.mubr.f32.gmra.mxu1 %v3391_v16  ;;  %v10464_v36 = vld [vmem:[#allocation62_spill] sm:$0xff] }
 0x4c2   : > { %v3217_v63 = vpop.f32.mrf.mxu0  ;;  %v6598_v34 = vpop.eup %6597  ;;  %3810 = vmatprep.mubr.f32.mxu1 %v3401_v3  ;;  %v3409_v26 = vmul.f32 %v6596_v59, %v10459_v0  ;;  %v10465_v54 = vld [vmem:[#allocation14_spill] sm:$0xff] }
 0x4c3   : > { %6619 = vrcp.f32 %v3285_v1  ;;  %v3288_v33 = vmax.f32 %v3216_v27, 1e-30  ;;  %v3218_v17 = vadd.f32 %v3217_v63, %v3056_v22  ;;  %3930 = vmatprep.mubr.f32.mxu0 %v3365_v41  ;;  %v3060_v58 = vpop.f32.mrf.mxu1  ;;  %v3371_v10 = vmul.f32 %v6598_v34, %v10458_v45  ;;  %v10466_v1 = vld [vmem:[#allocation61_spill] sm:$0xff]  ;;  %v10467_v6 = vld [vmem:[#allocation38_spill] sm:$0xff] }
 0x4c4   : > { %v6600_v42 = vpop.eup %6599  ;;  %v3221_v46 = vpop.f32.mrf.mxu0  ;;  %3931 = vmatmul.mubr.f32.gmra.mxu0 %v3363_v40  ;;  %v10468_v3 = vld [vmem:[#allocation66_spill] sm:$0xff] }
 0x4c5   : > { %v6602_v8 = vpop.eup %6601  ;;  %v3289_v7 = vmax.f32 %v3218_v17, 1e-30  ;;  %v3222_v35 = vadd.f32 %v3221_v46, %v3060_v58  ;;  %v3373_v21 = vmul.f32 %v6600_v42, %v10456_v18  ;;  %6621 = vrcp.f32 %v3288_v33  ;;  %v3062_v28 = vpop.f32.mrf.mxu1  ;;  %3811 = vmatmul.mubr.f32.gmra.mxu1 %v3399_v13  ;;  %v10469_v33 = vld [vmem:[#allocation12_spill] sm:$0xff]  ;;  %v10470_v42 = vld [vmem:[#allocation65_spill] sm:$0xff]  ;;  %v3978_v13 = vld [vmem:[%s10118_s2 + $0x48] sm:$0xff] }
 0x4c6   : > { %v3223_v5 = vpop.f32.mrf.mxu0  ;;  %v6604_v43 = vpop.eup %6603  ;;  %3815 = vmatprep.mubr.f32.mxu1 %v3409_v26  ;;  %v3417_v44 = vmul.f32 %v6602_v8, %v10463_v62  ;;  %v10472_v18 = vld [vmem:[#allocation69_spill] sm:$0xff]  ;;  %6225 = vmatprep.subr.mxu1 %v3978_v13 }
 0x4c7   : > { %6623 = vrcp.f32 %v3289_v7  ;;  %v3292_v19 = vmax.f32 %v3222_v35, 1e-30  ;;  %v3224_v12 = vadd.f32 %v3223_v5, %v3062_v28  ;;  %3935 = vmatprep.mubr.f32.mxu0 %v3373_v21  ;;  %v3066_v20 = vpop.f32.mrf.mxu1  ;;  %v3379_v31 = vmul.f32 %v6604_v43, %v10462_v9  ;;  %v10471_v7 = vld [vmem:[#allocation70_spill] sm:$0xff]  ;;  %6226 = vmatpush3.msra.mxu1 %v3978_v13 }
 0x4c8   : > { %v6606_v53 = vpop.eup %6605  ;;  %v3227_v61 = vpop.f32.mrf.mxu0  ;;  %3936 = vmatmul.mubr.f32.gmra.mxu0 %v3371_v10  ;;  %v10473_v5 = vld [vmem:[#allocation74_spill] sm:$0xff]  ;;  %v10474_v10 = vld [vmem:[#allocation73_spill] sm:$0xff]  ;;  %6227 = vmatprep.subr.mxu1 %v3977_v15 }
 0x4c9   : > { %v6608_v57 = vpop.eup %6607  ;;  %v3293_v39 = vmax.f32 %v3224_v12, 1e-30  ;;  %v3228_v38 = vadd.f32 %v3227_v61, %v3066_v20  ;;  %v3381_v4 = vmul.f32 %v6606_v53, %v10460_v48  ;;  %6625 = vrcp.f32 %v3292_v19  ;;  %v3068_v49 = vpop.f32.mrf.mxu1  ;;  %3816 = vmatmul.mubr.f32.gmra.mxu1 %v3407_v30  ;;  %v10475_v19 = vld [vmem:[#allocation17_spill] sm:$0xff]  ;;  %v10476_v53 = vld [vmem:[#allocation15_spill] sm:$0xff]  ;;  %v3976_v30 = vld [vmem:[%s10118_s2 + $0x8] sm:$0xff] }
 0x4ca   : > { %v6610_v37 = vpop.eup %6609  ;;  %v3229_v47 = vpop.f32.mrf.mxu0  ;;  %3820 = vmatprep.mubr.f32.mxu1 %v3417_v44  ;;  %v3415_v56 = vmul.f32 %v6608_v57, %v10465_v54  ;;  %v10478_v48 = vld [vmem:[#allocation39_spill] sm:$0xff]  ;;  %6228 = vmatpush3.msra.mxu1 %v3977_v15 }
 0x4cb   : > { %v6612_v11 = vpop.eup %6611  ;;  %6627 = vrcp.f32 %v3293_v39  ;;  %v3296_v55 = vmax.f32 %v3228_v38, 1e-30  ;;  %v3230_v51 = vadd.f32 %v3229_v47, %v3068_v49  ;;  %3940 = vmatprep.mubr.f32.mxu0 %v3381_v4  ;;  %v3072_v25 = vpop.f32.mrf.mxu1  ;;  %v3425_v41 = vmul.f32 %v6610_v37, %v10467_v6  ;;  %v10477_v39 = vld [vmem:[#allocation43_spill] sm:$0xff]  ;;  %6229 = vmatprep.subr.mxu1 %v3976_v30 }
 0x4cc   : > { %v6614_v29 = vpop.eup %6613  ;;  %v3233_v23 = vpop.f32.mrf.mxu0  ;;  %3941 = vmatmul.mubr.f32.gmra.mxu0 %v3379_v31  ;;  %v3387_v27 = vmul.f32 %v6612_v11, %v10466_v1  ;;  %6230 = vmatpush3.msra.mxu1 %v3976_v30 }
 0x4cd   : > { %v3297_v52 = vmax.f32 %v3230_v51, 1e-30  ;;  %v3234_v14 = vadd.f32 %v3233_v23, %v3072_v25  ;;  %v3389_v50 = vmul.f32 %v6614_v29, %v10464_v36  ;;  %v6616_v2 = vpop.eup %6615  ;;  %6629 = vrcp.f32 %v3296_v55  ;;  %v3074_v16 = vpop.f32.mrf.mxu1  ;;  %3821 = vmatmul.mubr.f32.gmra.mxu1 %v3415_v56 }
 0x4ce   : > { %v3235_v59 = vpop.f32.mrf.mxu0  ;;  %v6618_v22 = vpop.eup %6617  ;;  %3825 = vmatprep.mubr.f32.mxu1 %v3425_v41  ;;  %v3423_v17 = vmul.f32 %v6616_v2, %v10469_v33 }
 0x4cf   : > { %6631 = vrcp.f32 %v3297_v52  ;;  %v3300_v63 = vmax.f32 %v3234_v14, 1e-30  ;;  %v3236_v24 = vadd.f32 %v3235_v59, %v3074_v16  ;;  %3945 = vmatprep.mubr.f32.mxu0 %v3389_v50  ;;  %v3395_v58 = vmul.f32 %v6618_v22, %v10470_v42 }
 0x4d0   : > { %v6620_v40 = vpop.eup %6619  ;;  %3946 = vmatmul.mubr.f32.gmra.mxu0 %v3387_v27 }
 0x4d1   : > { %v3301_v60 = vmax.f32 %v3236_v24, 1e-30  ;;  %v3397_v34 = vmul.f32 %v6620_v40, %v10468_v3  ;;  %6633 = vrcp.f32 %v3300_v63  ;;  %3826 = vmatmul.mubr.f32.gmra.mxu1 %v3423_v17 }
 0x4d2   : > { %v6622_v46 = vpop.eup %6621 }
 0x4d3   : > { %6635 = vrcp.f32 %v3301_v60  ;;  %3950 = vmatprep.mubr.f32.mxu0 %v3397_v34  ;;  %v3403_v21 = vmul.f32 %v6622_v46, %v10472_v18 }
 0x4d4   : > { %v6624_v8 = vpop.eup %6623  ;;  %3951 = vmatmul.mubr.f32.gmra.mxu0 %v3395_v58 }
 0x4d5   : > { %v3405_v35 = vmul.f32 %v6624_v8, %v10471_v7 }
 0x4d6   : > { %v6626_v32 = vpop.eup %6625 }
 0x4d7   : > { %3955 = vmatprep.mubr.f32.mxu0 %v3405_v35  ;;  %v3411_v0 = vmul.f32 %v6626_v32, %v10474_v10 }
 0x4d8   : > { %v6628_v28 = vpop.eup %6627  ;;  %3956 = vmatmul.mubr.f32.gmra.mxu0 %v3403_v21 }
 0x4d9   : > { %v3413_v45 = vmul.f32 %v6628_v28, %v10473_v5 }
 0x4da   : > { %v6630_v26 = vpop.eup %6629 }
 0x4db   : > { %3960 = vmatprep.mubr.f32.mxu0 %v3413_v45  ;;  %v3419_v20 = vmul.f32 %v6630_v26, %v10476_v53 }
 0x4dc   : > { %v6632_v43 = vpop.eup %6631  ;;  %3961 = vmatmul.mubr.f32.gmra.mxu0 %v3411_v0 }
 0x4dd   : > { %v3421_v12 = vmul.f32 %v6632_v43, %v10475_v19 }
 0x4de   : > { %v6634_v61 = vpop.eup %6633 }
 0x4df   : > { %3965 = vmatprep.mubr.f32.mxu0 %v3421_v12  ;;  %v3427_v4 = vmul.f32 %v6634_v61, %v10478_v48 }
 0x4e0   : > { %v6636_v57 = vpop.eup %6635  ;;  %3966 = vmatmul.mubr.f32.gmra.mxu0 %v3419_v20 }
 0x4e1   : > { %v3429_v38 = vmul.f32 %v6636_v57, %v10477_v39 }
 0x4e3   : > { %3970 = vmatprep.mubr.f32.mxu0 %v3429_v38 }
 0x4e4   : > { %3971 = vmatmul.mubr.f32.gmra.mxu0 %v3427_v4 }
 0x555   : > { %v5983_v37 = vpop.f32.mrf.mxu1 }
 0x557   : > { %v5984_v49 = vpop.f32.mrf.mxu1 }
 0x558   : > { %v5985_v23 = vadd.f32 %v5984_v49, %v5983_v37 }
 0x559   : > { %v5986_v47 = vpop.f32.mrf.mxu1 }
 0x55b   : > { %v5987_v9 = vpop.f32.mrf.mxu1 }
 0x55c   : > { %v5988_v2 = vadd.f32 %v5987_v9, %v5986_v47 }
 0x55d   : > { %v5989_v31 = vpop.f32.mrf.mxu1 }
 0x55f   : > { %v5990_v62 = vpop.f32.mrf.mxu1 }
 0x560   : > { %v5991_v22 = vadd.f32 %v5990_v62, %v5989_v31 }
 0x561   : > { %v5992_v44 = vpop.f32.mrf.mxu1 }
 0x563   : > { %v5993_v11 = vpop.f32.mrf.mxu1 }
 0x564   : > { %v5994_v33 = vadd.f32 %v5993_v11, %v5992_v44 }
 0x565   : > { %v5995_v55 = vpop.f32.mrf.mxu1 }
 0x567   : > { %v5996_v29 = vpop.f32.mrf.mxu1 }
 0x568   : > { %v6063_v51 = vpop.f32.mrf.mxu0  ;;  %v5997_v35 = vadd.f32 %v5996_v29, %v5995_v55 }
 0x569   : > { %v5998_v14 = vpop.f32.mrf.mxu1 }
 0x56a   : > { %v6064_v25 = vpop.f32.mrf.mxu0 }
 0x56b   : > { %v6065_v52 = vadd.f32 %v6064_v25, %v6063_v51  ;;  %v5999_v54 = vpop.f32.mrf.mxu1 }
 0x56c   : > { %v6066_v36 = vpop.f32.mrf.mxu0  ;;  %v6000_v45 = vadd.f32 %v5999_v54, %v5998_v14 }
 0x56d   : > { %v3898_v50 = vadd.f32 %v6065_v52, %v5985_v23  ;;  %v6001_v59 = vpop.f32.mrf.mxu1 }
 0x56e   : > { %v6067_v56 = vpop.f32.mrf.mxu0 }
 0x56f   : > { %v6068_v16 = vadd.f32 %v6067_v56, %v6066_v36  ;;  %6231 = vmatprep.mubr.msk.f32.mxu1 %vm441_vm0, %v3898_v50  ;;  %v6002_v6 = vpop.f32.mrf.mxu1 }
 0x570   : > { %v6069_v1 = vpop.f32.mrf.mxu0  ;;  %v6003_v53 = vadd.f32 %v6002_v6, %v6001_v59 }
 0x571   : > { %v3903_v27 = vadd.f32 %v6068_v16, %v5988_v2  ;;  %v6004_v24 = vpop.f32.mrf.mxu1 }
 0x572   : > { %v6070_v41 = vpop.f32.mrf.mxu0 }
 0x573   : > { %v6071_v63 = vadd.f32 %v6070_v41, %v6069_v1  ;;  %6232 = vmatmul.mubr.msk.f32.vlgmr.msra.gmra.mxu1 %vm441_vm0, %v3903_v27  ;;  %v6005_v3 = vpop.f32.mrf.mxu1 }
 0x574   : > { %v6072_v40 = vpop.f32.mrf.mxu0  ;;  %v6006_v4 = vadd.f32 %v6005_v3, %v6004_v24 }
 0x575   : > { %v3908_v60 = vadd.f32 %v6071_v63, %v5991_v22  ;;  %v6007_v42 = vpop.f32.mrf.mxu1 }
 0x576   : > { %v6073_v34 = vpop.f32.mrf.mxu0 }
 0x577   : > { %v6074_v17 = vadd.f32 %v6073_v34, %v6072_v40  ;;  %6234 = vmatprep.mubr.msk.f32.mxu1 %vm441_vm0, %v3908_v60  ;;  %v6008_v8 = vpop.f32.mrf.mxu1 }
 0x578   : > { %v6075_v58 = vpop.f32.mrf.mxu0  ;;  %v6009_v9 = vadd.f32 %v6008_v8, %v6007_v42 }
 0x579   : > { %v3913_v46 = vadd.f32 %v6074_v17, %v5994_v33  ;;  %v6010_v21 = vpop.f32.mrf.mxu1 }
 0x57a   : > { %v6076_v7 = vpop.f32.mrf.mxu0 }
 0x57b   : > { %v6077_v18 = vadd.f32 %v6076_v7, %v6075_v58  ;;  %6235 = vmatmul.mubr.msk.f32.gmra.mxu1 %vm441_vm0, %v3913_v46  ;;  %v6011_v28 = vpop.f32.mrf.mxu1 }
 0x57c   : > { %v6078_v32 = vpop.f32.mrf.mxu0  ;;  %v6012_v51 = vadd.f32 %v6011_v28, %v6010_v21 }
 0x57d   : > { %v3918_v13 = vadd.f32 %v6077_v18, %v5997_v35  ;;  %v6013_v0 = vpop.f32.mrf.mxu1 }
 0x57e   : > { %v6079_v5 = vpop.f32.mrf.mxu0 }
 0x57f   : > { %v6080_v10 = vadd.f32 %v6079_v5, %v6078_v32  ;;  %6237 = vmatprep.mubr.msk.f32.mxu1 %vm441_vm0, %v3918_v13  ;;  %v6014_v19 = vpop.f32.mrf.mxu1 }
 0x580   : > { %v6081_v26 = vpop.f32.mrf.mxu0  ;;  %v6015_v36 = vadd.f32 %v6014_v19, %v6013_v0  ;;  %v6815_v19 = vld [vmem:[%s6965_s25 + $0x8] sm:$0xff] }
 0x581   : > { %v3923_v43 = vadd.f32 %v6080_v10, %v6000_v45  ;;  %v6016_v61 = vpop.f32.mrf.mxu1  ;;  %v9267_v10 = vld [vmem:[%s10119_s3 + $0x1] ss:$0 sm:$0xff] }
 0x582   : > { %v6082_v12 = vpop.f32.mrf.mxu0 }
 0x583   : > { %v6083_v20 = vadd.f32 %v6082_v12, %v6081_v26  ;;  %6238 = vmatmul.mubr.msk.f32.gmra.mxu1 %vm441_vm0, %v3923_v43  ;;  %v6017_v38 = vpop.f32.mrf.mxu1 }
 0x584   : > { %v6084_v57 = vpop.f32.mrf.mxu0  ;;  %v6018_v59 = vadd.f32 %v6017_v38, %v6016_v61 }
 0x585   : > { %v3928_v39 = vadd.f32 %v6083_v20, %v6003_v53  ;;  %v6019_v37 = vpop.f32.mrf.mxu1  ;;  %v6816_v20 = vld [vmem:[%s6965_s25] sm:$0xff] }
 0x586   : > { %v6085_v48 = vpop.f32.mrf.mxu0 }
 0x587   : > { %v6086_v15 = vadd.f32 %v6085_v48, %v6084_v57  ;;  %6240 = vmatprep.mubr.msk.f32.mxu1 %vm441_vm0, %v3928_v39  ;;  %v6020_v62 = vpop.f32.mrf.mxu1 }
 0x588   : > { %v6087_v30 = vpop.f32.mrf.mxu0  ;;  %v6021_v63 = vadd.f32 %v6020_v62, %v6019_v37 }
 0x589   : > { %v3933_v49 = vadd.f32 %v6086_v15, %v6006_v4  ;;  %v6022_v25 = vpop.f32.mrf.mxu1 }
 0x58a   : > { %v6088_v47 = vpop.f32.mrf.mxu0 }
 0x58b   : > { %v6089_v31 = vadd.f32 %v6088_v47, %v6087_v30  ;;  %6241 = vmatmul.mubr.msk.f32.gmra.mxu1 %vm441_vm0, %v3933_v49  ;;  %v6023_v54 = vpop.f32.mrf.mxu1  ;;  %v6817_v30 = vld [vmem:[%s6965_s25 + $0x10] sm:$0xff]  ;;  %v6818_v49 = vld [vmem:[%s6965_s25 + $0x18] sm:$0xff] }
 0x58c   : > { %v6090_v44 = vpop.f32.mrf.mxu0  ;;  %v6024_v33 = vadd.f32 %v6023_v54, %v6022_v25  ;;  %v6820_v25 = vld [vmem:[%s6965_s25 + $0x20] sm:$0xff] }
 0x58d   : > { %v3938_v11 = vadd.f32 %v6089_v31, %v6009_v9  ;;  %v6025_v27 = vpop.f32.mrf.mxu1 }
 0x58e   : > { %v6091_v55 = vpop.f32.mrf.mxu0 }
 0x58f   : > { %v6092_v29 = vadd.f32 %v6091_v55, %v6090_v44  ;;  %6243 = vmatprep.mubr.msk.f32.mxu1 %vm441_vm0, %v3938_v11  ;;  %v6026_v40 = vpop.f32.mrf.mxu1  ;;  %v6819_v11 = vld [vmem:[%s6965_s25 + $0x28] sm:$0xff] }
 0x590   : > { %v6093_v23 = vpop.f32.mrf.mxu0  ;;  %v6027_v7 = vadd.f32 %v6026_v40, %v6025_v27 }
 0x591   : > { %v3943_v52 = vadd.f32 %v6092_v29, %v6012_v51  ;;  %v6028_v42 = vpop.f32.mrf.mxu1 }
 0x592   : > { %v6094_v14 = vpop.f32.mrf.mxu0 }
 0x593   : > { %v6095_v50 = vadd.f32 %v6094_v14, %v6093_v23  ;;  %6244 = vmatmul.mubr.msk.f32.gmra.mxu1 %vm441_vm0, %v3943_v52  ;;  %v6029_v18 = vpop.f32.mrf.mxu1 }
 0x594   : > { %v6096_v56 = vpop.f32.mrf.mxu0  ;;  %v6030_v28 = vadd.f32 %v6029_v18, %v6028_v42  ;;  %v6826_v18 = vld [vmem:[%s6965_s25 + $0x50] sm:$0xff] }
 0x595   : > { %v3948_v2 = vadd.f32 %v6095_v50, %v6015_v36 }
 0x596   : > { %v6097_v16 = vpop.f32.mrf.mxu0 }
 0x597   : > { %v6098_v1 = vadd.f32 %v6097_v16, %v6096_v56  ;;  %6246 = vmatprep.mubr.msk.f32.mxu1 %vm441_vm0, %v3948_v2  ;;  %v6821_v56 = vld [vmem:[%s6965_s25 + $0x38] sm:$0xff] }
 0x598   : > { %v6099_v6 = vpop.f32.mrf.mxu0 }
 0x599   : > { %v3953_v41 = vadd.f32 %v6098_v1, %v6018_v59  ;;  %v6822_v59 = vld [vmem:[%s6965_s25 + $0x30] sm:$0xff] }
 0x59a   : > { %v6100_v22 = vpop.f32.mrf.mxu0 }
 0x59b   : > { %v6101_v24 = vadd.f32 %v6100_v22, %v6099_v6  ;;  %6247 = vmatmul.mubr.msk.f32.gmra.mxu1 %vm441_vm0, %v3953_v41 }
 0x59c   : > { %v6102_v60 = vpop.f32.mrf.mxu0 }
 0x59d   : > { %v3958_v3 = vadd.f32 %v6101_v24, %v6021_v63  ;;  %v6823_v24 = vld [vmem:[%s6965_s25 + $0x48] sm:$0xff] }
 0x59e   : > { %v6103_v34 = vpop.f32.mrf.mxu0 }
 0x59f   : > { %v6104_v17 = vadd.f32 %v6103_v34, %v6102_v60  ;;  %6249 = vmatprep.mubr.msk.f32.mxu1 %vm441_vm0, %v3958_v3  ;;  %v6824_v3 = vld [vmem:[%s6965_s25 + $0x40] sm:$0xff] }
 0x5a0   : > { %v6105_v58 = vpop.f32.mrf.mxu0 }
 0x5a1   : > { %v3963_v46 = vadd.f32 %v6104_v17, %v6024_v33 }
 0x5a2   : > { %v6106_v8 = vpop.f32.mrf.mxu0 }
 0x5a3   : > { %v6107_v35 = vadd.f32 %v6106_v8, %v6105_v58  ;;  %6250 = vmatmul.mubr.msk.f32.gmra.mxu1 %vm441_vm0, %v3963_v46  ;;  %v6825_v8 = vld [vmem:[%s6965_s25 + $0x58] sm:$0xff] }
 0x5a4   : > { %v6108_v21 = vpop.f32.mrf.mxu0 }
 0x5a5   : > { %v3968_v32 = vadd.f32 %v6107_v35, %v6027_v7 }
 0x5a6   : > { %v6109_v13 = vpop.f32.mrf.mxu0 }
 0x5a7   : > { %v6110_v5 = vadd.f32 %v6109_v13, %v6108_v21  ;;  %6252 = vmatprep.mubr.msk.f32.mxu1 %vm441_vm0, %v3968_v32 }
 0x5a9   : > { %v3973_v45 = vadd.f32 %v6110_v5, %v6030_v28 }
 0x5ab   : > { %6253 = vmatmul.mubr.msk.f32.gmra.mxu1 %vm441_vm0, %v3973_v45 }
 0x633   : > { %v6233_v0 = vpop.f32.mrf.mxu1 }
 0x634   : > { %v4104_v26 = vadd.f32 %v6233_v0, %v9267_v10  ;;  %v6827_v0 = vld [vmem:[%s6965_s25 + $0x68] sm:$0xff] }
 0x635   : > { %v4098_v43 = vpop.f32.mrf.mxu1 }
 0x636   : > { %v9271_v12 = vadd.f32 %v6815_v19, %v4104_v26  ;;  %v4099_v53 = vadd.f32 %v9267_v10, %v4098_v43  ;;  %v6828_v19 = vld [vmem:[%s6965_s25 + $0x60] sm:$0xff] }
 0x638   : > { %v9275_v61 = vadd.f32 %v6816_v20, %v4099_v53  ;;  %v4196_v57 = vsel %vm441_vm0, %v9271_v12, 0.0 }
 0x639   : > { %4197 = vadd.xlane.f32.xlu1 %v4196_v57 }
 0x63a   : > { %v4193_v39 = vsel %vm441_vm0, %v9275_v61, 0.0 }
 0x63b   : > { %v6236_v38 = vpop.f32.mrf.mxu1  ;;  %4194 = vadd.xlane.f32.xlu0 %v4193_v39 }
 0x63c   : > { %v4114_v4 = vadd.f32 %v6236_v38, %v9267_v10 }
 0x63d   : > { %v4108_v48 = vpop.f32.mrf.mxu1 }
 0x63e   : > { %v4109_v15 = vadd.f32 %v9267_v10, %v4108_v48  ;;  %v9287_v47 = vadd.f32 %v6818_v49, %v4114_v4  ;;  %v6829_v4 = vld [vmem:[%s6965_s25 + $0x78] sm:$0xff]  ;;  %v6830_v49 = vld [vmem:[%s6965_s25 + $0x70] sm:$0xff]  ;;  %s342_s25 = scalar_lea.vmem %s10124_s8, %s5607_s19 }
 0x640   : > { %v9284_v37 = vadd.f32 %v6817_v30, %v4109_v15  ;;  %v4202_v29 = vsel %vm441_vm0, %v9287_v47, 0.0 }
 0x642   : > { %v4199_v9 = vsel %vm441_vm0, %v9284_v37, 0.0 }
 0x643   : > { %v6239_v31 = vpop.f32.mrf.mxu1  ;;  %4200 = vadd.xlane.f32.xlu0 %v4199_v9 }
 0x644   : > { %v4124_v62 = vadd.f32 %v6239_v31, %v9267_v10 }
 0x645   : > { %v4118_v44 = vpop.f32.mrf.mxu1 }
 0x646   : > { %v9293_v55 = vadd.f32 %v6819_v11, %v4124_v62  ;;  %v4119_v51 = vadd.f32 %v9267_v10, %v4118_v44 }
 0x647   : > { %4203 = vadd.xlane.f32.xlu0 %v4202_v29 }
 0x648   : > { %v9299_v23 = vadd.f32 %v6820_v25, %v4119_v51  ;;  %v4208_v14 = vsel %vm441_vm0, %v9293_v55, 0.0 }
 0x64a   : > { %v4205_v52 = vsel %vm441_vm0, %v9299_v23, 0.0 }
 0x64b   : > { %v6242_v36 = vpop.f32.mrf.mxu1  ;;  %4206 = vadd.xlane.f32.xlu1 %v4205_v52  ;;  %4209 = vadd.xlane.f32.xlu0 %v4208_v14 }
 0x64c   : > { %v4134_v50 = vadd.f32 %v6242_v36, %v9267_v10 }
 0x64d   : > { %v4128_v54 = vpop.f32.mrf.mxu1 }
 0x64e   : > { %v9307_v2 = vadd.f32 %v6821_v56, %v4134_v50  ;;  %v4129_v16 = vadd.f32 %v9267_v10, %v4128_v54 }
 0x650   : > { %v9311_v1 = vadd.f32 %v6822_v59, %v4129_v16  ;;  %v4214_v27 = vsel %vm441_vm0, %v9307_v2, 0.0 }
 0x651   : > { %4215 = vadd.xlane.f32.xlu0 %v4214_v27 }
 0x652   : > { %v4211_v6 = vsel %vm441_vm0, %v9311_v1, 0.0 }
 0x653   : > { %v6245_v41 = vpop.f32.mrf.mxu1  ;;  %4212 = vadd.xlane.f32.xlu1 %v4211_v6 }
 0x654   : > { %v4144_v22 = vadd.f32 %v6245_v41, %v9267_v10 }
 0x655   : > { %v4138_v63 = vpop.f32.mrf.mxu1 }
 0x656   : > { %v9319_v40 = vadd.f32 %v6823_v24, %v4144_v22  ;;  %v4139_v60 = vadd.f32 %v9267_v10, %v4138_v63 }
 0x658   : > { %v9323_v34 = vadd.f32 %v6824_v3, %v4139_v60  ;;  %v4220_v33 = vsel %vm441_vm0, %v9319_v40, 0.0 }
 0x659   : > { %4221 = vadd.xlane.f32.xlu0 %v4220_v33 }
 0x65a   : > { %v4217_v17 = vsel %vm441_vm0, %v9323_v34, 0.0 }
 0x65b   : > { %v6248_v42 = vpop.f32.mrf.mxu1  ;;  %4218 = vadd.xlane.f32.xlu1 %v4217_v17 }
 0x65c   : > { %v4154_v58 = vadd.f32 %v6248_v42, %v9267_v10 }
 0x65d   : > { %v4148_v46 = vpop.f32.mrf.mxu1 }
 0x65e   : > { %v9331_v7 = vadd.f32 %v6825_v8, %v4154_v58  ;;  %v4149_v35 = vadd.f32 %v9267_v10, %v4148_v46 }
 0x660   : > { %v9335_v21 = vadd.f32 %v6826_v18, %v4149_v35  ;;  %v4226_v32 = vsel %vm441_vm0, %v9331_v7, 0.0 }
 0x661   : > { %4227 = vadd.xlane.f32.xlu0 %v4226_v32 }
 0x662   : > { %v4223_v13 = vsel %vm441_vm0, %v9335_v21, 0.0 }
 0x663   : > { %v6251_v28 = vpop.f32.mrf.mxu1  ;;  %4224 = vadd.xlane.f32.xlu1 %v4223_v13 }
 0x664   : > { %v4164_v5 = vadd.f32 %v6251_v28, %v9267_v10 }
 0x665   : > { %v4158_v45 = vpop.f32.mrf.mxu1 }
 0x666   : > { %v9343_v26 = vadd.f32 %v6827_v0, %v4164_v5  ;;  %v4159_v43 = vadd.f32 %v9267_v10, %v4158_v45 }
 0x668   : > { %v9347_v53 = vadd.f32 %v6828_v19, %v4159_v43  ;;  %v4232_v20 = vsel %vm441_vm0, %v9343_v26, 0.0 }
 0x669   : > { %4233 = vadd.xlane.f32.xlu0 %v4232_v20 }
 0x66a   : > { %v4229_v57 = vsel %vm441_vm0, %v9347_v53, 0.0 }
 0x66b   : > { %v6254_v39 = vpop.f32.mrf.mxu1  ;;  %4230 = vadd.xlane.f32.xlu1 %v4229_v57 }
 0x66c   : > { %v4174_v38 = vadd.f32 %v6254_v39, %v9267_v10 }
 0x66d   : > { %v4168_v48 = vpop.f32.mrf.mxu1 }
 0x66e   : > { %v9355_v15 = vadd.f32 %v6829_v4, %v4174_v38  ;;  %v4169_v30 = vadd.f32 %v9267_v10, %v4168_v48 }
 0x670   : > { %v9359_v9 = vadd.f32 %v6830_v49, %v4169_v30  ;;  %v4238_v31 = vsel %vm441_vm0, %v9355_v15, 0.0  ;;  %v4558_v49 = vld [vmem:[%s10118_s2 + $0x70] sm:$0xff] }
 0x671   : > { %4239 = vadd.xlane.f32.xlu0 %v4238_v31  ;;  %6255 = vmatprep.subr.mxu0 %v4558_v49 }
 0x672   : > { %v4235_v62 = vsel %vm441_vm0, %v9359_v9, 0.0  ;;  %6256 = vmatpush3.msra.mxu0 %v4558_v49 }
 0x673   : > { %4236 = vadd.xlane.f32.xlu1 %v4235_v62 }
 0x6c2   : > { %v4198_v44 = vpop.xlane.xlu1 %4197 }
 0x6c3   : > { %v4243_v11 = vmul.f32 0.03125, %v4198_v44 }
 0x6c4   : > { %v4195_v51 = vpop.xlane.xlu0 %4194 }
 0x6c5   : > { %v9366_v29 = vsub.f32 %v9271_v12, %v4243_v11  ;;  %v4242_v25 = vmul.f32 0.03125, %v4195_v51 }
 0x6c7   : > { %v9369_v10 = vsub.f32 %v9275_v61, %v4242_v25  ;;  %v4275_v52 = vmul.f32 %v9366_v29, %v9366_v29 }
 0x6c9   : > { %v4293_v14 = vsel %vm441_vm0, %v4275_v52, 0.0  ;;  %v4274_v36 = vmul.f32 %v9369_v10, %v9369_v10 }
 0x6ca   : > { %4294 = vadd.xlane.f32.xlu0 %v4293_v14 }
 0x6cb   : > { %v4290_v50 = vsel %vm441_vm0, %v4274_v36, 0.0 }
 0x6cc   : > { %4291 = vadd.xlane.f32.xlu1 %v4290_v50  ;;  %v4201_v54 = vpop.xlane.xlu0 %4200 }
 0x6cd   : > { %v4244_v56 = vmul.f32 0.03125, %v4201_v54 }
 0x6cf   : > { %v9378_v12 = vsub.f32 %v9284_v37, %v4244_v56 }
 0x6d0   : > { %v4204_v16 = vpop.xlane.xlu0 %4203 }
 0x6d1   : > { %v4245_v61 = vmul.f32 0.03125, %v4204_v16  ;;  %v4276_v59 = vmul.f32 %v9378_v12, %v9378_v12 }
 0x6d3   : > { %v9383_v27 = vsub.f32 %v9287_v47, %v4245_v61  ;;  %v4296_v6 = vsel %vm441_vm0, %v4276_v59, 0.0  ;;  %v4557_v61 = vld [vmem:[%s10118_s2 + $0x50] sm:$0xff] }
 0x6d4   : > { %v4207_v41 = vpop.xlane.xlu1 %4206  ;;  %4297 = vadd.xlane.f32.xlu1 %v4296_v6  ;;  %v4210_v22 = vpop.xlane.xlu0 %4209  ;;  %6257 = vmatprep.subr.mxu0 %v4557_v61  ;;  %v4556_v6 = vld [vmem:[%s10118_s2 + $0x30] sm:$0xff] }
 0x6d5   : > { %v4246_v63 = vmul.f32 0.03125, %v4207_v41  ;;  %v4247_v24 = vmul.f32 0.03125, %v4210_v22  ;;  %v4277_v60 = vmul.f32 %v9383_v27, %v9383_v27  ;;  %6258 = vmatpush3.msra.mxu0 %v4557_v61 }
 0x6d6   : > { %6259 = vmatprep.subr.mxu0 %v4556_v6 }
 0x6d7   : > { %v9389_v37 = vsub.f32 %v9299_v23, %v4246_v63  ;;  %v9392_v3 = vsub.f32 %v9293_v55, %v4247_v24  ;;  %v4299_v33 = vsel %vm441_vm0, %v4277_v60, 0.0  ;;  %6260 = vmatpush3.msra.mxu0 %v4556_v6  ;;  %v4555_v63 = vld [vmem:[%s10118_s2 + $0x10] sm:$0xff] }
 0x6d8   : > { %4300 = vadd.xlane.f32.xlu0 %v4299_v33  ;;  %6261 = vmatprep.subr.mxu0 %v4555_v63 }
 0x6d9   : > { %v4278_v47 = vmul.f32 %v9389_v37, %v9389_v37  ;;  %v4279_v17 = vmul.f32 %v9392_v3, %v9392_v3  ;;  %6262 = vmatpush3.msra.mxu0 %v4555_v63 }
 0x6da   : > { %v4216_v42 = vpop.xlane.xlu0 %4215 }
 0x6db   : > { %v4249_v58 = vmul.f32 0.03125, %v4216_v42  ;;  %v4302_v46 = vsel %vm441_vm0, %v4278_v47, 0.0  ;;  %v4305_v8 = vsel %vm441_vm0, %v4279_v17, 0.0  ;;  %v4775_v17 = vld [vmem:[%s10118_s2 + $0x78] sm:$0xff] }
 0x6dc   : > { %v4213_v23 = vpop.xlane.xlu1 %4212  ;;  %4303 = vadd.xlane.f32.xlu1 %v4302_v46  ;;  %4306 = vadd.xlane.f32.xlu0 %v4305_v8 }
 0x6dd   : > { %v9402_v55 = vsub.f32 %v9307_v2, %v4249_v58  ;;  %v4248_v35 = vmul.f32 0.03125, %v4213_v23  ;;  %6287 = vmatprep.subr.msk.mxu1 %vm4780_vm1, %v4775_v17 }
 0x6de   : > { %6288 = vmatpush3.xpose.msk.msra.mxu1 %vm4780_vm1, %v4775_v17 }
 0x6df   : > { %v9405_v18 = vsub.f32 %v9311_v1, %v4248_v35  ;;  %v4281_v32 = vmul.f32 %v9402_v55, %v9402_v55 }
 0x6e1   : > { %v4311_v13 = vsel %vm441_vm0, %v4281_v32, 0.0  ;;  %v4280_v28 = vmul.f32 %v9405_v18, %v9405_v18 }
 0x6e2   : > { %4312 = vadd.xlane.f32.xlu0 %v4311_v13  ;;  %v4222_v5 = vpop.xlane.xlu0 %4221 }
 0x6e3   : > { %v4251_v45 = vmul.f32 0.03125, %v4222_v5  ;;  %v4308_v0 = vsel %vm441_vm0, %v4280_v28, 0.0 }
 0x6e4   : > { %v4219_v43 = vpop.xlane.xlu1 %4218  ;;  %4309 = vadd.xlane.f32.xlu1 %v4308_v0 }
 0x6e5   : > { %v9414_v2 = vsub.f32 %v9319_v40, %v4251_v45  ;;  %v4250_v1 = vmul.f32 0.03125, %v4219_v43 }
 0x6e7   : > { %v9417_v19 = vsub.f32 %v9323_v34, %v4250_v1  ;;  %v4283_v20 = vmul.f32 %v9414_v2, %v9414_v2 }
 0x6e9   : > { %v4317_v57 = vsel %vm441_vm0, %v4283_v20, 0.0  ;;  %v4282_v39 = vmul.f32 %v9417_v19, %v9417_v19 }
 0x6ea   : > { %4318 = vadd.xlane.f32.xlu0 %v4317_v57  ;;  %v4228_v38 = vpop.xlane.xlu0 %4227 }
 0x6eb   : > { %v4253_v48 = vmul.f32 0.03125, %v4228_v38  ;;  %v4314_v4 = vsel %vm441_vm0, %v4282_v39, 0.0 }
 0x6ec   : > { %v4225_v30 = vpop.xlane.xlu1 %4224  ;;  %4315 = vadd.xlane.f32.xlu1 %v4314_v4 }
 0x6ed   : > { %v9426_v40 = vsub.f32 %v9331_v7, %v4253_v48  ;;  %v4252_v34 = vmul.f32 0.03125, %v4225_v30 }
 0x6ef   : > { %v9432_v31 = vsub.f32 %v9335_v21, %v4252_v34  ;;  %v4285_v62 = vmul.f32 %v9426_v40, %v9426_v40 }
 0x6f1   : > { %v4323_v44 = vsel %vm441_vm0, %v4285_v62, 0.0  ;;  %v4284_v11 = vmul.f32 %v9432_v31, %v9432_v31 }
 0x6f2   : > { %4324 = vadd.xlane.f32.xlu0 %v4323_v44  ;;  %v4234_v7 = vpop.xlane.xlu0 %4233 }
 0x6f3   : > { %v4255_v51 = vmul.f32 0.03125, %v4234_v7  ;;  %v4320_v25 = vsel %vm441_vm0, %v4284_v11, 0.0 }
 0x6f4   : > { %v4231_v52 = vpop.xlane.xlu1 %4230  ;;  %4321 = vadd.xlane.f32.xlu1 %v4320_v25 }
 0x6f5   : > { %v9441_v14 = vsub.f32 %v9343_v26, %v4255_v51  ;;  %v4254_v21 = vmul.f32 0.03125, %v4231_v52 }
 0x6f7   : > { %v9444_v36 = vsub.f32 %v9347_v53, %v4254_v21  ;;  %v4287_v50 = vmul.f32 %v9441_v14, %v9441_v14 }
 0x6f9   : > { %v4329_v54 = vsel %vm441_vm0, %v4287_v50, 0.0  ;;  %v4286_v56 = vmul.f32 %v9444_v36, %v9444_v36 }
 0x6fa   : > { %4330 = vadd.xlane.f32.xlu0 %v4329_v54  ;;  %v4240_v16 = vpop.xlane.xlu0 %4239 }
 0x6fb   : > { %v4257_v26 = vmul.f32 0.03125, %v4240_v16  ;;  %v4326_v59 = vsel %vm441_vm0, %v4286_v56, 0.0  ;;  %v9495_v16 = vld [vmem:[%s10119_s3 + $0x4] ss:$0 sm:$0xff] }
 0x6fc   : > { %v4237_v53 = vpop.xlane.xlu1 %4236  ;;  %4327 = vadd.xlane.f32.xlu1 %v4326_v59 }
 0x6fd   : > { %v9459_v41 = vsub.f32 %v9355_v15, %v4257_v26  ;;  %v4256_v22 = vmul.f32 0.03125, %v4237_v53 }
 0x6ff   : > { %v9465_v24 = vsub.f32 %v9359_v9, %v4256_v22  ;;  %v4289_v60 = vmul.f32 %v9459_v41, %v9459_v41  ;;  %v4774_v9 = vld [vmem:[%s10118_s2 + $0x58] sm:$0xff] }
 0x700   : > { %6289 = vmatprep.subr.msk.mxu1 %vm4780_vm1, %v4774_v9 }
 0x701   : > { %v4335_v33 = vsel %vm441_vm0, %v4289_v60, 0.0  ;;  %v4288_v15 = vmul.f32 %v9465_v24, %v9465_v24  ;;  %6290 = vmatpush3.xpose.msk.msra.mxu1 %vm4780_vm1, %v4774_v9  ;;  %v4360_v60 = vmul.f32 %v9495_v16, %v9366_v29 }
 0x702   : > { %4336 = vadd.xlane.f32.xlu0 %v4335_v33  ;;  %v4359_v33 = vmul.f32 %v9495_v16, %v9369_v10 }
 0x703   : > { %v4332_v47 = vsel %vm441_vm0, %v4288_v15, 0.0 }
 0x704   : > { %4333 = vadd.xlane.f32.xlu1 %v4332_v47 }
 0x753   : > { %v4295_v42 = vpop.xlane.xlu0 %4294 }
 0x754   : > { %v4340_v58 = vmul.f32 0.032258064, %v4295_v42 }
 0x755   : > { %v4292_v46 = vpop.xlane.xlu1 %4291 }
 0x756   : > { %6637 = vrsqrt.f32 %v4340_v58  ;;  %v4339_v8 = vmul.f32 0.032258064, %v4292_v46  ;;  %vm4384_vm2 = vcmp.eq.f32.partialorder %v4340_v58, inf  ;;  %v4387_v45 = vand.u32 2147483648, %v4340_v58 }
 0x757   : > { %vm4386_vm3 = vcmp.eq.f32.partialorder %v4340_v58, 0.0 }
 0x758   : > { %6639 = vrsqrt.f32 %v4339_v8  ;;  %vm4377_vm4 = vcmp.eq.f32.partialorder %v4339_v8, inf  ;;  %v4380_v30 = vand.u32 2147483648, %v4339_v8  ;;  %vm4379_vm5 = vcmp.eq.f32.partialorder %v4339_v8, 0.0 }
 0x75d   : > { %v4298_v23 = vpop.xlane.xlu1 %4297 }
 0x75e   : > { %v4341_v35 = vmul.f32 0.032258064, %v4298_v23 }
 0x760   : > { %6641 = vrsqrt.f32 %v4341_v35  ;;  %vm4391_vm6 = vcmp.eq.f32.partialorder %v4341_v35, inf  ;;  %v4394_v52 = vand.u32 2147483648, %v4341_v35  ;;  %vm4393_vm7 = vcmp.eq.f32.partialorder %v4341_v35, 0.0 }
 0x761   : > { %v4301_v32 = vpop.xlane.xlu0 %4300 }
 0x762   : > { %v4342_v13 = vmul.f32 0.032258064, %v4301_v32 }
 0x763   : > { %v6638_v28 = vpop.eup %6637 }
 0x764   : > { %v4383_v5 = vmul.f32 %v6638_v28, %v4340_v58  ;;  %6643 = vrsqrt.f32 %v4342_v13  ;;  %vm4398_vm8 = vcmp.eq.f32.partialorder %v4342_v13, inf  ;;  %v4401_v59 = vand.u32 2147483648, %v4342_v13 }
 0x765   : > { %v4304_v0 = vpop.xlane.xlu1 %4303  ;;  %v4307_v43 = vpop.xlane.xlu0 %4306  ;;  %vm4400_vm9 = vcmp.eq.f32.partialorder %v4342_v13, 0.0 }
 0x766   : > { %v6640_v1 = vpop.eup %6639  ;;  %v4385_v20 = vsel %vm4384_vm2, %v4340_v58, %v4383_v5  ;;  %v4343_v57 = vmul.f32 0.032258064, %v4304_v0  ;;  %v9483_v39 = vmul.f32 0.032258064, %v4307_v43 }
 0x767   : > { %v4388_v38 = vsel %vm4386_vm3, %v4387_v45, %v4385_v20  ;;  %v4376_v48 = vmul.f32 %v6640_v1, %v4339_v8  ;;  %v9515_v20 = vld [vmem:[%s10119_s3 + $0x5] ss:$0 sm:$0xff] }
 0x768   : > { %v4488_v4 = vadd.f32 1e-06, %v4388_v38  ;;  %6645 = vrsqrt.f32 %v4343_v57  ;;  %vm4405_vm10 = vcmp.eq.f32.partialorder %v4343_v57, inf  ;;  %vm4407_vm11 = vcmp.eq.f32.partialorder %v4343_v57, 0.0 }
 0x769   : > { %v4378_v34 = vsel %vm4377_vm4, %v4339_v8, %v4376_v48  ;;  %6647 = vrsqrt.f32 %v9483_v39  ;;  %v4408_v46 = vand.u32 2147483648, %v4343_v57  ;;  %vm4412_vm12 = vcmp.eq.f32.partialorder %v9483_v39, inf }
 0x76a   : > { %6649 = vrcp.f32 %v4488_v4  ;;  %v4381_v49 = vsel %vm4379_vm5, %v4380_v30, %v4378_v34  ;;  %v4415_v10 = vand.u32 2147483648, %v9483_v39  ;;  %vm4414_vm13 = vcmp.eq.f32.partialorder %v9483_v39, 0.0 }
 0x76b   : > { %v4487_v62 = vadd.f32 1e-06, %v4381_v49  ;;  %v4313_v44 = vpop.xlane.xlu0 %4312 }
 0x76c   : > { %v9486_v11 = vmul.f32 0.032258064, %v4313_v44 }
 0x76d   : > { %v6642_v7 = vpop.eup %6641  ;;  %6651 = vrcp.f32 %v4487_v62  ;;  %v4310_v51 = vpop.xlane.xlu1 %4309 }
 0x76e   : > { %v4390_v25 = vmul.f32 %v6642_v7, %v4341_v35  ;;  %6653 = vrsqrt.f32 %v9486_v11  ;;  %v9489_v21 = vmul.f32 0.032258064, %v4310_v51  ;;  %vm4426_vm14 = vcmp.eq.f32.partialorder %v9486_v11, inf }
 0x76f   : > { %vm4428_vm15 = vcmp.eq.f32.partialorder %v9486_v11, 0.0 }
 0x770   : > { %v4392_v50 = vsel %vm4391_vm6, %v4341_v35, %v4390_v25  ;;  %6655 = vrsqrt.f32 %v9489_v21  ;;  %v4361_v25 = vmul.f32 %v9495_v16, %v9378_v12  ;;  %vm4419_vm2 = vcmp.eq.f32.partialorder %v9489_v21, inf }
 0x771   : > { %v6644_v54 = vpop.eup %6643  ;;  %v4395_v56 = vsel %vm4393_vm7, %v4394_v52, %v4392_v50  ;;  %vm4421_vm3 = vcmp.eq.f32.partialorder %v9489_v21, 0.0 }
 0x772   : > { %v4489_v61 = vadd.f32 1e-06, %v4395_v56  ;;  %v4397_v26 = vmul.f32 %v6644_v54, %v4342_v13 }
 0x773   : > { %v4319_v53 = vpop.xlane.xlu0 %4318 }
 0x774   : > { %6657 = vrcp.f32 %v4489_v61  ;;  %v4399_v6 = vsel %vm4398_vm8, %v4342_v13, %v4397_v26  ;;  %v9497_v22 = vmul.f32 0.032258064, %v4319_v53 }
 0x775   : > { %v6646_v63 = vpop.eup %6645  ;;  %v4402_v15 = vsel %vm4400_vm9, %v4401_v59, %v4399_v6  ;;  %v4316_v47 = vpop.xlane.xlu1 %4315 }
 0x776   : > { %v6648_v17 = vpop.eup %6647  ;;  %v4490_v9 = vadd.f32 1e-06, %v4402_v15  ;;  %v4404_v42 = vmul.f32 %v6646_v63, %v4343_v57  ;;  %6659 = vrsqrt.f32 %v9497_v22  ;;  %v9505_v23 = vmul.f32 0.032258064, %v4316_v47 }
 0x777   : > { %v6650_v58 = vpop.eup %6649  ;;  %v4411_v8 = vmul.f32 %v6648_v17, %v9483_v39  ;;  %vm4440_vm4 = vcmp.eq.f32.partialorder %v9497_v22, inf  ;;  %v4362_v47 = vmul.f32 %v9495_v16, %v9383_v27  ;;  %vm4442_vm5 = vcmp.eq.f32.partialorder %v9497_v22, 0.0 }
 0x778   : > { %6661 = vrcp.f32 %v4490_v9  ;;  %v4406_v29 = vsel %vm4405_vm10, %v4343_v57, %v4404_v42  ;;  %v4506_v45 = vmul.f32 %v6650_v58, %v4360_v60  ;;  %v4363_v9 = vmul.f32 %v9495_v16, %v9389_v37 }
 0x779   : > { %v4409_v35 = vsel %vm4407_vm11, %v4408_v46, %v4406_v29  ;;  %v4413_v32 = vsel %vm4412_vm12, %v9483_v39, %v4411_v8  ;;  %6663 = vrsqrt.f32 %v9505_v23  ;;  %v4429_v39 = vand.u32 2147483648, %v9486_v11 }
 0x77a   : > { %v6652_v13 = vpop.eup %6651  ;;  %v4491_v28 = vadd.f32 1e-06, %v4409_v35  ;;  %v4416_v5 = vsel %vm4414_vm13, %v4415_v10, %v4413_v32  ;;  %v9529_v62 = vadd.f32 %v9515_v20, %v4506_v45  ;;  %vm4433_vm6 = vcmp.eq.f32.partialorder %v9505_v23, inf }
 0x77b   : > { %v6654_v0 = vpop.eup %6653  ;;  %v4492_v43 = vadd.f32 1e-06, %v4416_v5  ;;  %v4325_v1 = vpop.xlane.xlu0 %4324  ;;  %v4504_v57 = vmul.f32 %v6652_v13, %v4359_v33  ;;  %v4436_v27 = vand.u32 2147483648, %v9505_v23  ;;  %v4364_v10 = vmul.f32 %v9495_v16, %v9392_v3 }
 0x77c   : > { %6665 = vrcp.f32 %v4491_v28  ;;  %v4425_v38 = vmul.f32 %v6654_v0, %v9486_v11  ;;  %v9518_v48 = vmul.f32 0.032258064, %v4325_v1  ;;  %vm4435_vm7 = vcmp.eq.f32.partialorder %v9505_v23, 0.0 }
 0x77d   : > { %6667 = vrcp.f32 %v4492_v43  ;;  %v4322_v4 = vpop.xlane.xlu1 %4321  ;;  %v9523_v30 = vadd.f32 %v9515_v20, %v4504_v57  ;;  %v6656_v34 = vpop.eup %6655 }
 0x77e   : > { %v4427_v49 = vsel %vm4426_vm14, %v9486_v11, %v4425_v38  ;;  %6669 = vrsqrt.f32 %v9518_v48  ;;  %v4418_v7 = vmul.f32 %v6656_v34, %v9489_v21  ;;  %v9532_v51 = vmul.f32 0.032258064, %v4322_v4 }
 0x77f   : > { %v4430_v44 = vsel %vm4428_vm15, %v4429_v39, %v4427_v49  ;;  %6263 = vmatprep.mubr.msk.f32.mxu0 %vm441_vm0, %v9523_v30  ;;  %v4422_v11 = vand.u32 2147483648, %v9489_v21  ;;  %vm4454_vm8 = vcmp.eq.f32.partialorder %v9518_v48, inf  ;;  %vm4456_vm9 = vcmp.eq.f32.partialorder %v9518_v48, 0.0 }
 0x780   : > { %v4494_v52 = vadd.f32 1e-06, %v4430_v44  ;;  %6264 = vmatmul.mubr.msk.f32.vlgmr.msra.gmra.mxu0 %vm441_vm0, %v9529_v62  ;;  %v4420_v54 = vsel %vm4419_vm2, %v9489_v21, %v4418_v7  ;;  %6671 = vrsqrt.f32 %v9532_v51  ;;  %v4443_v21 = vand.u32 2147483648, %v9497_v22 }
 0x781   : > { %v6658_v50 = vpop.eup %6657  ;;  %v4423_v56 = vsel %vm4421_vm3, %v4422_v11, %v4420_v54  ;;  %vm4447_vm10 = vcmp.eq.f32.partialorder %v9532_v51, inf  ;;  %vm4449_vm11 = vcmp.eq.f32.partialorder %v9532_v51, 0.0 }
 0x782   : > { %6673 = vrcp.f32 %v4494_v52  ;;  %v4508_v61 = vmul.f32 %v6658_v50, %v4361_v25  ;;  %v4493_v12 = vadd.f32 1e-06, %v4423_v56  ;;  %v4366_v52 = vmul.f32 %v9495_v16, %v9402_v55 }
 0x783   : > { %v6660_v26 = vpop.eup %6659  ;;  %v4331_v59 = vpop.xlane.xlu0 %4330  ;;  %v4450_v50 = vand.u32 2147483648, %v9532_v51 }
 0x784   : > { %v4439_v53 = vmul.f32 %v6660_v26, %v9497_v22  ;;  %v9546_v6 = vmul.f32 0.032258064, %v4331_v59  ;;  %v9549_v63 = vadd.f32 %v9515_v20, %v4508_v61  ;;  %6675 = vrcp.f32 %v4493_v12 }
 0x785   : > { %v6662_v60 = vpop.eup %6661  ;;  %v4328_v33 = vpop.xlane.xlu1 %4327 }
 0x786   : > { %v6664_v15 = vpop.eup %6663  ;;  %v4441_v17 = vsel %vm4440_vm4, %v9497_v22, %v4439_v53  ;;  %6677 = vrsqrt.f32 %v9546_v6  ;;  %6266 = vmatprep.mubr.msk.f32.mxu0 %vm441_vm0, %v9549_v63  ;;  %v9563_v46 = vmul.f32 0.032258064, %v4328_v33  ;;  %v4510_v29 = vmul.f32 %v6662_v60, %v4362_v47 }
 0x787   : > { %v4444_v42 = vsel %vm4442_vm5, %v4443_v21, %v4441_v17  ;;  %v4432_v58 = vmul.f32 %v6664_v15, %v9505_v23  ;;  %vm4468_vm12 = vcmp.eq.f32.partialorder %v9546_v6, inf  ;;  %vm4470_vm13 = vcmp.eq.f32.partialorder %v9546_v6, 0.0 }
 0x788   : > { %v4496_v8 = vadd.f32 1e-06, %v4444_v42  ;;  %6679 = vrsqrt.f32 %v9563_v46  ;;  %v9573_v13 = vadd.f32 %v9515_v20, %v4510_v29  ;;  %vm4461_vm14 = vcmp.eq.f32.partialorder %v9563_v46, inf }
 0x789   : > { %v6666_v22 = vpop.eup %6665  ;;  %v4434_v35 = vsel %vm4433_vm6, %v9505_v23, %v4432_v58  ;;  %v4457_v23 = vand.u32 2147483648, %v9518_v48  ;;  %v4464_v58 = vand.u32 2147483648, %v9563_v46  ;;  %vm4463_vm15 = vcmp.eq.f32.partialorder %v9563_v46, 0.0 }
 0x78a   : > { %v6668_v37 = vpop.eup %6667  ;;  %6681 = vrcp.f32 %v4496_v8  ;;  %v4437_v32 = vsel %vm4435_vm7, %v4436_v27, %v4434_v35  ;;  %v4512_v0 = vmul.f32 %v6666_v22, %v4363_v9  ;;  %6267 = vmatmul.mubr.msk.f32.gmra.mxu0 %vm441_vm0, %v9573_v13  ;;  %v4368_v9 = vmul.f32 %v9495_v16, %v9414_v2 }
 0x78b   : > { %v6670_v28 = vpop.eup %6669  ;;  %v4495_v5 = vadd.f32 1e-06, %v4437_v32  ;;  %v4337_v45 = vpop.xlane.xlu0 %4336  ;;  %v4514_v43 = vmul.f32 %v6668_v37, %v4364_v10 }
 0x78c   : > { %v4453_v1 = vmul.f32 %v6670_v28, %v9518_v48  ;;  %v9579_v3 = vmul.f32 0.032258064, %v4337_v45  ;;  %v9583_v38 = vadd.f32 %v9515_v20, %v4512_v0 }
 0x78d   : > { %6683 = vrcp.f32 %v4495_v5  ;;  %v4334_v57 = vpop.xlane.xlu1 %4333  ;;  %v9586_v39 = vadd.f32 %v9515_v20, %v4514_v43  ;;  %v6672_v4 = vpop.eup %6671 }
 0x78e   : > { %v4455_v34 = vsel %vm4454_vm8, %v9518_v48, %v4453_v1  ;;  %6685 = vrsqrt.f32 %v9579_v3  ;;  %v4446_v7 = vmul.f32 %v6672_v4, %v9532_v51  ;;  %v9592_v25 = vmul.f32 0.032258064, %v4334_v57  ;;  %6269 = vmatprep.mubr.msk.f32.mxu0 %vm441_vm0, %v9583_v38 }
 0x78f   : > { %v6674_v49 = vpop.eup %6673  ;;  %v4458_v44 = vsel %vm4456_vm9, %v4457_v23, %v4455_v34  ;;  %6270 = vmatmul.mubr.msk.f32.gmra.mxu0 %vm441_vm0, %v9586_v39  ;;  %v4365_v48 = vmul.f32 %v9495_v16, %v9405_v18  ;;  %v4471_v18 = vand.u32 2147483648, %v9546_v6  ;;  %vm4482_vm2 = vcmp.eq.f32.partialorder %v9579_v3, inf }
 0x790   : > { %v4498_v11 = vadd.f32 1e-06, %v4458_v44  ;;  %v4448_v54 = vsel %vm4447_vm10, %v9532_v51, %v4446_v7  ;;  %6687 = vrsqrt.f32 %v9592_v25  ;;  %v4518_v61 = vmul.f32 %v6674_v49, %v4366_v52 }
 0x791   : > { %v6676_v56 = vpop.eup %6675  ;;  %v4451_v55 = vsel %vm4449_vm11, %v4450_v50, %v4448_v54  ;;  %v4485_v32 = vand.u32 2147483648, %v9579_v3  ;;  %vm4484_vm3 = vcmp.eq.f32.partialorder %v9579_v3, 0.0  ;;  %v4370_v1 = vmul.f32 %v9495_v16, %v9426_v40 }
 0x792   : > { %6689 = vrcp.f32 %v4498_v11  ;;  %v4497_v12 = vadd.f32 1e-06, %v4451_v55  ;;  %v4516_v59 = vmul.f32 %v6676_v56, %v4365_v48  ;;  %v9616_v33 = vadd.f32 %v9515_v20, %v4518_v61 }
 0x793   : > { %v6678_v26 = vpop.eup %6677  ;;  %vm4475_vm4 = vcmp.eq.f32.partialorder %v9592_v25, inf  ;;  %v4478_v57 = vand.u32 2147483648, %v9592_v25  ;;  %vm4477_vm5 = vcmp.eq.f32.partialorder %v9592_v25, 0.0 }
 0x794   : > { %v4467_v53 = vmul.f32 %v6678_v26, %v9546_v6  ;;  %6691 = vrcp.f32 %v4497_v12  ;;  %v9611_v60 = vadd.f32 %v9515_v20, %v4516_v59 }
 0x795   : > { %v6680_v51 = vpop.eup %6679 }
 0x796   : > { %v4469_v21 = vsel %vm4468_vm12, %v9546_v6, %v4467_v53  ;;  %v4460_v17 = vmul.f32 %v6680_v51, %v9563_v46  ;;  %6272 = vmatprep.mubr.msk.f32.mxu0 %vm441_vm0, %v9611_v60  ;;  %v4367_v6 = vmul.f32 %v9495_v16, %v9417_v19 }
 0x797   : > { %v6682_v15 = vpop.eup %6681  ;;  %v4472_v47 = vsel %vm4470_vm13, %v4471_v18, %v4469_v21  ;;  %6273 = vmatmul.mubr.msk.f32.gmra.mxu0 %vm441_vm0, %v9616_v33 }
 0x798   : > { %v4500_v42 = vadd.f32 1e-06, %v4472_v47  ;;  %v4462_v8 = vsel %vm4461_vm14, %v9563_v46, %v4460_v17  ;;  %v4522_v22 = vmul.f32 %v6682_v15, %v4368_v9 }
 0x799   : > { %v4465_v29 = vsel %vm4463_vm15, %v4464_v58, %v4462_v8 }
 0x79a   : > { %v6684_v27 = vpop.eup %6683  ;;  %6693 = vrcp.f32 %v4500_v42  ;;  %v4499_v10 = vadd.f32 1e-06, %v4465_v29  ;;  %v9640_v5 = vadd.f32 %v9515_v20, %v4522_v22 }
 0x79b   : > { %v6686_v2 = vpop.eup %6685  ;;  %v4520_v35 = vmul.f32 %v6684_v27, %v4367_v6 }
 0x79c   : > { %v4481_v37 = vmul.f32 %v6686_v2, %v9579_v3  ;;  %6695 = vrcp.f32 %v4499_v10 }
 0x79d   : > { %v9635_v19 = vadd.f32 %v9515_v20, %v4520_v35  ;;  %v6688_v28 = vpop.eup %6687 }
 0x79e   : > { %v4483_v46 = vsel %vm4482_vm2, %v9579_v3, %v4481_v37  ;;  %v4474_v43 = vmul.f32 %v6688_v28, %v9592_v25  ;;  %v4369_v3 = vmul.f32 %v9495_v16, %v9432_v31  ;;  %v4372_v31 = vmul.f32 %v9495_v16, %v9441_v14 }
 0x79f   : > { %v6690_v45 = vpop.eup %6689  ;;  %v4486_v0 = vsel %vm4484_vm3, %v4485_v32, %v4483_v46  ;;  %6275 = vmatprep.mubr.msk.f32.mxu0 %vm441_vm0, %v9635_v19  ;;  %v4374_v14 = vmul.f32 %v9495_v16, %v9459_v41  ;;  %v4773_v41 = vld [vmem:[%s10118_s2 + $0x38] sm:$0xff] }
 0x7a0   : > { %v4502_v23 = vadd.f32 1e-06, %v4486_v0  ;;  %6276 = vmatmul.mubr.msk.f32.gmra.mxu0 %vm441_vm0, %v9640_v5  ;;  %v4476_v4 = vsel %vm4475_vm4, %v9592_v25, %v4474_v43  ;;  %v4526_v44 = vmul.f32 %v6690_v45, %v4370_v1  ;;  %v4371_v25 = vmul.f32 %v9495_v16, %v9444_v36  ;;  %6291 = vmatprep.subr.msk.mxu1 %vm4780_vm1, %v4773_v41 }
 0x7a1   : > { %v6692_v34 = vpop.eup %6691  ;;  %v4479_v49 = vsel %vm4477_vm5, %v4478_v57, %v4476_v4  ;;  %v4373_v36 = vmul.f32 %v9495_v16, %v9465_v24  ;;  %6292 = vmatpush3.xpose.msk.msra.mxu1 %vm4780_vm1, %v4773_v41  ;;  %v4772_v24 = vld [vmem:[%s10118_s2 + $0x18] sm:$0xff]  ;;  %v5740_v16 = vld [vmem:[%s10119_s3 + $0x2] ss:$0 sm:$0xff] }
 0x7a2   : > { %6697 = vrcp.f32 %v4502_v23  ;;  %v4501_v40 = vadd.f32 1e-06, %v4479_v49  ;;  %v4524_v7 = vmul.f32 %v6692_v34, %v4369_v3  ;;  %v9659_v11 = vadd.f32 %v9515_v20, %v4526_v44  ;;  %6293 = vmatprep.subr.msk.mxu1 %vm4780_vm1, %v4772_v24 }
 0x7a4   : > { %6699 = vrcp.f32 %v4501_v40  ;;  %v9656_v52 = vadd.f32 %v9515_v20, %v4524_v7 }
 0x7a5   : > { %6294 = vmatpush3.xpose.msk.msra.mxu1 %vm4780_vm1, %v4772_v24 }
 0x7a6   : > { %6278 = vmatprep.mubr.msk.f32.mxu0 %vm441_vm0, %v9656_v52 }
 0x7a7   : > { %v6694_v50 = vpop.eup %6693  ;;  %6279 = vmatmul.mubr.msk.f32.gmra.mxu0 %vm441_vm0, %v9659_v11 }
 0x7a8   : > { %v4530_v54 = vmul.f32 %v6694_v50, %v4372_v31 }
 0x7a9   : > { %v6696_v48 = vpop.eup %6695 }
 0x7aa   : > { %v4528_v56 = vmul.f32 %v6696_v48, %v4371_v25  ;;  %v9673_v61 = vadd.f32 %v9515_v20, %v4530_v54 }
 0x7ac   : > { %v9670_v55 = vadd.f32 %v9515_v20, %v4528_v56 }
 0x7ae   : > { %6281 = vmatprep.mubr.msk.f32.mxu0 %vm441_vm0, %v9670_v55 }
 0x7af   : > { %v6698_v26 = vpop.eup %6697  ;;  %6282 = vmatmul.mubr.msk.f32.gmra.mxu0 %vm441_vm0, %v9673_v61 }
 0x7b0   : > { %v4534_v59 = vmul.f32 %v6698_v26, %v4374_v14 }
 0x7b1   : > { %v6700_v12 = vpop.eup %6699 }
 0x7b2   : > { %v4532_v53 = vmul.f32 %v6700_v12, %v4373_v36  ;;  %v9687_v51 = vadd.f32 %v9515_v20, %v4534_v59 }
 0x7b4   : > { %v9684_v18 = vadd.f32 %v9515_v20, %v4532_v53 }
 0x7b6   : > { %6284 = vmatprep.mubr.msk.f32.mxu0 %vm441_vm0, %v9684_v18 }
 0x7b7   : > { %6285 = vmatmul.mubr.msk.f32.gmra.mxu0 %vm441_vm0, %v9687_v51 }
 0x840   : > { %v6265_v20 = vpop.f32.mrf.mxu0 }
 0x841   : > { %v4683_v21 = vadd.f32 %v6265_v20, %v5740_v16 }
 0x842   : > { %v4677_v15 = vpop.f32.mrf.mxu0 }
 0x843   : > { %v4678_v47 = vadd.f32 %v5740_v16, %v4677_v15  ;;  %v4757_v9 = vmax.f32 %v4683_v21, 0.0 }
 0x845   : > { %v4756_v17 = vmax.f32 %v4678_v47, 0.0 }
 0x847   : > { %6295 = vmatprep.mubr.msk.f32.mxu1 %vm4780_vm1, %v4756_v17 }
 0x848   : > { %6296 = vmatmul.mubr.msk.f32.vlgmr.msra.gmra.mxu1 %vm4780_vm1, %v4757_v9 }
 0x84a   : > { %v6268_v42 = vpop.f32.mrf.mxu0 }
 0x84b   : > { %v4693_v58 = vadd.f32 %v6268_v42, %v5740_v16 }
 0x84c   : > { %v4687_v6 = vpop.f32.mrf.mxu0 }
 0x84d   : > { %v4688_v8 = vadd.f32 %v5740_v16, %v4687_v6  ;;  %v4759_v22 = vmax.f32 %v4693_v58, 0.0 }
 0x84f   : > { %v6271_v27 = vpop.f32.mrf.mxu0  ;;  %v4758_v29 = vmax.f32 %v4688_v8, 0.0 }
 0x850   : > { %v4703_v2 = vadd.f32 %v6271_v27, %v5740_v16 }
 0x851   : > { %v4697_v10 = vpop.f32.mrf.mxu0  ;;  %6298 = vmatprep.mubr.msk.f32.mxu1 %vm4780_vm1, %v4758_v29 }
 0x852   : > { %v4698_v35 = vadd.f32 %v5740_v16, %v4697_v10  ;;  %6299 = vmatmul.mubr.msk.f32.gmra.mxu1 %vm4780_vm1, %v4759_v22  ;;  %v4761_v32 = vmax.f32 %v4703_v2, 0.0  ;;  %v5757_v10 = vld [vmem:[%s10119_s3 + $0x3] ss:$0 sm:$0xff] }
 0x854   : > { %v4760_v37 = vmax.f32 %v4698_v35, 0.0 }
 0x856   : > { %6301 = vmatprep.mubr.msk.f32.mxu1 %vm4780_vm1, %v4760_v37 }
 0x857   : > { %v6274_v28 = vpop.f32.mrf.mxu0  ;;  %6302 = vmatmul.mubr.msk.f32.gmra.mxu1 %vm4780_vm1, %v4761_v32 }
 0x858   : > { %v4713_v46 = vadd.f32 %v6274_v28, %v5740_v16 }
 0x859   : > { %v4707_v45 = vpop.f32.mrf.mxu0 }
 0x85a   : > { %v4708_v0 = vadd.f32 %v5740_v16, %v4707_v45  ;;  %v4763_v1 = vmax.f32 %v4713_v46, 0.0 }
 0x85c   : > { %v4762_v43 = vmax.f32 %v4708_v0, 0.0 }
 0x85e   : > { %6304 = vmatprep.mubr.msk.f32.mxu1 %vm4780_vm1, %v4762_v43 }
 0x85f   : > { %6305 = vmatmul.mubr.msk.f32.gmra.mxu1 %vm4780_vm1, %v4763_v1 }
 0x860   : > { %v6277_v23 = vpop.f32.mrf.mxu0 }
 0x861   : > { %v4723_v57 = vadd.f32 %v6277_v23, %v5740_v16 }
 0x862   : > { %v4717_v3 = vpop.f32.mrf.mxu0 }
 0x863   : > { %v4718_v4 = vadd.f32 %v5740_v16, %v4717_v3  ;;  %v4765_v49 = vmax.f32 %v4723_v57, 0.0 }
 0x865   : > { %v4764_v34 = vmax.f32 %v4718_v4, 0.0 }
 0x867   : > { %6307 = vmatprep.mubr.msk.f32.mxu1 %vm4780_vm1, %v4764_v34  ;;  %v6280_v44 = vpop.f32.mrf.mxu0 }
 0x868   : > { %6308 = vmatmul.mubr.msk.f32.gmra.mxu1 %vm4780_vm1, %v4765_v49  ;;  %v4733_v40 = vadd.f32 %v6280_v44, %v5740_v16 }
 0x869   : > { %v4727_v7 = vpop.f32.mrf.mxu0 }
 0x86a   : > { %v4728_v50 = vadd.f32 %v5740_v16, %v4727_v7  ;;  %v4767_v25 = vmax.f32 %v4733_v40, 0.0 }
 0x86c   : > { %v4766_v31 = vmax.f32 %v4728_v50, 0.0 }
 0x86e   : > { %6310 = vmatprep.mubr.msk.f32.mxu1 %vm4780_vm1, %v4766_v31 }
 0x86f   : > { %v6283_v48 = vpop.f32.mrf.mxu0  ;;  %6311 = vmatmul.mubr.msk.f32.gmra.mxu1 %vm4780_vm1, %v4767_v25 }
 0x870   : > { %v4743_v54 = vadd.f32 %v6283_v48, %v5740_v16 }
 0x871   : > { %v4737_v56 = vpop.f32.mrf.mxu0 }
 0x872   : > { %v4738_v26 = vadd.f32 %v5740_v16, %v4737_v56  ;;  %v4769_v36 = vmax.f32 %v4743_v54, 0.0 }
 0x874   : > { %v4768_v14 = vmax.f32 %v4738_v26, 0.0 }
 0x876   : > { %6313 = vmatprep.mubr.msk.f32.mxu1 %vm4780_vm1, %v4768_v14 }
 0x877   : > { %v6286_v12 = vpop.f32.mrf.mxu0  ;;  %6314 = vmatmul.mubr.msk.f32.gmra.mxu1 %vm4780_vm1, %v4769_v36 }
 0x878   : > { %v4753_v59 = vadd.f32 %v6286_v12, %v5740_v16 }
 0x879   : > { %v4747_v53 = vpop.f32.mrf.mxu0 }
 0x87a   : > { %v4748_v41 = vadd.f32 %v5740_v16, %v4747_v53  ;;  %v4771_v20 = vmax.f32 %v4753_v59, 0.0 }
 0x87c   : > { %v4770_v24 = vmax.f32 %v4748_v41, 0.0 }
 0x87e   : > { %6316 = vmatprep.mubr.msk.f32.mxu1 %vm4780_vm1, %v4770_v24 }
 0x87f   : > { %6317 = vmatmul.mubr.msk.f32.gmra.mxu1 %vm4780_vm1, %v4771_v20 }
 0x908   : > { %v9722_v21 = vpop.f32.mrf.mxu1 }
 0x909   : > { %v4913_v59 = vadd.f32 %v9722_v21, %v5757_v10 }
 0x90a   : > { %v9724_v15 = vpop.f32.mrf.mxu1 }
 0x90b   : > { %v4908_v41 = vadd.f32 %v5757_v10, %v9724_v15  ;;  %v9798_v20 = vadd.f32 %v4913_v59, %v9529_v62 }
 0x90d   : > { %v9803_v21 = vadd.f32 %v4908_v41, %v9523_v30 }
 0x912   : > { %v6300_v47 = vpop.f32.mrf.mxu1 }
 0x913   : > { %v4923_v26 = vadd.f32 %v6300_v47, %v5757_v10  ;;  %v5002_v47 = vsel %vm441_vm0, %v9803_v21, 0.0 }
 0x914   : > { %v4917_v17 = vpop.f32.mrf.mxu1 }
 0x915   : > { %v4918_v36 = vadd.f32 %v5757_v10, %v4917_v17  ;;  %v9787_v53 = vadd.f32 %v4923_v26, %v9573_v13 }
 0x917   : > { %v6303_v9 = vpop.f32.mrf.mxu1  ;;  %v9793_v24 = vadd.f32 %v4918_v36, %v9549_v63  ;;  %v5011_v13 = vsel %vm441_vm0, %v9787_v53, 0.0  ;;  %v5005_v63 = vsel %vm441_vm0, %v9798_v20, 0.0 }
 0x918   : > { %v4933_v25 = vadd.f32 %v6303_v9, %v5757_v10 }
 0x919   : > { %v4927_v42 = vpop.f32.mrf.mxu1  ;;  %v5008_v15 = vsel %vm441_vm0, %v9793_v24, 0.0 }
 0x91a   : > { %v4928_v54 = vadd.f32 %v5757_v10, %v4927_v42  ;;  %v9776_v14 = vadd.f32 %v4933_v25, %v9586_v39 }
 0x91c   : > { %v9781_v12 = vadd.f32 %v4928_v54, %v9583_v38  ;;  %v5017_v39 = vsel %vm441_vm0, %v9776_v14, 0.0 }
 0x91e   : > { %v5014_v38 = vsel %vm441_vm0, %v9781_v12, 0.0 }
 0x91f   : > { %v6306_v58 = vpop.f32.mrf.mxu1 }
 0x920   : > { %v4943_v40 = vadd.f32 %v6306_v58, %v5757_v10 }
 0x921   : > { %v4937_v6 = vpop.f32.mrf.mxu1 }
 0x922   : > { %v4938_v50 = vadd.f32 %v5757_v10, %v4937_v6  ;;  %v9766_v48 = vadd.f32 %v4943_v40, %v9616_v33 }
 0x924   : > { %v9771_v56 = vadd.f32 %v4938_v50, %v9611_v60  ;;  %v5023_v33 = vsel %vm441_vm0, %v9766_v48, 0.0 }
 0x926   : > { %v5020_v60 = vsel %vm441_vm0, %v9771_v56, 0.0 }
 0x928   : > { %v6309_v8 = vpop.f32.mrf.mxu1 }
 0x929   : > { %v4953_v34 = vadd.f32 %v6309_v8, %v5757_v10 }
 0x92a   : > { %v4947_v27 = vpop.f32.mrf.mxu1 }
 0x92b   : > { %v9756_v7 = vadd.f32 %v4953_v34, %v9640_v5 }
 0x92d   : > { %v5029_v5 = vsel %vm441_vm0, %v9756_v7, 0.0 }
 0x92f   : > { %v6312_v29 = vpop.f32.mrf.mxu1 }
 0x930   : > { %v4963_v43 = vadd.f32 %v6312_v29, %v5757_v10 }
 0x931   : > { %v4957_v16 = vpop.f32.mrf.mxu1 }
 0x932   : > { %v4958_v3 = vadd.f32 %v5757_v10, %v4957_v16  ;;  %v9746_v49 = vadd.f32 %v4963_v43, %v9659_v11 }
 0x934   : > { %v9751_v44 = vadd.f32 %v4958_v3, %v9656_v52  ;;  %v5035_v11 = vsel %vm441_vm0, %v9746_v49, 0.0 }
 0x936   : > { %v5032_v52 = vsel %vm441_vm0, %v9751_v44, 0.0 }
 0x937   : > { %v6315_v22 = vpop.f32.mrf.mxu1 }
 0x938   : > { %v4973_v37 = vadd.f32 %v6315_v22, %v5757_v10 }
 0x939   : > { %v4967_v2 = vpop.f32.mrf.mxu1 }
 0x93a   : > { %v4968_v46 = vadd.f32 %v5757_v10, %v4967_v2  ;;  %v9733_v1 = vadd.f32 %v4973_v37, %v9673_v61 }
 0x93c   : > { %v9741_v4 = vadd.f32 %v4968_v46, %v9670_v55  ;;  %v5041_v61 = vsel %vm441_vm0, %v9733_v1, 0.0 }
 0x93e   : > { %v5038_v55 = vsel %vm441_vm0, %v9741_v4, 0.0 }
 0x93f   : > { %v6318_v35 = vpop.f32.mrf.mxu1 }
 0x940   : > { %v4983_v32 = vadd.f32 %v6318_v35, %v5757_v10 }
 0x941   : > { %v4977_v28 = vpop.f32.mrf.mxu1 }
 0x942   : > { %v9730_v45 = vadd.f32 %v4983_v32, %v9687_v51  ;;  %v4978_v0 = vadd.f32 %v5757_v10, %v4977_v28 }
 0x944   : > { %v9736_v23 = vadd.f32 %v4978_v0, %v9684_v18  ;;  %v5047_v57 = vsel %vm441_vm0, %v9730_v45, 0.0  ;;  %v4948_v18 = vadd.f32 %v5757_v10, %v4947_v27 }
 0x945   : > { %5048 = vadd.xlane.f32.xlu1 %v5047_v57 }
 0x946   : > { %v5044_v51 = vsel %vm441_vm0, %v9736_v23, 0.0  ;;  %v9761_v31 = vadd.f32 %v4948_v18, %v9635_v19 }
 0x947   : > { %5045 = vadd.xlane.f32.xlu0 %v5044_v51 }
 0x948   : > { %v5026_v19 = vsel %vm441_vm0, %v9761_v31, 0.0 }
 0x949   : > { %5042 = vadd.xlane.f32.xlu1 %v5041_v61 }
 0x94b   : > { %5039 = vadd.xlane.f32.xlu0 %v5038_v55 }
 0x94d   : > { %5036 = vadd.xlane.f32.xlu1 %v5035_v11 }
 0x94f   : > { %5033 = vadd.xlane.f32.xlu0 %v5032_v52 }
 0x951   : > { %5030 = vadd.xlane.f32.xlu1 %v5029_v5 }
 0x953   : > { %5027 = vadd.xlane.f32.xlu0 %v5026_v19 }
 0x955   : > { %5024 = vadd.xlane.f32.xlu1 %v5023_v33 }
 0x957   : > { %5021 = vadd.xlane.f32.xlu0 %v5020_v60 }
 0x959   : > { %5018 = vadd.xlane.f32.xlu1 %v5017_v39 }
 0x95b   : > { %5015 = vadd.xlane.f32.xlu0 %v5014_v38 }
 0x95d   : > { %5012 = vadd.xlane.f32.xlu1 %v5011_v13 }
 0x95f   : > { %5009 = vadd.xlane.f32.xlu0 %v5008_v15 }
 0x961   : > { %5006 = vadd.xlane.f32.xlu1 %v5005_v63 }
 0x963   : > { %5003 = vadd.xlane.f32.xlu0 %v5002_v47 }
 0x9ce   : > { %v5049_v62 = vpop.xlane.xlu1 %5048 }
 0x9cf   : > { %v5065_v17 = vmul.f32 0.03125, %v5049_v62 }
 0x9d0   : > { %v5046_v9 = vpop.xlane.xlu0 %5045 }
 0x9d1   : > { %v9812_v42 = vsub.f32 %v9730_v45, %v5065_v17  ;;  %v5064_v30 = vmul.f32 0.03125, %v5046_v9 }
 0x9d2   : > { %v5043_v58 = vpop.xlane.xlu1 %5042 }
 0x9d3   : > { %v9815_v6 = vsub.f32 %v9736_v23, %v5064_v30  ;;  %v5063_v8 = vmul.f32 0.03125, %v5043_v58  ;;  %v5097_v27 = vmul.f32 %v9812_v42, %v9812_v42 }
 0x9d4   : > { %v5040_v29 = vpop.xlane.xlu0 %5039 }
 0x9d5   : > { %v9820_v16 = vsub.f32 %v9733_v1, %v5063_v8  ;;  %v5062_v22 = vmul.f32 0.03125, %v5040_v29  ;;  %v5143_v2 = vsel %vm441_vm0, %v5097_v27, 0.0  ;;  %v5096_v35 = vmul.f32 %v9815_v6, %v9815_v6 }
 0x9d6   : > { %5144 = vadd.xlane.f32.xlu1 %v5143_v2  ;;  %v5037_v10 = vpop.xlane.xlu1 %5036 }
 0x9d7   : > { %v9826_v37 = vsub.f32 %v9741_v4, %v5062_v22  ;;  %v5061_v32 = vmul.f32 0.03125, %v5037_v10  ;;  %v5095_v28 = vmul.f32 %v9820_v16, %v9820_v16  ;;  %v5140_v46 = vsel %vm441_vm0, %v5096_v35, 0.0 }
 0x9d8   : > { %v5034_v45 = vpop.xlane.xlu0 %5033  ;;  %5141 = vadd.xlane.f32.xlu0 %v5140_v46 }
 0x9d9   : > { %v9832_v0 = vsub.f32 %v9746_v49, %v5061_v32  ;;  %v5060_v43 = vmul.f32 0.03125, %v5034_v45  ;;  %v5137_v1 = vsel %vm441_vm0, %v5095_v28, 0.0  ;;  %v5094_v57 = vmul.f32 %v9826_v37, %v9826_v37 }
 0x9da   : > { %5138 = vadd.xlane.f32.xlu1 %v5137_v1  ;;  %v5031_v23 = vpop.xlane.xlu1 %5030 }
 0x9db   : > { %v9838_v3 = vsub.f32 %v9751_v44, %v5060_v43  ;;  %v5059_v4 = vmul.f32 0.03125, %v5031_v23  ;;  %v5093_v51 = vmul.f32 %v9832_v0, %v9832_v0  ;;  %v5134_v34 = vsel %vm441_vm0, %v5094_v57, 0.0 }
 0x9dc   : > { %v5028_v49 = vpop.xlane.xlu0 %5027  ;;  %5135 = vadd.xlane.f32.xlu0 %v5134_v34 }
 0x9dd   : > { %v9844_v61 = vsub.f32 %v9756_v7, %v5059_v4  ;;  %v5058_v18 = vmul.f32 0.03125, %v5028_v49  ;;  %v5131_v55 = vsel %vm441_vm0, %v5093_v51, 0.0  ;;  %v5092_v44 = vmul.f32 %v9838_v3, %v9838_v3 }
 0x9de   : > { %5132 = vadd.xlane.f32.xlu1 %v5131_v55  ;;  %v5025_v40 = vpop.xlane.xlu1 %5024 }
 0x9df   : > { %v9850_v11 = vsub.f32 %v9761_v31, %v5058_v18  ;;  %v5057_v50 = vmul.f32 0.03125, %v5025_v40  ;;  %v5091_v52 = vmul.f32 %v9844_v61, %v9844_v61  ;;  %v5128_v25 = vsel %vm441_vm0, %v5092_v44, 0.0 }
 0x9e0   : > { %v5022_v7 = vpop.xlane.xlu0 %5021  ;;  %5129 = vadd.xlane.f32.xlu0 %v5128_v25 }
 0x9e1   : > { %v9856_v5 = vsub.f32 %v9766_v48, %v5057_v50  ;;  %v5056_v54 = vmul.f32 0.03125, %v5022_v7  ;;  %v5125_v19 = vsel %vm441_vm0, %v5091_v52, 0.0  ;;  %v5090_v31 = vmul.f32 %v9850_v11, %v9850_v11 }
 0x9e2   : > { %5126 = vadd.xlane.f32.xlu1 %v5125_v19  ;;  %v5019_v26 = vpop.xlane.xlu1 %5018 }
 0x9e3   : > { %v9862_v33 = vsub.f32 %v9771_v56, %v5056_v54  ;;  %v5055_v36 = vmul.f32 0.03125, %v5019_v26  ;;  %v5089_v60 = vmul.f32 %v9856_v5, %v9856_v5  ;;  %v5122_v59 = vsel %vm441_vm0, %v5090_v31, 0.0 }
 0x9e4   : > { %v5016_v48 = vpop.xlane.xlu0 %5015  ;;  %5123 = vadd.xlane.f32.xlu0 %v5122_v59 }
 0x9e5   : > { %v9868_v39 = vsub.f32 %v9776_v14, %v5055_v36  ;;  %v5054_v41 = vmul.f32 0.03125, %v5016_v48  ;;  %v5119_v38 = vsel %vm441_vm0, %v5089_v60, 0.0  ;;  %v5088_v56 = vmul.f32 %v9862_v33, %v9862_v33 }
 0x9e6   : > { %5120 = vadd.xlane.f32.xlu1 %v5119_v38  ;;  %v5013_v13 = vpop.xlane.xlu1 %5012 }
 0x9e7   : > { %v9874_v15 = vsub.f32 %v9781_v12, %v5054_v41  ;;  %v5053_v63 = vmul.f32 0.03125, %v5013_v13  ;;  %v5087_v47 = vmul.f32 %v9868_v39, %v9868_v39  ;;  %v5116_v62 = vsel %vm441_vm0, %v5088_v56, 0.0 }
 0x9e8   : > { %v5010_v14 = vpop.xlane.xlu0 %5009  ;;  %5117 = vadd.xlane.f32.xlu0 %v5116_v62 }
 0x9e9   : > { %v9880_v17 = vsub.f32 %v9787_v53, %v5053_v63  ;;  %v5052_v9 = vmul.f32 0.03125, %v5010_v14  ;;  %v5113_v30 = vsel %vm441_vm0, %v5087_v47, 0.0  ;;  %v5086_v12 = vmul.f32 %v9874_v15, %v9874_v15 }
 0x9ea   : > { %5114 = vadd.xlane.f32.xlu1 %v5113_v30  ;;  %v5007_v58 = vpop.xlane.xlu1 %5006 }
 0x9eb   : > { %v9886_v8 = vsub.f32 %v9793_v24, %v5052_v9  ;;  %v5051_v27 = vmul.f32 0.03125, %v5007_v58  ;;  %v5085_v29 = vmul.f32 %v9880_v17, %v9880_v17  ;;  %v5110_v22 = vsel %vm441_vm0, %v5086_v12, 0.0 }
 0x9ec   : > { %v5004_v53 = vpop.xlane.xlu0 %5003  ;;  %5111 = vadd.xlane.f32.xlu0 %v5110_v22 }
 0x9ed   : > { %v9892_v2 = vsub.f32 %v9798_v20, %v5051_v27  ;;  %v5050_v10 = vmul.f32 0.03125, %v5004_v53  ;;  %v5107_v35 = vsel %vm441_vm0, %v5085_v29, 0.0  ;;  %v5084_v32 = vmul.f32 %v9886_v8, %v9886_v8 }
 0x9ee   : > { %5108 = vadd.xlane.f32.xlu1 %v5107_v35 }
 0x9ef   : > { %v9898_v24 = vsub.f32 %v9803_v21, %v5050_v10  ;;  %v5083_v28 = vmul.f32 %v9892_v2, %v9892_v2  ;;  %v5104_v46 = vsel %vm441_vm0, %v5084_v32, 0.0  ;;  %v5362_v21 = vld [vmem:[%s10123_s7] sm:$0xff] }
 0x9f0   : > { %5105 = vadd.xlane.f32.xlu0 %v5104_v46  ;;  %6351 = vmatprep.mubr.msk.f32.mxu0 %vm441_vm0, %v5362_v21 }
 0x9f1   : > { %v5101_v20 = vsel %vm441_vm0, %v5083_v28, 0.0  ;;  %v5082_v45 = vmul.f32 %v9898_v24, %v9898_v24 }
 0x9f2   : > { %5102 = vadd.xlane.f32.xlu1 %v5101_v20 }
 0x9f3   : > { %v5098_v43 = vsel %vm441_vm0, %v5082_v45, 0.0 }
 0x9f4   : > { %5099 = vadd.xlane.f32.xlu0 %v5098_v43 }
 0xa5f   : > { %v5145_v1 = vpop.xlane.xlu1 %5144 }
 0xa60   : > { %v5161_v23 = vmul.f32 0.032258064, %v5145_v1 }
 0xa61   : > { %v5142_v57 = vpop.xlane.xlu0 %5141 }
 0xa62   : > { %6701 = vrsqrt.f32 %v5161_v23  ;;  %v5160_v4 = vmul.f32 0.032258064, %v5142_v57  ;;  %vm5289_vm1 = vcmp.eq.f32.partialorder %v5161_v23, inf  ;;  %v5292_v36 = vand.u32 2147483648, %v5161_v23 }
 0xa63   : > { %v5139_v51 = vpop.xlane.xlu1 %5138  ;;  %vm5291_vm6 = vcmp.eq.f32.partialorder %v5161_v23, 0.0 }
 0xa64   : > { %v5159_v34 = vmul.f32 0.032258064, %v5139_v51  ;;  %6703 = vrsqrt.f32 %v5160_v4  ;;  %vm5282_vm7 = vcmp.eq.f32.partialorder %v5160_v4, inf  ;;  %vm5284_vm8 = vcmp.eq.f32.partialorder %v5160_v4, 0.0 }
 0xa65   : > { %v5136_v49 = vpop.xlane.xlu0 %5135  ;;  %v5285_v47 = vand.u32 2147483648, %v5160_v4 }
 0xa66   : > { %6705 = vrsqrt.f32 %v5159_v34  ;;  %v5158_v18 = vmul.f32 0.032258064, %v5136_v49  ;;  %vm5275_vm9 = vcmp.eq.f32.partialorder %v5159_v34, inf  ;;  %vm5277_vm10 = vcmp.eq.f32.partialorder %v5159_v34, 0.0 }
 0xa67   : > { %v5133_v55 = vpop.xlane.xlu1 %5132  ;;  %v5278_v9 = vand.u32 2147483648, %v5159_v34 }
 0xa68   : > { %v9911_v40 = vmul.f32 0.032258064, %v5133_v55  ;;  %6707 = vrsqrt.f32 %v5158_v18  ;;  %vm5268_vm11 = vcmp.eq.f32.partialorder %v5158_v18, inf  ;;  %v5271_v28 = vand.u32 2147483648, %v5158_v18 }
 0xa69   : > { %v5130_v44 = vpop.xlane.xlu0 %5129  ;;  %vm5270_vm12 = vcmp.eq.f32.partialorder %v5158_v18, 0.0 }
 0xa6a   : > { %6709 = vrsqrt.f32 %v9911_v40  ;;  %v9914_v50 = vmul.f32 0.032258064, %v5130_v44  ;;  %vm5261_vm13 = vcmp.eq.f32.partialorder %v9911_v40, inf  ;;  %v5264_v57 = vand.u32 2147483648, %v9911_v40 }
 0xa6b   : > { %v5127_v52 = vpop.xlane.xlu1 %5126  ;;  %vm5263_vm14 = vcmp.eq.f32.partialorder %v9911_v40, 0.0 }
 0xa6c   : > { %v9916_v25 = vmul.f32 0.032258064, %v5127_v52  ;;  %6711 = vrsqrt.f32 %v9914_v50  ;;  %vm5254_vm15 = vcmp.eq.f32.partialorder %v9914_v50, inf  ;;  %vm5256_vm2 = vcmp.eq.f32.partialorder %v9914_v50, 0.0 }
 0xa6d   : > { %v5124_v7 = vpop.xlane.xlu0 %5123 }
 0xa6e   : > { %6713 = vrsqrt.f32 %v9916_v25  ;;  %v9920_v19 = vmul.f32 0.032258064, %v5124_v7  ;;  %v5257_v7 = vand.u32 2147483648, %v9914_v50  ;;  %vm5247_vm3 = vcmp.eq.f32.partialorder %v9916_v25, inf }
 0xa6f   : > { %v6702_v54 = vpop.eup %6701  ;;  %v5121_v26 = vpop.xlane.xlu1 %5120  ;;  %vm5249_vm4 = vcmp.eq.f32.partialorder %v9916_v25, 0.0 }
 0xa70   : > { %v5288_v31 = vmul.f32 %v6702_v54, %v5161_v23  ;;  %6715 = vrsqrt.f32 %v9920_v19  ;;  %v9923_v48 = vmul.f32 0.032258064, %v5121_v26  ;;  %vm5240_vm5 = vcmp.eq.f32.partialorder %v9920_v19, inf }
 0xa71   : > { %v6704_v60 = vpop.eup %6703  ;;  %v5118_v56 = vpop.xlane.xlu0 %5117 }
 0xa72   : > { %v5290_v59 = vsel %vm5289_vm1, %v5161_v23, %v5288_v31  ;;  %v5281_v13 = vmul.f32 %v6704_v60, %v5160_v4  ;;  %6717 = vrsqrt.f32 %v9923_v48  ;;  %v9926_v27 = vmul.f32 0.032258064, %v5118_v56  ;;  %v9949_v31 = vld [vmem:[%s10119_s3 + $0x6] ss:$0 sm:$0xff] }
 0xa73   : > { %v6706_v41 = vpop.eup %6705  ;;  %v5293_v38 = vsel %vm5291_vm6, %v5292_v36, %v5290_v59  ;;  %v5115_v35 = vpop.xlane.xlu1 %5114  ;;  %vm5242_vm1 = vcmp.eq.f32.partialorder %v9920_v19, 0.0  ;;  %vm5233_vm6 = vcmp.eq.f32.partialorder %v9923_v48, inf }
 0xa74   : > { %v5309_v63 = vadd.f32 1e-06, %v5293_v38  ;;  %v5274_v62 = vmul.f32 %v6706_v41, %v5159_v34  ;;  %v5283_v14 = vsel %vm5282_vm7, %v5160_v4, %v5281_v13  ;;  %v9932_v1 = vmul.f32 0.032258064, %v5115_v35 }
 0xa75   : > { %v6708_v30 = vpop.eup %6707  ;;  %v5286_v58 = vsel %vm5284_vm8, %v5285_v47, %v5283_v14  ;;  %v5112_v51 = vpop.xlane.xlu0 %5111  ;;  %v5250_v38 = vand.u32 2147483648, %v9916_v25  ;;  %vm5235_vm7 = vcmp.eq.f32.partialorder %v9923_v48, 0.0  ;;  %vm5226_vm8 = vcmp.eq.f32.partialorder %v9926_v27, inf }
 0xa76   : > { %v5276_v12 = vsel %vm5275_vm9, %v5159_v34, %v5274_v62  ;;  %v5308_v22 = vadd.f32 1e-06, %v5286_v58  ;;  %v5267_v10 = vmul.f32 %v6708_v30, %v5158_v18  ;;  %6719 = vrcp.f32 %v5309_v63 }
 0xa77   : > { %v6710_v29 = vpop.eup %6709  ;;  %v5279_v53 = vsel %vm5277_vm10, %v5278_v9, %v5276_v12  ;;  %v9941_v44 = vmul.f32 0.032258064, %v5112_v51  ;;  %v5109_v54 = vpop.xlane.xlu1 %5108  ;;  %v5181_v63 = vmul.f32 %v9949_v31, %v9812_v42  ;;  %v5179_v42 = vmul.f32 %v9949_v31, %v9820_v16 }
 0xa78   : > { %v5307_v32 = vadd.f32 1e-06, %v5279_v53  ;;  %v5260_v46 = vmul.f32 %v6710_v29, %v9911_v40  ;;  %6721 = vrcp.f32 %v5308_v22  ;;  %v5269_v20 = vsel %vm5268_vm11, %v5158_v18, %v5267_v10  ;;  %v9974_v22 = vld [vmem:[%s10119_s3 + $0x7] ss:$0 sm:$0xff] }
 0xa79   : > { %v6712_v45 = vpop.eup %6711  ;;  %v5272_v43 = vsel %vm5270_vm12, %v5271_v28, %v5269_v20  ;;  %6723 = vrsqrt.f32 %v9926_v27  ;;  %v9954_v59 = vmul.f32 0.032258064, %v5109_v54  ;;  %v5243_v29 = vand.u32 2147483648, %v9920_v19 }
 0xa7a   : > { %v5262_v21 = vsel %vm5261_vm13, %v9911_v40, %v5260_v46  ;;  %v5253_v4 = vmul.f32 %v6712_v45, %v9914_v50  ;;  %6725 = vrcp.f32 %v5307_v32  ;;  %v5306_v34 = vadd.f32 1e-06, %v5272_v43 }
 0xa7b   : > { %v6714_v23 = vpop.eup %6713  ;;  %v5265_v49 = vsel %vm5263_vm14, %v5264_v57, %v5262_v21  ;;  %6727 = vrsqrt.f32 %v9932_v1  ;;  %v5103_v58 = vpop.xlane.xlu1 %5102  ;;  %v5236_v43 = vand.u32 2147483648, %v9923_v48  ;;  %v5178_v51 = vmul.f32 %v9949_v31, %v9826_v37 }
 0xa7c   : > { %v5255_v18 = vsel %vm5254_vm15, %v9914_v50, %v5253_v4  ;;  %v5246_v55 = vmul.f32 %v6714_v23, %v9916_v25  ;;  %6729 = vrcp.f32 %v5306_v34  ;;  %v5305_v26 = vadd.f32 1e-06, %v5265_v49  ;;  %v5106_v50 = vpop.xlane.xlu0 %5105 }
 0xa7d   : > { %v6716_v52 = vpop.eup %6715  ;;  %v5258_v40 = vsel %vm5256_vm2, %v5257_v7, %v5255_v18  ;;  %6731 = vrsqrt.f32 %v9941_v44  ;;  %v9964_v30 = vmul.f32 0.032258064, %v5106_v50  ;;  %vm5228_vm9 = vcmp.eq.f32.partialorder %v9926_v27, 0.0 }
 0xa7e   : > { %v5248_v36 = vsel %vm5247_vm3, %v9916_v25, %v5246_v55  ;;  %v5239_v60 = vmul.f32 %v6716_v52, %v9920_v19  ;;  %6733 = vrcp.f32 %v5305_v26  ;;  %v5304_v13 = vadd.f32 1e-06, %v5258_v40 }
 0xa7f   : > { %v6718_v41 = vpop.eup %6717  ;;  %v5251_v47 = vsel %vm5249_vm4, %v5250_v38, %v5248_v36  ;;  %6735 = vrsqrt.f32 %v9954_v59  ;;  %v5180_v25 = vmul.f32 %v9949_v31, %v9815_v6  ;;  %v9978_v6 = vmul.f32 0.032258064, %v5103_v58 }
 0xa80   : > { %v5241_v14 = vsel %vm5240_vm5, %v9920_v19, %v5239_v60  ;;  %v5232_v9 = vmul.f32 %v6718_v41, %v9923_v48  ;;  %6737 = vrcp.f32 %v5304_v13  ;;  %v5303_v53 = vadd.f32 1e-06, %v5251_v47  ;;  %v5100_v19 = vpop.xlane.xlu0 %5099 }
 0xa81   : > { %v5244_v32 = vsel %vm5242_vm1, %v5243_v29, %v5241_v14  ;;  %6739 = vrsqrt.f32 %v9964_v30  ;;  %v9995_v55 = vmul.f32 0.032258064, %v5100_v19  ;;  %v5229_v37 = vand.u32 2147483648, %v9926_v27 }
 0xa82   : > { %v5234_v16 = vsel %vm5233_vm6, %v9923_v48, %v5232_v9  ;;  %6741 = vrcp.f32 %v5303_v53  ;;  %v5302_v23 = vadd.f32 1e-06, %v5244_v32  ;;  %vm5219_vm10 = vcmp.eq.f32.partialorder %v9932_v1, inf }
 0xa83   : > { %v6720_v56 = vpop.eup %6719  ;;  %v5237_v34 = vsel %vm5235_vm7, %v5236_v43, %v5234_v16  ;;  %6743 = vrsqrt.f32 %v9978_v6  ;;  %v5177_v36 = vmul.f32 %v9949_v31, %v9832_v0  ;;  %vm5221_vm11 = vcmp.eq.f32.partialorder %v9932_v1, 0.0 }
 0xa84   : > { %v5341_v10 = vmul.f32 %v6720_v56, %v5181_v63  ;;  %6745 = vrcp.f32 %v5302_v23  ;;  %v5301_v52 = vadd.f32 1e-06, %v5237_v34  ;;  %v5222_v38 = vand.u32 2147483648, %v9932_v1 }
 0xa85   : > { %v6722_v62 = vpop.eup %6721  ;;  %6747 = vrsqrt.f32 %v9995_v55  ;;  %vm5212_vm12 = vcmp.eq.f32.partialorder %v9941_v44, inf  ;;  %v5176_v47 = vmul.f32 %v9949_v31, %v9838_v3  ;;  %vm5214_vm13 = vcmp.eq.f32.partialorder %v9941_v44, 0.0 }
 0xa86   : > { %v6724_v12 = vpop.eup %6723  ;;  %v5339_v28 = vmul.f32 %v6722_v62, %v5180_v25  ;;  %v5361_v20 = vadd.f32 %v9974_v22, %v5341_v10  ;;  %6749 = vrcp.f32 %v5301_v52  ;;  %v5215_v9 = vand.u32 2147483648, %v9941_v44 }
 0xa87   : > { %v6726_v35 = vpop.eup %6725  ;;  %v5225_v46 = vmul.f32 %v6724_v12, %v9926_v27  ;;  %vm5205_vm14 = vcmp.eq.f32.partialorder %v9954_v59, inf  ;;  %v5175_v3 = vmul.f32 %v9949_v31, %v9844_v61  ;;  %vm5207_vm15 = vcmp.eq.f32.partialorder %v9954_v59, 0.0 }
 0xa88   : > { %v6728_v45 = vpop.eup %6727  ;;  %v5360_v21 = vadd.f32 %v9974_v22, %v5339_v28  ;;  %6319 = vmatprep.subr.msk.mxu0 %vm441_vm0, %v5361_v20  ;;  %v5337_v57 = vmul.f32 %v6726_v35, %v5179_v42  ;;  %v5208_v35 = vand.u32 2147483648, %v9954_v59  ;;  %vm5198_vm2 = vcmp.eq.f32.partialorder %v9964_v30, inf }
 0xa89   : > { %v6730_v4 = vpop.eup %6729  ;;  %6320 = vmatpush3.xpose.msk.msra.mxu0 %vm441_vm0, %v5361_v20  ;;  %v5227_v49 = vsel %vm5226_vm8, %v9926_v27, %v5225_v46  ;;  %v5218_v18 = vmul.f32 %v6728_v45, %v9932_v1  ;;  %v5174_v61 = vmul.f32 %v9949_v31, %v9850_v11  ;;  %vm5200_vm3 = vcmp.eq.f32.partialorder %v9964_v30, 0.0 }
 0xa8a   : > { %6321 = vmatprep.subr.msk.mxu0 %vm441_vm0, %v5360_v21  ;;  %v6732_v48 = vpop.eup %6731  ;;  %v5359_v7 = vadd.f32 %v9974_v22, %v5337_v57  ;;  %v5335_v54 = vmul.f32 %v6730_v4, %v5178_v51  ;;  %v5230_v40 = vsel %vm5228_vm9, %v5229_v37, %v5227_v49  ;;  %v5201_v19 = vand.u32 2147483648, %v9964_v30 }
 0xa8b   : > { %v6734_v26 = vpop.eup %6733  ;;  %v5220_v60 = vsel %vm5219_vm10, %v9932_v1, %v5218_v18  ;;  %v5211_v41 = vmul.f32 %v6732_v48, %v9941_v44  ;;  %v5300_v50 = vadd.f32 1e-06, %v5230_v40  ;;  %vm5191_vm4 = vcmp.eq.f32.partialorder %v9978_v6, inf }
 0xa8c   : > { %v6736_v27 = vpop.eup %6735  ;;  %v5358_v13 = vadd.f32 %v9974_v22, %v5335_v54  ;;  %v5333_v56 = vmul.f32 %v6734_v26, %v5177_v36  ;;  %v5223_v0 = vsel %vm5221_vm11, %v5222_v38, %v5220_v60  ;;  %v5173_v11 = vmul.f32 %v9949_v31, %v9856_v5 }
 0xa8d   : > { %6322 = vmatpush3.xpose.msk.msra.mxu0 %vm441_vm0, %v5360_v21  ;;  %v6738_v63 = vpop.eup %6737  ;;  %v5213_v62 = vsel %vm5212_vm12, %v9941_v44, %v5211_v41  ;;  %v5204_v14 = vmul.f32 %v6736_v27, %v9954_v59  ;;  %6751 = vrcp.f32 %v5300_v50  ;;  %v5299_v58 = vadd.f32 1e-06, %v5223_v0 }
 0xa8e   : > { %6323 = vmatprep.subr.msk.mxu0 %vm441_vm0, %v5359_v7  ;;  %v6740_v1 = vpop.eup %6739  ;;  %v5357_v12 = vadd.f32 %v9974_v22, %v5333_v56  ;;  %v5331_v25 = vmul.f32 %v6738_v63, %v5176_v47  ;;  %v5216_v29 = vsel %vm5214_vm13, %v5215_v9, %v5213_v62  ;;  %vm5193_vm5 = vcmp.eq.f32.partialorder %v9978_v6, 0.0 }
 0xa8f   : > { %v6742_v42 = vpop.eup %6741  ;;  %v5206_v53 = vsel %vm5205_vm14, %v9954_v59, %v5204_v14  ;;  %v5197_v10 = vmul.f32 %v6740_v1, %v9964_v30  ;;  %6753 = vrcp.f32 %v5299_v58  ;;  %v5298_v32 = vadd.f32 1e-06, %v5216_v29 }
 0xa90   : > { %v6744_v44 = vpop.eup %6743  ;;  %v5356_v28 = vadd.f32 %v9974_v22, %v5331_v25  ;;  %v5329_v16 = vmul.f32 %v6742_v42, %v5175_v3  ;;  %v5209_v20 = vsel %vm5207_vm15, %v5208_v35, %v5206_v53  ;;  %vm5184_vm1 = vcmp.eq.f32.partialorder %v9995_v55, inf }
 0xa91   : > { %6324 = vmatpush3.xpose.msk.msra.mxu0 %vm441_vm0, %v5359_v7  ;;  %v6746_v46 = vpop.eup %6745  ;;  %v5199_v45 = vsel %vm5198_vm2, %v9964_v30, %v5197_v10  ;;  %v5190_v43 = vmul.f32 %v6744_v44, %v9978_v6  ;;  %6755 = vrcp.f32 %v5298_v32  ;;  %v5297_v21 = vadd.f32 1e-06, %v5209_v20 }
 0xa92   : > { %6325 = vmatprep.subr.msk.mxu0 %vm441_vm0, %v5358_v13  ;;  %v6748_v59 = vpop.eup %6747  ;;  %v5355_v23 = vadd.f32 %v9974_v22, %v5329_v16  ;;  %v5327_v57 = vmul.f32 %v6746_v46, %v5174_v61  ;;  %v5202_v51 = vsel %vm5200_vm3, %v5201_v19, %v5199_v45  ;;  %v5194_v30 = vand.u32 2147483648, %v9978_v6 }
 0xa93   : > { %v6750_v4 = vpop.eup %6749  ;;  %v5192_v34 = vsel %vm5191_vm4, %v9978_v6, %v5190_v43  ;;  %v5183_v49 = vmul.f32 %v6748_v59, %v9995_v55  ;;  %6757 = vrcp.f32 %v5297_v21  ;;  %v5296_v18 = vadd.f32 1e-06, %v5202_v51 }
 0xa94   : > { %v5354_v48 = vadd.f32 %v9974_v22, %v5327_v57  ;;  %v5325_v37 = vmul.f32 %v6750_v4, %v5173_v11  ;;  %v5195_v7 = vsel %vm5193_vm5, %v5194_v30, %v5192_v34  ;;  %v5172_v5 = vmul.f32 %v9949_v31, %v9862_v33 }
 0xa95   : > { %6326 = vmatpush3.xpose.msk.msra.mxu0 %vm441_vm0, %v5358_v13  ;;  %v5185_v54 = vsel %vm5184_vm1, %v9995_v55, %v5183_v49  ;;  %vm5186_vm6 = vcmp.eq.f32.partialorder %v9995_v55, 0.0  ;;  %v5187_v6 = vand.u32 2147483648, %v9995_v55  ;;  %6759 = vrcp.f32 %v5296_v18 }
 0xa96   : > { %6327 = vmatprep.subr.msk.mxu0 %vm441_vm0, %v5357_v12  ;;  %v5295_v26 = vadd.f32 1e-06, %v5195_v7  ;;  %v5353_v40 = vadd.f32 %v9974_v22, %v5325_v37  ;;  %v5171_v33 = vmul.f32 %v9949_v31, %v9868_v39  ;;  %v5170_v13 = vmul.f32 %v9949_v31, %v9874_v15 }
 0xa97   : > { %v5188_v41 = vsel %vm5186_vm6, %v5187_v6, %v5185_v54  ;;  %v5169_v0 = vmul.f32 %v9949_v31, %v9880_v17  ;;  %v5168_v15 = vmul.f32 %v9949_v31, %v9886_v8  ;;  %v5167_v17 = vmul.f32 %v9949_v31, %v9892_v2 }
 0xa98   : > { %6761 = vrcp.f32 %v5295_v26  ;;  %v5294_v27 = vadd.f32 1e-06, %v5188_v41  ;;  %v5166_v8 = vmul.f32 %v9949_v31, %v9898_v24  ;;  %v5363_v24 = vld [vmem:[%s10123_s7 + $0x8] sm:$0xff]  ;;  %v5364_v31 = vld [vmem:[%s10123_s7 + $0x10] sm:$0xff] }
 0xa99   : > { %6328 = vmatpush3.xpose.msk.msra.mxu0 %vm441_vm0, %v5357_v12 }
 0xa9a   : > { %6329 = vmatprep.subr.msk.mxu0 %vm441_vm0, %v5356_v28  ;;  %v6752_v52 = vpop.eup %6751  ;;  %6763 = vrcp.f32 %v5294_v27 }
 0xa9b   : > { %v5323_v36 = vmul.f32 %v6752_v52, %v5172_v5 }
 0xa9c   : > { %v6754_v60 = vpop.eup %6753 }
 0xa9d   : > { %6330 = vmatpush3.xpose.msk.msra.mxu0 %vm441_vm0, %v5356_v28  ;;  %v5352_v38 = vadd.f32 %v9974_v22, %v5323_v36  ;;  %v5321_v50 = vmul.f32 %v6754_v60, %v5171_v33 }
 0xa9e   : > { %6331 = vmatprep.subr.msk.mxu0 %vm441_vm0, %v5355_v23  ;;  %v6756_v55 = vpop.eup %6755 }
 0xa9f   : > { %v5351_v56 = vadd.f32 %v9974_v22, %v5321_v50  ;;  %v5319_v63 = vmul.f32 %v6756_v55, %v5170_v13 }
 0xaa0   : > { %v6758_v39 = vpop.eup %6757 }
 0xaa1   : > { %6332 = vmatpush3.xpose.msk.msra.mxu0 %vm441_vm0, %v5355_v23  ;;  %v5350_v47 = vadd.f32 %v9974_v22, %v5319_v63  ;;  %v5317_v62 = vmul.f32 %v6758_v39, %v5169_v0 }
 0xaa2   : > { %6333 = vmatprep.subr.msk.mxu0 %vm441_vm0, %v5354_v48  ;;  %v6760_v14 = vpop.eup %6759 }
 0xaa3   : > { %v5349_v1 = vadd.f32 %v9974_v22, %v5317_v62  ;;  %v5315_v9 = vmul.f32 %v6760_v14, %v5168_v15 }
 0xaa5   : > { %6334 = vmatpush3.xpose.msk.msra.mxu0 %vm441_vm0, %v5354_v48  ;;  %v6762_v58 = vpop.eup %6761  ;;  %v5348_v12 = vadd.f32 %v9974_v22, %v5315_v9 }
 0xaa6   : > { %6335 = vmatprep.subr.msk.mxu0 %vm441_vm0, %v5353_v40  ;;  %v5313_v25 = vmul.f32 %v6762_v58, %v5167_v17 }
 0xaa7   : > { %v6764_v42 = vpop.eup %6763 }
 0xaa8   : > { %v5347_v29 = vadd.f32 %v9974_v22, %v5313_v25  ;;  %v5311_v3 = vmul.f32 %v6764_v42, %v5166_v8 }
 0xaa9   : > { %6336 = vmatpush3.xpose.msk.msra.mxu0 %vm441_vm0, %v5353_v40 }
 0xaaa   : > { %6337 = vmatprep.subr.msk.mxu0 %vm441_vm0, %v5352_v38  ;;  %v5346_v2 = vadd.f32 %v9974_v22, %v5311_v3  ;;  %v5365_v22 = vld [vmem:[%s10123_s7 + $0x18] sm:$0xff] }
 0xaad   : > { %6338 = vmatpush3.xpose.msk.msra.mxu0 %vm441_vm0, %v5352_v38 }
 0xaae   : > { %6339 = vmatprep.subr.msk.mxu0 %vm441_vm0, %v5351_v56 }
 0xab1   : > { %6340 = vmatpush3.xpose.msk.msra.mxu0 %vm441_vm0, %v5351_v56 }
 0xab2   : > { %6341 = vmatprep.subr.msk.mxu0 %vm441_vm0, %v5350_v47 }
 0xab5   : > { %6342 = vmatpush3.xpose.msk.msra.mxu0 %vm441_vm0, %v5350_v47 }
 0xab6   : > { %6343 = vmatprep.subr.msk.mxu0 %vm441_vm0, %v5349_v1 }
 0xab9   : > { %6344 = vmatpush3.xpose.msk.msra.mxu0 %vm441_vm0, %v5349_v1 }
 0xaba   : > { %6345 = vmatprep.subr.msk.mxu0 %vm441_vm0, %v5348_v12 }
 0xabd   : > { %6346 = vmatpush3.xpose.msk.msra.mxu0 %vm441_vm0, %v5348_v12 }
 0xabe   : > { %6347 = vmatprep.subr.msk.mxu0 %vm441_vm0, %v5347_v29 }
 0xac1   : > { %6348 = vmatpush3.xpose.msk.msra.mxu0 %vm441_vm0, %v5347_v29 }
 0xac2   : > { %6349 = vmatprep.subr.msk.mxu0 %vm441_vm0, %v5346_v2 }
 0xac5   : > { %6350 = vmatpush3.xpose.msk.msra.mxu0 %vm441_vm0, %v5346_v2 }
 0xac8   : > { %6352 = vmatmul.mubr.msk.f32.vlgmr.msra.gmra.mxu0 %vm441_vm0, %v5363_v24 }
 0xac9   : > { %6354 = vmatprep.mubr.msk.f32.mxu0 %vm441_vm0, %v5364_v31 }
 0xacc   : > { %6355 = vmatmul.mubr.msk.f32.gmra.mxu0 %vm441_vm0, %v5365_v22 }
 0xb88   : > { %v6353_v53 = vpop.f32.mrf.mxu0 }
 0xb89   : > { %5512 = vst [vmem:[%s342_s25 + $0x8] sm:$0xff] %v6353_v53 }
 0xb8a   : > { %v5492_v10 = vpop.f32.mrf.mxu0 }
 0xb8b   : > { %5511 = vst [vmem:[%s342_s25] sm:$0xff] %v5492_v10 }
 0xb8c   : > { %v6356_v44 = vpop.f32.mrf.mxu0 }
 0xb8d   : > { %5514 = vst [vmem:[%s342_s25 + $0x18] sm:$0xff] %v6356_v44 }
 0xb8e   : > { %v5502_v35 = vpop.f32.mrf.mxu0 }
 0xb8f   : > { %5513 = vst [vmem:[%s342_s25 + $0x10] sm:$0xff] %v5502_v35 }
 0xb90 PF: > { %s19_s27 = sadd.s32 1, %s6867_s27  }
 0xb91   : > { %p16_p3 = scmp.ge.s32.totalorder %s19_s27, 6  }
 0xb93   :  { %18 = sbr.rel (!%p16_p3) target bundleno = 1 (0x1), region = 90 }
 0xb98   :  { %5537 = vsyncpa [#allocation3], 1 }
 0xb99   :  { %5539 = vsyncpa [#allocation3 + $0x1], 1 }

</bundles_post_ra>
